<compile_context>
chip_gen: v7x
topology: tpu7x:2x2x1
jax: 0.10.0
libtpu: 0.0.40
codegen_flags: <defaults>
</compile_context>

<pallas_src>
import jax
import jax.numpy as jnp
from jax.experimental import pallas as pl
from jax.experimental.pallas import tpu as pltpu

HIST_INDEX = [-5, -10, -15, -20, -25, -30, -35, -40]
NUM_ROWS = len(HIST_INDEX)       # 8
FEAT = 1024                      # ResBlock / fc width (8 rows * D)
D = FEAT // NUM_ROWS             # 128 — per-timestep feature width
MAX_TB = 256                     # batch rows per grid step (good for 256-wide MXUs)


def _hist_encoder_kernel(
    # 8 gathered history-row tiles, each [TB, D] f32 (auto-pipelined)
    x0, x1, x2, x3, x4, x5, x6, x7,
    w1_ref,                    # [1024,1024] bf16, auto-DMA'd, VMEM-resident
    w2_hbm, w3_hbm, wf_hbm,    # [1024,1024] bf16 HBM refs (manual DMA)
    b_ref,                     # [4,1024] f32 biases (fc1, fc2, fc3, fc)
    o_ref,                     # [TB,1024] f32 output tile
    w2_v, w3_v, wf_v,          # VMEM scratch for manually fetched weights
    sem,                       # DMA semaphores, shape (3,)
):
    step0 = pl.program_id(0) == 0

    # Kick off w2/w3/wf fetches; they complete behind matmuls 1-3.
    @pl.when(step0)
    def _start_weight_fetch():
        pltpu.make_async_copy(w2_hbm, w2_v, sem.at[0]).start()
        pltpu.make_async_copy(w3_hbm, w3_v, sem.at[1]).start()
        pltpu.make_async_copy(wf_hbm, wf_v, sem.at[2]).start()

    # Fused gather: lay the 8 history rows side-by-side along the lane axis
    # (each piece is exactly one 128-lane block) and cast to bf16 for the MXU.
    x = jnp.concatenate(
        [r[...] for r in (x0, x1, x2, x3, x4, x5, x6, x7)], axis=-1
    ).astype(jnp.bfloat16)                                   # [TB, 1024]
    b = b_ref[...]                                           # [4, 1024]

    # ResBlock.fc1 + ReLU  (residual tap: identity = relu(fc1(x)))
    h1 = jnp.dot(x, w1_ref[...], preferred_element_type=jnp.float32) + b[0:1, :]
    h1 = jnp.maximum(h1, 0.0)

    @pl.when(step0)
    def _wait_w2():
        pltpu.make_async_copy(w2_hbm, w2_v, sem.at[0]).wait()

    # ResBlock.fc2 + ReLU
    h2 = jnp.dot(h1.astype(jnp.bfloat16), w2_v[...],
                 preferred_element_type=jnp.float32) + b[1:2, :]
    h2 = jnp.maximum(h2, 0.0)

    @pl.when(step0)
    def _wait_w3():
        pltpu.make_async_copy(w3_hbm, w3_v, sem.at[1]).wait()

    # ResBlock.fc3 + residual + ReLU
    h3 = jnp.dot(h2.astype(jnp.bfloat16), w3_v[...],
                 preferred_element_type=jnp.float32) + b[2:3, :]
    h3 = jnp.maximum(h3 + h1, 0.0)

    @pl.when(step0)
    def _wait_wf():
        pltpu.make_async_copy(wf_hbm, wf_v, sem.at[2]).wait()

    # HistEncoder.fc + ReLU
    out = jnp.dot(h3.astype(jnp.bfloat16), wf_v[...],
                  preferred_element_type=jnp.float32) + b[3:4, :]
    o_ref[...] = jnp.maximum(out, 0.0).astype(o_ref.dtype)


def hist_encoder_forward(hist_feature, params):
    """hist_feature: [B, T, D] float32 with T >= 40, D = 128. Returns [B, 1024] f32."""
    B, T, d = hist_feature.shape
    assert d == D and T >= 40, "HistEncoder expects D=128 and T >= 40"

    # Static history rows (negative torch indices resolved against T).
    rows = [i % T for i in HIST_INDEX]                       # e.g. T=40 -> [35,30,...,0]

    # Free, contiguous reshape: time-row r now lives in lane-block r of width D.
    flat = hist_feature.reshape(B, T * D)

    # Batch tile: multiple of 16 (bf16 sublane packing), capped at MAX_TB.
    TB = min(MAX_TB, max(16, ((B + 15) // 16) * 16))
    Bp = ((B + TB - 1) // TB) * TB
    if Bp != B:
        flat = jnp.pad(flat, ((0, Bp - B), (0, 0)))

    # bf16 weights (dominant HBM traffic); stacked f32 biases.
    w1 = params["w1"].astype(jnp.bfloat16)
    w2 = params["w2"].astype(jnp.bfloat16)
    w3 = params["w3"].astype(jnp.bfloat16)
    wf = params["wf"].astype(jnp.bfloat16)
    biases = jnp.concatenate(
        [params["b1"], params["b2"], params["b3"], params["bf"]], axis=0
    ).astype(jnp.float32)                                    # [4, 1024]

    grid = (Bp // TB,)
    x_specs = [pl.BlockSpec((TB, D), lambda i, r=r: (i, r)) for r in rows]
    w1_spec = pl.BlockSpec((FEAT, FEAT), lambda i: (0, 0))   # resident across steps
    hbm_spec = pl.BlockSpec(memory_space=pl.ANY)             # manual DMA in kernel
    b_spec = pl.BlockSpec((4, FEAT), lambda i: (0, 0))
    o_spec = pl.BlockSpec((TB, FEAT), lambda i: (i, 0))

    out = pl.pallas_call(
        _hist_encoder_kernel,
        out_shape=jax.ShapeDtypeStruct((Bp, FEAT), jnp.float32),
        grid=grid,
        in_specs=x_specs + [w1_spec, hbm_spec, hbm_spec, hbm_spec, b_spec],
        out_specs=o_spec,
        scratch_shapes=[
            pltpu.VMEM((FEAT, FEAT), jnp.bfloat16),          # w2
            pltpu.VMEM((FEAT, FEAT), jnp.bfloat16),          # w3
            pltpu.VMEM((FEAT, FEAT), jnp.bfloat16),          # wf
            pltpu.SemaphoreType.DMA((3,)),
        ],
        compiler_params=pltpu.CompilerParams(
            # Fetch-once weight DMA guard (program_id==0) needs a sequential grid.
            dimension_semantics=("arbitrary",),
            vmem_limit_bytes=40 << 20,   # ~14 MiB used; fits every generation
        ),
    )(*([flat] * NUM_ROWS), w1, w2, w3, wf, biases)

    return out[:B]


def init_params(key):
    """Deterministic synthetic parameters. Weights stored as [in, out]
    (kernel computes y = x @ W + b, matching PyTorch's x @ weight.T + bias)."""
    ks = jax.random.split(key, 8)
    scale = 1.0 / jnp.sqrt(jnp.float32(FEAT))

    def w(k):
        return jax.random.normal(k, (FEAT, FEAT), jnp.float32) * scale

    def b(k):
        return jax.random.normal(k, (1, FEAT), jnp.float32) * 0.01

    return {
        "w1": w(ks[0]), "b1": b(ks[1]),
        "w2": w(ks[2]), "b2": b(ks[3]),
        "w3": w(ks[4]), "b3": b(ks[5]),
        "wf": w(ks[6]), "bf": b(ks[7]),
    }


def _reference_forward(hist_feature, params):
    """Pure-JAX reference mirroring the PyTorch module, with the same bf16
    weight/activation cast + f32 accumulation as the kernel."""
    B, T, _ = hist_feature.shape
    idx = jnp.array([i % T for i in HIST_INDEX], dtype=jnp.int32)
    x = jnp.take(hist_feature, idx, axis=1).reshape(B, FEAT).astype(jnp.bfloat16)

    w1 = params["w1"].astype(jnp.bfloat16)
    w2 = params["w2"].astype(jnp.bfloat16)
    w3 = params["w3"].astype(jnp.bfloat16)
    wf = params["wf"].astype(jnp.bfloat16)

    h1 = jax.nn.relu(
        jnp.dot(x, w1, preferred_element_type=jnp.float32) + params["b1"])
    h2 = jax.nn.relu(
        jnp.dot(h1.astype(jnp.bfloat16), w2, preferred_element_type=jnp.float32)
        + params["b2"])
    h3 = jax.nn.relu(
        jnp.dot(h2.astype(jnp.bfloat16), w3, preferred_element_type=jnp.float32)
        + params["b3"] + h1)
    return jax.nn.relu(
        jnp.dot(h3.astype(jnp.bfloat16), wf, preferred_element_type=jnp.float32)
        + params["bf"])


if __name__ == "__main__":
    key = jax.random.PRNGKey(0)
    k_in, k_par = jax.random.split(key)

    B, T = 2, 40  # smallest T that makes index -40 valid
    hist_feature = jax.random.normal(k_in, (B, T, D), jnp.float32)
    params = init_params(k_par)

    out = jax.block_until_ready(hist_encoder_forward(hist_feature, params))

    ref = _reference_forward(hist_feature, params)
    assert out.shape == (B, FEAT)
    assert jnp.allclose(out, ref, atol=2e-2, rtol=2e-2), "mismatch vs reference"

    print("KERNEL_OK")
</pallas_src>

<mosaic_0001>
module attributes {stable_mosaic.version = 11 : i64} {
  func.func @_hist_encoder_kernel(%arg0: i32, %arg1: memref<16x128xf32, #tpu.memory_space<vmem>>, %arg2: memref<16x128xf32, #tpu.memory_space<vmem>>, %arg3: memref<16x128xf32, #tpu.memory_space<vmem>>, %arg4: memref<16x128xf32, #tpu.memory_space<vmem>>, %arg5: memref<16x128xf32, #tpu.memory_space<vmem>>, %arg6: memref<16x128xf32, #tpu.memory_space<vmem>>, %arg7: memref<16x128xf32, #tpu.memory_space<vmem>>, %arg8: memref<16x128xf32, #tpu.memory_space<vmem>>, %arg9: memref<1024x1024xbf16, #tpu.memory_space<vmem>>, %arg10: memref<1024x1024xbf16, #tpu.memory_space<any>>, %arg11: memref<1024x1024xbf16, #tpu.memory_space<any>>, %arg12: memref<1024x1024xbf16, #tpu.memory_space<any>>, %arg13: memref<4x1024xf32, #tpu.memory_space<vmem>>, %arg14: memref<16x1024xf32, #tpu.memory_space<vmem>>, %arg15: memref<1024x1024xbf16, #tpu.memory_space<vmem>>, %arg16: memref<1024x1024xbf16, #tpu.memory_space<vmem>>, %arg17: memref<1024x1024xbf16, #tpu.memory_space<vmem>>, %arg18: memref<3x!tpu.dma_semaphore, #tpu.memory_space<semaphore_mem>>) attributes {dimension_semantics = [#tpu.dimension_semantics<arbitrary>], iteration_bounds = array<i64: 1>, scalar_prefetch = 0 : i64, scratch_operands = 4 : i64, tpu.core_type = #tpu.core_type<tc>, window_params = [{transform_indices = @transform_0, window_bounds = array<i64: 16, 128>}, {transform_indices = @transform_1, window_bounds = array<i64: 16, 128>}, {transform_indices = @transform_2, window_bounds = array<i64: 16, 128>}, {transform_indices = @transform_3, window_bounds = array<i64: 16, 128>}, {transform_indices = @transform_4, window_bounds = array<i64: 16, 128>}, {transform_indices = @transform_5, window_bounds = array<i64: 16, 128>}, {transform_indices = @transform_6, window_bounds = array<i64: 16, 128>}, {transform_indices = @transform_7, window_bounds = array<i64: 16, 128>}, {pipeline_mode = #tpu.pipeline_mode<synchronous>, transform_indices = @transform_8, window_bounds = array<i64: 1024, 1024>}, {}, {}, {}, {pipeline_mode = #tpu.pipeline_mode<synchronous>, transform_indices = @transform_12, window_bounds = array<i64: 4, 1024>}, {transform_indices = @transform_13, window_bounds = array<i64: 16, 1024>}]} {
    %c0_i32 = arith.constant 0 : i32
    %0 = arith.cmpi eq, %arg0, %c0_i32 : i32
    %1 = arith.extui %0 : i1 to i32
    %c0_i32_0 = arith.constant 0 : i32
    %2 = arith.cmpi ne, %1, %c0_i32_0 : i32
    scf.if %2 {
      %c0_i32_38 = arith.constant 0 : i32
      %53 = tpu.memref_slice %arg18[%c0_i32_38] : memref<3x!tpu.dma_semaphore, #tpu.memory_space<semaphore_mem>> -> memref<1x!tpu.dma_semaphore, #tpu.memory_space<semaphore_mem>>
      %54 = tpu.memref_squeeze %53 : memref<1x!tpu.dma_semaphore, #tpu.memory_space<semaphore_mem>> -> memref<!tpu.dma_semaphore, #tpu.memory_space<semaphore_mem>>
      tpu.enqueue_dma source(%arg10 : memref<1024x1024xbf16, #tpu.memory_space<any>>) target(%arg15 : memref<1024x1024xbf16, #tpu.memory_space<vmem>>) target_semaphore(%54 : memref<!tpu.dma_semaphore, #tpu.memory_space<semaphore_mem>>)
      %c1_i32 = arith.constant 1 : i32
      %55 = tpu.memref_slice %arg18[%c1_i32] : memref<3x!tpu.dma_semaphore, #tpu.memory_space<semaphore_mem>> -> memref<1x!tpu.dma_semaphore, #tpu.memory_space<semaphore_mem>>
      %56 = tpu.memref_squeeze %55 : memref<1x!tpu.dma_semaphore, #tpu.memory_space<semaphore_mem>> -> memref<!tpu.dma_semaphore, #tpu.memory_space<semaphore_mem>>
      tpu.enqueue_dma source(%arg11 : memref<1024x1024xbf16, #tpu.memory_space<any>>) target(%arg16 : memref<1024x1024xbf16, #tpu.memory_space<vmem>>) target_semaphore(%56 : memref<!tpu.dma_semaphore, #tpu.memory_space<semaphore_mem>>)
      %c2_i32 = arith.constant 2 : i32
      %57 = tpu.memref_slice %arg18[%c2_i32] : memref<3x!tpu.dma_semaphore, #tpu.memory_space<semaphore_mem>> -> memref<1x!tpu.dma_semaphore, #tpu.memory_space<semaphore_mem>>
      %58 = tpu.memref_squeeze %57 : memref<1x!tpu.dma_semaphore, #tpu.memory_space<semaphore_mem>> -> memref<!tpu.dma_semaphore, #tpu.memory_space<semaphore_mem>>
      tpu.enqueue_dma source(%arg12 : memref<1024x1024xbf16, #tpu.memory_space<any>>) target(%arg17 : memref<1024x1024xbf16, #tpu.memory_space<vmem>>) target_semaphore(%58 : memref<!tpu.dma_semaphore, #tpu.memory_space<semaphore_mem>>)
    } else {
    }
    %c0 = arith.constant 0 : index
    %c0_1 = arith.constant 0 : index
    %3 = vector.load %arg1[%c0, %c0_1] : memref<16x128xf32, #tpu.memory_space<vmem>>, vector<16x128xf32>
    %c0_2 = arith.constant 0 : index
    %c0_3 = arith.constant 0 : index
    %4 = vector.load %arg2[%c0_2, %c0_3] : memref<16x128xf32, #tpu.memory_space<vmem>>, vector<16x128xf32>
    %c0_4 = arith.constant 0 : index
    %c0_5 = arith.constant 0 : index
    %5 = vector.load %arg3[%c0_4, %c0_5] : memref<16x128xf32, #tpu.memory_space<vmem>>, vector<16x128xf32>
    %c0_6 = arith.constant 0 : index
    %c0_7 = arith.constant 0 : index
    %6 = vector.load %arg4[%c0_6, %c0_7] : memref<16x128xf32, #tpu.memory_space<vmem>>, vector<16x128xf32>
    %c0_8 = arith.constant 0 : index
    %c0_9 = arith.constant 0 : index
    %7 = vector.load %arg5[%c0_8, %c0_9] : memref<16x128xf32, #tpu.memory_space<vmem>>, vector<16x128xf32>
    %c0_10 = arith.constant 0 : index
    %c0_11 = arith.constant 0 : index
    %8 = vector.load %arg6[%c0_10, %c0_11] : memref<16x128xf32, #tpu.memory_space<vmem>>, vector<16x128xf32>
    %c0_12 = arith.constant 0 : index
    %c0_13 = arith.constant 0 : index
    %9 = vector.load %arg7[%c0_12, %c0_13] : memref<16x128xf32, #tpu.memory_space<vmem>>, vector<16x128xf32>
    %c0_14 = arith.constant 0 : index
    %c0_15 = arith.constant 0 : index
    %10 = vector.load %arg8[%c0_14, %c0_15] : memref<16x128xf32, #tpu.memory_space<vmem>>, vector<16x128xf32>
    %11 = tpu.concatenate %3, %4, %5, %6, %7, %8, %9, %10 in 1 : vector<16x128xf32>, vector<16x128xf32>, vector<16x128xf32>, vector<16x128xf32>, vector<16x128xf32>, vector<16x128xf32>, vector<16x128xf32>, vector<16x128xf32> -> vector<16x1024xf32>
    %12 = arith.truncf %11 : vector<16x1024xf32> to vector<16x1024xbf16>
    %c0_16 = arith.constant 0 : index
    %c0_17 = arith.constant 0 : index
    %13 = vector.load %arg13[%c0_16, %c0_17] : memref<4x1024xf32, #tpu.memory_space<vmem>>, vector<4x1024xf32>
    %c0_18 = arith.constant 0 : index
    %c0_19 = arith.constant 0 : index
    %14 = vector.load %arg9[%c0_18, %c0_19] : memref<1024x1024xbf16, #tpu.memory_space<vmem>>, vector<1024x1024xbf16>
    %cst = arith.constant dense<0.000000e+00> : vector<16x1024xf32>
    %15 = tpu.matmul %12, %14, %cst {dimension_numbers = #tpu.dot_dimension_numbers<[1], [0], [0], [1], [0, 0, 1, 1], [], []>} : vector<16x1024xbf16>, vector<1024x1024xbf16>, vector<16x1024xf32> -> vector<16x1024xf32>
    %16 = vector.extract_strided_slice %13 {offsets = [0, 0], sizes = [1, 1024], strides = [1, 1]} : vector<4x1024xf32> to vector<1x1024xf32>
    %17 = vector.broadcast %16 : vector<1x1024xf32> to vector<16x1024xf32>
    %18 = arith.addf %15, %17 : vector<16x1024xf32>
    %cst_20 = arith.constant 0.000000e+00 : f32
    %19 = vector.broadcast %cst_20 : f32 to vector<16x1024xf32>
    %20 = arith.maximumf %18, %19 : vector<16x1024xf32>
    %21 = arith.extui %0 : i1 to i32
    %c0_i32_21 = arith.constant 0 : i32
    %22 = arith.cmpi ne, %21, %c0_i32_21 : i32
    scf.if %22 {
      %c0_i32_38 = arith.constant 0 : i32
      %53 = tpu.memref_slice %arg18[%c0_i32_38] : memref<3x!tpu.dma_semaphore, #tpu.memory_space<semaphore_mem>> -> memref<1x!tpu.dma_semaphore, #tpu.memory_space<semaphore_mem>>
      %54 = tpu.memref_squeeze %53 : memref<1x!tpu.dma_semaphore, #tpu.memory_space<semaphore_mem>> -> memref<!tpu.dma_semaphore, #tpu.memory_space<semaphore_mem>>
      tpu.wait_dma2 semaphore(%54 : memref<!tpu.dma_semaphore, #tpu.memory_space<semaphore_mem>>) src(%arg10 : memref<1024x1024xbf16, #tpu.memory_space<any>>) dst(%arg15 : memref<1024x1024xbf16, #tpu.memory_space<vmem>>)
    } else {
    }
    %23 = arith.truncf %20 : vector<16x1024xf32> to vector<16x1024xbf16>
    %c0_22 = arith.constant 0 : index
    %c0_23 = arith.constant 0 : index
    %24 = vector.load %arg15[%c0_22, %c0_23] : memref<1024x1024xbf16, #tpu.memory_space<vmem>>, vector<1024x1024xbf16>
    %cst_24 = arith.constant dense<0.000000e+00> : vector<16x1024xf32>
    %25 = tpu.matmul %23, %24, %cst_24 {dimension_numbers = #tpu.dot_dimension_numbers<[1], [0], [0], [1], [0, 0, 1, 1], [], []>} : vector<16x1024xbf16>, vector<1024x1024xbf16>, vector<16x1024xf32> -> vector<16x1024xf32>
    %26 = vector.extract_strided_slice %13 {offsets = [1, 0], sizes = [1, 1024], strides = [1, 1]} : vector<4x1024xf32> to vector<1x1024xf32>
    %27 = vector.broadcast %26 : vector<1x1024xf32> to vector<16x1024xf32>
    %28 = arith.addf %25, %27 : vector<16x1024xf32>
    %cst_25 = arith.constant 0.000000e+00 : f32
    %29 = vector.broadcast %cst_25 : f32 to vector<16x1024xf32>
    %30 = arith.maximumf %28, %29 : vector<16x1024xf32>
    %31 = arith.extui %0 : i1 to i32
    %c0_i32_26 = arith.constant 0 : i32
    %32 = arith.cmpi ne, %31, %c0_i32_26 : i32
    scf.if %32 {
      %c1_i32 = arith.constant 1 : i32
      %53 = tpu.memref_slice %arg18[%c1_i32] : memref<3x!tpu.dma_semaphore, #tpu.memory_space<semaphore_mem>> -> memref<1x!tpu.dma_semaphore, #tpu.memory_space<semaphore_mem>>
      %54 = tpu.memref_squeeze %53 : memref<1x!tpu.dma_semaphore, #tpu.memory_space<semaphore_mem>> -> memref<!tpu.dma_semaphore, #tpu.memory_space<semaphore_mem>>
      tpu.wait_dma2 semaphore(%54 : memref<!tpu.dma_semaphore, #tpu.memory_space<semaphore_mem>>) src(%arg11 : memref<1024x1024xbf16, #tpu.memory_space<any>>) dst(%arg16 : memref<1024x1024xbf16, #tpu.memory_space<vmem>>)
    } else {
    }
    %33 = arith.truncf %30 : vector<16x1024xf32> to vector<16x1024xbf16>
    %c0_27 = arith.constant 0 : index
    %c0_28 = arith.constant 0 : index
    %34 = vector.load %arg16[%c0_27, %c0_28] : memref<1024x1024xbf16, #tpu.memory_space<vmem>>, vector<1024x1024xbf16>
    %cst_29 = arith.constant dense<0.000000e+00> : vector<16x1024xf32>
    %35 = tpu.matmul %33, %34, %cst_29 {dimension_numbers = #tpu.dot_dimension_numbers<[1], [0], [0], [1], [0, 0, 1, 1], [], []>} : vector<16x1024xbf16>, vector<1024x1024xbf16>, vector<16x1024xf32> -> vector<16x1024xf32>
    %36 = vector.extract_strided_slice %13 {offsets = [2, 0], sizes = [1, 1024], strides = [1, 1]} : vector<4x1024xf32> to vector<1x1024xf32>
    %37 = vector.broadcast %36 : vector<1x1024xf32> to vector<16x1024xf32>
    %38 = arith.addf %35, %37 : vector<16x1024xf32>
    %39 = arith.addf %38, %20 : vector<16x1024xf32>
    %cst_30 = arith.constant 0.000000e+00 : f32
    %40 = vector.broadcast %cst_30 : f32 to vector<16x1024xf32>
    %41 = arith.maximumf %39, %40 : vector<16x1024xf32>
    %42 = arith.extui %0 : i1 to i32
    %c0_i32_31 = arith.constant 0 : i32
    %43 = arith.cmpi ne, %42, %c0_i32_31 : i32
    scf.if %43 {
      %c2_i32 = arith.constant 2 : i32
      %53 = tpu.memref_slice %arg18[%c2_i32] : memref<3x!tpu.dma_semaphore, #tpu.memory_space<semaphore_mem>> -> memref<1x!tpu.dma_semaphore, #tpu.memory_space<semaphore_mem>>
      %54 = tpu.memref_squeeze %53 : memref<1x!tpu.dma_semaphore, #tpu.memory_space<semaphore_mem>> -> memref<!tpu.dma_semaphore, #tpu.memory_space<semaphore_mem>>
      tpu.wait_dma2 semaphore(%54 : memref<!tpu.dma_semaphore, #tpu.memory_space<semaphore_mem>>) src(%arg12 : memref<1024x1024xbf16, #tpu.memory_space<any>>) dst(%arg17 : memref<1024x1024xbf16, #tpu.memory_space<vmem>>)
    } else {
    }
    %44 = arith.truncf %41 : vector<16x1024xf32> to vector<16x1024xbf16>
    %c0_32 = arith.constant 0 : index
    %c0_33 = arith.constant 0 : index
    %45 = vector.load %arg17[%c0_32, %c0_33] : memref<1024x1024xbf16, #tpu.memory_space<vmem>>, vector<1024x1024xbf16>
    %cst_34 = arith.constant dense<0.000000e+00> : vector<16x1024xf32>
    %46 = tpu.matmul %44, %45, %cst_34 {dimension_numbers = #tpu.dot_dimension_numbers<[1], [0], [0], [1], [0, 0, 1, 1], [], []>} : vector<16x1024xbf16>, vector<1024x1024xbf16>, vector<16x1024xf32> -> vector<16x1024xf32>
    %47 = vector.extract_strided_slice %13 {offsets = [3, 0], sizes = [1, 1024], strides = [1, 1]} : vector<4x1024xf32> to vector<1x1024xf32>
    %48 = vector.broadcast %47 : vector<1x1024xf32> to vector<16x1024xf32>
    %49 = arith.addf %46, %48 : vector<16x1024xf32>
    %cst_35 = arith.constant 0.000000e+00 : f32
    %50 = vector.broadcast %cst_35 : f32 to vector<16x1024xf32>
    %51 = arith.maximumf %49, %50 : vector<16x1024xf32>
    %c0_36 = arith.constant 0 : index
    %c0_37 = arith.constant 0 : index
    %52 = vector.load %arg14[%c0_36, %c0_37] : memref<16x1024xf32, #tpu.memory_space<vmem>>, vector<16x1024xf32>
    tpu.vector_store %arg14[%c0_36, %c0_37], %51 {strides = array<i32>} : memref<16x1024xf32, #tpu.memory_space<vmem>>, vector<16x1024xf32>,
    return
  }
  func.func @transform_0(%arg0: i32) -> (i32, i32) {
    %c35_i32 = arith.constant 35 : i32
    %c0_i32 = arith.constant 0 : i32
    return %arg0, %c35_i32 : i32, i32
  }
  func.func @transform_1(%arg0: i32) -> (i32, i32) {
    %c30_i32 = arith.constant 30 : i32
    %c0_i32 = arith.constant 0 : i32
    return %arg0, %c30_i32 : i32, i32
  }
  func.func @transform_2(%arg0: i32) -> (i32, i32) {
    %c25_i32 = arith.constant 25 : i32
    %c0_i32 = arith.constant 0 : i32
    return %arg0, %c25_i32 : i32, i32
  }
  func.func @transform_3(%arg0: i32) -> (i32, i32) {
    %c20_i32 = arith.constant 20 : i32
    %c0_i32 = arith.constant 0 : i32
    return %arg0, %c20_i32 : i32, i32
  }
  func.func @transform_4(%arg0: i32) -> (i32, i32) {
    %c15_i32 = arith.constant 15 : i32
    %c0_i32 = arith.constant 0 : i32
    return %arg0, %c15_i32 : i32, i32
  }
  func.func @transform_5(%arg0: i32) -> (i32, i32) {
    %c10_i32 = arith.constant 10 : i32
    %c0_i32 = arith.constant 0 : i32
    return %arg0, %c10_i32 : i32, i32
  }
  func.func @transform_6(%arg0: i32) -> (i32, i32) {
    %c5_i32 = arith.constant 5 : i32
    %c0_i32 = arith.constant 0 : i32
    return %arg0, %c5_i32 : i32, i32
  }
  func.func @transform_7(%arg0: i32) -> (i32, i32) {
    %c0_i32 = arith.constant 0 : i32
    %c0_i32_0 = arith.constant 0 : i32
    return %arg0, %c0_i32 : i32, i32
  }
  func.func @transform_8(%arg0: i32) -> (i32, i32) {
    %c0_i32 = arith.constant 0 : i32
    %c0_i32_0 = arith.constant 0 : i32
    %c0_i32_1 = arith.constant 0 : i32
    return %c0_i32, %c0_i32_0 : i32, i32
  }
  func.func @transform_12(%arg0: i32) -> (i32, i32) {
    %c0_i32 = arith.constant 0 : i32
    %c0_i32_0 = arith.constant 0 : i32
    %c0_i32_1 = arith.constant 0 : i32
    return %c0_i32, %c0_i32_0 : i32, i32
  }
  func.func @transform_13(%arg0: i32) -> (i32, i32) {
    %c0_i32 = arith.constant 0 : i32
    %c0_i32_0 = arith.constant 0 : i32
    return %arg0, %c0_i32 : i32, i32
  }
}

</mosaic_0001>

<bundles_post_ra>
// kernel: tpu_custom_call.1
= control target key start
LH: loop header
LB: loop body
LE: loop exit
PB: predicated region body
PF: predicated region fallthrough
CT: control target
= control target key end

     0   :  { %18 = vsyncpa [#allocation7], 0  ;;  %s10189_s0 = inlined_call_operand.hbm [shape: f32[16,5120], index: 0, kind: input, shape index: {}]   ;;  %s10190_s1 = inlined_call_operand.hbm [shape: f32[16,5120], index: 1, kind: input, shape index: {}]   ;;  %s10191_s2 = inlined_call_operand.hbm [shape: f32[16,5120], index: 2, kind: input, shape index: {}]   ;;  %s10192_s3 = inlined_call_operand.hbm [shape: f32[16,5120], index: 3, kind: input, shape index: {}]   ;;  %s10193_s4 = inlined_call_operand.hbm [shape: f32[16,5120], index: 4, kind: input, shape index: {}]   ;;  %s10194_s5 = inlined_call_operand.hbm [shape: f32[16,5120], index: 5, kind: input, shape index: {}]   ;;  %s10195_s6 = inlined_call_operand.hbm [shape: f32[16,5120], index: 6, kind: input, shape index: {}]   ;;  %s10196_s7 = inlined_call_operand.hbm [shape: f32[16,5120], index: 7, kind: input, shape index: {}]   ;;  %s10197_s8 = inlined_call_operand.hbm [shape: bf16[1024,1024], index: 8, kind: input, shape index: {}]   ;;  %s10198_s9 = inlined_call_operand.hbm [shape: bf16[1024,1024], index: 9, kind: input, shape index: {}]   ;;  %s10199_s10 = inlined_call_operand.hbm [shape: bf16[1024,1024], index: 10, kind: input, shape index: {}]   ;;  %s10200_s11 = inlined_call_operand.hbm [shape: bf16[1024,1024], index: 11, kind: input, shape index: {}]   ;;  %s10201_s12 = inlined_call_operand.hbm [shape: f32[4,1024], index: 12, kind: input, shape index: {}]   ;;  %s10202_s13 = inlined_call_operand.hbm [shape: f32[16,1024], index: 13, kind: output, shape index: {}]  }
   0x1   :  { %19 = vsyncpa [#allocation10], 0 }
   0x2   :  { %20 = vsyncpa [#allocation13], 0 }
   0x3   :  { %21 = vsyncpa [#allocation16], 0 }
   0x4   :  { %22 = vsyncpa [#allocation19], 0 }
   0x5   :  { %23 = vsyncpa [#allocation22], 0 }
   0x6   :  { %24 = vsyncpa [#allocation8], 0  ;;  %s9355_s27 = scalar_lea.hbm %s10190_s1, 3840  ;;  %s9360_s30 = scalar_lea.hbm %s10192_s3, 2560 }
   0x7   :  { %s9248_s14 = smov [#allocation9]   ;;  %s9249_s16 = smov [#allocation12]  }
   0x8   :  { %s44_s15 = sshll.u32 %s9248_s14, 4  ;;  %s70_s17 = sshll.u32 %s9249_s16, 4  ;;  %s45_s15 = int_to_ptr.vmem [resolvable:$true] %s44_s15  ;;  %s71_s17 = int_to_ptr.vmem [resolvable:$true] %s70_s17 }
   0x9   :  { %s8989_s20 = scalar_lea.hbm %s10190_s1, 4096  ;;  %s8967_s23 = scalar_lea.hbm %s10190_s1, 10240 }
   0xa   :  { %p8966_p0 = scmp.ne.s32.totalorder %s9355_s27, %s8989_s20  ;;  %p8968_p1 = scmp.lt.u32.totalorder %s9355_s27, %s10190_s1 }
   0xb   :  { %p8969_p2 = scmp.lt.u32.totalorder %s8967_s23, %s8989_s20  ;;  %p8971_p4 = scmp.lt.u32.totalorder %s8989_s20, %s9355_s27 }
   0xd   :  { %p8970_p3 = por %p8969_p2, %p8968_p1 }
   0xf   :  { %p8972_p5 = por %p8971_p4, %p8970_p3 }
  0x11   :  { %p8973_p6 = pnand %p8972_p5, %p8966_p0 }
  0x13   :  { %8976 = shalt.err (!%p8973_p6)
}
  0x14   :  { %s8977_s26 = scalar_lea.vmem %s45_s15, 256  ;;  %p8982_p8 = scmp.lt.s32.totalorder %s45_s15, %s45_s15 }
  0x15   :  { %p8978_p7 = scmp.ne.s32.totalorder %s45_s15, %s8977_s26  ;;  %p8983_p9 = scmp.lt.s32.totalorder %s8977_s26, %s8977_s26 }
  0x17   :  { %p8984_p10 = por %p8983_p9, %p8982_p8 }
  0x19   :  { %p8985_p11 = pnand %p8984_p10, %p8978_p7 }
  0x1b   :  { %8988 = shalt.err (!%p8985_p11)
}
  0x1c   :  { %s9250_s28 = smov 5120   ;;  %s9251_s29 = smov 128  }
  0x1d   :  { %s9252_s1 = smov 8   ;;  %s9381_s18 = scalar_lea.hbm %s10194_s5, 1280 }
  0x1e   :  { %50 = dma.hbm_to_vmem [thread:$0]  %s9355_s27, 256, %s45_s15, [#allocation10], %s9250_s28, %s9251_s29, %s9252_s1  }
  0x1f   :  { %s9014_s21 = scalar_lea.hbm %s10192_s3, 2816  ;;  %s8992_s24 = scalar_lea.hbm %s10192_s3, 10240 }
  0x20   :  { %p8991_p12 = scmp.ne.s32.totalorder %s9360_s30, %s9014_s21  ;;  %p8993_p13 = scmp.lt.u32.totalorder %s9360_s30, %s10192_s3 }
  0x21   :  { %p8994_p0 = scmp.lt.u32.totalorder %s8992_s24, %s9014_s21  ;;  %p8996_p2 = scmp.lt.u32.totalorder %s9014_s21, %s9360_s30 }
  0x23   :  { %p8995_p1 = por %p8994_p0, %p8993_p13 }
  0x25   :  { %p8997_p3 = por %p8996_p2, %p8995_p1 }
  0x27   :  { %p8998_p4 = pnand %p8997_p3, %p8991_p12 }
  0x29   :  { %9001 = shalt.err (!%p8998_p4)
}
  0x2a   :  { %s9002_s27 = scalar_lea.vmem %s71_s17, 256  ;;  %p9007_p6 = scmp.lt.s32.totalorder %s71_s17, %s71_s17 }
  0x2b   :  { %p9003_p5 = scmp.ne.s32.totalorder %s71_s17, %s9002_s27  ;;  %p9008_p7 = scmp.lt.s32.totalorder %s9002_s27, %s9002_s27 }
  0x2d   :  { %p9009_p8 = por %p9008_p7, %p9007_p6 }
  0x2f   :  { %p9010_p9 = pnand %p9009_p8, %p9003_p5 }
  0x31   :  { %9013 = shalt.err (!%p9010_p9)
}
  0x32   :  { %76 = dma.hbm_to_vmem [thread:$0]  %s9360_s30, 256, %s71_s17, [#allocation13], %s9250_s28, %s9251_s29, %s9252_s1  }
  0x33   :  { %s9253_s3 = smov [#allocation15]   ;;  %s9254_s14 = smov [#allocation18]  }
  0x34   :  { %s96_s15 = sshll.u32 %s9253_s3, 4  ;;  %s121_s16 = sshll.u32 %s9254_s14, 4  ;;  %s97_s15 = int_to_ptr.vmem [resolvable:$true] %s96_s15  ;;  %s9399_s16 = int_to_ptr.vmem [resolvable:$true] %s121_s16 }
  0x35   :  { %s9039_s21 = scalar_lea.hbm %s10194_s5, 1536  ;;  %s9017_s24 = scalar_lea.hbm %s10194_s5, 10240 }
  0x36   :  { %p9016_p10 = scmp.ne.s32.totalorder %s9381_s18, %s9039_s21  ;;  %p9018_p11 = scmp.lt.u32.totalorder %s9381_s18, %s10194_s5 }
  0x37   :  { %p9019_p12 = scmp.lt.u32.totalorder %s9017_s24, %s9039_s21  ;;  %p9021_p0 = scmp.lt.u32.totalorder %s9039_s21, %s9381_s18 }
  0x39   :  { %p9020_p13 = por %p9019_p12, %p9018_p11 }
  0x3b   :  { %p9022_p1 = por %p9021_p0, %p9020_p13 }
  0x3d   :  { %p9023_p2 = pnand %p9022_p1, %p9016_p10 }
  0x3f   :  { %9026 = shalt.err (!%p9023_p2)
}
  0x40   :  { %s9027_s30 = scalar_lea.vmem %s97_s15, 256  ;;  %p9032_p4 = scmp.lt.s32.totalorder %s97_s15, %s97_s15 }
  0x41   :  { %p9028_p3 = scmp.ne.s32.totalorder %s97_s15, %s9027_s30  ;;  %p9033_p5 = scmp.lt.s32.totalorder %s9027_s30, %s9027_s30 }
  0x43   :  { %p9034_p6 = por %p9033_p5, %p9032_p4 }
  0x45   :  { %p9035_p7 = pnand %p9034_p6, %p9028_p3 }
  0x47   :  { %9038 = shalt.err (!%p9035_p7)
}
  0x48   :  { %102 = dma.hbm_to_vmem [thread:$0]  %s9381_s18, 256, %s97_s15, [#allocation16], %s9250_s28, %s9251_s29, %s9252_s1  }
  0x49   :  { %s9040_s27 = scalar_lea.hbm %s10196_s7, 256  ;;  %s9042_s21 = scalar_lea.hbm %s10196_s7, 10240 }
  0x4a   :  { %p9041_p8 = scmp.ne.s32.totalorder %s10196_s7, %s9040_s27  ;;  %p9043_p9 = scmp.lt.u32.totalorder %s9042_s21, %s9040_s27 }
  0x4b   :  { %p9044_p10 = scmp.lt.u32.totalorder %s9040_s27, %s10196_s7 }
  0x4d   :  { %p9045_p11 = por %p9044_p10, %p9043_p9 }
  0x4f   :  { %p9046_p12 = pnand %p9045_p11, %p9041_p8 }
  0x51   :  { %9049 = shalt.err (!%p9046_p12)
}
  0x52   :  { %s9050_s18 = scalar_lea.vmem %s9399_s16, 256  ;;  %p9055_p0 = scmp.lt.s32.totalorder %s9399_s16, %s9399_s16 }
  0x53   :  { %p9051_p13 = scmp.ne.s32.totalorder %s9399_s16, %s9050_s18  ;;  %p9056_p1 = scmp.lt.s32.totalorder %s9050_s18, %s9050_s18 }
  0x55   :  { %p9057_p2 = por %p9056_p1, %p9055_p0 }
  0x57   :  { %p9058_p3 = pnand %p9057_p2, %p9051_p13 }
  0x59   :  { %9061 = shalt.err (!%p9058_p3)
}
  0x5a   :  { %127 = dma.hbm_to_vmem [thread:$0]  %s10196_s7, 256, %s9399_s16, [#allocation19], %s9250_s28, %s9251_s29, %s9252_s1  }
  0x5b   :  { %s30_s30 = scalar_lea.hbm %s10189_s0, 4480  ;;  %s9255_s17 = smov [#allocation6]  }
  0x5c   :  { %s31_s5 = sshll.u32 %s9255_s17, 4  ;;  %s9446_s14 = scalar_lea.hbm %s10191_s2, 3200  ;;  %s32_s5 = int_to_ptr.vmem [resolvable:$true] %s31_s5 }
  0x5d   :  { %s9086_s21 = scalar_lea.hbm %s10189_s0, 4736  ;;  %s9064_s7 = scalar_lea.hbm %s10189_s0, 10240 }
  0x5e   :  { %p9063_p4 = scmp.ne.s32.totalorder %s30_s30, %s9086_s21  ;;  %p9065_p5 = scmp.lt.u32.totalorder %s30_s30, %s10189_s0 }
  0x5f   :  { %p9066_p6 = scmp.lt.u32.totalorder %s9064_s7, %s9086_s21  ;;  %p9068_p8 = scmp.lt.u32.totalorder %s9086_s21, %s30_s30 }
  0x61   :  { %p9067_p7 = por %p9066_p6, %p9065_p5 }
  0x63   :  { %p9069_p9 = por %p9068_p8, %p9067_p7 }
  0x65   :  { %p9070_p10 = pnand %p9069_p9, %p9063_p4 }
  0x67   :  { %9073 = shalt.err (!%p9070_p10)
}
  0x68   :  { %s9074_s15 = scalar_lea.vmem %s32_s5, 256  ;;  %p9079_p12 = scmp.lt.s32.totalorder %s32_s5, %s32_s5 }
  0x69   :  { %p9075_p11 = scmp.ne.s32.totalorder %s32_s5, %s9074_s15  ;;  %p9080_p13 = scmp.lt.s32.totalorder %s9074_s15, %s9074_s15 }
  0x6b   :  { %p9081_p0 = por %p9080_p13, %p9079_p12 }
  0x6d   :  { %p9082_p1 = pnand %p9081_p0, %p9075_p11 }
  0x6f   :  { %9085 = shalt.err (!%p9082_p1)
}
  0x70   :  { %37 = dma.hbm_to_vmem [thread:$0]  %s30_s30, 256, %s32_s5, [#allocation7], %s9250_s28, %s9251_s29, %s9252_s1  }
  0x71   :  { %s9256_s0 = smov [#allocation11]   ;;  %s9463_s17 = scalar_lea.hbm %s10193_s4, 1920 }
  0x72   :  { %s57_s24 = sshll.u32 %s9256_s0, 4  ;;  %s9111_s19 = scalar_lea.hbm %s10191_s2, 3456  ;;  %s58_s24 = int_to_ptr.vmem [resolvable:$true] %s57_s24 }
  0x73   :  { %p9088_p2 = scmp.ne.s32.totalorder %s9446_s14, %s9111_s19  ;;  %s9089_s22 = scalar_lea.hbm %s10191_s2, 10240 }
  0x74   :  { %p9090_p3 = scmp.lt.u32.totalorder %s9446_s14, %s10191_s2  ;;  %p9091_p4 = scmp.lt.u32.totalorder %s9089_s22, %s9111_s19 }
  0x75   :  { %p9093_p6 = scmp.lt.u32.totalorder %s9111_s19, %s9446_s14 }
  0x76   :  { %p9092_p5 = por %p9091_p4, %p9090_p3 }
  0x78   :  { %p9094_p7 = por %p9093_p6, %p9092_p5 }
  0x7a   :  { %p9095_p8 = pnand %p9094_p7, %p9088_p2 }
  0x7c   :  { %9098 = shalt.err (!%p9095_p8)
}
  0x7d   :  { %s9099_s30 = scalar_lea.vmem %s58_s24, 256  ;;  %p9104_p10 = scmp.lt.s32.totalorder %s58_s24, %s58_s24 }
  0x7e   :  { %p9100_p9 = scmp.ne.s32.totalorder %s58_s24, %s9099_s30  ;;  %p9105_p11 = scmp.lt.s32.totalorder %s9099_s30, %s9099_s30 }
  0x80   :  { %p9106_p12 = por %p9105_p11, %p9104_p10 }
  0x82   :  { %p9107_p13 = pnand %p9106_p12, %p9100_p9 }
  0x84   :  { %9110 = shalt.err (!%p9107_p13)
}
  0x85   :  { %63 = dma.hbm_to_vmem [thread:$0]  %s9446_s14, 256, %s58_s24, [#allocation10], %s9250_s28, %s9251_s29, %s9252_s1  }
  0x86   :  { %s9257_s2 = smov [#allocation14]   ;;  %s9484_s15 = scalar_lea.hbm %s10195_s6, 640 }
  0x87   :  { %s83_s5 = sshll.u32 %s9257_s2, 4  ;;  %s9136_s26 = scalar_lea.hbm %s10193_s4, 2176  ;;  %s84_s5 = int_to_ptr.vmem [resolvable:$true] %s83_s5 }
  0x88   :  { %p9113_p0 = scmp.ne.s32.totalorder %s9463_s17, %s9136_s26  ;;  %s9114_s19 = scalar_lea.hbm %s10193_s4, 10240 }
  0x89   :  { %p9115_p1 = scmp.lt.u32.totalorder %s9463_s17, %s10193_s4  ;;  %p9116_p2 = scmp.lt.u32.totalorder %s9114_s19, %s9136_s26 }
  0x8a   :  { %p9118_p4 = scmp.lt.u32.totalorder %s9136_s26, %s9463_s17 }
  0x8b   :  { %p9117_p3 = por %p9116_p2, %p9115_p1 }
  0x8d   :  { %p9119_p5 = por %p9118_p4, %p9117_p3 }
  0x8f   :  { %p9120_p6 = pnand %p9119_p5, %p9113_p0 }
  0x91   :  { %9123 = shalt.err (!%p9120_p6)
}
  0x92   :  { %s9124_s14 = scalar_lea.vmem %s84_s5, 256  ;;  %p9129_p8 = scmp.lt.s32.totalorder %s84_s5, %s84_s5 }
  0x93   :  { %p9125_p7 = scmp.ne.s32.totalorder %s84_s5, %s9124_s14  ;;  %p9130_p9 = scmp.lt.s32.totalorder %s9124_s14, %s9124_s14 }
  0x95   :  { %p9131_p10 = por %p9130_p9, %p9129_p8 }
  0x97   :  { %p9132_p11 = pnand %p9131_p10, %p9125_p7 }
  0x99   :  { %9135 = shalt.err (!%p9132_p11)
}
  0x9a   :  { %89 = dma.hbm_to_vmem [thread:$0]  %s9463_s17, 256, %s84_s5, [#allocation13], %s9250_s28, %s9251_s29, %s9252_s1  }
  0x9b   :  { %s9258_s4 = smov [#allocation17]   ;;  %s9259_s22 = smov [#allocation20]  }
  0x9c   :  { %s109_s24 = sshll.u32 %s9258_s4, 4  ;;  %s133_s23 = sshll.u32 %s9259_s22, 4  ;;  %s110_s24 = int_to_ptr.vmem [resolvable:$true] %s109_s24  ;;  %s134_s23 = int_to_ptr.vmem [resolvable:$true] %s133_s23 }
  0x9d   :  { %s9161_s2 = scalar_lea.hbm %s10195_s6, 896  ;;  %s9139_s0 = scalar_lea.hbm %s10195_s6, 10240 }
  0x9e   :  { %p9138_p12 = scmp.ne.s32.totalorder %s9484_s15, %s9161_s2  ;;  %p9140_p13 = scmp.lt.u32.totalorder %s9484_s15, %s10195_s6 }
  0x9f   :  { %p9141_p0 = scmp.lt.u32.totalorder %s9139_s0, %s9161_s2  ;;  %p9143_p2 = scmp.lt.u32.totalorder %s9161_s2, %s9484_s15 }
  0xa1   :  { %p9142_p1 = por %p9141_p0, %p9140_p13 }
  0xa3   :  { %p9144_p3 = por %p9143_p2, %p9142_p1 }
  0xa5   :  { %p9145_p4 = pnand %p9144_p3, %p9138_p12 }
  0xa7   :  { %9148 = shalt.err (!%p9145_p4)
}
  0xa8   :  { %s9149_s17 = scalar_lea.vmem %s110_s24, 256  ;;  %p9154_p6 = scmp.lt.s32.totalorder %s110_s24, %s110_s24 }
  0xa9   :  { %p9150_p5 = scmp.ne.s32.totalorder %s110_s24, %s9149_s17  ;;  %p9155_p7 = scmp.lt.s32.totalorder %s9149_s17, %s9149_s17 }
  0xab   :  { %p9156_p8 = por %p9155_p7, %p9154_p6 }
  0xad   :  { %p9157_p9 = pnand %p9156_p8, %p9150_p5 }
  0xaf   :  { %9160 = shalt.err (!%p9157_p9)
}
  0xb0   :  { %115 = dma.hbm_to_vmem [thread:$0]  %s9484_s15, 256, %s110_s24, [#allocation16], %s9250_s28, %s9251_s29, %s9252_s1  }
  0xb1   :  { %s9162_s27 = scalar_lea.hbm %s10197_s8, 65536 }
  0xb2   :  { %p9163_p10 = scmp.ne.s32.totalorder %s10197_s8, %s9162_s27  ;;  %p9166_p11 = scmp.lt.u32.totalorder %s9162_s27, %s10197_s8 }
  0xb4   :  { %p9168_p12 = pnand %p9166_p11, %p9163_p10 }
  0xb6   :  { %9171 = shalt.err (!%p9168_p12)
}
  0xb7   :  { %s9172_s14 = scalar_lea.vmem %s134_s23, 65536  ;;  %p9177_p0 = scmp.lt.s32.totalorder %s134_s23, %s134_s23 }
  0xb8   :  { %p9173_p13 = scmp.ne.s32.totalorder %s134_s23, %s9172_s14  ;;  %p9178_p1 = scmp.lt.s32.totalorder %s9172_s14, %s9172_s14 }
  0xba   :  { %p9179_p2 = por %p9178_p1, %p9177_p0 }
  0xbc   :  { %p9180_p3 = pnand %p9179_p2, %p9173_p13 }
  0xbe   :  { %9183 = shalt.err (!%p9180_p3)
}
  0xbf   :  { %s9260_s28 = smov 512   ;;  %s9261_s29 = smov 32  }
  0xc0   :  { %139 = dma.hbm_to_vmem [thread:$0]  %s10197_s8, 65536, %s134_s23, [#allocation19], %s9260_s28, %s9260_s28, %s9261_s29  }
  0xc1   :  { %s9262_s4 = smov [#allocation21]   ;;  %s9184_s30 = scalar_lea.hbm %s10201_s12, 512 }
  0xc2   :  { %s146_s24 = sshll.u32 %s9262_s4, 4  ;;  %p9185_p4 = scmp.ne.s32.totalorder %s10201_s12, %s9184_s30  ;;  %s147_s24 = int_to_ptr.vmem [resolvable:$true] %s146_s24 }
  0xc3   :  { %p9188_p5 = scmp.lt.u32.totalorder %s9184_s30, %s10201_s12 }
  0xc5   :  { %p9190_p6 = pnand %p9188_p5, %p9185_p4 }
  0xc7   :  { %9193 = shalt.err (!%p9190_p6)
}
  0xc8   :  { %s9194_s25 = scalar_lea.vmem %s147_s24, 512  ;;  %p9199_p8 = scmp.lt.s32.totalorder %s147_s24, %s147_s24 }
  0xc9   :  { %p9195_p7 = scmp.ne.s32.totalorder %s147_s24, %s9194_s25  ;;  %p9200_p9 = scmp.lt.s32.totalorder %s9194_s25, %s9194_s25 }
  0xcb   :  { %p9201_p10 = por %p9200_p9, %p9199_p8 }
  0xcd   :  { %p9202_p11 = pnand %p9201_p10, %p9195_p7 }
  0xcf   :  { %9205 = shalt.err (!%p9202_p11)
}
  0xd0   :  { %149 = dma.hbm_to_vmem [thread:$0]  %s10201_s12, 512, %s147_s24, [#allocation22]  }
  0xd1   :  { %9228 = dma.done.wait [#allocation7], 256  }
  0xd2   :  { %9229 = vsyncadd [#allocation7], 4294967040 }
  0xd3   :  { %9230 = dma.done.wait [#allocation10], 512  }
  0xd4   :  { %9231 = vsyncadd [#allocation10], 4294966784 }
  0xd5   :  { %9232 = dma.done.wait [#allocation13], 512  }
  0xd6   :  { %9233 = vsyncadd [#allocation13], 4294966784 }
  0xd7   :  { %9234 = dma.done.wait [#allocation16], 512  }
  0xd8   :  { %9235 = vsyncadd [#allocation16], 4294966784 }
  0xd9   :  { %9236 = dma.done.wait [#allocation19], 65792  }
  0xda   :  { %9237 = vsyncadd [#allocation19], 4294901504 }
  0xdb   :  { %9238 = dma.done.wait [#allocation22], 512  }
  0xdc   :  { %9239 = vsyncadd [#allocation22], 4294966784 }
  0xdd   :  { %s188_s26 = sld [smem:[#allocation0]]   ;;  %s9263_s17 = smov [#allocation2]  }
  0xde   :  { %s196_s6 = sshll.u32 %s9263_s17, 4  ;;  %s9264_s5 = smov 1024   ;;  %s197_s6 = int_to_ptr.vmem [resolvable:$true] %s196_s6 }
  0xdf   :  { %200 = sst [smem:[#allocation25]] %s9264_s5  ;;  %s9265_s12 = smov 8  }
  0xe0   :  { %202 = sst [smem:[#allocation25 + $0x1]] %s9264_s5  ;;  %s9266_s27 = smov 64  }
  0xe1   :  { %204 = sst [smem:[#allocation25 + $0x2]] %s9265_s12  ;;  %s9267_s19 = smov 128  }
  0xe2   :  { %206 = sst [smem:[#allocation25 + $0x3]] %s9266_s27  ;;  %s9268_s21 = smov 2  }
  0xe3   :  { %s8154_s3 = sshll.u32 %s188_s26, 26  ;;  %208 = sst [smem:[#allocation25 + $0x4]] %s9267_s19 }
  0xe4   :  { %s9547_s20 = sadd.s32 134217728, %s8154_s3  ;;  %210 = sst [smem:[#allocation25 + $0x5]] %s9268_s21 }
  0xe5   :  { %s9269_s14 = smov 512   ;;  %214 = sst [smem:[#allocation25 + $0x7]] %s9266_s27 }
  0xe6   :  { %212 = sst [smem:[#allocation25 + $0x6]] %s9269_s14  ;;  %s9270_s28 = smov 4  }
  0xe7   :  { %216 = sst [smem:[#allocation25 + $0x8]] %s9270_s28  ;;  %s9271_s29 = smov [#allocation5]  }
  0xe8   :  { %s9272_s1 = smov [#allocation24]   ;;  %s9273_s24 = smov [#allocation3]  }
  0xe9   :  { %218 = dma.general %s10198_s9, 65536, %s197_s6, %s9271_s29, %s9272_s1, [#allocation25], %s9547_s20, 0  }
  0xea   :  { %235 = sst [smem:[#allocation27]] %s9264_s5  ;;  %s231_s22 = sshll.u32 %s9273_s24, 4  ;;  %s232_s22 = int_to_ptr.vmem [resolvable:$true] %s231_s22 }
  0xeb   :  { %237 = sst [smem:[#allocation27 + $0x1]] %s9264_s5  ;;  %s9274_s9 = smov [#allocation5 + $0x1]  }
  0xec   :  { %239 = sst [smem:[#allocation27 + $0x2]] %s9265_s12  ;;  %s9275_s7 = smov [#allocation26]  }
  0xed   :  { %241 = sst [smem:[#allocation27 + $0x3]] %s9266_s27  ;;  %s9276_s16 = smov [#allocation4]  }
  0xee   :  { %243 = sst [smem:[#allocation27 + $0x4]] %s9267_s19  ;;  %s266_s18 = sshll.u32 %s9276_s16, 4  ;;  %s267_s18 = int_to_ptr.vmem [resolvable:$true] %s266_s18 }
  0xef   :  { %245 = sst [smem:[#allocation27 + $0x5]] %s9268_s21  ;;  %s9278_s0 = smov [#allocation28]  }
  0xf0   :  { %247 = sst [smem:[#allocation27 + $0x6]] %s9269_s14 }
  0xf1   :  { %249 = sst [smem:[#allocation27 + $0x7]] %s9266_s27 }
  0xf2   :  { %251 = sst [smem:[#allocation27 + $0x8]] %s9270_s28 }
  0xf3   :  { %253 = dma.general %s10199_s10, 65536, %s232_s22, %s9274_s9, %s9275_s7, [#allocation27], %s9547_s20, 0  }
  0xf4   :  { %270 = sst [smem:[#allocation29]] %s9264_s5  ;;  %s9277_s10 = smov [#allocation5 + $0x2]  }
  0xf5   :  { %272 = sst [smem:[#allocation29 + $0x1]] %s9264_s5 }
  0xf6   :  { %274 = sst [smem:[#allocation29 + $0x2]] %s9265_s12 }
  0xf7   :  { %276 = sst [smem:[#allocation29 + $0x3]] %s9266_s27 }
  0xf8   :  { %278 = sst [smem:[#allocation29 + $0x4]] %s9267_s19 }
  0xf9   :  { %280 = sst [smem:[#allocation29 + $0x5]] %s9268_s21 }
  0xfa   :  { %282 = sst [smem:[#allocation29 + $0x6]] %s9269_s14 }
  0xfb   :  { %284 = sst [smem:[#allocation29 + $0x7]] %s9266_s27 }
  0xfc   :  { %286 = sst [smem:[#allocation29 + $0x8]] %s9270_s28 }
  0xfd   :  { %288 = dma.general %s10200_s11, 65536, %s267_s18, %s9277_s10, %s9278_s0, [#allocation29], %s9547_s20, 0  }
  0xfe   :  { %v317_v0 = vld [vmem:[#allocation20] sm:$0xff]  ;;  %v318_v2 = vld [vmem:[#allocation20 + $0x8] sm:$0xff]  ;;  %v291_v53 = vld [vmem:[#allocation9] sm:$0xff] }
  0xff   :  { %v321_v1 = vld [vmem:[#allocation20 + $0x20] sm:$0xff]  ;;  %v322_v4 = vld [vmem:[#allocation20 + $0x28] sm:$0xff]  ;;  %v292_v54 = vld [vmem:[#allocation9 + $0x8] sm:$0xff] }
 0x100   :  { %v8161_v3 = vcombine.high %v317_v0, %v321_v1  ;;  %v8160_v5 = vcombine.low %v317_v0, %v321_v1  ;;  %v325_v6 = vld [vmem:[#allocation20 + $0x40] sm:$0xff]  ;;  %v8163_v8 = vcombine.high %v318_v2, %v322_v4  ;;  %v8162_v9 = vcombine.low %v318_v2, %v322_v4  ;;  %v326_v11 = vld [vmem:[#allocation20 + $0x48] sm:$0xff] }
 0x101   :  { %v329_v7 = vld [vmem:[#allocation20 + $0x60] sm:$0xff]  ;;  %v330_v12 = vld [vmem:[#allocation20 + $0x68] sm:$0xff]  ;;  %v9583_v58 = vpack.c.bf16 %v292_v54, %v291_v53 }
 0x102   :  { %v8169_v10 = vcombine.high %v325_v6, %v329_v7  ;;  %v333_v13 = vld [vmem:[#allocation20 + $0x80] sm:$0xff]  ;;  %3465 = vmatprep.subr.bf16.mxu0 %v8161_v3  ;;  %v8171_v14 = vcombine.high %v326_v11, %v330_v12  ;;  %v334_v16 = vld [vmem:[#allocation20 + $0x88] sm:$0xff]  ;;  %3637 = vmatprep.subr.bf16.mxu1 %v8163_v8  ;;  %v8168_v18 = vcombine.low %v325_v6, %v329_v7 }
 0x103   :  { %v337_v15 = vld [vmem:[#allocation20 + $0xa0] sm:$0xff]  ;;  %v338_v17 = vld [vmem:[#allocation20 + $0xa8] sm:$0xff]  ;;  %3466 = vmatpush1.bf16.msra.mxu0 %v8160_v5  ;;  %3638 = vmatpush1.bf16.msra.mxu1 %v8162_v9  ;;  %v8170_v19 = vcombine.low %v326_v11, %v330_v12 }
 0x104   :  { %3467 = vmatprep.subr.bf16.mxu0 %v8169_v10  ;;  %v8177_v20 = vcombine.high %v333_v13, %v337_v15  ;;  %3639 = vmatprep.subr.bf16.mxu1 %v8171_v14  ;;  %v8179_v21 = vcombine.high %v334_v16, %v338_v17  ;;  %v341_v22 = vld [vmem:[#allocation20 + $0xc0] sm:$0xff]  ;;  %v342_v24 = vld [vmem:[#allocation20 + $0xc8] sm:$0xff]  ;;  %v8176_v26 = vcombine.low %v333_v13, %v337_v15 }
 0x105   :  { %v345_v23 = vld [vmem:[#allocation20 + $0xe0] sm:$0xff]  ;;  %v346_v25 = vld [vmem:[#allocation20 + $0xe8] sm:$0xff]  ;;  %v8178_v27 = vcombine.low %v334_v16, %v338_v17  ;;  %3497 = vmatprep.mubr.bf16.mxu0 %v9583_v58  ;;  %3669 = vmatprep.mubr.bf16.mxu1 %v9583_v58 }
 0x106   :  { %v8185_v28 = vcombine.high %v341_v22, %v345_v23  ;;  %v8187_v29 = vcombine.high %v342_v24, %v346_v25  ;;  %v349_v30 = vld [vmem:[#allocation20 + $0x100] sm:$0xff]  ;;  %v350_v32 = vld [vmem:[#allocation20 + $0x108] sm:$0xff]  ;;  %v8184_v34 = vcombine.low %v341_v22, %v345_v23  ;;  %v8186_v35 = vcombine.low %v342_v24, %v346_v25 }
 0x107   :  { %3468 = vmatpush1.bf16.msra.mxu0 %v8168_v18  ;;  %3640 = vmatpush1.bf16.msra.mxu1 %v8170_v19  ;;  %v353_v31 = vld [vmem:[#allocation20 + $0x120] sm:$0xff]  ;;  %v354_v33 = vld [vmem:[#allocation20 + $0x128] sm:$0xff] }
 0x108   :  { %3469 = vmatprep.subr.bf16.mxu0 %v8177_v20  ;;  %3641 = vmatprep.subr.bf16.mxu1 %v8179_v21  ;;  %v8193_v36 = vcombine.high %v349_v30, %v353_v31  ;;  %v8195_v37 = vcombine.high %v350_v32, %v354_v33  ;;  %v357_v38 = vld [vmem:[#allocation20 + $0x140] sm:$0xff]  ;;  %v358_v40 = vld [vmem:[#allocation20 + $0x148] sm:$0xff]  ;;  %v8192_v42 = vcombine.low %v349_v30, %v353_v31 }
 0x109   :  { %v361_v39 = vld [vmem:[#allocation20 + $0x160] sm:$0xff]  ;;  %v362_v41 = vld [vmem:[#allocation20 + $0x168] sm:$0xff]  ;;  %v8194_v43 = vcombine.low %v350_v32, %v354_v33 }
 0x10a   :  { %v8201_v44 = vcombine.high %v357_v38, %v361_v39  ;;  %v8203_v45 = vcombine.high %v358_v40, %v362_v41  ;;  %v365_v46 = vld [vmem:[#allocation20 + $0x180] sm:$0xff]  ;;  %v366_v48 = vld [vmem:[#allocation20 + $0x188] sm:$0xff]  ;;  %v8200_v50 = vcombine.low %v357_v38, %v361_v39  ;;  %v8202_v51 = vcombine.low %v358_v40, %v362_v41 }
 0x10b   :  { %3470 = vmatpush1.bf16.msra.mxu0 %v8176_v26  ;;  %3642 = vmatpush1.bf16.msra.mxu1 %v8178_v27  ;;  %v369_v47 = vld [vmem:[#allocation20 + $0x1a0] sm:$0xff]  ;;  %v370_v49 = vld [vmem:[#allocation20 + $0x1a8] sm:$0xff] }
 0x10c   :  { %3471 = vmatprep.subr.bf16.mxu0 %v8185_v28  ;;  %3643 = vmatprep.subr.bf16.mxu1 %v8187_v29  ;;  %v8209_v52 = vcombine.high %v365_v46, %v369_v47  ;;  %v8211_v55 = vcombine.high %v366_v48, %v370_v49  ;;  %v373_v56 = vld [vmem:[#allocation20 + $0x1c0] sm:$0xff]  ;;  %v374_v59 = vld [vmem:[#allocation20 + $0x1c8] sm:$0xff]  ;;  %v8208_v61 = vcombine.low %v365_v46, %v369_v47 }
 0x10d   :  { %v377_v57 = vld [vmem:[#allocation20 + $0x1e0] sm:$0xff]  ;;  %v378_v60 = vld [vmem:[#allocation20 + $0x1e8] sm:$0xff]  ;;  %v8210_v62 = vcombine.low %v366_v48, %v370_v49 }
 0x10e   :  { %v8217_v63 = vcombine.high %v373_v56, %v377_v57  ;;  %v8219_v0 = vcombine.high %v374_v59, %v378_v60  ;;  %v381_v1 = vld [vmem:[#allocation20 + $0x200] sm:$0xff]  ;;  %v382_v3 = vld [vmem:[#allocation20 + $0x208] sm:$0xff]  ;;  %v8216_v5 = vcombine.low %v373_v56, %v377_v57  ;;  %v8218_v6 = vcombine.low %v374_v59, %v378_v60 }
 0x10f   :  { %3472 = vmatpush1.bf16.msra.mxu0 %v8184_v34  ;;  %3644 = vmatpush1.bf16.msra.mxu1 %v8186_v35  ;;  %v385_v2 = vld [vmem:[#allocation20 + $0x220] sm:$0xff]  ;;  %v386_v4 = vld [vmem:[#allocation20 + $0x228] sm:$0xff] }
 0x110   :  { %3473 = vmatprep.subr.bf16.mxu0 %v8193_v36  ;;  %3645 = vmatprep.subr.bf16.mxu1 %v8195_v37  ;;  %v8225_v7 = vcombine.high %v381_v1, %v385_v2  ;;  %v8227_v8 = vcombine.high %v382_v3, %v386_v4  ;;  %v389_v9 = vld [vmem:[#allocation20 + $0x240] sm:$0xff]  ;;  %v390_v11 = vld [vmem:[#allocation20 + $0x248] sm:$0xff]  ;;  %v8224_v13 = vcombine.low %v381_v1, %v385_v2 }
 0x111   :  { %v393_v10 = vld [vmem:[#allocation20 + $0x260] sm:$0xff]  ;;  %v394_v12 = vld [vmem:[#allocation20 + $0x268] sm:$0xff]  ;;  %v8226_v14 = vcombine.low %v382_v3, %v386_v4 }
 0x112   :  { %v8233_v15 = vcombine.high %v389_v9, %v393_v10  ;;  %v8235_v16 = vcombine.high %v390_v11, %v394_v12  ;;  %v397_v17 = vld [vmem:[#allocation20 + $0x280] sm:$0xff]  ;;  %v398_v19 = vld [vmem:[#allocation20 + $0x288] sm:$0xff]  ;;  %v8232_v21 = vcombine.low %v389_v9, %v393_v10  ;;  %v8234_v22 = vcombine.low %v390_v11, %v394_v12 }
 0x113   :  { %3474 = vmatpush1.bf16.msra.mxu0 %v8192_v42  ;;  %3646 = vmatpush1.bf16.msra.mxu1 %v8194_v43  ;;  %v401_v18 = vld [vmem:[#allocation20 + $0x2a0] sm:$0xff]  ;;  %v402_v20 = vld [vmem:[#allocation20 + $0x2a8] sm:$0xff] }
 0x114   :  { %3475 = vmatprep.subr.bf16.mxu0 %v8201_v44  ;;  %3647 = vmatprep.subr.bf16.mxu1 %v8203_v45  ;;  %v8241_v23 = vcombine.high %v397_v17, %v401_v18  ;;  %v8243_v24 = vcombine.high %v398_v19, %v402_v20  ;;  %v405_v25 = vld [vmem:[#allocation20 + $0x2c0] sm:$0xff]  ;;  %v406_v27 = vld [vmem:[#allocation20 + $0x2c8] sm:$0xff]  ;;  %v8240_v29 = vcombine.low %v397_v17, %v401_v18  ;;  %v295_v17 = vld [vmem:[#allocation12] sm:$0xff] }
 0x115   :  { %v409_v26 = vld [vmem:[#allocation20 + $0x2e0] sm:$0xff]  ;;  %v410_v28 = vld [vmem:[#allocation20 + $0x2e8] sm:$0xff]  ;;  %v8242_v30 = vcombine.low %v398_v19, %v402_v20  ;;  %v296_v18 = vld [vmem:[#allocation12 + $0x8] sm:$0xff] }
 0x116   :  { %v8249_v31 = vcombine.high %v405_v25, %v409_v26  ;;  %v8251_v32 = vcombine.high %v406_v27, %v410_v28  ;;  %v413_v33 = vld [vmem:[#allocation20 + $0x300] sm:$0xff]  ;;  %v414_v35 = vld [vmem:[#allocation20 + $0x308] sm:$0xff]  ;;  %v8248_v37 = vcombine.low %v405_v25, %v409_v26  ;;  %v8250_v38 = vcombine.low %v406_v27, %v410_v28 }
 0x117   :  { %3476 = vmatpush1.bf16.msra.mxu0 %v8200_v50  ;;  %3648 = vmatpush1.bf16.msra.mxu1 %v8202_v51  ;;  %v417_v34 = vld [vmem:[#allocation20 + $0x320] sm:$0xff]  ;;  %v418_v36 = vld [vmem:[#allocation20 + $0x328] sm:$0xff]  ;;  %v9589_v25 = vpack.c.bf16 %v296_v18, %v295_v17 }
 0x118   :  { %3477 = vmatprep.subr.bf16.mxu0 %v8209_v52  ;;  %3649 = vmatprep.subr.bf16.mxu1 %v8211_v55  ;;  %v8257_v39 = vcombine.high %v413_v33, %v417_v34  ;;  %v8259_v40 = vcombine.high %v414_v35, %v418_v36  ;;  %v421_v41 = vld [vmem:[#allocation20 + $0x340] sm:$0xff]  ;;  %v422_v43 = vld [vmem:[#allocation20 + $0x348] sm:$0xff]  ;;  %v8256_v45 = vcombine.low %v413_v33, %v417_v34 }
 0x119   :  { %v425_v42 = vld [vmem:[#allocation20 + $0x360] sm:$0xff]  ;;  %v426_v44 = vld [vmem:[#allocation20 + $0x368] sm:$0xff]  ;;  %v8258_v46 = vcombine.low %v414_v35, %v418_v36 }
 0x11a   :  { %v8265_v47 = vcombine.high %v421_v41, %v425_v42  ;;  %v8267_v48 = vcombine.high %v422_v43, %v426_v44  ;;  %v429_v49 = vld [vmem:[#allocation20 + $0x380] sm:$0xff]  ;;  %v430_v51 = vld [vmem:[#allocation20 + $0x388] sm:$0xff]  ;;  %v8264_v53 = vcombine.low %v421_v41, %v425_v42  ;;  %v8266_v54 = vcombine.low %v422_v43, %v426_v44 }
 0x11b   :  { %3478 = vmatpush1.bf16.msra.mxu0 %v8208_v61  ;;  %3650 = vmatpush1.bf16.msra.mxu1 %v8210_v62  ;;  %v433_v50 = vld [vmem:[#allocation20 + $0x3a0] sm:$0xff]  ;;  %v434_v52 = vld [vmem:[#allocation20 + $0x3a8] sm:$0xff] }
 0x11c   :  { %3479 = vmatprep.subr.bf16.mxu0 %v8217_v63  ;;  %3651 = vmatprep.subr.bf16.mxu1 %v8219_v0  ;;  %v8273_v55 = vcombine.high %v429_v49, %v433_v50  ;;  %v8275_v56 = vcombine.high %v430_v51, %v434_v52  ;;  %v437_v57 = vld [vmem:[#allocation20 + $0x3c0] sm:$0xff]  ;;  %v438_v60 = vld [vmem:[#allocation20 + $0x3c8] sm:$0xff]  ;;  %v8272_v62 = vcombine.low %v429_v49, %v433_v50 }
 0x11d   :  { %v441_v59 = vld [vmem:[#allocation20 + $0x3e0] sm:$0xff]  ;;  %v442_v61 = vld [vmem:[#allocation20 + $0x3e8] sm:$0xff]  ;;  %v8274_v63 = vcombine.low %v430_v51, %v434_v52 }
 0x11e   :  { %v8281_v0 = vcombine.high %v437_v57, %v441_v59  ;;  %v8283_v1 = vcombine.high %v438_v60, %v442_v61  ;;  %v445_v2 = vld [vmem:[#allocation20 + $0x400] sm:$0xff]  ;;  %v446_v4 = vld [vmem:[#allocation20 + $0x408] sm:$0xff]  ;;  %v8282_v9 = vcombine.low %v438_v60, %v442_v61 }
 0x11f   :  { %3480 = vmatpush1.bf16.msra.mxu0 %v8216_v5  ;;  %3652 = vmatpush1.bf16.msra.mxu1 %v8218_v6  ;;  %v449_v3 = vld [vmem:[#allocation20 + $0x420] sm:$0xff]  ;;  %v450_v5 = vld [vmem:[#allocation20 + $0x428] sm:$0xff]  ;;  %v8280_v6 = vcombine.low %v437_v57, %v441_v59 }
 0x120   :  { %3481 = vmatprep.subr.bf16.mxu0 %v8225_v7  ;;  %3653 = vmatprep.subr.bf16.mxu1 %v8227_v8  ;;  %v289_v7 = vld [vmem:[#allocation6] sm:$0xff]  ;;  %v290_v8 = vld [vmem:[#allocation6 + $0x8] sm:$0xff]  ;;  %v8289_v10 = vcombine.high %v445_v2, %v449_v3  ;;  %v8291_v11 = vcombine.high %v446_v4, %v450_v5  ;;  %v8288_v19 = vcombine.low %v445_v2, %v449_v3 }
 0x121   :  { %v453_v12 = vld [vmem:[#allocation20 + $0x440] sm:$0xff]  ;;  %v8290_v20 = vcombine.low %v446_v4, %v450_v5  ;;  %v462_v26 = vld [vmem:[#allocation20 + $0x488] sm:$0xff] }
 0x122   :  { %v466_v27 = vld [vmem:[#allocation20 + $0x4a8] sm:$0xff]  ;;  %v473_v33 = vld [vmem:[#allocation20 + $0x4e0] sm:$0xff] }
 0x123   :  { %3482 = vmatpush1.bf16.msra.mxu0 %v8224_v13  ;;  %3654 = vmatpush1.bf16.msra.mxu1 %v8226_v14  ;;  %v457_v13 = vld [vmem:[#allocation20 + $0x460] sm:$0xff]  ;;  %v454_v14 = vld [vmem:[#allocation20 + $0x448] sm:$0xff] }
 0x124   :  { %3483 = vmatprep.subr.bf16.mxu0 %v8233_v15  ;;  %3655 = vmatprep.subr.bf16.mxu1 %v8235_v16  ;;  %v9587_v15 = vpack.c.bf16 %v290_v8, %v289_v7  ;;  %v458_v16 = vld [vmem:[#allocation20 + $0x468] sm:$0xff]  ;;  %v8296_v28 = vcombine.low %v453_v12, %v457_v13  ;;  %v481_v41 = vld [vmem:[#allocation20 + $0x520] sm:$0xff] }
 0x125   :  { %v470_v34 = vld [vmem:[#allocation20 + $0x4c8] sm:$0xff]  ;;  %v489_v49 = vld [vmem:[#allocation20 + $0x560] sm:$0xff] }
 0x126   :  { %v474_v35 = vld [vmem:[#allocation20 + $0x4e8] sm:$0xff]  ;;  %v497_v57 = vld [vmem:[#allocation20 + $0x5a0] sm:$0xff] }
 0x127   :  { %3484 = vmatpush1.bf16.msra.mxu0 %v8232_v21  ;;  %3656 = vmatpush1.bf16.msra.mxu1 %v8234_v22  ;;  %v8297_v21 = vcombine.high %v453_v12, %v457_v13  ;;  %v8299_v22 = vcombine.high %v454_v14, %v458_v16  ;;  %v478_v42 = vld [vmem:[#allocation20 + $0x508] sm:$0xff]  ;;  %v505_v2 = vld [vmem:[#allocation20 + $0x5e0] sm:$0xff] }
 0x128   :  { %3485 = vmatprep.subr.bf16.mxu0 %v8241_v23  ;;  %3657 = vmatprep.subr.bf16.mxu1 %v8243_v24  ;;  %v461_v23 = vld [vmem:[#allocation20 + $0x480] sm:$0xff]  ;;  %v482_v43 = vld [vmem:[#allocation20 + $0x528] sm:$0xff] }
 0x129   :  { %v465_v24 = vld [vmem:[#allocation20 + $0x4a0] sm:$0xff]  ;;  %v486_v50 = vld [vmem:[#allocation20 + $0x548] sm:$0xff] }
 0x12a   :  { %v8304_v36 = vcombine.low %v461_v23, %v465_v24  ;;  %v490_v51 = vld [vmem:[#allocation20 + $0x568] sm:$0xff]  ;;  %v517_v18 = vld [vmem:[#allocation20 + $0x640] sm:$0xff] }
 0x12b   :  { %3486 = vmatpush1.bf16.msra.mxu0 %v8240_v29  ;;  %3658 = vmatpush1.bf16.msra.mxu1 %v8242_v30  ;;  %v8298_v29 = vcombine.low %v454_v14, %v458_v16  ;;  %v8305_v30 = vcombine.high %v461_v23, %v465_v24  ;;  %v494_v59 = vld [vmem:[#allocation20 + $0x588] sm:$0xff] }
 0x12c   :  { %3487 = vmatprep.subr.bf16.mxu0 %v8249_v31  ;;  %3659 = vmatprep.subr.bf16.mxu1 %v8251_v32  ;;  %v8307_v31 = vcombine.high %v462_v26, %v466_v27  ;;  %v469_v32 = vld [vmem:[#allocation20 + $0x4c0] sm:$0xff]  ;;  %v498_v60 = vld [vmem:[#allocation20 + $0x5a8] sm:$0xff] }
 0x12d   :  { %v8312_v44 = vcombine.low %v469_v32, %v473_v33  ;;  %v502_v3 = vld [vmem:[#allocation20 + $0x5c8] sm:$0xff] }
 0x12e   :  { %v506_v4 = vld [vmem:[#allocation20 + $0x5e8] sm:$0xff] }
 0x12f   :  { %3488 = vmatpush1.bf16.msra.mxu0 %v8248_v37  ;;  %3660 = vmatpush1.bf16.msra.mxu1 %v8250_v38  ;;  %v8306_v37 = vcombine.low %v462_v26, %v466_v27  ;;  %v8313_v38 = vcombine.high %v469_v32, %v473_v33  ;;  %v8347_v8 = vcombine.high %v502_v3, %v506_v4  ;;  %v514_v12 = vld [vmem:[#allocation20 + $0x628] sm:$0xff]  ;;  %v525_v27 = vld [vmem:[#allocation20 + $0x680] sm:$0xff] }
 0x130   :  { %3489 = vmatprep.subr.bf16.mxu0 %v8257_v39  ;;  %3661 = vmatprep.subr.bf16.mxu1 %v8259_v40  ;;  %v8315_v39 = vcombine.high %v470_v34, %v474_v35  ;;  %v477_v40 = vld [vmem:[#allocation20 + $0x500] sm:$0xff]  ;;  %v8346_v14 = vcombine.low %v502_v3, %v506_v4 }
 0x131   :  { %v8320_v52 = vcombine.low %v477_v40, %v481_v41  ;;  %v565_v4 = vld [vmem:[#allocation20 + $0x7c0] sm:$0xff] }
 0x133   :  { %3490 = vmatpush1.bf16.msra.mxu0 %v8256_v45  ;;  %3662 = vmatpush1.bf16.msra.mxu1 %v8258_v46  ;;  %v8314_v45 = vcombine.low %v470_v34, %v474_v35  ;;  %v8321_v46 = vcombine.high %v477_v40, %v481_v41  ;;  %v533_v35 = vld [vmem:[#allocation20 + $0x6c0] sm:$0xff] }
 0x134   :  { %3491 = vmatprep.subr.bf16.mxu0 %v8265_v47  ;;  %3663 = vmatprep.subr.bf16.mxu1 %v8267_v48  ;;  %v8323_v47 = vcombine.high %v478_v42, %v482_v43  ;;  %v485_v48 = vld [vmem:[#allocation20 + $0x540] sm:$0xff] }
 0x135   :  { %v8328_v61 = vcombine.low %v485_v48, %v489_v49 }
 0x137   :  { %3492 = vmatpush1.bf16.msra.mxu0 %v8264_v53  ;;  %3664 = vmatpush1.bf16.msra.mxu1 %v8266_v54  ;;  %v8322_v53 = vcombine.low %v478_v42, %v482_v43  ;;  %v8329_v54 = vcombine.high %v485_v48, %v489_v49  ;;  %v541_v43 = vld [vmem:[#allocation20 + $0x700] sm:$0xff] }
 0x138   :  { %3493 = vmatprep.subr.bf16.mxu0 %v8273_v55  ;;  %3665 = vmatprep.subr.bf16.mxu1 %v8275_v56  ;;  %v8331_v55 = vcombine.high %v486_v50, %v490_v51  ;;  %v493_v56 = vld [vmem:[#allocation20 + $0x580] sm:$0xff] }
 0x139   :  { %v8336_v5 = vcombine.low %v493_v56, %v497_v57 }
 0x13b   :  { %3494 = vmatpush1.bf16.msra.mxu0 %v8272_v62  ;;  %3666 = vmatpush1.bf16.msra.mxu1 %v8274_v63  ;;  %v8330_v62 = vcombine.low %v486_v50, %v490_v51  ;;  %v8337_v63 = vcombine.high %v493_v56, %v497_v57  ;;  %v549_v51 = vld [vmem:[#allocation20 + $0x740] sm:$0xff] }
 0x13c   :  { %3495 = vmatprep.subr.bf16.mxu0 %v8281_v0  ;;  %3667 = vmatprep.subr.bf16.mxu1 %v8283_v1  ;;  %v8339_v0 = vcombine.high %v494_v59, %v498_v60  ;;  %v501_v1 = vld [vmem:[#allocation20 + $0x5c0] sm:$0xff] }
 0x13d   :  { %v8345_v7 = vcombine.high %v501_v1, %v505_v2  ;;  %v8344_v13 = vcombine.low %v501_v1, %v505_v2 }
 0x13f   :  { %3496 = vmatpush1.bf16.msra.mxu0 %v8280_v6  ;;  %3668 = vmatpush1.bf16.msra.mxu1 %v8282_v9  ;;  %v8338_v6 = vcombine.low %v494_v59, %v498_v60  ;;  %v509_v9 = vld [vmem:[#allocation20 + $0x600] sm:$0xff] }
 0x140   :  { %3508 = vmatprep.subr.bf16.mxu0 %v8289_v10  ;;  %3680 = vmatprep.subr.bf16.mxu1 %v8291_v11  ;;  %v513_v10 = vld [vmem:[#allocation20 + $0x620] sm:$0xff]  ;;  %v510_v11 = vld [vmem:[#allocation20 + $0x608] sm:$0xff] }
 0x141   :  { %v8353_v16 = vcombine.high %v509_v9, %v513_v10  ;;  %v8355_v17 = vcombine.high %v510_v11, %v514_v12  ;;  %v8354_v23 = vcombine.low %v510_v11, %v514_v12  ;;  %v557_v60 = vld [vmem:[#allocation20 + $0x780] sm:$0xff] }
 0x142   :  { %3498 = vmatmul.mubr.bf16.vlgmr.msra.gmra.mrb[0].mxu0 %v9587_v15  ;;  %3670 = vmatmul.mubr.bf16.vlgmr.msra.gmra.mrb[0].mxu1 %v9587_v15  ;;  %v573_v12 = vld [vmem:[#allocation20 + $0x800] sm:$0xff] }
 0x143   :  { %3509 = vmatpush1.bf16.msra.mxu0 %v8288_v19  ;;  %3681 = vmatpush1.bf16.msra.mxu1 %v8290_v20  ;;  %v521_v19 = vld [vmem:[#allocation20 + $0x660] sm:$0xff]  ;;  %v518_v20 = vld [vmem:[#allocation20 + $0x648] sm:$0xff] }
 0x144   :  { %3510 = vmatprep.subr.bf16.mxu0 %v8297_v21  ;;  %3682 = vmatprep.subr.bf16.mxu1 %v8299_v22  ;;  %v522_v21 = vld [vmem:[#allocation20 + $0x668] sm:$0xff]  ;;  %v8352_v22 = vcombine.low %v509_v9, %v513_v10  ;;  %v8361_v24 = vcombine.high %v517_v18, %v521_v19 }
 0x145   :  { %3540 = vmatprep.mubr.bf16.mxu0 %v9589_v25  ;;  %3712 = vmatprep.mubr.bf16.mxu1 %v9589_v25  ;;  %v8363_v26 = vcombine.high %v518_v20, %v522_v21  ;;  %v8362_v32 = vcombine.low %v518_v20, %v522_v21 }
 0x147   :  { %3511 = vmatpush1.bf16.msra.mxu0 %v8296_v28  ;;  %3683 = vmatpush1.bf16.msra.mxu1 %v8298_v29  ;;  %v529_v28 = vld [vmem:[#allocation20 + $0x6a0] sm:$0xff]  ;;  %v526_v29 = vld [vmem:[#allocation20 + $0x688] sm:$0xff] }
 0x148   :  { %3512 = vmatprep.subr.bf16.mxu0 %v8305_v30  ;;  %3684 = vmatprep.subr.bf16.mxu1 %v8307_v31  ;;  %v530_v30 = vld [vmem:[#allocation20 + $0x6a8] sm:$0xff]  ;;  %v8360_v31 = vcombine.low %v517_v18, %v521_v19  ;;  %v8369_v33 = vcombine.high %v525_v27, %v529_v28  ;;  %v293_v18 = vld [vmem:[#allocation11] sm:$0xff] }
 0x149   :  { %v8371_v34 = vcombine.high %v526_v29, %v530_v30  ;;  %v8370_v40 = vcombine.low %v526_v29, %v530_v30  ;;  %v294_v19 = vld [vmem:[#allocation11 + $0x8] sm:$0xff]  ;;  %v299_v29 = vld [vmem:[#allocation15] sm:$0xff]  ;;  %v300_v30 = vld [vmem:[#allocation15 + $0x8] sm:$0xff] }
 0x14b   :  { %3513 = vmatpush1.bf16.msra.mxu0 %v8304_v36  ;;  %3685 = vmatpush1.bf16.msra.mxu1 %v8306_v37  ;;  %v537_v36 = vld [vmem:[#allocation20 + $0x6e0] sm:$0xff]  ;;  %v534_v37 = vld [vmem:[#allocation20 + $0x6c8] sm:$0xff] }
 0x14c   :  { %3514 = vmatprep.subr.bf16.mxu0 %v8313_v38  ;;  %3686 = vmatprep.subr.bf16.mxu1 %v8315_v39  ;;  %v538_v38 = vld [vmem:[#allocation20 + $0x6e8] sm:$0xff]  ;;  %v8368_v39 = vcombine.low %v525_v27, %v529_v28  ;;  %v8377_v41 = vcombine.high %v533_v35, %v537_v36  ;;  %v9595_v27 = vpack.c.bf16 %v294_v19, %v293_v18 }
 0x14d   :  { %v8379_v42 = vcombine.high %v534_v37, %v538_v38  ;;  %v8378_v48 = vcombine.low %v534_v37, %v538_v38  ;;  %v586_v28 = vld [vmem:[#allocation20 + $0x868] sm:$0xff]  ;;  %v9597_v37 = vpack.c.bf16 %v300_v30, %v299_v29 }
 0x14e   :  { %v590_v38 = vld [vmem:[#allocation20 + $0x888] sm:$0xff] }
 0x14f   :  { %3515 = vmatpush1.bf16.msra.mxu0 %v8312_v44  ;;  %3687 = vmatpush1.bf16.msra.mxu1 %v8314_v45  ;;  %v545_v44 = vld [vmem:[#allocation20 + $0x720] sm:$0xff]  ;;  %v542_v45 = vld [vmem:[#allocation20 + $0x708] sm:$0xff] }
 0x150   :  { %3516 = vmatprep.subr.bf16.mxu0 %v8321_v46  ;;  %3688 = vmatprep.subr.bf16.mxu1 %v8323_v47  ;;  %v546_v46 = vld [vmem:[#allocation20 + $0x728] sm:$0xff]  ;;  %v8376_v47 = vcombine.low %v533_v35, %v537_v36  ;;  %v8385_v49 = vcombine.high %v541_v43, %v545_v44  ;;  %v589_v35 = vld [vmem:[#allocation20 + $0x880] sm:$0xff] }
 0x151   :  { %v8387_v50 = vcombine.high %v542_v45, %v546_v46  ;;  %v8386_v56 = vcombine.low %v542_v45, %v546_v46  ;;  %v593_v36 = vld [vmem:[#allocation20 + $0x8a0] sm:$0xff]  ;;  %v598_v46 = vld [vmem:[#allocation20 + $0x8c8] sm:$0xff] }
 0x152   :  { %v601_v45 = vld [vmem:[#allocation20 + $0x8e0] sm:$0xff] }
 0x153   :  { %3517 = vmatpush1.bf16.msra.mxu0 %v8320_v52  ;;  %3689 = vmatpush1.bf16.msra.mxu1 %v8322_v53  ;;  %v553_v52 = vld [vmem:[#allocation20 + $0x760] sm:$0xff]  ;;  %v550_v53 = vld [vmem:[#allocation20 + $0x748] sm:$0xff] }
 0x154   :  { %3518 = vmatprep.subr.bf16.mxu0 %v8329_v54  ;;  %3690 = vmatprep.subr.bf16.mxu1 %v8331_v55  ;;  %v554_v54 = vld [vmem:[#allocation20 + $0x768] sm:$0xff]  ;;  %v8384_v55 = vcombine.low %v541_v43, %v545_v44  ;;  %v8393_v57 = vcombine.high %v549_v51, %v553_v52  ;;  %v597_v44 = vld [vmem:[#allocation20 + $0x8c0] sm:$0xff] }
 0x155   :  { %v8395_v59 = vcombine.high %v550_v53, %v554_v54  ;;  %v8394_v1 = vcombine.low %v550_v53, %v554_v54  ;;  %v609_v53 = vld [vmem:[#allocation20 + $0x920] sm:$0xff]  ;;  %v606_v54 = vld [vmem:[#allocation20 + $0x908] sm:$0xff] }
 0x157   :  { %3519 = vmatpush1.bf16.msra.mxu0 %v8328_v61  ;;  %3691 = vmatpush1.bf16.msra.mxu1 %v8330_v62  ;;  %v561_v61 = vld [vmem:[#allocation20 + $0x7a0] sm:$0xff]  ;;  %v558_v62 = vld [vmem:[#allocation20 + $0x788] sm:$0xff] }
 0x158   :  { %3520 = vmatprep.subr.bf16.mxu0 %v8337_v63  ;;  %3692 = vmatprep.subr.bf16.mxu1 %v8339_v0  ;;  %v562_v63 = vld [vmem:[#allocation20 + $0x7a8] sm:$0xff]  ;;  %v8392_v0 = vcombine.low %v549_v51, %v553_v52  ;;  %v8401_v2 = vcombine.high %v557_v60, %v561_v61  ;;  %v605_v52 = vld [vmem:[#allocation20 + $0x900] sm:$0xff] }
 0x159   :  { %v8403_v3 = vcombine.high %v558_v62, %v562_v63  ;;  %v8402_v9 = vcombine.low %v558_v62, %v562_v63  ;;  %v617_v62 = vld [vmem:[#allocation20 + $0x960] sm:$0xff]  ;;  %v614_v63 = vld [vmem:[#allocation20 + $0x948] sm:$0xff] }
 0x15b   :  { %3521 = vmatpush1.bf16.msra.mxu0 %v8336_v5  ;;  %3693 = vmatpush1.bf16.msra.mxu1 %v8338_v6  ;;  %v569_v5 = vld [vmem:[#allocation20 + $0x7e0] sm:$0xff]  ;;  %v566_v6 = vld [vmem:[#allocation20 + $0x7c8] sm:$0xff] }
 0x15c   :  { %3522 = vmatprep.subr.bf16.mxu0 %v8345_v7  ;;  %3694 = vmatprep.subr.bf16.mxu1 %v8347_v8  ;;  %v570_v7 = vld [vmem:[#allocation20 + $0x7e8] sm:$0xff]  ;;  %v8400_v8 = vcombine.low %v557_v60, %v561_v61  ;;  %v8409_v10 = vcombine.high %v565_v4, %v569_v5  ;;  %v613_v61 = vld [vmem:[#allocation20 + $0x940] sm:$0xff] }
 0x15d   :  { %v8411_v11 = vcombine.high %v566_v6, %v570_v7  ;;  %v8410_v20 = vcombine.low %v566_v6, %v570_v7  ;;  %v625_v6 = vld [vmem:[#allocation20 + $0x9a0] sm:$0xff]  ;;  %v622_v7 = vld [vmem:[#allocation20 + $0x988] sm:$0xff] }
 0x15f   :  { %3523 = vmatpush1.bf16.msra.mxu0 %v8344_v13  ;;  %3695 = vmatpush1.bf16.msra.mxu1 %v8346_v14  ;;  %v577_v13 = vld [vmem:[#allocation20 + $0x820] sm:$0xff]  ;;  %v574_v14 = vld [vmem:[#allocation20 + $0x808] sm:$0xff] }
 0x160   :  { %3524 = vmatprep.subr.bf16.mxu0 %v8353_v16  ;;  %3696 = vmatprep.subr.bf16.mxu1 %v8355_v17  ;;  %v578_v16 = vld [vmem:[#allocation20 + $0x828] sm:$0xff]  ;;  %v8408_v17 = vcombine.low %v565_v4, %v569_v5  ;;  %v8417_v21 = vcombine.high %v573_v12, %v577_v13  ;;  %v621_v5 = vld [vmem:[#allocation20 + $0x980] sm:$0xff] }
 0x161   :  { %v8464_v18 = vcombine.low %v621_v5, %v625_v6 }
 0x163   :  { %3525 = vmatpush1.bf16.msra.mxu0 %v8352_v22  ;;  %3697 = vmatpush1.bf16.msra.mxu1 %v8354_v23  ;;  %v8419_v22 = vcombine.high %v574_v14, %v578_v16  ;;  %v581_v23 = vld [vmem:[#allocation20 + $0x840] sm:$0xff] }
 0x164   :  { %3526 = vmatprep.subr.bf16.mxu0 %v8361_v24  ;;  %3698 = vmatprep.subr.bf16.mxu1 %v8363_v26  ;;  %v585_v24 = vld [vmem:[#allocation20 + $0x860] sm:$0xff]  ;;  %v582_v26 = vld [vmem:[#allocation20 + $0x848] sm:$0xff] }
 0x167   :  { %3527 = vmatpush1.bf16.msra.mxu0 %v8360_v31  ;;  %3699 = vmatpush1.bf16.msra.mxu1 %v8362_v32  ;;  %v8416_v31 = vcombine.low %v573_v12, %v577_v13  ;;  %v8418_v32 = vcombine.low %v574_v14, %v578_v16  ;;  %v629_v13 = vld [vmem:[#allocation20 + $0x9c0] sm:$0xff]  ;;  %v630_v16 = vld [vmem:[#allocation20 + $0x9c8] sm:$0xff] }
 0x168   :  { %3528 = vmatprep.subr.bf16.mxu0 %v8369_v33  ;;  %3700 = vmatprep.subr.bf16.mxu1 %v8371_v34  ;;  %v8425_v33 = vcombine.high %v581_v23, %v585_v24  ;;  %v8427_v34 = vcombine.high %v582_v26, %v586_v28  ;;  %v633_v14 = vld [vmem:[#allocation20 + $0x9e0] sm:$0xff] }
 0x16b   :  { %3529 = vmatpush1.bf16.msra.mxu0 %v8368_v39  ;;  %3701 = vmatpush1.bf16.msra.mxu1 %v8370_v40  ;;  %v594_v39 = vld [vmem:[#allocation20 + $0x8a8] sm:$0xff]  ;;  %v8424_v40 = vcombine.low %v581_v23, %v585_v24  ;;  %v641_v23 = vld [vmem:[#allocation20 + $0xa20] sm:$0xff] }
 0x16c   :  { %3530 = vmatprep.subr.bf16.mxu0 %v8377_v41  ;;  %3702 = vmatprep.subr.bf16.mxu1 %v8379_v42  ;;  %v8426_v41 = vcombine.low %v582_v26, %v586_v28  ;;  %v8433_v42 = vcombine.high %v589_v35, %v593_v36  ;;  %v8435_v43 = vcombine.high %v590_v38, %v594_v39  ;;  %v638_v24 = vld [vmem:[#allocation20 + $0xa08] sm:$0xff] }
 0x16d   :  { %v642_v26 = vld [vmem:[#allocation20 + $0xa28] sm:$0xff]  ;;  %v8472_v28 = vcombine.low %v629_v13, %v633_v14 }
 0x16f   :  { %3531 = vmatpush1.bf16.msra.mxu0 %v8376_v47  ;;  %3703 = vmatpush1.bf16.msra.mxu1 %v8378_v48  ;;  %v602_v47 = vld [vmem:[#allocation20 + $0x8e8] sm:$0xff]  ;;  %v8432_v48 = vcombine.low %v589_v35, %v593_v36 }
 0x170   :  { %3532 = vmatprep.subr.bf16.mxu0 %v8385_v49  ;;  %3704 = vmatprep.subr.bf16.mxu1 %v8387_v50  ;;  %v8434_v49 = vcombine.low %v590_v38, %v594_v39  ;;  %v8441_v50 = vcombine.high %v597_v44, %v601_v45  ;;  %v8443_v51 = vcombine.high %v598_v46, %v602_v47  ;;  %v650_v35 = vld [vmem:[#allocation20 + $0xa68] sm:$0xff] }
 0x171   :  { %v8482_v38 = vcombine.low %v638_v24, %v642_v26 }
 0x173   :  { %3533 = vmatpush1.bf16.msra.mxu0 %v8384_v55  ;;  %3705 = vmatpush1.bf16.msra.mxu1 %v8386_v56  ;;  %v610_v55 = vld [vmem:[#allocation20 + $0x928] sm:$0xff]  ;;  %v8440_v56 = vcombine.low %v597_v44, %v601_v45 }
 0x174   :  { %3534 = vmatprep.subr.bf16.mxu0 %v8393_v57  ;;  %3706 = vmatprep.subr.bf16.mxu1 %v8395_v59  ;;  %v8442_v57 = vcombine.low %v598_v46, %v602_v47  ;;  %v8449_v59 = vcombine.high %v605_v52, %v609_v53  ;;  %v8451_v60 = vcombine.high %v606_v54, %v610_v55  ;;  %v658_v44 = vld [vmem:[#allocation20 + $0xaa8] sm:$0xff] }
 0x177   :  { %3535 = vmatpush1.bf16.msra.mxu0 %v8392_v0  ;;  %3707 = vmatpush1.bf16.msra.mxu1 %v8394_v1  ;;  %v618_v0 = vld [vmem:[#allocation20 + $0x968] sm:$0xff]  ;;  %v8448_v1 = vcombine.low %v605_v52, %v609_v53 }
 0x178   :  { %3536 = vmatprep.subr.bf16.mxu0 %v8401_v2  ;;  %3708 = vmatprep.subr.bf16.mxu1 %v8403_v3  ;;  %v8450_v2 = vcombine.low %v606_v54, %v610_v55  ;;  %v8457_v3 = vcombine.high %v613_v61, %v617_v62  ;;  %v8459_v4 = vcombine.high %v614_v63, %v618_v0  ;;  %v666_v52 = vld [vmem:[#allocation20 + $0xae8] sm:$0xff] }
 0x17b   :  { %3537 = vmatpush1.bf16.msra.mxu0 %v8400_v8  ;;  %3709 = vmatpush1.bf16.msra.mxu1 %v8402_v9  ;;  %v626_v8 = vld [vmem:[#allocation20 + $0x9a8] sm:$0xff]  ;;  %v8456_v9 = vcombine.low %v613_v61, %v617_v62 }
 0x17c   :  { %3538 = vmatprep.subr.bf16.mxu0 %v8409_v10  ;;  %3710 = vmatprep.subr.bf16.mxu1 %v8411_v11  ;;  %v8458_v10 = vcombine.low %v614_v63, %v618_v0  ;;  %v8465_v11 = vcombine.high %v621_v5, %v625_v6  ;;  %v8467_v12 = vcombine.high %v622_v7, %v626_v8  ;;  %v674_v61 = vld [vmem:[#allocation20 + $0xb28] sm:$0xff] }
 0x17d   :  { %v8466_v19 = vcombine.low %v622_v7, %v626_v8  ;;  %v682_v5 = vld [vmem:[#allocation20 + $0xb68] sm:$0xff] }
 0x17f   :  { %3539 = vmatpush1.bf16.msra.mxu0 %v8408_v17  ;;  %3711 = vmatpush1.bf16.msra.mxu1 %v8410_v20  ;;  %v634_v17 = vld [vmem:[#allocation20 + $0x9e8] sm:$0xff]  ;;  %v8473_v20 = vcombine.high %v629_v13, %v633_v14 }
 0x180   :  { %3551 = vmatprep.subr.bf16.mxu0 %v8417_v21  ;;  %3723 = vmatprep.subr.bf16.mxu1 %v8419_v22  ;;  %v8475_v21 = vcombine.high %v630_v16, %v634_v17  ;;  %v637_v22 = vld [vmem:[#allocation20 + $0xa00] sm:$0xff]  ;;  %v8474_v29 = vcombine.low %v630_v16, %v634_v17  ;;  %v690_v13 = vld [vmem:[#allocation20 + $0xba8] sm:$0xff] }
 0x181   :  { %v8481_v30 = vcombine.high %v637_v22, %v641_v23  ;;  %v8480_v36 = vcombine.low %v637_v22, %v641_v23  ;;  %v698_v22 = vld [vmem:[#allocation20 + $0xbe8] sm:$0xff] }
 0x182   :  { %3541 = vmatmul.mubr.bf16.vlgmr.msra.gmra.mrb[0].mxu0 %v9595_v27  ;;  %3713 = vmatmul.mubr.bf16.vlgmr.msra.gmra.mrb[0].mxu1 %v9595_v27 }
 0x183   :  { %3552 = vmatpush1.bf16.msra.mxu0 %v8416_v31  ;;  %3724 = vmatpush1.bf16.msra.mxu1 %v8418_v32  ;;  %v8483_v31 = vcombine.high %v638_v24, %v642_v26  ;;  %v645_v32 = vld [vmem:[#allocation20 + $0xa40] sm:$0xff] }
 0x184   :  { %3553 = vmatprep.subr.bf16.mxu0 %v8425_v33  ;;  %3725 = vmatprep.subr.bf16.mxu1 %v8427_v34  ;;  %v649_v33 = vld [vmem:[#allocation20 + $0xa60] sm:$0xff]  ;;  %v646_v34 = vld [vmem:[#allocation20 + $0xa48] sm:$0xff] }
 0x185   :  { %3583 = vmatprep.mubr.bf16.mxu0 %v9597_v37  ;;  %3755 = vmatprep.mubr.bf16.mxu1 %v9597_v37  ;;  %v8489_v39 = vcombine.high %v645_v32, %v649_v33  ;;  %v8488_v45 = vcombine.low %v645_v32, %v649_v33  ;;  %v8490_v46 = vcombine.low %v646_v34, %v650_v35  ;;  %v706_v32 = vld [vmem:[#allocation20 + $0xc28] sm:$0xff] }
 0x187   :  { %3554 = vmatpush1.bf16.msra.mxu0 %v8424_v40  ;;  %3726 = vmatpush1.bf16.msra.mxu1 %v8426_v41  ;;  %v8491_v40 = vcombine.high %v646_v34, %v650_v35  ;;  %v653_v41 = vld [vmem:[#allocation20 + $0xa80] sm:$0xff]  ;;  %v298_v35 = vld [vmem:[#allocation14 + $0x8] sm:$0xff] }
 0x188   :  { %3555 = vmatprep.subr.bf16.mxu0 %v8433_v42  ;;  %3727 = vmatprep.subr.bf16.mxu1 %v8435_v43  ;;  %v657_v42 = vld [vmem:[#allocation20 + $0xaa0] sm:$0xff]  ;;  %v654_v43 = vld [vmem:[#allocation20 + $0xa88] sm:$0xff] }
 0x189   :  { %v8497_v47 = vcombine.high %v653_v41, %v657_v42  ;;  %v8496_v53 = vcombine.low %v653_v41, %v657_v42  ;;  %v8498_v54 = vcombine.low %v654_v43, %v658_v44  ;;  %v297_v34 = vld [vmem:[#allocation14] sm:$0xff]  ;;  %v710_v42 = vld [vmem:[#allocation20 + $0xc48] sm:$0xff] }
 0x18a   :  { %v713_v41 = vld [vmem:[#allocation20 + $0xc60] sm:$0xff] }
 0x18b   :  { %3556 = vmatpush1.bf16.msra.mxu0 %v8432_v48  ;;  %3728 = vmatpush1.bf16.msra.mxu1 %v8434_v49  ;;  %v8499_v48 = vcombine.high %v654_v43, %v658_v44  ;;  %v661_v49 = vld [vmem:[#allocation20 + $0xac0] sm:$0xff]  ;;  %v9603_v43 = vpack.c.bf16 %v298_v35, %v297_v34  ;;  %v714_v44 = vld [vmem:[#allocation20 + $0xc68] sm:$0xff] }
 0x18c   :  { %3557 = vmatprep.subr.bf16.mxu0 %v8441_v50  ;;  %3729 = vmatprep.subr.bf16.mxu1 %v8443_v51  ;;  %v665_v50 = vld [vmem:[#allocation20 + $0xae0] sm:$0xff]  ;;  %v662_v51 = vld [vmem:[#allocation20 + $0xac8] sm:$0xff] }
 0x18d   :  { %v8505_v55 = vcombine.high %v661_v49, %v665_v50  ;;  %v8504_v62 = vcombine.low %v661_v49, %v665_v50  ;;  %v8506_v63 = vcombine.low %v662_v51, %v666_v52  ;;  %v8555_v50 = vcombine.high %v710_v42, %v714_v44  ;;  %v758_v34 = vld [vmem:[#allocation20 + $0xdc8] sm:$0xff] }
 0x18e   :  { %v762_v35 = vld [vmem:[#allocation20 + $0xde8] sm:$0xff] }
 0x18f   :  { %3558 = vmatpush1.bf16.msra.mxu0 %v8440_v56  ;;  %3730 = vmatpush1.bf16.msra.mxu1 %v8442_v57  ;;  %v8507_v56 = vcombine.high %v662_v51, %v666_v52  ;;  %v669_v57 = vld [vmem:[#allocation20 + $0xb00] sm:$0xff] }
 0x190   :  { %3559 = vmatprep.subr.bf16.mxu0 %v8449_v59  ;;  %3731 = vmatprep.subr.bf16.mxu1 %v8451_v60  ;;  %v673_v59 = vld [vmem:[#allocation20 + $0xb20] sm:$0xff]  ;;  %v670_v60 = vld [vmem:[#allocation20 + $0xb08] sm:$0xff] }
 0x191   :  { %v8513_v0 = vcombine.high %v669_v57, %v673_v59  ;;  %v8512_v6 = vcombine.low %v669_v57, %v673_v59  ;;  %v8514_v7 = vcombine.low %v670_v60, %v674_v61  ;;  %v717_v51 = vld [vmem:[#allocation20 + $0xc80] sm:$0xff]  ;;  %v8554_v57 = vcombine.low %v710_v42, %v714_v44  ;;  %v766_v44 = vld [vmem:[#allocation20 + $0xe08] sm:$0xff] }
 0x192   :  { %v721_v52 = vld [vmem:[#allocation20 + $0xca0] sm:$0xff] }
 0x193   :  { %3560 = vmatpush1.bf16.msra.mxu0 %v8448_v1  ;;  %3732 = vmatpush1.bf16.msra.mxu1 %v8450_v2  ;;  %v8515_v1 = vcombine.high %v670_v60, %v674_v61  ;;  %v677_v2 = vld [vmem:[#allocation20 + $0xb40] sm:$0xff]  ;;  %v8561_v59 = vcombine.high %v717_v51, %v721_v52 }
 0x194   :  { %3561 = vmatprep.subr.bf16.mxu0 %v8457_v3  ;;  %3733 = vmatprep.subr.bf16.mxu1 %v8459_v4  ;;  %v681_v3 = vld [vmem:[#allocation20 + $0xb60] sm:$0xff]  ;;  %v678_v4 = vld [vmem:[#allocation20 + $0xb48] sm:$0xff] }
 0x195   :  { %v8521_v8 = vcombine.high %v677_v2, %v681_v3  ;;  %v8520_v14 = vcombine.low %v677_v2, %v681_v3  ;;  %v8522_v16 = vcombine.low %v678_v4, %v682_v5  ;;  %v725_v61 = vld [vmem:[#allocation20 + $0xcc0] sm:$0xff] }
 0x196   :  { %v769_v42 = vld [vmem:[#allocation20 + $0xe20] sm:$0xff] }
 0x197   :  { %3562 = vmatpush1.bf16.msra.mxu0 %v8456_v9  ;;  %3734 = vmatpush1.bf16.msra.mxu1 %v8458_v10  ;;  %v8523_v9 = vcombine.high %v678_v4, %v682_v5  ;;  %v685_v10 = vld [vmem:[#allocation20 + $0xb80] sm:$0xff] }
 0x198   :  { %3563 = vmatprep.subr.bf16.mxu0 %v8465_v11  ;;  %3735 = vmatprep.subr.bf16.mxu1 %v8467_v12  ;;  %v689_v11 = vld [vmem:[#allocation20 + $0xba0] sm:$0xff]  ;;  %v686_v12 = vld [vmem:[#allocation20 + $0xb88] sm:$0xff] }
 0x199   :  { %v8529_v17 = vcombine.high %v685_v10, %v689_v11  ;;  %v8528_v23 = vcombine.low %v685_v10, %v689_v11  ;;  %v8530_v24 = vcombine.low %v686_v12, %v690_v13  ;;  %v733_v5 = vld [vmem:[#allocation20 + $0xd00] sm:$0xff] }
 0x19b   :  { %3564 = vmatpush1.bf16.msra.mxu0 %v8464_v18  ;;  %3736 = vmatpush1.bf16.msra.mxu1 %v8466_v19  ;;  %v8531_v18 = vcombine.high %v686_v12, %v690_v13  ;;  %v693_v19 = vld [vmem:[#allocation20 + $0xbc0] sm:$0xff] }
 0x19c   :  { %3565 = vmatprep.subr.bf16.mxu0 %v8473_v20  ;;  %3737 = vmatprep.subr.bf16.mxu1 %v8475_v21  ;;  %v697_v20 = vld [vmem:[#allocation20 + $0xbe0] sm:$0xff]  ;;  %v694_v21 = vld [vmem:[#allocation20 + $0xbc8] sm:$0xff] }
 0x19d   :  { %v8537_v26 = vcombine.high %v693_v19, %v697_v20  ;;  %v8536_v33 = vcombine.low %v693_v19, %v697_v20  ;;  %v741_v13 = vld [vmem:[#allocation20 + $0xd40] sm:$0xff] }
 0x19f   :  { %3566 = vmatpush1.bf16.msra.mxu0 %v8472_v28  ;;  %3738 = vmatpush1.bf16.msra.mxu1 %v8474_v29  ;;  %v8539_v28 = vcombine.high %v694_v21, %v698_v22  ;;  %v701_v29 = vld [vmem:[#allocation20 + $0xc00] sm:$0xff] }
 0x1a0   :  { %3567 = vmatprep.subr.bf16.mxu0 %v8481_v30  ;;  %3739 = vmatprep.subr.bf16.mxu1 %v8483_v31  ;;  %v705_v30 = vld [vmem:[#allocation20 + $0xc20] sm:$0xff]  ;;  %v702_v31 = vld [vmem:[#allocation20 + $0xc08] sm:$0xff] }
 0x1a3   :  { %3568 = vmatpush1.bf16.msra.mxu0 %v8480_v36  ;;  %3740 = vmatpush1.bf16.msra.mxu1 %v8482_v38  ;;  %v8538_v36 = vcombine.low %v694_v21, %v698_v22  ;;  %v8545_v38 = vcombine.high %v701_v29, %v705_v30  ;;  %v749_v22 = vld [vmem:[#allocation20 + $0xd80] sm:$0xff] }
 0x1a4   :  { %3569 = vmatprep.subr.bf16.mxu0 %v8489_v39  ;;  %3741 = vmatprep.subr.bf16.mxu1 %v8491_v40  ;;  %v8547_v39 = vcombine.high %v702_v31, %v706_v32  ;;  %v709_v40 = vld [vmem:[#allocation20 + $0xc40] sm:$0xff] }
 0x1a5   :  { %v8553_v49 = vcombine.high %v709_v40, %v713_v41 }
 0x1a7   :  { %3570 = vmatpush1.bf16.msra.mxu0 %v8488_v45  ;;  %3742 = vmatpush1.bf16.msra.mxu1 %v8490_v46  ;;  %v303_v45 = vld [vmem:[#allocation18] sm:$0xff]  ;;  %v304_v46 = vld [vmem:[#allocation18 + $0x8] sm:$0xff] }
 0x1a8   :  { %3571 = vmatprep.subr.bf16.mxu0 %v8497_v47  ;;  %3743 = vmatprep.subr.bf16.mxu1 %v8499_v48  ;;  %v8544_v47 = vcombine.low %v701_v29, %v705_v30  ;;  %v8546_v48 = vcombine.low %v702_v31, %v706_v32  ;;  %v757_v32 = vld [vmem:[#allocation20 + $0xdc0] sm:$0xff] }
 0x1ab   :  { %3572 = vmatpush1.bf16.msra.mxu0 %v8496_v53  ;;  %3744 = vmatpush1.bf16.msra.mxu1 %v8498_v54  ;;  %v9605_v53 = vpack.c.bf16 %v304_v46, %v303_v45  ;;  %v718_v54 = vld [vmem:[#allocation20 + $0xc88] sm:$0xff] }
 0x1ac   :  { %3573 = vmatprep.subr.bf16.mxu0 %v8505_v55  ;;  %3745 = vmatprep.subr.bf16.mxu1 %v8507_v56  ;;  %v722_v55 = vld [vmem:[#allocation20 + $0xca8] sm:$0xff]  ;;  %v8552_v56 = vcombine.low %v709_v40, %v713_v41  ;;  %v8603_v40 = vcombine.high %v758_v34, %v762_v35  ;;  %v765_v41 = vld [vmem:[#allocation20 + $0xe00] sm:$0xff] }
 0x1ad   :  { %v8563_v60 = vcombine.high %v718_v54, %v722_v55  ;;  %v8562_v2 = vcombine.low %v718_v54, %v722_v55  ;;  %v770_v45 = vld [vmem:[#allocation20 + $0xe28] sm:$0xff]  ;;  %v8608_v55 = vcombine.low %v765_v41, %v769_v42 }
 0x1ae   :  { %v778_v54 = vld [vmem:[#allocation20 + $0xe68] sm:$0xff] }
 0x1af   :  { %3574 = vmatpush1.bf16.msra.mxu0 %v8504_v62  ;;  %3746 = vmatpush1.bf16.msra.mxu1 %v8506_v63  ;;  %v729_v62 = vld [vmem:[#allocation20 + $0xce0] sm:$0xff]  ;;  %v726_v63 = vld [vmem:[#allocation20 + $0xcc8] sm:$0xff] }
 0x1b0   :  { %3575 = vmatprep.subr.bf16.mxu0 %v8513_v0  ;;  %3747 = vmatprep.subr.bf16.mxu1 %v8515_v1  ;;  %v730_v0 = vld [vmem:[#allocation20 + $0xce8] sm:$0xff]  ;;  %v8560_v1 = vcombine.low %v717_v51, %v721_v52  ;;  %v8569_v3 = vcombine.high %v725_v61, %v729_v62  ;;  %v777_v51 = vld [vmem:[#allocation20 + $0xe60] sm:$0xff] }
 0x1b1   :  { %v8571_v4 = vcombine.high %v726_v63, %v730_v0  ;;  %v8570_v10 = vcombine.low %v726_v63, %v730_v0  ;;  %v774_v52 = vld [vmem:[#allocation20 + $0xe48] sm:$0xff] }
 0x1b2   :  { %v786_v63 = vld [vmem:[#allocation20 + $0xea8] sm:$0xff] }
 0x1b3   :  { %3576 = vmatpush1.bf16.msra.mxu0 %v8512_v6  ;;  %3748 = vmatpush1.bf16.msra.mxu1 %v8514_v7  ;;  %v737_v6 = vld [vmem:[#allocation20 + $0xd20] sm:$0xff]  ;;  %v734_v7 = vld [vmem:[#allocation20 + $0xd08] sm:$0xff] }
 0x1b4   :  { %3577 = vmatprep.subr.bf16.mxu0 %v8521_v8  ;;  %3749 = vmatprep.subr.bf16.mxu1 %v8523_v9  ;;  %v738_v8 = vld [vmem:[#allocation20 + $0xd28] sm:$0xff]  ;;  %v8568_v9 = vcombine.low %v725_v61, %v729_v62  ;;  %v8577_v11 = vcombine.high %v733_v5, %v737_v6  ;;  %v785_v61 = vld [vmem:[#allocation20 + $0xea0] sm:$0xff] }
 0x1b5   :  { %v8579_v12 = vcombine.high %v734_v7, %v738_v8  ;;  %v8578_v19 = vcombine.low %v734_v7, %v738_v8  ;;  %v782_v62 = vld [vmem:[#allocation20 + $0xe88] sm:$0xff] }
 0x1b6   :  { %v794_v7 = vld [vmem:[#allocation20 + $0xee8] sm:$0xff] }
 0x1b7   :  { %3578 = vmatpush1.bf16.msra.mxu0 %v8520_v14  ;;  %3750 = vmatpush1.bf16.msra.mxu1 %v8522_v16  ;;  %v745_v14 = vld [vmem:[#allocation20 + $0xd60] sm:$0xff]  ;;  %v742_v16 = vld [vmem:[#allocation20 + $0xd48] sm:$0xff] }
 0x1b8   :  { %3579 = vmatprep.subr.bf16.mxu0 %v8529_v17  ;;  %3751 = vmatprep.subr.bf16.mxu1 %v8531_v18  ;;  %v746_v17 = vld [vmem:[#allocation20 + $0xd68] sm:$0xff]  ;;  %v8576_v18 = vcombine.low %v733_v5, %v737_v6  ;;  %v8585_v20 = vcombine.high %v741_v13, %v745_v14  ;;  %v793_v5 = vld [vmem:[#allocation20 + $0xee0] sm:$0xff] }
 0x1b9   :  { %v8587_v21 = vcombine.high %v742_v16, %v746_v17  ;;  %v8586_v29 = vcombine.low %v742_v16, %v746_v17  ;;  %v790_v6 = vld [vmem:[#allocation20 + $0xec8] sm:$0xff] }
 0x1ba   :  { %v802_v16 = vld [vmem:[#allocation20 + $0xf28] sm:$0xff] }
 0x1bb   :  { %3580 = vmatpush1.bf16.msra.mxu0 %v8528_v23  ;;  %3752 = vmatpush1.bf16.msra.mxu1 %v8530_v24  ;;  %v753_v23 = vld [vmem:[#allocation20 + $0xda0] sm:$0xff]  ;;  %v750_v24 = vld [vmem:[#allocation20 + $0xd88] sm:$0xff] }
 0x1bc   :  { %3581 = vmatprep.subr.bf16.mxu0 %v8537_v26  ;;  %3753 = vmatprep.subr.bf16.mxu1 %v8539_v28  ;;  %v754_v26 = vld [vmem:[#allocation20 + $0xda8] sm:$0xff]  ;;  %v8584_v28 = vcombine.low %v741_v13, %v745_v14  ;;  %v8593_v30 = vcombine.high %v749_v22, %v753_v23  ;;  %v801_v13 = vld [vmem:[#allocation20 + $0xf20] sm:$0xff] }
 0x1bd   :  { %v8595_v31 = vcombine.high %v750_v24, %v754_v26  ;;  %v798_v14 = vld [vmem:[#allocation20 + $0xf08] sm:$0xff] }
 0x1bf   :  { %3582 = vmatpush1.bf16.msra.mxu0 %v8536_v33  ;;  %3754 = vmatpush1.bf16.msra.mxu1 %v8538_v36  ;;  %v761_v33 = vld [vmem:[#allocation20 + $0xde0] sm:$0xff]  ;;  %v8592_v36 = vcombine.low %v749_v22, %v753_v23  ;;  %v806_v23 = vld [vmem:[#allocation20 + $0xf48] sm:$0xff] }
 0x1c0   :  { %3594 = vmatprep.subr.bf16.mxu0 %v8545_v38  ;;  %3766 = vmatprep.subr.bf16.mxu1 %v8547_v39  ;;  %v8594_v38 = vcombine.low %v750_v24, %v754_v26  ;;  %v8601_v39 = vcombine.high %v757_v32, %v761_v33  ;;  %v8600_v46 = vcombine.low %v757_v32, %v761_v33  ;;  %v809_v22 = vld [vmem:[#allocation20 + $0xf60] sm:$0xff]  ;;  %v810_v24 = vld [vmem:[#allocation20 + $0xf68] sm:$0xff] }
 0x1c1   :  { %v817_v32 = vld [vmem:[#allocation20 + $0xfa0] sm:$0xff]  ;;  %v814_v33 = vld [vmem:[#allocation20 + $0xf88] sm:$0xff] }
 0x1c2   :  { %3584 = vmatmul.mubr.bf16.vlgmr.msra.gmra.mrb[0].mxu0 %v9603_v43  ;;  %3756 = vmatmul.mubr.bf16.vlgmr.msra.gmra.mrb[0].mxu1 %v9603_v43 }
 0x1c3   :  { %3595 = vmatpush1.bf16.msra.mxu0 %v8544_v47  ;;  %3767 = vmatpush1.bf16.msra.mxu1 %v8546_v48  ;;  %v8602_v47 = vcombine.low %v758_v34, %v762_v35  ;;  %v8609_v48 = vcombine.high %v765_v41, %v769_v42  ;;  %v818_v34 = vld [vmem:[#allocation20 + $0xfa8] sm:$0xff]  ;;  %v825_v41 = vld [vmem:[#allocation20 + $0xfe0] sm:$0xff] }
 0x1c4   :  { %3596 = vmatprep.subr.bf16.mxu0 %v8553_v49  ;;  %3768 = vmatprep.subr.bf16.mxu1 %v8555_v50  ;;  %v8611_v49 = vcombine.high %v766_v44, %v770_v45  ;;  %v773_v50 = vld [vmem:[#allocation20 + $0xe40] sm:$0xff]  ;;  %v822_v42 = vld [vmem:[#allocation20 + $0xfc8] sm:$0xff] }
 0x1c5   :  { %3626 = vmatprep.mubr.bf16.mxu0 %v9605_v53  ;;  %3798 = vmatprep.mubr.bf16.mxu1 %v9605_v53  ;;  %v8616_v0 = vcombine.low %v773_v50, %v777_v51 }
 0x1c7   :  { %3597 = vmatpush1.bf16.msra.mxu0 %v8552_v56  ;;  %3769 = vmatpush1.bf16.msra.mxu1 %v8554_v57  ;;  %v8610_v56 = vcombine.low %v766_v44, %v770_v45  ;;  %v8617_v57 = vcombine.high %v773_v50, %v777_v51  ;;  %v826_v44 = vld [vmem:[#allocation20 + $0xfe8] sm:$0xff]  ;;  %v323_v50 = vld [vmem:[#allocation20 + $0x30] sm:$0xff]  ;;  %v320_v51 = vld [vmem:[#allocation20 + $0x18] sm:$0xff] }
 0x1c8   :  { %3598 = vmatprep.subr.bf16.mxu0 %v8561_v59  ;;  %3770 = vmatprep.subr.bf16.mxu1 %v8563_v60  ;;  %v8619_v59 = vcombine.high %v774_v52, %v778_v54  ;;  %v781_v60 = vld [vmem:[#allocation20 + $0xe80] sm:$0xff] }
 0x1c9   :  { %v8624_v8 = vcombine.low %v781_v60, %v785_v61 }
 0x1cb   :  { %3599 = vmatpush1.bf16.msra.mxu0 %v8560_v1  ;;  %3771 = vmatpush1.bf16.msra.mxu1 %v8562_v2  ;;  %v8618_v1 = vcombine.low %v774_v52, %v778_v54  ;;  %v8625_v2 = vcombine.high %v781_v60, %v785_v61  ;;  %v324_v52 = vld [vmem:[#allocation20 + $0x38] sm:$0xff]  ;;  %v327_v61 = vld [vmem:[#allocation20 + $0x50] sm:$0xff] }
 0x1cc   :  { %3600 = vmatprep.subr.bf16.mxu0 %v8569_v3  ;;  %3772 = vmatprep.subr.bf16.mxu1 %v8571_v4  ;;  %v8627_v3 = vcombine.high %v782_v62, %v786_v63  ;;  %v789_v4 = vld [vmem:[#allocation20 + $0xec0] sm:$0xff]  ;;  %v8167_v60 = vcombine.high %v320_v51, %v324_v52 }
 0x1cd   :  { %v8632_v17 = vcombine.low %v789_v4, %v793_v5 }
 0x1cf   :  { %3601 = vmatpush1.bf16.msra.mxu0 %v8568_v9  ;;  %3773 = vmatpush1.bf16.msra.mxu1 %v8570_v10  ;;  %v8626_v9 = vcombine.low %v782_v62, %v786_v63  ;;  %v8633_v10 = vcombine.high %v789_v4, %v793_v5  ;;  %v331_v62 = vld [vmem:[#allocation20 + $0x70] sm:$0xff] }
 0x1d0   :  { %3602 = vmatprep.subr.bf16.mxu0 %v8577_v11  ;;  %3774 = vmatprep.subr.bf16.mxu1 %v8579_v12  ;;  %v8635_v11 = vcombine.high %v790_v6, %v794_v7  ;;  %v797_v12 = vld [vmem:[#allocation20 + $0xf00] sm:$0xff]  ;;  %v8173_v4 = vcombine.high %v327_v61, %v331_v62 }
 0x1d1   :  { %v8640_v26 = vcombine.low %v797_v12, %v801_v13 }
 0x1d3   :  { %3603 = vmatpush1.bf16.msra.mxu0 %v8576_v18  ;;  %3775 = vmatpush1.bf16.msra.mxu1 %v8578_v19  ;;  %v8634_v18 = vcombine.low %v790_v6, %v794_v7  ;;  %v8641_v19 = vcombine.high %v797_v12, %v801_v13  ;;  %v335_v6 = vld [vmem:[#allocation20 + $0x90] sm:$0xff] }
 0x1d4   :  { %3604 = vmatprep.subr.bf16.mxu0 %v8585_v20  ;;  %3776 = vmatprep.subr.bf16.mxu1 %v8587_v21  ;;  %v8643_v20 = vcombine.high %v798_v14, %v802_v16  ;;  %v805_v21 = vld [vmem:[#allocation20 + $0xf40] sm:$0xff]  ;;  %v339_v7 = vld [vmem:[#allocation20 + $0xb0] sm:$0xff] }
 0x1d5   :  { %v8648_v35 = vcombine.low %v805_v21, %v809_v22  ;;  %v8181_v12 = vcombine.high %v335_v6, %v339_v7 }
 0x1d7   :  { %3605 = vmatpush1.bf16.msra.mxu0 %v8584_v28  ;;  %3777 = vmatpush1.bf16.msra.mxu1 %v8586_v29  ;;  %v8642_v28 = vcombine.low %v798_v14, %v802_v16  ;;  %v8649_v29 = vcombine.high %v805_v21, %v809_v22  ;;  %v343_v14 = vld [vmem:[#allocation20 + $0xd0] sm:$0xff] }
 0x1d8   :  { %3606 = vmatprep.subr.bf16.mxu0 %v8593_v30  ;;  %3778 = vmatprep.subr.bf16.mxu1 %v8595_v31  ;;  %v8651_v30 = vcombine.high %v806_v23, %v810_v24  ;;  %v813_v31 = vld [vmem:[#allocation20 + $0xf80] sm:$0xff]  ;;  %v347_v16 = vld [vmem:[#allocation20 + $0xf0] sm:$0xff] }
 0x1d9   :  { %v8656_v45 = vcombine.low %v813_v31, %v817_v32  ;;  %v8189_v21 = vcombine.high %v343_v14, %v347_v16 }
 0x1db   :  { %3607 = vmatpush1.bf16.msra.mxu0 %v8592_v36  ;;  %3779 = vmatpush1.bf16.msra.mxu1 %v8594_v38  ;;  %v8650_v36 = vcombine.low %v806_v23, %v810_v24  ;;  %v8657_v38 = vcombine.high %v813_v31, %v817_v32  ;;  %v351_v23 = vld [vmem:[#allocation20 + $0x110] sm:$0xff] }
 0x1dc   :  { %3608 = vmatprep.subr.bf16.mxu0 %v8601_v39  ;;  %3780 = vmatprep.subr.bf16.mxu1 %v8603_v40  ;;  %v8659_v39 = vcombine.high %v814_v33, %v818_v34  ;;  %v821_v40 = vld [vmem:[#allocation20 + $0xfc0] sm:$0xff]  ;;  %v355_v24 = vld [vmem:[#allocation20 + $0x130] sm:$0xff] }
 0x1dd   :  { %v8664_v54 = vcombine.low %v821_v40, %v825_v41  ;;  %v8197_v31 = vcombine.high %v351_v23, %v355_v24  ;;  %v359_v32 = vld [vmem:[#allocation20 + $0x150] sm:$0xff] }
 0x1df   :  { %3609 = vmatpush1.bf16.msra.mxu0 %v8600_v46  ;;  %3781 = vmatpush1.bf16.msra.mxu1 %v8602_v47  ;;  %v8658_v46 = vcombine.low %v814_v33, %v818_v34  ;;  %v8665_v47 = vcombine.high %v821_v40, %v825_v41  ;;  %v363_v33 = vld [vmem:[#allocation20 + $0x170] sm:$0xff]  ;;  %v360_v34 = vld [vmem:[#allocation20 + $0x158] sm:$0xff] }
 0x1e0   :  { %3610 = vmatprep.subr.bf16.mxu0 %v8609_v48  ;;  %3782 = vmatprep.subr.bf16.mxu1 %v8611_v49  ;;  %v8667_v48 = vcombine.high %v822_v42, %v826_v44  ;;  %v319_v49 = vld [vmem:[#allocation20 + $0x10] sm:$0xff] }
 0x1e1   :  { %v367_v41 = vld [vmem:[#allocation20 + $0x190] sm:$0xff] }
 0x1e3   :  { %3611 = vmatpush1.bf16.msra.mxu0 %v8608_v55  ;;  %3783 = vmatpush1.bf16.msra.mxu1 %v8610_v56  ;;  %v301_v55 = vld [vmem:[#allocation17] sm:$0xff]  ;;  %v302_v56 = vld [vmem:[#allocation17 + $0x8] sm:$0xff] }
 0x1e4   :  { %3612 = vmatprep.subr.bf16.mxu0 %v8617_v57  ;;  %3784 = vmatprep.subr.bf16.mxu1 %v8619_v59  ;;  %v8666_v57 = vcombine.low %v822_v42, %v826_v44  ;;  %v8165_v59 = vcombine.high %v319_v49, %v323_v50  ;;  %v9611_v63 = vpack.c.bf16 %v302_v56, %v301_v55  ;;  %v371_v42 = vld [vmem:[#allocation20 + $0x1b0] sm:$0xff]  ;;  %v368_v44 = vld [vmem:[#allocation20 + $0x198] sm:$0xff] }
 0x1e5   :  { %v8212_v55 = vcombine.low %v367_v41, %v371_v42 }
 0x1e7   :  { %3613 = vmatpush1.bf16.msra.mxu0 %v8616_v0  ;;  %3785 = vmatpush1.bf16.msra.mxu1 %v8618_v1  ;;  %v328_v0 = vld [vmem:[#allocation20 + $0x58] sm:$0xff] }
 0x1e8   :  { %3614 = vmatprep.subr.bf16.mxu0 %v8625_v2  ;;  %3786 = vmatprep.subr.bf16.mxu1 %v8627_v3  ;;  %v332_v1 = vld [vmem:[#allocation20 + $0x78] sm:$0xff]  ;;  %v8164_v2 = vcombine.low %v319_v49, %v323_v50  ;;  %v8166_v3 = vcombine.low %v320_v51, %v324_v52  ;;  %v375_v50 = vld [vmem:[#allocation20 + $0x1d0] sm:$0xff] }
 0x1e9   :  { %v8175_v5 = vcombine.high %v328_v0, %v332_v1  ;;  %v379_v51 = vld [vmem:[#allocation20 + $0x1f0] sm:$0xff]  ;;  %v376_v52 = vld [vmem:[#allocation20 + $0x1d8] sm:$0xff] }
 0x1eb   :  { %3615 = vmatpush1.bf16.msra.mxu0 %v8624_v8  ;;  %3787 = vmatpush1.bf16.msra.mxu1 %v8626_v9  ;;  %v336_v8 = vld [vmem:[#allocation20 + $0x98] sm:$0xff] }
 0x1ec   :  { %3616 = vmatprep.subr.bf16.mxu0 %v8633_v10  ;;  %3788 = vmatprep.subr.bf16.mxu1 %v8635_v11  ;;  %v340_v9 = vld [vmem:[#allocation20 + $0xb8] sm:$0xff]  ;;  %v8172_v10 = vcombine.low %v327_v61, %v331_v62  ;;  %v8174_v11 = vcombine.low %v328_v0, %v332_v1  ;;  %v387_v61 = vld [vmem:[#allocation20 + $0x230] sm:$0xff]  ;;  %v8220_v1 = vcombine.low %v375_v50, %v379_v51 }
 0x1ed   :  { %v8183_v13 = vcombine.high %v336_v8, %v340_v9  ;;  %v384_v62 = vld [vmem:[#allocation20 + $0x218] sm:$0xff] }
 0x1ee   :  { %v388_v0 = vld [vmem:[#allocation20 + $0x238] sm:$0xff] }
 0x1ef   :  { %3617 = vmatpush1.bf16.msra.mxu0 %v8632_v17  ;;  %3789 = vmatpush1.bf16.msra.mxu1 %v8634_v18  ;;  %v344_v17 = vld [vmem:[#allocation20 + $0xd8] sm:$0xff] }
 0x1f0   :  { %3618 = vmatprep.subr.bf16.mxu0 %v8641_v19  ;;  %3790 = vmatprep.subr.bf16.mxu1 %v8643_v20  ;;  %v348_v18 = vld [vmem:[#allocation20 + $0xf8] sm:$0xff]  ;;  %v8180_v19 = vcombine.low %v335_v6, %v339_v7  ;;  %v8182_v20 = vcombine.low %v336_v8, %v340_v9  ;;  %v395_v6 = vld [vmem:[#allocation20 + $0x270] sm:$0xff] }
 0x1f1   :  { %v8191_v22 = vcombine.high %v344_v17, %v348_v18  ;;  %v392_v7 = vld [vmem:[#allocation20 + $0x258] sm:$0xff] }
 0x1f2   :  { %v396_v8 = vld [vmem:[#allocation20 + $0x278] sm:$0xff] }
 0x1f3   :  { %3619 = vmatpush1.bf16.msra.mxu0 %v8640_v26  ;;  %3791 = vmatpush1.bf16.msra.mxu1 %v8642_v28  ;;  %v352_v26 = vld [vmem:[#allocation20 + $0x118] sm:$0xff] }
 0x1f4   :  { %3620 = vmatprep.subr.bf16.mxu0 %v8649_v29  ;;  %3792 = vmatprep.subr.bf16.mxu1 %v8651_v30  ;;  %v356_v28 = vld [vmem:[#allocation20 + $0x138] sm:$0xff]  ;;  %v8188_v29 = vcombine.low %v343_v14, %v347_v16  ;;  %v8190_v30 = vcombine.low %v344_v17, %v348_v18  ;;  %v403_v14 = vld [vmem:[#allocation20 + $0x2b0] sm:$0xff] }
 0x1f5   :  { %v400_v16 = vld [vmem:[#allocation20 + $0x298] sm:$0xff] }
 0x1f6   :  { %v404_v17 = vld [vmem:[#allocation20 + $0x2b8] sm:$0xff] }
 0x1f7   :  { %3621 = vmatpush1.bf16.msra.mxu0 %v8648_v35  ;;  %3793 = vmatpush1.bf16.msra.mxu1 %v8650_v36  ;;  %v364_v35 = vld [vmem:[#allocation20 + $0x178] sm:$0xff]  ;;  %v8196_v36 = vcombine.low %v351_v23, %v355_v24  ;;  %v411_v23 = vld [vmem:[#allocation20 + $0x2f0] sm:$0xff] }
 0x1f8   :  { %3622 = vmatprep.subr.bf16.mxu0 %v8657_v38  ;;  %3794 = vmatprep.subr.bf16.mxu1 %v8659_v39  ;;  %v8198_v38 = vcombine.low %v352_v26, %v356_v28  ;;  %v8205_v39 = vcombine.high %v359_v32, %v363_v33  ;;  %v8207_v40 = vcombine.high %v360_v34, %v364_v35  ;;  %v408_v24 = vld [vmem:[#allocation20 + $0x2d8] sm:$0xff] }
 0x1fb   :  { %3623 = vmatpush1.bf16.msra.mxu0 %v8656_v45  ;;  %3795 = vmatpush1.bf16.msra.mxu1 %v8658_v46  ;;  %v372_v45 = vld [vmem:[#allocation20 + $0x1b8] sm:$0xff]  ;;  %v8204_v46 = vcombine.low %v359_v32, %v363_v33  ;;  %v419_v32 = vld [vmem:[#allocation20 + $0x330] sm:$0xff] }
 0x1fc   :  { %3624 = vmatprep.subr.bf16.mxu0 %v8665_v47  ;;  %3796 = vmatprep.subr.bf16.mxu1 %v8667_v48  ;;  %v8206_v47 = vcombine.low %v360_v34, %v364_v35  ;;  %v8213_v48 = vcombine.high %v367_v41, %v371_v42  ;;  %v8215_v49 = vcombine.high %v368_v44, %v372_v45  ;;  %v416_v33 = vld [vmem:[#allocation20 + $0x318] sm:$0xff]  ;;  %v427_v41 = vld [vmem:[#allocation20 + $0x370] sm:$0xff] }
 0x1fd   :  { %v8214_v56 = vcombine.low %v368_v44, %v372_v45  ;;  %v420_v34 = vld [vmem:[#allocation20 + $0x338] sm:$0xff] }
 0x1fe   :  { %v424_v42 = vld [vmem:[#allocation20 + $0x358] sm:$0xff] }
 0x1ff   :  { %3625 = vmatpush1.bf16.msra.mxu0 %v8664_v54  ;;  %3797 = vmatpush1.bf16.msra.mxu1 %v8666_v57  ;;  %v380_v54 = vld [vmem:[#allocation20 + $0x1f8] sm:$0xff]  ;;  %v8221_v57 = vcombine.high %v375_v50, %v379_v51  ;;  %v435_v50 = vld [vmem:[#allocation20 + $0x3b0] sm:$0xff] }
 0x200   :  { %3809 = vmatprep.subr.bf16.mxu0 %v8165_v59  ;;  %3981 = vmatprep.subr.bf16.mxu1 %v8167_v60  ;;  %v8223_v59 = vcombine.high %v376_v52, %v380_v54  ;;  %v383_v60 = vld [vmem:[#allocation20 + $0x210] sm:$0xff]  ;;  %v428_v44 = vld [vmem:[#allocation20 + $0x378] sm:$0xff] }
 0x201   :  { %v8228_v9 = vcombine.low %v383_v60, %v387_v61  ;;  %v432_v51 = vld [vmem:[#allocation20 + $0x398] sm:$0xff] }
 0x202   :  { %3627 = vmatmul.mubr.bf16.vlgmr.msra.gmra.mrb[0].mxu0 %v9611_v63  ;;  %3799 = vmatmul.mubr.bf16.vlgmr.msra.gmra.mrb[0].mxu1 %v9611_v63 }
 0x203   :  { %3810 = vmatpush1.bf16.msra.mxu0 %v8164_v2  ;;  %3982 = vmatpush1.bf16.msra.mxu1 %v8166_v3  ;;  %v8222_v2 = vcombine.low %v376_v52, %v380_v54  ;;  %v8229_v3 = vcombine.high %v383_v60, %v387_v61  ;;  %v436_v52 = vld [vmem:[#allocation20 + $0x3b8] sm:$0xff]  ;;  %v443_v60 = vld [vmem:[#allocation20 + $0x3f0] sm:$0xff] }
 0x204   :  { %3811 = vmatprep.subr.bf16.mxu0 %v8173_v4  ;;  %3983 = vmatprep.subr.bf16.mxu1 %v8175_v5  ;;  %v8231_v4 = vcombine.high %v384_v62, %v388_v0  ;;  %v391_v5 = vld [vmem:[#allocation20 + $0x250] sm:$0xff]  ;;  %v440_v61 = vld [vmem:[#allocation20 + $0x3d8] sm:$0xff] }
 0x205   :  { %3841 = vmatprep.mubr.bf16.mxu0 %v9583_v58  ;;  %4013 = vmatprep.mubr.bf16.mxu1 %v9583_v58  ;;  %v8199_v58 = vcombine.high %v352_v26, %v356_v28  ;;  %v8236_v18 = vcombine.low %v391_v5, %v395_v6  ;;  %v412_v26 = vld [vmem:[#allocation20 + $0x2f8] sm:$0xff] }
 0x207   :  { %3812 = vmatpush1.bf16.msra.mxu0 %v8172_v10  ;;  %3984 = vmatpush1.bf16.msra.mxu1 %v8174_v11  ;;  %v8230_v10 = vcombine.low %v384_v62, %v388_v0  ;;  %v8237_v11 = vcombine.high %v391_v5, %v395_v6  ;;  %v444_v62 = vld [vmem:[#allocation20 + $0x3f8] sm:$0xff]  ;;  %v451_v5 = vld [vmem:[#allocation20 + $0x430] sm:$0xff] }
 0x208   :  { %3813 = vmatprep.subr.bf16.mxu0 %v8181_v12  ;;  %3985 = vmatprep.subr.bf16.mxu1 %v8183_v13  ;;  %v8239_v12 = vcombine.high %v392_v7, %v396_v8  ;;  %v399_v13 = vld [vmem:[#allocation20 + $0x290] sm:$0xff]  ;;  %v448_v6 = vld [vmem:[#allocation20 + $0x418] sm:$0xff] }
 0x209   :  { %v8244_v28 = vcombine.low %v399_v13, %v403_v14 }
 0x20b   :  { %3814 = vmatpush1.bf16.msra.mxu0 %v8180_v19  ;;  %3986 = vmatpush1.bf16.msra.mxu1 %v8182_v20  ;;  %v8238_v19 = vcombine.low %v392_v7, %v396_v8  ;;  %v8245_v20 = vcombine.high %v399_v13, %v403_v14  ;;  %v452_v7 = vld [vmem:[#allocation20 + $0x438] sm:$0xff]  ;;  %v459_v13 = vld [vmem:[#allocation20 + $0x470] sm:$0xff] }
 0x20c   :  { %3815 = vmatprep.subr.bf16.mxu0 %v8189_v21  ;;  %3987 = vmatprep.subr.bf16.mxu1 %v8191_v22  ;;  %v8247_v21 = vcombine.high %v400_v16, %v404_v17  ;;  %v407_v22 = vld [vmem:[#allocation20 + $0x2d0] sm:$0xff]  ;;  %v456_v14 = vld [vmem:[#allocation20 + $0x458] sm:$0xff] }
 0x20d   :  { %v8252_v35 = vcombine.low %v407_v22, %v411_v23 }
 0x20f   :  { %3816 = vmatpush1.bf16.msra.mxu0 %v8188_v29  ;;  %3988 = vmatpush1.bf16.msra.mxu1 %v8190_v30  ;;  %v8246_v29 = vcombine.low %v400_v16, %v404_v17  ;;  %v8253_v30 = vcombine.high %v407_v22, %v411_v23  ;;  %v460_v16 = vld [vmem:[#allocation20 + $0x478] sm:$0xff]  ;;  %v467_v22 = vld [vmem:[#allocation20 + $0x4b0] sm:$0xff] }
 0x210   :  { %3817 = vmatprep.subr.bf16.mxu0 %v8197_v31  ;;  %3989 = vmatprep.subr.bf16.mxu1 %v8199_v58  ;;  %v8255_v31 = vcombine.high %v408_v24, %v412_v26  ;;  %v415_v58 = vld [vmem:[#allocation20 + $0x310] sm:$0xff]  ;;  %v464_v23 = vld [vmem:[#allocation20 + $0x498] sm:$0xff] }
 0x211   :  { %v8260_v45 = vcombine.low %v415_v58, %v419_v32 }
 0x213   :  { %3818 = vmatpush1.bf16.msra.mxu0 %v8196_v36  ;;  %3990 = vmatpush1.bf16.msra.mxu1 %v8198_v38  ;;  %v8254_v36 = vcombine.low %v408_v24, %v412_v26  ;;  %v8261_v38 = vcombine.high %v415_v58, %v419_v32  ;;  %v468_v24 = vld [vmem:[#allocation20 + $0x4b8] sm:$0xff]  ;;  %v475_v58 = vld [vmem:[#allocation20 + $0x4f0] sm:$0xff] }
 0x214   :  { %3819 = vmatprep.subr.bf16.mxu0 %v8205_v39  ;;  %3991 = vmatprep.subr.bf16.mxu1 %v8207_v40  ;;  %v8263_v39 = vcombine.high %v416_v33, %v420_v34  ;;  %v423_v40 = vld [vmem:[#allocation20 + $0x350] sm:$0xff]  ;;  %v472_v32 = vld [vmem:[#allocation20 + $0x4d8] sm:$0xff] }
 0x215   :  { %v8268_v54 = vcombine.low %v423_v40, %v427_v41 }
 0x217   :  { %3820 = vmatpush1.bf16.msra.mxu0 %v8204_v46  ;;  %3992 = vmatpush1.bf16.msra.mxu1 %v8206_v47  ;;  %v8262_v46 = vcombine.low %v416_v33, %v420_v34  ;;  %v8269_v47 = vcombine.high %v423_v40, %v427_v41  ;;  %v476_v33 = vld [vmem:[#allocation20 + $0x4f8] sm:$0xff] }
 0x218   :  { %3821 = vmatprep.subr.bf16.mxu0 %v8213_v48  ;;  %3993 = vmatprep.subr.bf16.mxu1 %v8215_v49  ;;  %v8271_v48 = vcombine.high %v424_v42, %v428_v44  ;;  %v431_v49 = vld [vmem:[#allocation20 + $0x390] sm:$0xff]  ;;  %v480_v40 = vld [vmem:[#allocation20 + $0x518] sm:$0xff] }
 0x219   :  { %v8276_v0 = vcombine.low %v431_v49, %v435_v50  ;;  %v484_v41 = vld [vmem:[#allocation20 + $0x538] sm:$0xff] }
 0x21b   :  { %3822 = vmatpush1.bf16.msra.mxu0 %v8212_v55  ;;  %3994 = vmatpush1.bf16.msra.mxu1 %v8214_v56  ;;  %v8270_v55 = vcombine.low %v424_v42, %v428_v44  ;;  %v8277_v56 = vcombine.high %v431_v49, %v435_v50  ;;  %v8318_v44 = vcombine.low %v472_v32, %v476_v33  ;;  %v492_v49 = vld [vmem:[#allocation20 + $0x578] sm:$0xff] }
 0x21c   :  { %3823 = vmatprep.subr.bf16.mxu0 %v8221_v57  ;;  %3995 = vmatprep.subr.bf16.mxu1 %v8223_v59  ;;  %v8279_v57 = vcombine.high %v432_v51, %v436_v52  ;;  %v439_v59 = vld [vmem:[#allocation20 + $0x3d0] sm:$0xff] }
 0x21d   :  { %v8284_v8 = vcombine.low %v439_v59, %v443_v60 }
 0x21f   :  { %3824 = vmatpush1.bf16.msra.mxu0 %v8220_v1  ;;  %3996 = vmatpush1.bf16.msra.mxu1 %v8222_v2  ;;  %v8278_v1 = vcombine.low %v432_v51, %v436_v52  ;;  %v8285_v2 = vcombine.high %v439_v59, %v443_v60  ;;  %v8326_v51 = vcombine.low %v480_v40, %v484_v41  ;;  %v500_v59 = vld [vmem:[#allocation20 + $0x5b8] sm:$0xff] }
 0x220   :  { %3825 = vmatprep.subr.bf16.mxu0 %v8229_v3  ;;  %3997 = vmatprep.subr.bf16.mxu1 %v8231_v4  ;;  %v8287_v3 = vcombine.high %v440_v61, %v444_v62  ;;  %v447_v4 = vld [vmem:[#allocation20 + $0x410] sm:$0xff] }
 0x221   :  { %v8292_v17 = vcombine.low %v447_v4, %v451_v5 }
 0x223   :  { %3826 = vmatpush1.bf16.msra.mxu0 %v8228_v9  ;;  %3998 = vmatpush1.bf16.msra.mxu1 %v8230_v10  ;;  %v8286_v9 = vcombine.low %v440_v61, %v444_v62  ;;  %v8293_v10 = vcombine.high %v447_v4, %v451_v5  ;;  %v508_v4 = vld [vmem:[#allocation20 + $0x5f8] sm:$0xff] }
 0x224   :  { %3827 = vmatprep.subr.bf16.mxu0 %v8237_v11  ;;  %3999 = vmatprep.subr.bf16.mxu1 %v8239_v12  ;;  %v8295_v11 = vcombine.high %v448_v6, %v452_v7  ;;  %v455_v12 = vld [vmem:[#allocation20 + $0x450] sm:$0xff] }
 0x225   :  { %v8300_v26 = vcombine.low %v455_v12, %v459_v13 }
 0x227   :  { %3828 = vmatpush1.bf16.msra.mxu0 %v8236_v18  ;;  %4000 = vmatpush1.bf16.msra.mxu1 %v8238_v19  ;;  %v8294_v18 = vcombine.low %v448_v6, %v452_v7  ;;  %v8301_v19 = vcombine.high %v455_v12, %v459_v13  ;;  %v516_v12 = vld [vmem:[#allocation20 + $0x638] sm:$0xff] }
 0x228   :  { %3829 = vmatprep.subr.bf16.mxu0 %v8245_v20  ;;  %4001 = vmatprep.subr.bf16.mxu1 %v8247_v21  ;;  %v8303_v20 = vcombine.high %v456_v14, %v460_v16  ;;  %v463_v21 = vld [vmem:[#allocation20 + $0x490] sm:$0xff] }
 0x229   :  { %v8308_v34 = vcombine.low %v463_v21, %v467_v22 }
 0x22b   :  { %3830 = vmatpush1.bf16.msra.mxu0 %v8244_v28  ;;  %4002 = vmatpush1.bf16.msra.mxu1 %v8246_v29  ;;  %v8302_v28 = vcombine.low %v456_v14, %v460_v16  ;;  %v8309_v29 = vcombine.high %v463_v21, %v467_v22  ;;  %v524_v21 = vld [vmem:[#allocation20 + $0x678] sm:$0xff] }
 0x22c   :  { %3831 = vmatprep.subr.bf16.mxu0 %v8253_v30  ;;  %4003 = vmatprep.subr.bf16.mxu1 %v8255_v31  ;;  %v8311_v30 = vcombine.high %v464_v23, %v468_v24  ;;  %v471_v31 = vld [vmem:[#allocation20 + $0x4d0] sm:$0xff] }
 0x22d   :  { %v8316_v42 = vcombine.low %v471_v31, %v475_v58 }
 0x22f   :  { %3832 = vmatpush1.bf16.msra.mxu0 %v8252_v35  ;;  %4004 = vmatpush1.bf16.msra.mxu1 %v8254_v36  ;;  %v8317_v35 = vcombine.high %v471_v31, %v475_v58  ;;  %v8319_v36 = vcombine.high %v472_v32, %v476_v33  ;;  %v532_v31 = vld [vmem:[#allocation20 + $0x6b8] sm:$0xff] }
 0x230   :  { %3833 = vmatprep.subr.bf16.mxu0 %v8261_v38  ;;  %4005 = vmatprep.subr.bf16.mxu1 %v8263_v39  ;;  %v479_v38 = vld [vmem:[#allocation20 + $0x510] sm:$0xff] }
 0x231   :  { %v483_v39 = vld [vmem:[#allocation20 + $0x530] sm:$0xff] }
 0x232   :  { %v8324_v50 = vcombine.low %v479_v38, %v483_v39 }
 0x233   :  { %3834 = vmatpush1.bf16.msra.mxu0 %v8260_v45  ;;  %4006 = vmatpush1.bf16.msra.mxu1 %v8262_v46  ;;  %v8325_v45 = vcombine.high %v479_v38, %v483_v39  ;;  %v487_v46 = vld [vmem:[#allocation20 + $0x550] sm:$0xff]  ;;  %v540_v38 = vld [vmem:[#allocation20 + $0x6f8] sm:$0xff] }
 0x234   :  { %3835 = vmatprep.subr.bf16.mxu0 %v8269_v47  ;;  %4007 = vmatprep.subr.bf16.mxu1 %v8271_v48  ;;  %v491_v47 = vld [vmem:[#allocation20 + $0x570] sm:$0xff]  ;;  %v488_v48 = vld [vmem:[#allocation20 + $0x558] sm:$0xff] }
 0x235   :  { %v8333_v52 = vcombine.high %v487_v46, %v491_v47  ;;  %v8332_v60 = vcombine.low %v487_v46, %v491_v47  ;;  %v8334_v61 = vcombine.low %v488_v48, %v492_v49  ;;  %v548_v46 = vld [vmem:[#allocation20 + $0x738] sm:$0xff] }
 0x237   :  { %3836 = vmatpush1.bf16.msra.mxu0 %v8268_v54  ;;  %4008 = vmatpush1.bf16.msra.mxu1 %v8270_v55  ;;  %v8335_v54 = vcombine.high %v488_v48, %v492_v49  ;;  %v495_v55 = vld [vmem:[#allocation20 + $0x590] sm:$0xff] }
 0x238   :  { %3837 = vmatprep.subr.bf16.mxu0 %v8277_v56  ;;  %4009 = vmatprep.subr.bf16.mxu1 %v8279_v57  ;;  %v499_v56 = vld [vmem:[#allocation20 + $0x5b0] sm:$0xff]  ;;  %v496_v57 = vld [vmem:[#allocation20 + $0x598] sm:$0xff] }
 0x239   :  { %v8341_v62 = vcombine.high %v495_v55, %v499_v56  ;;  %v8340_v5 = vcombine.low %v495_v55, %v499_v56  ;;  %v8342_v6 = vcombine.low %v496_v57, %v500_v59  ;;  %v556_v55 = vld [vmem:[#allocation20 + $0x778] sm:$0xff] }
 0x23b   :  { %3838 = vmatpush1.bf16.msra.mxu0 %v8276_v0  ;;  %4010 = vmatpush1.bf16.msra.mxu1 %v8278_v1  ;;  %v8343_v0 = vcombine.high %v496_v57, %v500_v59  ;;  %v503_v1 = vld [vmem:[#allocation20 + $0x5d0] sm:$0xff] }
 0x23c   :  { %3839 = vmatprep.subr.bf16.mxu0 %v8285_v2  ;;  %4011 = vmatprep.subr.bf16.mxu1 %v8287_v3  ;;  %v507_v2 = vld [vmem:[#allocation20 + $0x5f0] sm:$0xff]  ;;  %v504_v3 = vld [vmem:[#allocation20 + $0x5d8] sm:$0xff] }
 0x23d   :  { %v8349_v7 = vcombine.high %v503_v1, %v507_v2  ;;  %v8348_v13 = vcombine.low %v503_v1, %v507_v2  ;;  %v8350_v14 = vcombine.low %v504_v3, %v508_v4  ;;  %v564_v1 = vld [vmem:[#allocation20 + $0x7b8] sm:$0xff] }
 0x23f   :  { %3840 = vmatpush1.bf16.msra.mxu0 %v8284_v8  ;;  %4012 = vmatpush1.bf16.msra.mxu1 %v8286_v9  ;;  %v8351_v8 = vcombine.high %v504_v3, %v508_v4  ;;  %v511_v9 = vld [vmem:[#allocation20 + $0x610] sm:$0xff] }
 0x240   :  { %3852 = vmatprep.subr.bf16.mxu0 %v8293_v10  ;;  %4024 = vmatprep.subr.bf16.mxu1 %v8295_v11  ;;  %v515_v10 = vld [vmem:[#allocation20 + $0x630] sm:$0xff]  ;;  %v512_v11 = vld [vmem:[#allocation20 + $0x618] sm:$0xff] }
 0x241   :  { %v8357_v16 = vcombine.high %v511_v9, %v515_v10  ;;  %v8356_v22 = vcombine.low %v511_v9, %v515_v10  ;;  %v572_v9 = vld [vmem:[#allocation20 + $0x7f8] sm:$0xff] }
 0x242   :  { %3842 = vmatmul.mubr.bf16.vlgmr.msra.gmra.mrb[4].mxu0 %v9587_v15  ;;  %4014 = vmatmul.mubr.bf16.vlgmr.msra.gmra.mrb[4].mxu1 %v9587_v15  ;;  %v8310_v15 = vcombine.low %v464_v23, %v468_v24  ;;  %v8358_v23 = vcombine.low %v512_v11, %v516_v12 }
 0x243   :  { %3853 = vmatpush1.bf16.msra.mxu0 %v8292_v17  ;;  %4025 = vmatpush1.bf16.msra.mxu1 %v8294_v18  ;;  %v8359_v17 = vcombine.high %v512_v11, %v516_v12  ;;  %v519_v18 = vld [vmem:[#allocation20 + $0x650] sm:$0xff] }
 0x244   :  { %3854 = vmatprep.subr.bf16.mxu0 %v8301_v19  ;;  %4026 = vmatprep.subr.bf16.mxu1 %v8303_v20  ;;  %v523_v19 = vld [vmem:[#allocation20 + $0x670] sm:$0xff]  ;;  %v520_v20 = vld [vmem:[#allocation20 + $0x658] sm:$0xff] }
 0x245   :  { %3884 = vmatprep.mubr.bf16.mxu0 %v9589_v25  ;;  %4056 = vmatprep.mubr.bf16.mxu1 %v9589_v25  ;;  %v8327_v25 = vcombine.high %v480_v40, %v484_v41  ;;  %v8365_v24 = vcombine.high %v519_v18, %v523_v19  ;;  %v8364_v58 = vcombine.low %v519_v18, %v523_v19  ;;  %v580_v18 = vld [vmem:[#allocation20 + $0x838] sm:$0xff] }
 0x246   :  { %v8366_v32 = vcombine.low %v520_v20, %v524_v21 }
 0x247   :  { %3855 = vmatpush1.bf16.msra.mxu0 %v8300_v26  ;;  %4027 = vmatpush1.bf16.msra.mxu1 %v8302_v28  ;;  %v8367_v26 = vcombine.high %v520_v20, %v524_v21  ;;  %v527_v28 = vld [vmem:[#allocation20 + $0x690] sm:$0xff] }
 0x248   :  { %3856 = vmatprep.subr.bf16.mxu0 %v8309_v29  ;;  %4028 = vmatprep.subr.bf16.mxu1 %v8311_v30  ;;  %v531_v29 = vld [vmem:[#allocation20 + $0x6b0] sm:$0xff]  ;;  %v528_v30 = vld [vmem:[#allocation20 + $0x698] sm:$0xff] }
 0x249   :  { %v8373_v33 = vcombine.high %v527_v28, %v531_v29  ;;  %v8372_v39 = vcombine.low %v527_v28, %v531_v29  ;;  %v8374_v40 = vcombine.low %v528_v30, %v532_v31  ;;  %v588_v28 = vld [vmem:[#allocation20 + $0x878] sm:$0xff] }
 0x24b   :  { %3857 = vmatpush1.bf16.msra.mxu0 %v8308_v34  ;;  %4029 = vmatpush1.bf16.msra.mxu1 %v8310_v15  ;;  %v8375_v34 = vcombine.high %v528_v30, %v532_v31  ;;  %v535_v15 = vld [vmem:[#allocation20 + $0x6d0] sm:$0xff] }
 0x24c   :  { %3858 = vmatprep.subr.bf16.mxu0 %v8317_v35  ;;  %4030 = vmatprep.subr.bf16.mxu1 %v8319_v36  ;;  %v539_v35 = vld [vmem:[#allocation20 + $0x6f0] sm:$0xff]  ;;  %v536_v36 = vld [vmem:[#allocation20 + $0x6d8] sm:$0xff] }
 0x24d   :  { %v8381_v41 = vcombine.high %v535_v15, %v539_v35  ;;  %v8380_v47 = vcombine.low %v535_v15, %v539_v35  ;;  %v8382_v48 = vcombine.low %v536_v36, %v540_v38  ;;  %v596_v15 = vld [vmem:[#allocation20 + $0x8b8] sm:$0xff] }
 0x24f   :  { %3859 = vmatpush1.bf16.msra.mxu0 %v8316_v42  ;;  %4031 = vmatpush1.bf16.msra.mxu1 %v8318_v44  ;;  %v8383_v42 = vcombine.high %v536_v36, %v540_v38  ;;  %v543_v44 = vld [vmem:[#allocation20 + $0x710] sm:$0xff] }
 0x250   :  { %3860 = vmatprep.subr.bf16.mxu0 %v8325_v45  ;;  %4032 = vmatprep.subr.bf16.mxu1 %v8327_v25  ;;  %v547_v45 = vld [vmem:[#allocation20 + $0x730] sm:$0xff]  ;;  %v544_v25 = vld [vmem:[#allocation20 + $0x718] sm:$0xff] }
 0x251   :  { %v8389_v49 = vcombine.high %v543_v44, %v547_v45  ;;  %v8388_v56 = vcombine.low %v543_v44, %v547_v45  ;;  %v8390_v57 = vcombine.low %v544_v25, %v548_v46  ;;  %v604_v44 = vld [vmem:[#allocation20 + $0x8f8] sm:$0xff] }
 0x253   :  { %3861 = vmatpush1.bf16.msra.mxu0 %v8324_v50  ;;  %4033 = vmatpush1.bf16.msra.mxu1 %v8326_v51  ;;  %v8391_v50 = vcombine.high %v544_v25, %v548_v46  ;;  %v551_v51 = vld [vmem:[#allocation20 + $0x750] sm:$0xff] }
 0x254   :  { %3862 = vmatprep.subr.bf16.mxu0 %v8333_v52  ;;  %4034 = vmatprep.subr.bf16.mxu1 %v8335_v54  ;;  %v555_v52 = vld [vmem:[#allocation20 + $0x770] sm:$0xff]  ;;  %v552_v54 = vld [vmem:[#allocation20 + $0x758] sm:$0xff] }
 0x255   :  { %v8397_v59 = vcombine.high %v551_v51, %v555_v52  ;;  %v8396_v2 = vcombine.low %v551_v51, %v555_v52  ;;  %v8398_v3 = vcombine.low %v552_v54, %v556_v55 }
 0x257   :  { %3863 = vmatpush1.bf16.msra.mxu0 %v8332_v60  ;;  %4035 = vmatpush1.bf16.msra.mxu1 %v8334_v61  ;;  %v8399_v60 = vcombine.high %v552_v54, %v556_v55  ;;  %v559_v61 = vld [vmem:[#allocation20 + $0x790] sm:$0xff] }
 0x258   :  { %3864 = vmatprep.subr.bf16.mxu0 %v8341_v62  ;;  %4036 = vmatprep.subr.bf16.mxu1 %v8343_v0  ;;  %v563_v62 = vld [vmem:[#allocation20 + $0x7b0] sm:$0xff]  ;;  %v560_v0 = vld [vmem:[#allocation20 + $0x798] sm:$0xff] }
 0x259   :  { %v8405_v4 = vcombine.high %v559_v61, %v563_v62  ;;  %v8404_v10 = vcombine.low %v559_v61, %v563_v62  ;;  %v8406_v11 = vcombine.low %v560_v0, %v564_v1  ;;  %v615_v55 = vld [vmem:[#allocation20 + $0x950] sm:$0xff] }
 0x25b   :  { %3865 = vmatpush1.bf16.msra.mxu0 %v8340_v5  ;;  %4037 = vmatpush1.bf16.msra.mxu1 %v8342_v6  ;;  %v8407_v5 = vcombine.high %v560_v0, %v564_v1  ;;  %v567_v6 = vld [vmem:[#allocation20 + $0x7d0] sm:$0xff] }
 0x25c   :  { %3866 = vmatprep.subr.bf16.mxu0 %v8349_v7  ;;  %4038 = vmatprep.subr.bf16.mxu1 %v8351_v8  ;;  %v571_v7 = vld [vmem:[#allocation20 + $0x7f0] sm:$0xff]  ;;  %v568_v8 = vld [vmem:[#allocation20 + $0x7d8] sm:$0xff] }
 0x25d   :  { %v8413_v12 = vcombine.high %v567_v6, %v571_v7  ;;  %v8412_v19 = vcombine.low %v567_v6, %v571_v7  ;;  %v8414_v20 = vcombine.low %v568_v8, %v572_v9  ;;  %v623_v1 = vld [vmem:[#allocation20 + $0x990] sm:$0xff] }
 0x25f   :  { %3867 = vmatpush1.bf16.msra.mxu0 %v8348_v13  ;;  %4039 = vmatpush1.bf16.msra.mxu1 %v8350_v14  ;;  %v8415_v13 = vcombine.high %v568_v8, %v572_v9  ;;  %v575_v14 = vld [vmem:[#allocation20 + $0x810] sm:$0xff] }
 0x260   :  { %3868 = vmatprep.subr.bf16.mxu0 %v8357_v16  ;;  %4040 = vmatprep.subr.bf16.mxu1 %v8359_v17  ;;  %v579_v16 = vld [vmem:[#allocation20 + $0x830] sm:$0xff]  ;;  %v576_v17 = vld [vmem:[#allocation20 + $0x818] sm:$0xff] }
 0x261   :  { %v8421_v21 = vcombine.high %v575_v14, %v579_v16  ;;  %v8420_v29 = vcombine.low %v575_v14, %v579_v16  ;;  %v8422_v30 = vcombine.low %v576_v17, %v580_v18  ;;  %v631_v9 = vld [vmem:[#allocation20 + $0x9d0] sm:$0xff] }
 0x263   :  { %3869 = vmatpush1.bf16.msra.mxu0 %v8356_v22  ;;  %4041 = vmatpush1.bf16.msra.mxu1 %v8358_v23  ;;  %v8423_v22 = vcombine.high %v576_v17, %v580_v18  ;;  %v583_v23 = vld [vmem:[#allocation20 + $0x850] sm:$0xff] }
 0x264   :  { %3870 = vmatprep.subr.bf16.mxu0 %v8365_v24  ;;  %4042 = vmatprep.subr.bf16.mxu1 %v8367_v26  ;;  %v587_v24 = vld [vmem:[#allocation20 + $0x870] sm:$0xff]  ;;  %v584_v26 = vld [vmem:[#allocation20 + $0x858] sm:$0xff] }
 0x265   :  { %v8429_v31 = vcombine.high %v583_v23, %v587_v24  ;;  %v8428_v35 = vcombine.low %v583_v23, %v587_v24  ;;  %v8430_v36 = vcombine.low %v584_v26, %v588_v28  ;;  %v639_v18 = vld [vmem:[#allocation20 + $0xa10] sm:$0xff] }
 0x267   :  { %3871 = vmatpush1.bf16.msra.mxu0 %v8364_v58  ;;  %4043 = vmatpush1.bf16.msra.mxu1 %v8366_v32  ;;  %v8431_v58 = vcombine.high %v584_v26, %v588_v28  ;;  %v591_v32 = vld [vmem:[#allocation20 + $0x890] sm:$0xff] }
 0x268   :  { %3872 = vmatprep.subr.bf16.mxu0 %v8373_v33  ;;  %4044 = vmatprep.subr.bf16.mxu1 %v8375_v34  ;;  %v595_v33 = vld [vmem:[#allocation20 + $0x8b0] sm:$0xff]  ;;  %v592_v34 = vld [vmem:[#allocation20 + $0x898] sm:$0xff] }
 0x269   :  { %v8437_v38 = vcombine.high %v591_v32, %v595_v33  ;;  %v8436_v45 = vcombine.low %v591_v32, %v595_v33  ;;  %v647_v28 = vld [vmem:[#allocation20 + $0xa50] sm:$0xff] }
 0x26b   :  { %3873 = vmatpush1.bf16.msra.mxu0 %v8372_v39  ;;  %4045 = vmatpush1.bf16.msra.mxu1 %v8374_v40  ;;  %v8439_v39 = vcombine.high %v592_v34, %v596_v15  ;;  %v599_v40 = vld [vmem:[#allocation20 + $0x8d0] sm:$0xff] }
 0x26c   :  { %3874 = vmatprep.subr.bf16.mxu0 %v8381_v41  ;;  %4046 = vmatprep.subr.bf16.mxu1 %v8383_v42  ;;  %v603_v41 = vld [vmem:[#allocation20 + $0x8f0] sm:$0xff]  ;;  %v600_v42 = vld [vmem:[#allocation20 + $0x8d8] sm:$0xff] }
 0x26d   :  { %v8445_v25 = vcombine.high %v599_v40, %v603_v41  ;;  %v8447_v46 = vcombine.high %v600_v42, %v604_v44  ;;  %v8444_v51 = vcombine.low %v599_v40, %v603_v41  ;;  %v8446_v52 = vcombine.low %v600_v42, %v604_v44  ;;  %v663_v44 = vld [vmem:[#allocation20 + $0xad0] sm:$0xff] }
 0x26f   :  { %3875 = vmatpush1.bf16.msra.mxu0 %v8380_v47  ;;  %4047 = vmatpush1.bf16.msra.mxu1 %v8382_v48  ;;  %v607_v47 = vld [vmem:[#allocation20 + $0x910] sm:$0xff] }
 0x270   :  { %3876 = vmatprep.subr.bf16.mxu0 %v8389_v49  ;;  %4048 = vmatprep.subr.bf16.mxu1 %v8391_v50  ;;  %v611_v48 = vld [vmem:[#allocation20 + $0x930] sm:$0xff]  ;;  %v608_v49 = vld [vmem:[#allocation20 + $0x918] sm:$0xff] }
 0x271   :  { %v612_v50 = vld [vmem:[#allocation20 + $0x938] sm:$0xff]  ;;  %v8453_v54 = vcombine.high %v607_v47, %v611_v48 }
 0x272   :  { %v8454_v61 = vcombine.low %v608_v49, %v612_v50 }
 0x273   :  { %3877 = vmatpush1.bf16.msra.mxu0 %v8388_v56  ;;  %4049 = vmatpush1.bf16.msra.mxu1 %v8390_v57  ;;  %v619_v56 = vld [vmem:[#allocation20 + $0x970] sm:$0xff]  ;;  %v616_v57 = vld [vmem:[#allocation20 + $0x958] sm:$0xff] }
 0x274   :  { %3878 = vmatprep.subr.bf16.mxu0 %v8397_v59  ;;  %4050 = vmatprep.subr.bf16.mxu1 %v8399_v60  ;;  %v620_v59 = vld [vmem:[#allocation20 + $0x978] sm:$0xff]  ;;  %v8452_v60 = vcombine.low %v607_v47, %v611_v48  ;;  %v8461_v62 = vcombine.high %v615_v55, %v619_v56 }
 0x275   :  { %v8463_v0 = vcombine.high %v616_v57, %v620_v59  ;;  %v8462_v6 = vcombine.low %v616_v57, %v620_v59  ;;  %v679_v59 = vld [vmem:[#allocation20 + $0xb50] sm:$0xff] }
 0x277   :  { %3879 = vmatpush1.bf16.msra.mxu0 %v8396_v2  ;;  %4051 = vmatpush1.bf16.msra.mxu1 %v8398_v3  ;;  %v627_v2 = vld [vmem:[#allocation20 + $0x9b0] sm:$0xff]  ;;  %v624_v3 = vld [vmem:[#allocation20 + $0x998] sm:$0xff] }
 0x278   :  { %3880 = vmatprep.subr.bf16.mxu0 %v8405_v4  ;;  %4052 = vmatprep.subr.bf16.mxu1 %v8407_v5  ;;  %v628_v4 = vld [vmem:[#allocation20 + $0x9b8] sm:$0xff]  ;;  %v8460_v5 = vcombine.low %v615_v55, %v619_v56  ;;  %v8469_v7 = vcombine.high %v623_v1, %v627_v2 }
 0x279   :  { %v8471_v8 = vcombine.high %v624_v3, %v628_v4  ;;  %v8470_v14 = vcombine.low %v624_v3, %v628_v4  ;;  %v687_v4 = vld [vmem:[#allocation20 + $0xb90] sm:$0xff] }
 0x27b   :  { %3881 = vmatpush1.bf16.msra.mxu0 %v8404_v10  ;;  %4053 = vmatpush1.bf16.msra.mxu1 %v8406_v11  ;;  %v635_v10 = vld [vmem:[#allocation20 + $0x9f0] sm:$0xff]  ;;  %v632_v11 = vld [vmem:[#allocation20 + $0x9d8] sm:$0xff] }
 0x27c   :  { %3882 = vmatprep.subr.bf16.mxu0 %v8413_v12  ;;  %4054 = vmatprep.subr.bf16.mxu1 %v8415_v13  ;;  %v636_v12 = vld [vmem:[#allocation20 + $0x9f8] sm:$0xff]  ;;  %v8468_v13 = vcombine.low %v623_v1, %v627_v2  ;;  %v8477_v16 = vcombine.high %v631_v9, %v635_v10 }
 0x27d   :  { %v8479_v17 = vcombine.high %v632_v11, %v636_v12  ;;  %v8478_v23 = vcombine.low %v632_v11, %v636_v12  ;;  %v695_v12 = vld [vmem:[#allocation20 + $0xbd0] sm:$0xff] }
 0x27f   :  { %3883 = vmatpush1.bf16.msra.mxu0 %v8412_v19  ;;  %4055 = vmatpush1.bf16.msra.mxu1 %v8414_v20  ;;  %v643_v19 = vld [vmem:[#allocation20 + $0xa30] sm:$0xff]  ;;  %v640_v20 = vld [vmem:[#allocation20 + $0xa18] sm:$0xff] }
 0x280   :  { %3895 = vmatprep.subr.bf16.mxu0 %v8421_v21  ;;  %4067 = vmatprep.subr.bf16.mxu1 %v8423_v22  ;;  %v644_v21 = vld [vmem:[#allocation20 + $0xa38] sm:$0xff]  ;;  %v8476_v22 = vcombine.low %v631_v9, %v635_v10  ;;  %v8485_v24 = vcombine.high %v639_v18, %v643_v19 }
 0x281   :  { %v8487_v26 = vcombine.high %v640_v20, %v644_v21  ;;  %v8486_v32 = vcombine.low %v640_v20, %v644_v21  ;;  %v703_v21 = vld [vmem:[#allocation20 + $0xc10] sm:$0xff] }
 0x282   :  { %3885 = vmatmul.mubr.bf16.vlgmr.msra.gmra.mrb[4].mxu0 %v9595_v27  ;;  %4057 = vmatmul.mubr.bf16.vlgmr.msra.gmra.mrb[4].mxu1 %v9595_v27  ;;  %v8438_v27 = vcombine.low %v592_v34, %v596_v15  ;;  %v655_v15 = vld [vmem:[#allocation20 + $0xa90] sm:$0xff] }
 0x283   :  { %3896 = vmatpush1.bf16.msra.mxu0 %v8420_v29  ;;  %4068 = vmatpush1.bf16.msra.mxu1 %v8422_v30  ;;  %v651_v29 = vld [vmem:[#allocation20 + $0xa70] sm:$0xff]  ;;  %v648_v30 = vld [vmem:[#allocation20 + $0xa58] sm:$0xff] }
 0x284   :  { %3897 = vmatprep.subr.bf16.mxu0 %v8429_v31  ;;  %4069 = vmatprep.subr.bf16.mxu1 %v8431_v58  ;;  %v652_v31 = vld [vmem:[#allocation20 + $0xa78] sm:$0xff]  ;;  %v8484_v58 = vcombine.low %v639_v18, %v643_v19  ;;  %v8493_v33 = vcombine.high %v647_v28, %v651_v29 }
 0x285   :  { %3927 = vmatprep.mubr.bf16.mxu0 %v9597_v37  ;;  %4099 = vmatprep.mubr.bf16.mxu1 %v9597_v37  ;;  %v8455_v37 = vcombine.high %v608_v49, %v612_v50  ;;  %v8495_v34 = vcombine.high %v648_v30, %v652_v31  ;;  %v8494_v40 = vcombine.low %v648_v30, %v652_v31  ;;  %v671_v50 = vld [vmem:[#allocation20 + $0xb10] sm:$0xff] }
 0x286   :  { %v711_v31 = vld [vmem:[#allocation20 + $0xc50] sm:$0xff] }
 0x287   :  { %3898 = vmatpush1.bf16.msra.mxu0 %v8428_v35  ;;  %4070 = vmatpush1.bf16.msra.mxu1 %v8430_v36  ;;  %v659_v35 = vld [vmem:[#allocation20 + $0xab0] sm:$0xff]  ;;  %v656_v36 = vld [vmem:[#allocation20 + $0xa98] sm:$0xff] }
 0x288   :  { %3899 = vmatprep.subr.bf16.mxu0 %v8437_v38  ;;  %4071 = vmatprep.subr.bf16.mxu1 %v8439_v39  ;;  %v660_v38 = vld [vmem:[#allocation20 + $0xab8] sm:$0xff]  ;;  %v8492_v39 = vcombine.low %v647_v28, %v651_v29  ;;  %v8501_v41 = vcombine.high %v655_v15, %v659_v35 }
 0x289   :  { %v8503_v42 = vcombine.high %v656_v36, %v660_v38  ;;  %v8502_v47 = vcombine.low %v656_v36, %v660_v38  ;;  %v719_v38 = vld [vmem:[#allocation20 + $0xc90] sm:$0xff] }
 0x28b   :  { %3900 = vmatpush1.bf16.msra.mxu0 %v8436_v45  ;;  %4072 = vmatpush1.bf16.msra.mxu1 %v8438_v27  ;;  %v667_v45 = vld [vmem:[#allocation20 + $0xaf0] sm:$0xff]  ;;  %v664_v27 = vld [vmem:[#allocation20 + $0xad8] sm:$0xff] }
 0x28c   :  { %3901 = vmatprep.subr.bf16.mxu0 %v8445_v25  ;;  %4073 = vmatprep.subr.bf16.mxu1 %v8447_v46  ;;  %v668_v25 = vld [vmem:[#allocation20 + $0xaf8] sm:$0xff]  ;;  %v8500_v46 = vcombine.low %v655_v15, %v659_v35  ;;  %v8509_v48 = vcombine.high %v663_v44, %v667_v45 }
 0x28d   :  { %v8511_v49 = vcombine.high %v664_v27, %v668_v25  ;;  %v8510_v55 = vcombine.low %v664_v27, %v668_v25 }
 0x28f   :  { %3902 = vmatpush1.bf16.msra.mxu0 %v8444_v51  ;;  %4074 = vmatpush1.bf16.msra.mxu1 %v8446_v52  ;;  %v675_v51 = vld [vmem:[#allocation20 + $0xb30] sm:$0xff]  ;;  %v672_v52 = vld [vmem:[#allocation20 + $0xb18] sm:$0xff] }
 0x290   :  { %3903 = vmatprep.subr.bf16.mxu0 %v8453_v54  ;;  %4075 = vmatprep.subr.bf16.mxu1 %v8455_v37  ;;  %v676_v54 = vld [vmem:[#allocation20 + $0xb38] sm:$0xff]  ;;  %v8508_v37 = vcombine.low %v663_v44, %v667_v45  ;;  %v8517_v56 = vcombine.high %v671_v50, %v675_v51 }
 0x291   :  { %v8519_v57 = vcombine.high %v672_v52, %v676_v54  ;;  %v8518_v1 = vcombine.low %v672_v52, %v676_v54 }
 0x293   :  { %3904 = vmatpush1.bf16.msra.mxu0 %v8452_v60  ;;  %4076 = vmatpush1.bf16.msra.mxu1 %v8454_v61  ;;  %v683_v60 = vld [vmem:[#allocation20 + $0xb70] sm:$0xff]  ;;  %v680_v61 = vld [vmem:[#allocation20 + $0xb58] sm:$0xff] }
 0x294   :  { %3905 = vmatprep.subr.bf16.mxu0 %v8461_v62  ;;  %4077 = vmatprep.subr.bf16.mxu1 %v8463_v0  ;;  %v684_v62 = vld [vmem:[#allocation20 + $0xb78] sm:$0xff]  ;;  %v8516_v0 = vcombine.low %v671_v50, %v675_v51  ;;  %v8525_v2 = vcombine.high %v679_v59, %v683_v60 }
 0x295   :  { %v8527_v3 = vcombine.high %v680_v61, %v684_v62  ;;  %v8526_v9 = vcombine.low %v680_v61, %v684_v62  ;;  %v9634_v61 = vld [vmem:[#allocation21] sm:$0xff] }
 0x297   :  { %3906 = vmatpush1.bf16.msra.mxu0 %v8460_v5  ;;  %4078 = vmatpush1.bf16.msra.mxu1 %v8462_v6  ;;  %v691_v5 = vld [vmem:[#allocation20 + $0xbb0] sm:$0xff]  ;;  %v688_v6 = vld [vmem:[#allocation20 + $0xb98] sm:$0xff] }
 0x298   :  { %3907 = vmatprep.subr.bf16.mxu0 %v8469_v7  ;;  %4079 = vmatprep.subr.bf16.mxu1 %v8471_v8  ;;  %v692_v7 = vld [vmem:[#allocation20 + $0xbb8] sm:$0xff]  ;;  %v8524_v8 = vcombine.low %v679_v59, %v683_v60  ;;  %v8533_v10 = vcombine.high %v687_v4, %v691_v5 }
 0x299   :  { %v8535_v11 = vcombine.high %v688_v6, %v692_v7  ;;  %v8534_v18 = vcombine.low %v688_v6, %v692_v7  ;;  %v744_v6 = vld [vmem:[#allocation20 + $0xd58] sm:$0xff] }
 0x29a   :  { %v748_v7 = vld [vmem:[#allocation20 + $0xd78] sm:$0xff] }
 0x29b   :  { %3908 = vmatpush1.bf16.msra.mxu0 %v8468_v13  ;;  %4080 = vmatpush1.bf16.msra.mxu1 %v8470_v14  ;;  %v699_v13 = vld [vmem:[#allocation20 + $0xbf0] sm:$0xff]  ;;  %v696_v14 = vld [vmem:[#allocation20 + $0xbd8] sm:$0xff] }
 0x29c   :  { %3909 = vmatprep.subr.bf16.mxu0 %v8477_v16  ;;  %4081 = vmatprep.subr.bf16.mxu1 %v8479_v17  ;;  %v700_v16 = vld [vmem:[#allocation20 + $0xbf8] sm:$0xff]  ;;  %v8532_v17 = vcombine.low %v687_v4, %v691_v5  ;;  %v8541_v19 = vcombine.high %v695_v12, %v699_v13  ;;  %v747_v4 = vld [vmem:[#allocation20 + $0xd70] sm:$0xff] }
 0x29d   :  { %v8543_v20 = vcombine.high %v696_v14, %v700_v16  ;;  %v8542_v28 = vcombine.low %v696_v14, %v700_v16  ;;  %v8591_v14 = vcombine.high %v744_v6, %v748_v7  ;;  %v751_v16 = vld [vmem:[#allocation20 + $0xd90] sm:$0xff] }
 0x29f   :  { %3910 = vmatpush1.bf16.msra.mxu0 %v8476_v22  ;;  %4082 = vmatpush1.bf16.msra.mxu1 %v8478_v23  ;;  %v707_v22 = vld [vmem:[#allocation20 + $0xc30] sm:$0xff]  ;;  %v704_v23 = vld [vmem:[#allocation20 + $0xc18] sm:$0xff] }
 0x2a0   :  { %3911 = vmatprep.subr.bf16.mxu0 %v8485_v24  ;;  %4083 = vmatprep.subr.bf16.mxu1 %v8487_v26  ;;  %v708_v24 = vld [vmem:[#allocation20 + $0xc38] sm:$0xff]  ;;  %v8540_v26 = vcombine.low %v695_v12, %v699_v13  ;;  %v8549_v29 = vcombine.high %v703_v21, %v707_v22 }
 0x2a1   :  { %v8551_v30 = vcombine.high %v704_v23, %v708_v24  ;;  %v8550_v15 = vcombine.low %v704_v23, %v708_v24 }
 0x2a3   :  { %3912 = vmatpush1.bf16.msra.mxu0 %v8484_v58  ;;  %4084 = vmatpush1.bf16.msra.mxu1 %v8486_v32  ;;  %v715_v58 = vld [vmem:[#allocation20 + $0xc70] sm:$0xff]  ;;  %v712_v32 = vld [vmem:[#allocation20 + $0xc58] sm:$0xff] }
 0x2a4   :  { %3913 = vmatprep.subr.bf16.mxu0 %v8493_v33  ;;  %4085 = vmatprep.subr.bf16.mxu1 %v8495_v34  ;;  %v716_v33 = vld [vmem:[#allocation20 + $0xc78] sm:$0xff]  ;;  %v8548_v34 = vcombine.low %v703_v21, %v707_v22  ;;  %v8557_v35 = vcombine.high %v711_v31, %v715_v58  ;;  %v8556_v44 = vcombine.low %v711_v31, %v715_v58 }
 0x2a5   :  { %v8559_v36 = vcombine.high %v712_v32, %v716_v33  ;;  %v8558_v45 = vcombine.low %v712_v32, %v716_v33  ;;  %v760_v32 = vld [vmem:[#allocation20 + $0xdd8] sm:$0xff] }
 0x2a6   :  { %v764_v33 = vld [vmem:[#allocation20 + $0xdf8] sm:$0xff] }
 0x2a7   :  { %3914 = vmatpush1.bf16.msra.mxu0 %v8492_v39  ;;  %4086 = vmatpush1.bf16.msra.mxu1 %v8494_v40  ;;  %v723_v39 = vld [vmem:[#allocation20 + $0xcb0] sm:$0xff]  ;;  %v720_v40 = vld [vmem:[#allocation20 + $0xc98] sm:$0xff] }
 0x2a8   :  { %3915 = vmatprep.subr.bf16.mxu0 %v8501_v41  ;;  %4087 = vmatprep.subr.bf16.mxu1 %v8503_v42  ;;  %v724_v41 = vld [vmem:[#allocation20 + $0xcb8] sm:$0xff]  ;;  %v833_v42 = vlaneseq  ;;  %v8565_v27 = vcombine.high %v719_v38, %v723_v39  ;;  %v8564_v51 = vcombine.low %v719_v38, %v723_v39 }
 0x2a9   :  { %v8567_v25 = vcombine.high %v720_v40, %v724_v41 }
 0x2aa   :  { %v9628_v50 = vshrl.u32 %v833_v42, 7 }
 0x2ab   :  { %3916 = vmatpush1.bf16.msra.mxu0 %v8500_v46  ;;  %4088 = vmatpush1.bf16.msra.mxu1 %v8502_v47  ;;  %v727_v46 = vld [vmem:[#allocation20 + $0xcd0] sm:$0xff] }
 0x2ac   :  { %3917 = vmatprep.subr.bf16.mxu0 %v8509_v48  ;;  %4089 = vmatprep.subr.bf16.mxu1 %v8511_v49  ;;  %v731_v47 = vld [vmem:[#allocation20 + $0xcf0] sm:$0xff]  ;;  %v728_v48 = vld [vmem:[#allocation20 + $0xcd8] sm:$0xff]  ;;  %v9632_v59 = vsub.s32 0, %v9628_v50 }
 0x2ad   :  { %v732_v49 = vld [vmem:[#allocation20 + $0xcf8] sm:$0xff]  ;;  %v8573_v52 = vcombine.high %v727_v46, %v731_v47  ;;  %v8572_v60 = vcombine.low %v727_v46, %v731_v47 }
 0x2ae   :  { %v8575_v54 = vcombine.high %v728_v48, %v732_v49  ;;  %v8574_v62 = vcombine.low %v728_v48, %v732_v49  ;;  %v836_v5 = vrot.slane %v9634_v61, %v9632_v59  ;;  %v8607_v48 = vcombine.high %v760_v32, %v764_v33 }
 0x2af   :  { %3918 = vmatpush1.bf16.msra.mxu0 %v8508_v37  ;;  %4090 = vmatpush1.bf16.msra.mxu1 %v8510_v55  ;;  %v735_v37 = vld [vmem:[#allocation20 + $0xd10] sm:$0xff] }
 0x2b0   :  { %3919 = vmatprep.subr.bf16.mxu0 %v8517_v56  ;;  %4091 = vmatprep.subr.bf16.mxu1 %v8519_v57  ;;  %v739_v55 = vld [vmem:[#allocation20 + $0xd30] sm:$0xff]  ;;  %v736_v56 = vld [vmem:[#allocation20 + $0xd18] sm:$0xff] }
 0x2b1   :  { %v740_v57 = vld [vmem:[#allocation20 + $0xd38] sm:$0xff] }
 0x2b3   :  { %3920 = vmatpush1.bf16.msra.mxu0 %v8516_v0  ;;  %4092 = vmatpush1.bf16.msra.mxu1 %v8518_v1  ;;  %v8581_v0 = vcombine.high %v735_v37, %v739_v55  ;;  %v9639_v1 = vld [vmem:[#allocation21 + $0x8] sm:$0xff] }
 0x2b4   :  { %3921 = vmatprep.subr.bf16.mxu0 %v8525_v2  ;;  %4093 = vmatprep.subr.bf16.mxu1 %v8527_v3  ;;  %v8583_v2 = vcombine.high %v736_v56, %v740_v57  ;;  %v743_v3 = vld [vmem:[#allocation20 + $0xd50] sm:$0xff] }
 0x2b5   :  { %v8589_v13 = vcombine.high %v743_v3, %v747_v4  ;;  %v8588_v23 = vcombine.low %v743_v3, %v747_v4 }
 0x2b7   :  { %3922 = vmatpush1.bf16.msra.mxu0 %v8524_v8  ;;  %4094 = vmatpush1.bf16.msra.mxu1 %v8526_v9  ;;  %v8580_v8 = vcombine.low %v735_v37, %v739_v55  ;;  %v844_v9 = vrot.slane %v9639_v1, %v9632_v59  ;;  %v767_v37 = vld [vmem:[#allocation20 + $0xe10] sm:$0xff] }
 0x2b8   :  { %3923 = vmatprep.subr.bf16.mxu0 %v8533_v10  ;;  %4095 = vmatprep.subr.bf16.mxu1 %v8535_v11  ;;  %v8582_v11 = vcombine.low %v736_v56, %v740_v57  ;;  %v771_v55 = vld [vmem:[#allocation20 + $0xe30] sm:$0xff] }
 0x2b9   :  { %v884_v21 = vrot.slane %v844_v9, %v9632_v59  ;;  %v775_v9 = vld [vmem:[#allocation20 + $0xe50] sm:$0xff] }
 0x2bb   :  { %3924 = vmatpush1.bf16.msra.mxu0 %v8532_v17  ;;  %4096 = vmatpush1.bf16.msra.mxu1 %v8534_v18  ;;  %v755_v17 = vld [vmem:[#allocation20 + $0xdb0] sm:$0xff]  ;;  %v876_v18 = vrot.slane %v836_v5, %v9632_v59 }
 0x2bc   :  { %3925 = vmatprep.subr.bf16.mxu0 %v8541_v19  ;;  %4097 = vmatprep.subr.bf16.mxu1 %v8543_v20  ;;  %v752_v19 = vld [vmem:[#allocation20 + $0xd98] sm:$0xff] }
 0x2bd   :  { %v756_v20 = vld [vmem:[#allocation20 + $0xdb8] sm:$0xff] }
 0x2be   :  { %v8599_v58 = vcombine.high %v752_v19, %v756_v20  ;;  %v8598_v42 = vcombine.low %v752_v19, %v756_v20  ;;  %v787_v19 = vld [vmem:[#allocation20 + $0xeb0] sm:$0xff]  ;;  %v784_v20 = vld [vmem:[#allocation20 + $0xe98] sm:$0xff] }
 0x2bf   :  { %3926 = vmatpush1.bf16.msra.mxu0 %v8540_v26  ;;  %4098 = vmatpush1.bf16.msra.mxu1 %v8542_v28  ;;  %v8590_v26 = vcombine.low %v744_v6, %v748_v7  ;;  %v8597_v28 = vcombine.high %v751_v16, %v755_v17  ;;  %v8606_v6 = vcombine.low %v760_v32, %v764_v33 }
 0x2c0   :  { %3938 = vmatprep.subr.bf16.mxu0 %v8549_v29  ;;  %4110 = vmatprep.subr.bf16.mxu1 %v8551_v30  ;;  %v759_v29 = vld [vmem:[#allocation20 + $0xdd0] sm:$0xff]  ;;  %v8613_v7 = vcombine.high %v767_v37, %v771_v55 }
 0x2c1   :  { %v763_v30 = vld [vmem:[#allocation20 + $0xdf0] sm:$0xff] }
 0x2c2   :  { %3928 = vmatmul.mubr.bf16.vlgmr.msra.gmra.mrb[4].mxu0 %v9603_v43  ;;  %4100 = vmatmul.mubr.bf16.vlgmr.msra.gmra.mrb[4].mxu1 %v9603_v43  ;;  %v8566_v43 = vcombine.low %v720_v40, %v724_v41  ;;  %v8604_v4 = vcombine.low %v759_v29, %v763_v30 }
 0x2c3   :  { %3939 = vmatpush1.bf16.msra.mxu0 %v8548_v34  ;;  %4111 = vmatpush1.bf16.msra.mxu1 %v8550_v15 }
 0x2c4   :  { %3940 = vmatprep.subr.bf16.mxu0 %v8557_v35  ;;  %4112 = vmatprep.subr.bf16.mxu1 %v8559_v36  ;;  %v8596_v36 = vcombine.low %v751_v16, %v755_v17 }
 0x2c5   :  { %3970 = vmatprep.mubr.bf16.mxu0 %v9605_v53  ;;  %4142 = vmatprep.mubr.bf16.mxu1 %v9605_v53  ;;  %v9637_v53 = vsub.s32 4, %v9628_v50 }
 0x2c7   :  { %3941 = vmatpush1.bf16.msra.mxu0 %v8556_v44  ;;  %4113 = vmatpush1.bf16.msra.mxu1 %v8558_v45  ;;  %v840_v10 = vrot.slane %v9634_v61, %v9637_v53  ;;  %v848_v12 = vrot.slane %v9639_v1, %v9637_v53  ;;  %v8605_v44 = vcombine.high %v759_v29, %v763_v30  ;;  %v795_v29 = vld [vmem:[#allocation20 + $0xef0] sm:$0xff]  ;;  %v792_v30 = vld [vmem:[#allocation20 + $0xed8] sm:$0xff] }
 0x2c8   :  { %3942 = vmatprep.subr.bf16.mxu0 %v8565_v27  ;;  %4114 = vmatprep.subr.bf16.mxu1 %v8567_v25 }
 0x2c9   :  { %v880_v22 = vrot.slane %v840_v10, %v9632_v59  ;;  %v888_v24 = vrot.slane %v848_v12, %v9632_v59  ;;  %v779_v10 = vld [vmem:[#allocation20 + $0xe70] sm:$0xff]  ;;  %v780_v12 = vld [vmem:[#allocation20 + $0xe78] sm:$0xff] }
 0x2ca   :  { %v8621_v16 = vcombine.high %v775_v9, %v779_v10 }
 0x2cb   :  { %3943 = vmatpush1.bf16.msra.mxu0 %v8564_v51  ;;  %4115 = vmatpush1.bf16.msra.mxu1 %v8566_v43 }
 0x2cc   :  { %3944 = vmatprep.subr.bf16.mxu0 %v8573_v52  ;;  %4116 = vmatprep.subr.bf16.mxu1 %v8575_v54 }
 0x2cf   :  { %3945 = vmatpush1.bf16.msra.mxu0 %v8572_v60  ;;  %4117 = vmatpush1.bf16.msra.mxu1 %v8574_v62  ;;  %v768_v62 = vld [vmem:[#allocation20 + $0xe18] sm:$0xff] }
 0x2d0   :  { %3946 = vmatprep.subr.bf16.mxu0 %v8581_v0  ;;  %4118 = vmatprep.subr.bf16.mxu1 %v8583_v2  ;;  %v772_v0 = vld [vmem:[#allocation20 + $0xe38] sm:$0xff] }
 0x2d3   :  { %3947 = vmatpush1.bf16.msra.mxu0 %v8580_v8  ;;  %4119 = vmatpush1.bf16.msra.mxu1 %v8582_v11  ;;  %v8615_v8 = vcombine.high %v768_v62, %v772_v0  ;;  %v776_v11 = vld [vmem:[#allocation20 + $0xe58] sm:$0xff] }
 0x2d4   :  { %3948 = vmatprep.subr.bf16.mxu0 %v8589_v13  ;;  %4120 = vmatprep.subr.bf16.mxu1 %v8591_v14  ;;  %v8612_v13 = vcombine.low %v767_v37, %v771_v55  ;;  %v8614_v14 = vcombine.low %v768_v62, %v772_v0  ;;  %v8623_v17 = vcombine.high %v776_v11, %v780_v12  ;;  %v808_v37 = vld [vmem:[#allocation20 + $0xf58] sm:$0xff] }
 0x2d5   :  { %v3628_v31 = vpop.f32.mrb[0].mxu0  ;;  %v3800_v15 = vpop.f32.mrb[0].mxu1  ;;  %v812_v55 = vld [vmem:[#allocation20 + $0xf78] sm:$0xff] }
 0x2d6   :  { %v9653_v34 = vadd.f32 %v3628_v31, %v876_v18  ;;  %v3630_v35 = vpop.f32.mrb[1].mxu0  ;;  %v9655_v38 = vadd.f32 %v3800_v15, %v884_v21  ;;  %v3802_v40 = vpop.f32.mrb[1].mxu1  ;;  %v796_v31 = vld [vmem:[#allocation20 + $0xef8] sm:$0xff] }
 0x2d7   :  { %v9657_v39 = vadd.f32 %v3630_v35, %v880_v22  ;;  %v3632_v41 = vpop.f32.mrb[2].mxu0  ;;  %3949 = vmatpush1.bf16.msra.mxu0 %v8588_v23  ;;  %v9660_v27 = vadd.f32 %v3802_v40, %v888_v24  ;;  %v3804_v46 = vpop.f32.mrb[2].mxu1  ;;  %4121 = vmatpush1.bf16.msra.mxu1 %v8590_v26  ;;  %v8622_v23 = vcombine.low %v776_v11, %v780_v12  ;;  %v799_v35 = vld [vmem:[#allocation20 + $0xf10] sm:$0xff]  ;;  %v800_v40 = vld [vmem:[#allocation20 + $0xf18] sm:$0xff] }
 0x2d8   :  { %v4153_v45 = vmax.f32 %v9653_v34, 0.0  ;;  %v9662_v25 = vadd.f32 %v3632_v41, %v876_v18  ;;  %v3634_v47 = vpop.f32.mrb[3].mxu0  ;;  %3950 = vmatprep.subr.bf16.mxu0 %v8597_v28  ;;  %v10217_v49 = vmax.f32 %v9655_v38, 0.0  ;;  %v9666_v43 = vadd.f32 %v3804_v46, %v884_v21  ;;  %v3806_v54 = vpop.f32.mrb[3].mxu1  ;;  %4122 = vmatprep.subr.bf16.mxu1 %v8599_v58  ;;  %v783_v18 = vld [vmem:[#allocation20 + $0xe90] sm:$0xff]  ;;  %v788_v21 = vld [vmem:[#allocation20 + $0xeb8] sm:$0xff] }
 0x2d9   :  { %v10216_v51 = vmax.f32 %v9657_v39, 0.0  ;;  %v9668_v52 = vadd.f32 %v3634_v47, %v880_v22  ;;  %v10215_v56 = vmax.f32 %v9660_v27, 0.0  ;;  %v9672_v60 = vadd.f32 %v3806_v54, %v888_v24  ;;  %v791_v28 = vld [vmem:[#allocation20 + $0xed0] sm:$0xff]  ;;  %v804_v41 = vld [vmem:[#allocation20 + $0xf38] sm:$0xff] }
 0x2da   :  { %v10214_v57 = vmax.f32 %v9662_v25, 0.0  ;;  %v10213_v2 = vmax.f32 %v9666_v43, 0.0  ;;  %v8620_v22 = vcombine.low %v775_v9, %v779_v10  ;;  %v8629_v24 = vcombine.high %v783_v18, %v787_v19  ;;  %v811_v54 = vld [vmem:[#allocation20 + $0xf70] sm:$0xff]  ;;  %v816_v9 = vld [vmem:[#allocation20 + $0xf98] sm:$0xff] }
 0x2db   :  { %v10212_v3 = vmax.f32 %v9668_v52, 0.0  ;;  %3951 = vmatpush1.bf16.msra.mxu0 %v8596_v36  ;;  %v10211_v5 = vmax.f32 %v9672_v60, 0.0  ;;  %4123 = vmatpush1.bf16.msra.mxu1 %v8598_v42  ;;  %v8631_v26 = vcombine.high %v784_v20, %v788_v21  ;;  %v8628_v58 = vcombine.low %v783_v18, %v787_v19  ;;  %v803_v36 = vld [vmem:[#allocation20 + $0xf30] sm:$0xff]  ;;  %v820_v10 = vld [vmem:[#allocation20 + $0xfb8] sm:$0xff] }
 0x2dc   :  { %3952 = vmatprep.subr.bf16.mxu0 %v8605_v44  ;;  %4124 = vmatprep.subr.bf16.mxu1 %v8607_v48  ;;  %v8630_v32 = vcombine.low %v784_v20, %v788_v21  ;;  %v8637_v33 = vcombine.high %v791_v28, %v795_v29  ;;  %v8639_v15 = vcombine.high %v792_v30, %v796_v31  ;;  %v807_v48 = vld [vmem:[#allocation20 + $0xf50] sm:$0xff]  ;;  %v824_v18 = vld [vmem:[#allocation20 + $0xfd8] sm:$0xff] }
 0x2dd   :  { %v8636_v42 = vcombine.low %v791_v28, %v795_v29  ;;  %v8638_v44 = vcombine.low %v792_v30, %v796_v31  ;;  %v8645_v46 = vcombine.high %v799_v35, %v803_v36  ;;  %v8647_v47 = vcombine.high %v800_v40, %v804_v41  ;;  %v828_v19 = vld [vmem:[#allocation20 + $0xff8] sm:$0xff]  ;;  %v9679_v28 = vld [vmem:[#allocation21 + $0x10] sm:$0xff] }
 0x2de   :  { %v8644_v62 = vcombine.low %v799_v35, %v803_v36  ;;  %v8646_v0 = vcombine.low %v800_v40, %v804_v41  ;;  %v8652_v11 = vcombine.low %v807_v48, %v811_v54  ;;  %v8654_v12 = vcombine.low %v808_v37, %v812_v55  ;;  %v9681_v29 = vld [vmem:[#allocation21 + $0x18] sm:$0xff] }
 0x2df   :  { %3953 = vmatpush1.bf16.msra.mxu0 %v8604_v4  ;;  %4125 = vmatpush1.bf16.msra.mxu1 %v8606_v6  ;;  %v8653_v4 = vcombine.high %v807_v48, %v811_v54  ;;  %v8655_v6 = vcombine.high %v808_v37, %v812_v55  ;;  %v8662_v21 = vcombine.low %v816_v9, %v820_v10 }
 0x2e0   :  { %3954 = vmatprep.subr.bf16.mxu0 %v8613_v7  ;;  %4126 = vmatprep.subr.bf16.mxu1 %v8615_v8  ;;  %v815_v7 = vld [vmem:[#allocation20 + $0xf90] sm:$0xff]  ;;  %v852_v30 = vrot.slane %v9679_v28, %v9632_v59  ;;  %v860_v31 = vrot.slane %v9681_v29, %v9632_v59 }
 0x2e1   :  { %v819_v8 = vld [vmem:[#allocation20 + $0xfb0] sm:$0xff] }
 0x2e2   :  { %v8660_v20 = vcombine.low %v815_v7, %v819_v8 }
 0x2e3   :  { %3955 = vmatpush1.bf16.msra.mxu0 %v8612_v13  ;;  %4127 = vmatpush1.bf16.msra.mxu1 %v8614_v14  ;;  %v8661_v13 = vcombine.high %v815_v7, %v819_v8  ;;  %v8663_v14 = vcombine.high %v816_v9, %v820_v10 }
 0x2e4   :  { %3956 = vmatprep.subr.bf16.mxu0 %v8621_v16  ;;  %4128 = vmatprep.subr.bf16.mxu1 %v8623_v17  ;;  %v823_v16 = vld [vmem:[#allocation20 + $0xfd0] sm:$0xff] }
 0x2e5   :  { %v827_v17 = vld [vmem:[#allocation20 + $0xff0] sm:$0xff] }
 0x2e7   :  { %3957 = vmatpush1.bf16.msra.mxu0 %v8620_v22  ;;  %4129 = vmatpush1.bf16.msra.mxu1 %v8622_v23  ;;  %v8669_v22 = vcombine.high %v823_v16, %v827_v17  ;;  %v8671_v23 = vcombine.high %v824_v18, %v828_v19 }
 0x2e8   :  { %3958 = vmatprep.subr.bf16.mxu0 %v8629_v24  ;;  %4130 = vmatprep.subr.bf16.mxu1 %v8631_v26  ;;  %v8668_v24 = vcombine.low %v823_v16, %v827_v17  ;;  %v8670_v26 = vcombine.low %v824_v18, %v828_v19 }
 0x2eb   :  { %3959 = vmatpush1.bf16.msra.mxu0 %v8628_v58  ;;  %4131 = vmatpush1.bf16.msra.mxu1 %v8630_v32  ;;  %v856_v58 = vrot.slane %v9679_v28, %v9637_v53  ;;  %v864_v32 = vrot.slane %v9681_v29, %v9637_v53 }
 0x2ec   :  { %3960 = vmatprep.subr.bf16.mxu0 %v8637_v33  ;;  %4132 = vmatprep.subr.bf16.mxu1 %v8639_v15  ;;  %v892_v33 = vrot.slane %v852_v30, %v9632_v59 }
 0x2ed   :  { %v896_v15 = vrot.slane %v856_v58, %v9632_v59  ;;  %v904_v35 = vrot.slane %v864_v32, %v9632_v59 }
 0x2ef   :  { %3961 = vmatpush1.bf16.msra.mxu0 %v8636_v42  ;;  %4133 = vmatpush1.bf16.msra.mxu1 %v8638_v44 }
 0x2f0   :  { %3962 = vmatprep.subr.bf16.mxu0 %v8645_v46  ;;  %4134 = vmatprep.subr.bf16.mxu1 %v8647_v47 }
 0x2f3   :  { %3963 = vmatpush1.bf16.msra.mxu0 %v8644_v62  ;;  %4135 = vmatpush1.bf16.msra.mxu1 %v8646_v0 }
 0x2f4   :  { %3964 = vmatprep.subr.bf16.mxu0 %v8653_v4  ;;  %4136 = vmatprep.subr.bf16.mxu1 %v8655_v6 }
 0x2f7   :  { %3965 = vmatpush1.bf16.msra.mxu0 %v8652_v11  ;;  %4137 = vmatpush1.bf16.msra.mxu1 %v8654_v12 }
 0x2f8   :  { %3966 = vmatprep.subr.bf16.mxu0 %v8661_v13  ;;  %4138 = vmatprep.subr.bf16.mxu1 %v8663_v14 }
 0x2fb   :  { %3967 = vmatpush1.bf16.msra.mxu0 %v8660_v20  ;;  %4139 = vmatpush1.bf16.msra.mxu1 %v8662_v21 }
 0x2fc   :  { %3968 = vmatprep.subr.bf16.mxu0 %v8669_v22  ;;  %4140 = vmatprep.subr.bf16.mxu1 %v8671_v23 }
 0x2ff   :  { %3969 = vmatpush1.bf16.msra.mxu0 %v8668_v24  ;;  %4141 = vmatpush1.bf16.msra.mxu1 %v8670_v26 }
 0x302   :  { %3971 = vmatmul.mubr.bf16.vlgmr.msra.gmra.mrb[4].mxu0 %v9611_v63  ;;  %4143 = vmatmul.mubr.bf16.vlgmr.msra.gmra.mrb[4].mxu1 %v9611_v63  ;;  %v900_v63 = vrot.slane %v860_v31, %v9632_v59 }
 0x3d5   :  { %v3972_v36 = vpop.f32.mrb[4].mxu0  ;;  %v4144_v41 = vpop.f32.mrb[4].mxu1 }
 0x3d6   :  { %v9695_v40 = vadd.f32 %v3972_v36, %v892_v33  ;;  %v3974_v42 = vpop.f32.mrb[5].mxu0  ;;  %v9697_v44 = vadd.f32 %v4144_v41, %v900_v63  ;;  %v4146_v47 = vpop.f32.mrb[5].mxu1 }
 0x3d7   :  { %v9699_v46 = vadd.f32 %v3974_v42, %v896_v15  ;;  %v3976_v48 = vpop.f32.mrb[6].mxu0  ;;  %v9702_v54 = vadd.f32 %v4146_v47, %v904_v35  ;;  %v4148_v55 = vpop.f32.mrb[6].mxu1 }
 0x3d8   :  { %v10210_v53 = vmax.f32 %v9695_v40, 0.0  ;;  %v9704_v37 = vadd.f32 %v3976_v48, %v892_v33  ;;  %v3978_v62 = vpop.f32.mrb[7].mxu0  ;;  %v10209_v59 = vmax.f32 %v9697_v44, 0.0  ;;  %v9708_v4 = vadd.f32 %v4148_v55, %v900_v63  ;;  %v4150_v7 = vpop.f32.mrb[7].mxu1 }
 0x3d9   :  { %v10208_v0 = vmax.f32 %v9699_v46, 0.0  ;;  %v9710_v6 = vadd.f32 %v3978_v62, %v896_v15  ;;  %v10207_v8 = vmax.f32 %v9702_v54, 0.0  ;;  %v9714_v10 = vadd.f32 %v4150_v7, %v904_v35 }
 0x3da   :  { %v10206_v9 = vmax.f32 %v9704_v37, 0.0  ;;  %v10205_v11 = vmax.f32 %v9708_v4, 0.0 }
 0x3db   :  { %v10204_v12 = vmax.f32 %v9710_v6, 0.0  ;;  %v10203_v13 = vmax.f32 %v9714_v10, 0.0 }
 0x3dc   :  { %9240 = dma.done.wait [#allocation5], 65536 }
 0x3dd   :  { %9241 = vsyncadd [#allocation5], 4294901760  ;;  %v9723_v14 = vpack.c.bf16 %v10212_v3, %v10216_v51  ;;  %v4185_v16 = vld [vmem:[#allocation2 + $0x8] sm:$0xff]  ;;  %v4187_v17 = vld [vmem:[#allocation2 + $0x18] sm:$0xff] }
 0x3de   :  { %v4184_v18 = vld [vmem:[#allocation2] sm:$0xff]  ;;  %4768 = vmatprep.subr.bf16.mxu0 %v4185_v16  ;;  %4940 = vmatprep.subr.bf16.mxu1 %v4187_v17  ;;  %v4186_v19 = vld [vmem:[#allocation2 + $0x10] sm:$0xff]  ;;  %v4193_v20 = vld [vmem:[#allocation2 + $0x48] sm:$0xff] }
 0x3df   :  { %4800 = vmatprep.mubr.bf16.mxu0 %v9723_v14  ;;  %4972 = vmatprep.mubr.bf16.mxu1 %v9723_v14  ;;  %v4195_v21 = vld [vmem:[#allocation2 + $0x58] sm:$0xff]  ;;  %v4192_v22 = vld [vmem:[#allocation2 + $0x40] sm:$0xff]  ;;  %v4194_v23 = vld [vmem:[#allocation2 + $0x50] sm:$0xff] }
 0x3e0   :  { %4769 = vmatpush1.bf16.msra.mxu0 %v4184_v18  ;;  %4941 = vmatpush1.bf16.msra.mxu1 %v4186_v19  ;;  %v4201_v24 = vld [vmem:[#allocation2 + $0x88] sm:$0xff]  ;;  %v4203_v26 = vld [vmem:[#allocation2 + $0x98] sm:$0xff]  ;;  %v4200_v30 = vld [vmem:[#allocation2 + $0x80] sm:$0xff] }
 0x3e1   :  { %4770 = vmatprep.subr.bf16.mxu0 %v4193_v20  ;;  %4942 = vmatprep.subr.bf16.mxu1 %v4195_v21  ;;  %v4202_v31 = vld [vmem:[#allocation2 + $0x90] sm:$0xff]  ;;  %v4209_v58 = vld [vmem:[#allocation2 + $0xc8] sm:$0xff]  ;;  %v4211_v32 = vld [vmem:[#allocation2 + $0xd8] sm:$0xff] }
 0x3e2   :  { %v4208_v33 = vld [vmem:[#allocation2 + $0xc0] sm:$0xff]  ;;  %v4210_v63 = vld [vmem:[#allocation2 + $0xd0] sm:$0xff]  ;;  %v4217_v15 = vld [vmem:[#allocation2 + $0x108] sm:$0xff] }
 0x3e3   :  { %v4219_v35 = vld [vmem:[#allocation2 + $0x118] sm:$0xff]  ;;  %v4216_v36 = vld [vmem:[#allocation2 + $0x100] sm:$0xff]  ;;  %v4218_v41 = vld [vmem:[#allocation2 + $0x110] sm:$0xff] }
 0x3e4   :  { %4771 = vmatpush1.bf16.msra.mxu0 %v4192_v22  ;;  %4943 = vmatpush1.bf16.msra.mxu1 %v4194_v23  ;;  %v4225_v42 = vld [vmem:[#allocation2 + $0x148] sm:$0xff]  ;;  %v4227_v47 = vld [vmem:[#allocation2 + $0x158] sm:$0xff]  ;;  %v4224_v48 = vld [vmem:[#allocation2 + $0x140] sm:$0xff] }
 0x3e5   :  { %4772 = vmatprep.subr.bf16.mxu0 %v4201_v24  ;;  %4944 = vmatprep.subr.bf16.mxu1 %v4203_v26  ;;  %v4226_v55 = vld [vmem:[#allocation2 + $0x150] sm:$0xff]  ;;  %v4233_v62 = vld [vmem:[#allocation2 + $0x188] sm:$0xff]  ;;  %v4235_v7 = vld [vmem:[#allocation2 + $0x198] sm:$0xff] }
 0x3e6   :  { %v4232_v16 = vld [vmem:[#allocation2 + $0x180] sm:$0xff]  ;;  %v4234_v17 = vld [vmem:[#allocation2 + $0x190] sm:$0xff]  ;;  %v4241_v18 = vld [vmem:[#allocation2 + $0x1c8] sm:$0xff] }
 0x3e7   :  { %v4243_v19 = vld [vmem:[#allocation2 + $0x1d8] sm:$0xff]  ;;  %v4240_v20 = vld [vmem:[#allocation2 + $0x1c0] sm:$0xff]  ;;  %v4242_v21 = vld [vmem:[#allocation2 + $0x1d0] sm:$0xff] }
 0x3e8   :  { %4773 = vmatpush1.bf16.msra.mxu0 %v4200_v30  ;;  %4945 = vmatpush1.bf16.msra.mxu1 %v4202_v31  ;;  %v4249_v22 = vld [vmem:[#allocation2 + $0x208] sm:$0xff]  ;;  %v4251_v23 = vld [vmem:[#allocation2 + $0x218] sm:$0xff]  ;;  %v4248_v24 = vld [vmem:[#allocation2 + $0x200] sm:$0xff] }
 0x3e9   :  { %4774 = vmatprep.subr.bf16.mxu0 %v4209_v58  ;;  %4946 = vmatprep.subr.bf16.mxu1 %v4211_v32  ;;  %v4250_v26 = vld [vmem:[#allocation2 + $0x210] sm:$0xff]  ;;  %v4257_v30 = vld [vmem:[#allocation2 + $0x248] sm:$0xff]  ;;  %v4259_v31 = vld [vmem:[#allocation2 + $0x258] sm:$0xff] }
 0x3ea   :  { %v4256_v58 = vld [vmem:[#allocation2 + $0x240] sm:$0xff]  ;;  %v4258_v32 = vld [vmem:[#allocation2 + $0x250] sm:$0xff] }
 0x3ec   :  { %4775 = vmatpush1.bf16.msra.mxu0 %v4208_v33  ;;  %4947 = vmatpush1.bf16.msra.mxu1 %v4210_v63  ;;  %v4265_v33 = vld [vmem:[#allocation2 + $0x288] sm:$0xff]  ;;  %v4267_v63 = vld [vmem:[#allocation2 + $0x298] sm:$0xff] }
 0x3ed   :  { %4776 = vmatprep.subr.bf16.mxu0 %v4217_v15  ;;  %4948 = vmatprep.subr.bf16.mxu1 %v4219_v35  ;;  %v4264_v15 = vld [vmem:[#allocation2 + $0x280] sm:$0xff]  ;;  %v4266_v35 = vld [vmem:[#allocation2 + $0x290] sm:$0xff] }
 0x3f0   :  { %4777 = vmatpush1.bf16.msra.mxu0 %v4216_v36  ;;  %4949 = vmatpush1.bf16.msra.mxu1 %v4218_v41  ;;  %v4273_v36 = vld [vmem:[#allocation2 + $0x2c8] sm:$0xff]  ;;  %v4275_v41 = vld [vmem:[#allocation2 + $0x2d8] sm:$0xff] }
 0x3f1   :  { %4778 = vmatprep.subr.bf16.mxu0 %v4225_v42  ;;  %4950 = vmatprep.subr.bf16.mxu1 %v4227_v47  ;;  %v4272_v42 = vld [vmem:[#allocation2 + $0x2c0] sm:$0xff]  ;;  %v4274_v47 = vld [vmem:[#allocation2 + $0x2d0] sm:$0xff] }
 0x3f4   :  { %4779 = vmatpush1.bf16.msra.mxu0 %v4224_v48  ;;  %4951 = vmatpush1.bf16.msra.mxu1 %v4226_v55  ;;  %v4281_v48 = vld [vmem:[#allocation2 + $0x308] sm:$0xff]  ;;  %v4283_v55 = vld [vmem:[#allocation2 + $0x318] sm:$0xff] }
 0x3f5   :  { %4780 = vmatprep.subr.bf16.mxu0 %v4233_v62  ;;  %4952 = vmatprep.subr.bf16.mxu1 %v4235_v7  ;;  %v4280_v62 = vld [vmem:[#allocation2 + $0x300] sm:$0xff]  ;;  %v4282_v7 = vld [vmem:[#allocation2 + $0x310] sm:$0xff] }
 0x3f8   :  { %4781 = vmatpush1.bf16.msra.mxu0 %v4232_v16  ;;  %4953 = vmatpush1.bf16.msra.mxu1 %v4234_v17  ;;  %v4289_v16 = vld [vmem:[#allocation2 + $0x348] sm:$0xff]  ;;  %v4291_v17 = vld [vmem:[#allocation2 + $0x358] sm:$0xff] }
 0x3f9   :  { %4782 = vmatprep.subr.bf16.mxu0 %v4241_v18  ;;  %4954 = vmatprep.subr.bf16.mxu1 %v4243_v19  ;;  %v4288_v18 = vld [vmem:[#allocation2 + $0x340] sm:$0xff]  ;;  %v4290_v19 = vld [vmem:[#allocation2 + $0x350] sm:$0xff] }
 0x3fc   :  { %4783 = vmatpush1.bf16.msra.mxu0 %v4240_v20  ;;  %4955 = vmatpush1.bf16.msra.mxu1 %v4242_v21  ;;  %v4297_v20 = vld [vmem:[#allocation2 + $0x388] sm:$0xff]  ;;  %v4299_v21 = vld [vmem:[#allocation2 + $0x398] sm:$0xff] }
 0x3fd   :  { %4784 = vmatprep.subr.bf16.mxu0 %v4249_v22  ;;  %4956 = vmatprep.subr.bf16.mxu1 %v4251_v23  ;;  %v4296_v22 = vld [vmem:[#allocation2 + $0x380] sm:$0xff]  ;;  %v4298_v23 = vld [vmem:[#allocation2 + $0x390] sm:$0xff] }
 0x400   :  { %4785 = vmatpush1.bf16.msra.mxu0 %v4248_v24  ;;  %4957 = vmatpush1.bf16.msra.mxu1 %v4250_v26  ;;  %v4305_v24 = vld [vmem:[#allocation2 + $0x3c8] sm:$0xff]  ;;  %v4307_v26 = vld [vmem:[#allocation2 + $0x3d8] sm:$0xff] }
 0x401   :  { %4786 = vmatprep.subr.bf16.mxu0 %v4257_v30  ;;  %4958 = vmatprep.subr.bf16.mxu1 %v4259_v31  ;;  %v4304_v30 = vld [vmem:[#allocation2 + $0x3c0] sm:$0xff]  ;;  %v4306_v31 = vld [vmem:[#allocation2 + $0x3d0] sm:$0xff] }
 0x404   :  { %4787 = vmatpush1.bf16.msra.mxu0 %v4256_v58  ;;  %4959 = vmatpush1.bf16.msra.mxu1 %v4258_v32  ;;  %v4313_v58 = vld [vmem:[#allocation2 + $0x408] sm:$0xff]  ;;  %v4315_v32 = vld [vmem:[#allocation2 + $0x418] sm:$0xff] }
 0x405   :  { %4788 = vmatprep.subr.bf16.mxu0 %v4265_v33  ;;  %4960 = vmatprep.subr.bf16.mxu1 %v4267_v63  ;;  %v9731_v33 = vpack.c.bf16 %v10214_v57, %v4153_v45  ;;  %v4312_v63 = vld [vmem:[#allocation2 + $0x400] sm:$0xff] }
 0x408   :  { %4789 = vmatpush1.bf16.msra.mxu0 %v4264_v15  ;;  %4961 = vmatpush1.bf16.msra.mxu1 %v4266_v35  ;;  %v4314_v15 = vld [vmem:[#allocation2 + $0x410] sm:$0xff]  ;;  %v4321_v35 = vld [vmem:[#allocation2 + $0x448] sm:$0xff] }
 0x409   :  { %4790 = vmatprep.subr.bf16.mxu0 %v4273_v36  ;;  %4962 = vmatprep.subr.bf16.mxu1 %v4275_v41  ;;  %v4323_v36 = vld [vmem:[#allocation2 + $0x458] sm:$0xff]  ;;  %v9737_v41 = vpack.c.bf16 %v10211_v5, %v10215_v56 }
 0x40c   :  { %4791 = vmatpush1.bf16.msra.mxu0 %v4272_v42  ;;  %4963 = vmatpush1.bf16.msra.mxu1 %v4274_v47  ;;  %v4320_v42 = vld [vmem:[#allocation2 + $0x440] sm:$0xff]  ;;  %v4322_v47 = vld [vmem:[#allocation2 + $0x450] sm:$0xff] }
 0x40d   :  { %4792 = vmatprep.subr.bf16.mxu0 %v4281_v48  ;;  %4964 = vmatprep.subr.bf16.mxu1 %v4283_v55  ;;  %v4329_v48 = vld [vmem:[#allocation2 + $0x488] sm:$0xff]  ;;  %v4331_v55 = vld [vmem:[#allocation2 + $0x498] sm:$0xff] }
 0x410   :  { %4793 = vmatpush1.bf16.msra.mxu0 %v4280_v62  ;;  %4965 = vmatpush1.bf16.msra.mxu1 %v4282_v7  ;;  %v4328_v62 = vld [vmem:[#allocation2 + $0x480] sm:$0xff]  ;;  %v4330_v7 = vld [vmem:[#allocation2 + $0x490] sm:$0xff] }
 0x411   :  { %4794 = vmatprep.subr.bf16.mxu0 %v4289_v16  ;;  %4966 = vmatprep.subr.bf16.mxu1 %v4291_v17  ;;  %v4337_v16 = vld [vmem:[#allocation2 + $0x4c8] sm:$0xff]  ;;  %v4339_v17 = vld [vmem:[#allocation2 + $0x4d8] sm:$0xff] }
 0x414   :  { %4795 = vmatpush1.bf16.msra.mxu0 %v4288_v18  ;;  %4967 = vmatpush1.bf16.msra.mxu1 %v4290_v19  ;;  %v4336_v18 = vld [vmem:[#allocation2 + $0x4c0] sm:$0xff]  ;;  %v4338_v19 = vld [vmem:[#allocation2 + $0x4d0] sm:$0xff] }
 0x415   :  { %4796 = vmatprep.subr.bf16.mxu0 %v4297_v20  ;;  %4968 = vmatprep.subr.bf16.mxu1 %v4299_v21  ;;  %v4345_v20 = vld [vmem:[#allocation2 + $0x508] sm:$0xff]  ;;  %v4347_v21 = vld [vmem:[#allocation2 + $0x518] sm:$0xff] }
 0x418   :  { %4797 = vmatpush1.bf16.msra.mxu0 %v4296_v22  ;;  %4969 = vmatpush1.bf16.msra.mxu1 %v4298_v23  ;;  %v4344_v22 = vld [vmem:[#allocation2 + $0x500] sm:$0xff]  ;;  %v4346_v23 = vld [vmem:[#allocation2 + $0x510] sm:$0xff] }
 0x419   :  { %4798 = vmatprep.subr.bf16.mxu0 %v4305_v24  ;;  %4970 = vmatprep.subr.bf16.mxu1 %v4307_v26  ;;  %v4353_v24 = vld [vmem:[#allocation2 + $0x548] sm:$0xff]  ;;  %v4355_v26 = vld [vmem:[#allocation2 + $0x558] sm:$0xff] }
 0x41c   :  { %4799 = vmatpush1.bf16.msra.mxu0 %v4304_v30  ;;  %4971 = vmatpush1.bf16.msra.mxu1 %v4306_v31  ;;  %v4352_v30 = vld [vmem:[#allocation2 + $0x540] sm:$0xff]  ;;  %v4354_v31 = vld [vmem:[#allocation2 + $0x550] sm:$0xff] }
 0x41d   :  { %4811 = vmatprep.subr.bf16.mxu0 %v4313_v58  ;;  %4983 = vmatprep.subr.bf16.mxu1 %v4315_v32  ;;  %v4361_v58 = vld [vmem:[#allocation2 + $0x588] sm:$0xff]  ;;  %v4363_v32 = vld [vmem:[#allocation2 + $0x598] sm:$0xff] }
 0x41f   :  { %4801 = vmatmul.mubr.bf16.vlgmr.msra.gmra.mrb[8].mxu0 %v9731_v33  ;;  %4973 = vmatmul.mubr.bf16.vlgmr.msra.gmra.mrb[8].mxu1 %v9731_v33 }
 0x420   :  { %4812 = vmatpush1.bf16.msra.mxu0 %v4312_v63  ;;  %4984 = vmatpush1.bf16.msra.mxu1 %v4314_v15  ;;  %v4360_v63 = vld [vmem:[#allocation2 + $0x580] sm:$0xff]  ;;  %v4362_v15 = vld [vmem:[#allocation2 + $0x590] sm:$0xff] }
 0x421   :  { %4813 = vmatprep.subr.bf16.mxu0 %v4321_v35  ;;  %4985 = vmatprep.subr.bf16.mxu1 %v4323_v36  ;;  %v4369_v35 = vld [vmem:[#allocation2 + $0x5c8] sm:$0xff]  ;;  %v4371_v36 = vld [vmem:[#allocation2 + $0x5d8] sm:$0xff] }
 0x422   :  { %4843 = vmatprep.mubr.bf16.mxu0 %v9737_v41  ;;  %5015 = vmatprep.mubr.bf16.mxu1 %v9737_v41 }
 0x424   :  { %4814 = vmatpush1.bf16.msra.mxu0 %v4320_v42  ;;  %4986 = vmatpush1.bf16.msra.mxu1 %v4322_v47  ;;  %v4368_v42 = vld [vmem:[#allocation2 + $0x5c0] sm:$0xff]  ;;  %v4370_v47 = vld [vmem:[#allocation2 + $0x5d0] sm:$0xff] }
 0x425   :  { %4815 = vmatprep.subr.bf16.mxu0 %v4329_v48  ;;  %4987 = vmatprep.subr.bf16.mxu1 %v4331_v55  ;;  %v4377_v48 = vld [vmem:[#allocation2 + $0x608] sm:$0xff]  ;;  %v4379_v55 = vld [vmem:[#allocation2 + $0x618] sm:$0xff] }
 0x428   :  { %4816 = vmatpush1.bf16.msra.mxu0 %v4328_v62  ;;  %4988 = vmatpush1.bf16.msra.mxu1 %v4330_v7  ;;  %v4376_v62 = vld [vmem:[#allocation2 + $0x600] sm:$0xff]  ;;  %v4378_v7 = vld [vmem:[#allocation2 + $0x610] sm:$0xff] }
 0x429   :  { %4817 = vmatprep.subr.bf16.mxu0 %v4337_v16  ;;  %4989 = vmatprep.subr.bf16.mxu1 %v4339_v17  ;;  %v4385_v16 = vld [vmem:[#allocation2 + $0x648] sm:$0xff]  ;;  %v4387_v17 = vld [vmem:[#allocation2 + $0x658] sm:$0xff] }
 0x42c   :  { %4818 = vmatpush1.bf16.msra.mxu0 %v4336_v18  ;;  %4990 = vmatpush1.bf16.msra.mxu1 %v4338_v19  ;;  %v4384_v18 = vld [vmem:[#allocation2 + $0x640] sm:$0xff]  ;;  %v4386_v19 = vld [vmem:[#allocation2 + $0x650] sm:$0xff] }
 0x42d   :  { %4819 = vmatprep.subr.bf16.mxu0 %v4345_v20  ;;  %4991 = vmatprep.subr.bf16.mxu1 %v4347_v21  ;;  %v4393_v20 = vld [vmem:[#allocation2 + $0x688] sm:$0xff]  ;;  %v4395_v21 = vld [vmem:[#allocation2 + $0x698] sm:$0xff] }
 0x430   :  { %4820 = vmatpush1.bf16.msra.mxu0 %v4344_v22  ;;  %4992 = vmatpush1.bf16.msra.mxu1 %v4346_v23  ;;  %v4392_v22 = vld [vmem:[#allocation2 + $0x680] sm:$0xff]  ;;  %v4394_v23 = vld [vmem:[#allocation2 + $0x690] sm:$0xff] }
 0x431   :  { %4821 = vmatprep.subr.bf16.mxu0 %v4353_v24  ;;  %4993 = vmatprep.subr.bf16.mxu1 %v4355_v26  ;;  %v4401_v24 = vld [vmem:[#allocation2 + $0x6c8] sm:$0xff]  ;;  %v4403_v26 = vld [vmem:[#allocation2 + $0x6d8] sm:$0xff] }
 0x434   :  { %4822 = vmatpush1.bf16.msra.mxu0 %v4352_v30  ;;  %4994 = vmatpush1.bf16.msra.mxu1 %v4354_v31  ;;  %v4400_v30 = vld [vmem:[#allocation2 + $0x6c0] sm:$0xff]  ;;  %v4402_v31 = vld [vmem:[#allocation2 + $0x6d0] sm:$0xff] }
 0x435   :  { %4823 = vmatprep.subr.bf16.mxu0 %v4361_v58  ;;  %4995 = vmatprep.subr.bf16.mxu1 %v4363_v32  ;;  %v4409_v58 = vld [vmem:[#allocation2 + $0x708] sm:$0xff]  ;;  %v4411_v32 = vld [vmem:[#allocation2 + $0x718] sm:$0xff] }
 0x438   :  { %4824 = vmatpush1.bf16.msra.mxu0 %v4360_v63  ;;  %4996 = vmatpush1.bf16.msra.mxu1 %v4362_v15  ;;  %v4408_v63 = vld [vmem:[#allocation2 + $0x700] sm:$0xff]  ;;  %v4410_v15 = vld [vmem:[#allocation2 + $0x710] sm:$0xff] }
 0x439   :  { %4825 = vmatprep.subr.bf16.mxu0 %v4369_v35  ;;  %4997 = vmatprep.subr.bf16.mxu1 %v4371_v36  ;;  %v4417_v35 = vld [vmem:[#allocation2 + $0x748] sm:$0xff]  ;;  %v4419_v36 = vld [vmem:[#allocation2 + $0x758] sm:$0xff] }
 0x43c   :  { %4826 = vmatpush1.bf16.msra.mxu0 %v4368_v42  ;;  %4998 = vmatpush1.bf16.msra.mxu1 %v4370_v47  ;;  %v4416_v42 = vld [vmem:[#allocation2 + $0x740] sm:$0xff]  ;;  %v4418_v47 = vld [vmem:[#allocation2 + $0x750] sm:$0xff] }
 0x43d   :  { %4827 = vmatprep.subr.bf16.mxu0 %v4377_v48  ;;  %4999 = vmatprep.subr.bf16.mxu1 %v4379_v55  ;;  %v4425_v48 = vld [vmem:[#allocation2 + $0x788] sm:$0xff]  ;;  %v4427_v55 = vld [vmem:[#allocation2 + $0x798] sm:$0xff] }
 0x440   :  { %4828 = vmatpush1.bf16.msra.mxu0 %v4376_v62  ;;  %5000 = vmatpush1.bf16.msra.mxu1 %v4378_v7  ;;  %v4424_v62 = vld [vmem:[#allocation2 + $0x780] sm:$0xff]  ;;  %v4426_v7 = vld [vmem:[#allocation2 + $0x790] sm:$0xff] }
 0x441   :  { %4829 = vmatprep.subr.bf16.mxu0 %v4385_v16  ;;  %5001 = vmatprep.subr.bf16.mxu1 %v4387_v17  ;;  %v4433_v16 = vld [vmem:[#allocation2 + $0x7c8] sm:$0xff]  ;;  %v4435_v17 = vld [vmem:[#allocation2 + $0x7d8] sm:$0xff] }
 0x444   :  { %4830 = vmatpush1.bf16.msra.mxu0 %v4384_v18  ;;  %5002 = vmatpush1.bf16.msra.mxu1 %v4386_v19  ;;  %v4432_v18 = vld [vmem:[#allocation2 + $0x7c0] sm:$0xff]  ;;  %v4434_v19 = vld [vmem:[#allocation2 + $0x7d0] sm:$0xff] }
 0x445   :  { %4831 = vmatprep.subr.bf16.mxu0 %v4393_v20  ;;  %5003 = vmatprep.subr.bf16.mxu1 %v4395_v21  ;;  %v4441_v20 = vld [vmem:[#allocation2 + $0x808] sm:$0xff]  ;;  %v4443_v21 = vld [vmem:[#allocation2 + $0x818] sm:$0xff] }
 0x448   :  { %4832 = vmatpush1.bf16.msra.mxu0 %v4392_v22  ;;  %5004 = vmatpush1.bf16.msra.mxu1 %v4394_v23  ;;  %v9747_v22 = vpack.c.bf16 %v10213_v2, %v10217_v49  ;;  %v4440_v23 = vld [vmem:[#allocation2 + $0x800] sm:$0xff] }
 0x449   :  { %4833 = vmatprep.subr.bf16.mxu0 %v4401_v24  ;;  %5005 = vmatprep.subr.bf16.mxu1 %v4403_v26  ;;  %v4442_v24 = vld [vmem:[#allocation2 + $0x810] sm:$0xff]  ;;  %v4449_v26 = vld [vmem:[#allocation2 + $0x848] sm:$0xff] }
 0x44c   :  { %4834 = vmatpush1.bf16.msra.mxu0 %v4400_v30  ;;  %5006 = vmatpush1.bf16.msra.mxu1 %v4402_v31  ;;  %v4451_v30 = vld [vmem:[#allocation2 + $0x858] sm:$0xff]  ;;  %v9753_v31 = vpack.c.bf16 %v10204_v12, %v10208_v0 }
 0x44d   :  { %4835 = vmatprep.subr.bf16.mxu0 %v4409_v58  ;;  %5007 = vmatprep.subr.bf16.mxu1 %v4411_v32  ;;  %v4448_v58 = vld [vmem:[#allocation2 + $0x840] sm:$0xff]  ;;  %v4450_v32 = vld [vmem:[#allocation2 + $0x850] sm:$0xff]  ;;  %v4631_v12 = vld [vmem:[#allocation2 + $0xdf8] sm:$0xff] }
 0x450   :  { %4836 = vmatpush1.bf16.msra.mxu0 %v4408_v63  ;;  %5008 = vmatpush1.bf16.msra.mxu1 %v4410_v15  ;;  %v4457_v63 = vld [vmem:[#allocation2 + $0x888] sm:$0xff]  ;;  %v4459_v15 = vld [vmem:[#allocation2 + $0x898] sm:$0xff] }
 0x451   :  { %4837 = vmatprep.subr.bf16.mxu0 %v4417_v35  ;;  %5009 = vmatprep.subr.bf16.mxu1 %v4419_v36  ;;  %v4456_v35 = vld [vmem:[#allocation2 + $0x880] sm:$0xff]  ;;  %v4458_v36 = vld [vmem:[#allocation2 + $0x890] sm:$0xff] }
 0x454   :  { %4838 = vmatpush1.bf16.msra.mxu0 %v4416_v42  ;;  %5010 = vmatpush1.bf16.msra.mxu1 %v4418_v47  ;;  %v4465_v42 = vld [vmem:[#allocation2 + $0x8c8] sm:$0xff]  ;;  %v4467_v47 = vld [vmem:[#allocation2 + $0x8d8] sm:$0xff] }
 0x455   :  { %4839 = vmatprep.subr.bf16.mxu0 %v4425_v48  ;;  %5011 = vmatprep.subr.bf16.mxu1 %v4427_v55  ;;  %v4464_v48 = vld [vmem:[#allocation2 + $0x8c0] sm:$0xff]  ;;  %v4466_v55 = vld [vmem:[#allocation2 + $0x8d0] sm:$0xff] }
 0x458   :  { %4840 = vmatpush1.bf16.msra.mxu0 %v4424_v62  ;;  %5012 = vmatpush1.bf16.msra.mxu1 %v4426_v7  ;;  %v4473_v62 = vld [vmem:[#allocation2 + $0x908] sm:$0xff]  ;;  %v4475_v7 = vld [vmem:[#allocation2 + $0x918] sm:$0xff] }
 0x459   :  { %4841 = vmatprep.subr.bf16.mxu0 %v4433_v16  ;;  %5013 = vmatprep.subr.bf16.mxu1 %v4435_v17  ;;  %v4472_v16 = vld [vmem:[#allocation2 + $0x900] sm:$0xff]  ;;  %v4474_v17 = vld [vmem:[#allocation2 + $0x910] sm:$0xff] }
 0x45c   :  { %4842 = vmatpush1.bf16.msra.mxu0 %v4432_v18  ;;  %5014 = vmatpush1.bf16.msra.mxu1 %v4434_v19  ;;  %v4481_v18 = vld [vmem:[#allocation2 + $0x948] sm:$0xff]  ;;  %v4483_v19 = vld [vmem:[#allocation2 + $0x958] sm:$0xff] }
 0x45d   :  { %4854 = vmatprep.subr.bf16.mxu0 %v4441_v20  ;;  %5026 = vmatprep.subr.bf16.mxu1 %v4443_v21  ;;  %v4480_v20 = vld [vmem:[#allocation2 + $0x940] sm:$0xff]  ;;  %v4482_v21 = vld [vmem:[#allocation2 + $0x950] sm:$0xff] }
 0x45f   :  { %4844 = vmatmul.mubr.bf16.vlgmr.msra.gmra.mrb[8].mxu0 %v9747_v22  ;;  %5016 = vmatmul.mubr.bf16.vlgmr.msra.gmra.mrb[8].mxu1 %v9747_v22 }
 0x460   :  { %4855 = vmatpush1.bf16.msra.mxu0 %v4440_v23  ;;  %5027 = vmatpush1.bf16.msra.mxu1 %v4442_v24  ;;  %v4489_v23 = vld [vmem:[#allocation2 + $0x988] sm:$0xff]  ;;  %v4491_v24 = vld [vmem:[#allocation2 + $0x998] sm:$0xff] }
 0x461   :  { %4856 = vmatprep.subr.bf16.mxu0 %v4449_v26  ;;  %5028 = vmatprep.subr.bf16.mxu1 %v4451_v30  ;;  %v4488_v26 = vld [vmem:[#allocation2 + $0x980] sm:$0xff]  ;;  %v4490_v30 = vld [vmem:[#allocation2 + $0x990] sm:$0xff] }
 0x462   :  { %4886 = vmatprep.mubr.bf16.mxu0 %v9753_v31  ;;  %5058 = vmatprep.mubr.bf16.mxu1 %v9753_v31 }
 0x464   :  { %4857 = vmatpush1.bf16.msra.mxu0 %v4448_v58  ;;  %5029 = vmatpush1.bf16.msra.mxu1 %v4450_v32  ;;  %v4497_v58 = vld [vmem:[#allocation2 + $0x9c8] sm:$0xff]  ;;  %v4499_v32 = vld [vmem:[#allocation2 + $0x9d8] sm:$0xff] }
 0x465   :  { %4858 = vmatprep.subr.bf16.mxu0 %v4457_v63  ;;  %5030 = vmatprep.subr.bf16.mxu1 %v4459_v15  ;;  %v4496_v63 = vld [vmem:[#allocation2 + $0x9c0] sm:$0xff]  ;;  %v4498_v15 = vld [vmem:[#allocation2 + $0x9d0] sm:$0xff] }
 0x468   :  { %4859 = vmatpush1.bf16.msra.mxu0 %v4456_v35  ;;  %5031 = vmatpush1.bf16.msra.mxu1 %v4458_v36  ;;  %v4505_v35 = vld [vmem:[#allocation2 + $0xa08] sm:$0xff]  ;;  %v4507_v36 = vld [vmem:[#allocation2 + $0xa18] sm:$0xff] }
 0x469   :  { %4860 = vmatprep.subr.bf16.mxu0 %v4465_v42  ;;  %5032 = vmatprep.subr.bf16.mxu1 %v4467_v47  ;;  %v4504_v42 = vld [vmem:[#allocation2 + $0xa00] sm:$0xff]  ;;  %v4506_v47 = vld [vmem:[#allocation2 + $0xa10] sm:$0xff] }
 0x46c   :  { %4861 = vmatpush1.bf16.msra.mxu0 %v4464_v48  ;;  %5033 = vmatpush1.bf16.msra.mxu1 %v4466_v55  ;;  %v4513_v48 = vld [vmem:[#allocation2 + $0xa48] sm:$0xff]  ;;  %v4515_v55 = vld [vmem:[#allocation2 + $0xa58] sm:$0xff] }
 0x46d   :  { %4862 = vmatprep.subr.bf16.mxu0 %v4473_v62  ;;  %5034 = vmatprep.subr.bf16.mxu1 %v4475_v7  ;;  %v4512_v62 = vld [vmem:[#allocation2 + $0xa40] sm:$0xff]  ;;  %v4514_v7 = vld [vmem:[#allocation2 + $0xa50] sm:$0xff] }
 0x470   :  { %4863 = vmatpush1.bf16.msra.mxu0 %v4472_v16  ;;  %5035 = vmatpush1.bf16.msra.mxu1 %v4474_v17  ;;  %v4521_v16 = vld [vmem:[#allocation2 + $0xa88] sm:$0xff]  ;;  %v4523_v17 = vld [vmem:[#allocation2 + $0xa98] sm:$0xff] }
 0x471   :  { %4864 = vmatprep.subr.bf16.mxu0 %v4481_v18  ;;  %5036 = vmatprep.subr.bf16.mxu1 %v4483_v19  ;;  %v4520_v18 = vld [vmem:[#allocation2 + $0xa80] sm:$0xff]  ;;  %v4522_v19 = vld [vmem:[#allocation2 + $0xa90] sm:$0xff] }
 0x474   :  { %4865 = vmatpush1.bf16.msra.mxu0 %v4480_v20  ;;  %5037 = vmatpush1.bf16.msra.mxu1 %v4482_v21  ;;  %v4529_v20 = vld [vmem:[#allocation2 + $0xac8] sm:$0xff]  ;;  %v4531_v21 = vld [vmem:[#allocation2 + $0xad8] sm:$0xff] }
 0x475   :  { %4866 = vmatprep.subr.bf16.mxu0 %v4489_v23  ;;  %5038 = vmatprep.subr.bf16.mxu1 %v4491_v24  ;;  %v4528_v23 = vld [vmem:[#allocation2 + $0xac0] sm:$0xff]  ;;  %v4530_v24 = vld [vmem:[#allocation2 + $0xad0] sm:$0xff] }
 0x478   :  { %4867 = vmatpush1.bf16.msra.mxu0 %v4488_v26  ;;  %5039 = vmatpush1.bf16.msra.mxu1 %v4490_v30  ;;  %v4537_v26 = vld [vmem:[#allocation2 + $0xb08] sm:$0xff]  ;;  %v4539_v30 = vld [vmem:[#allocation2 + $0xb18] sm:$0xff] }
 0x479   :  { %4868 = vmatprep.subr.bf16.mxu0 %v4497_v58  ;;  %5040 = vmatprep.subr.bf16.mxu1 %v4499_v32  ;;  %v4536_v58 = vld [vmem:[#allocation2 + $0xb00] sm:$0xff]  ;;  %v4538_v32 = vld [vmem:[#allocation2 + $0xb10] sm:$0xff] }
 0x47c   :  { %4869 = vmatpush1.bf16.msra.mxu0 %v4496_v63  ;;  %5041 = vmatpush1.bf16.msra.mxu1 %v4498_v15  ;;  %v4545_v63 = vld [vmem:[#allocation2 + $0xb48] sm:$0xff]  ;;  %v4547_v15 = vld [vmem:[#allocation2 + $0xb58] sm:$0xff] }
 0x47d   :  { %4870 = vmatprep.subr.bf16.mxu0 %v4505_v35  ;;  %5042 = vmatprep.subr.bf16.mxu1 %v4507_v36  ;;  %v4544_v35 = vld [vmem:[#allocation2 + $0xb40] sm:$0xff]  ;;  %v4546_v36 = vld [vmem:[#allocation2 + $0xb50] sm:$0xff] }
 0x480   :  { %4871 = vmatpush1.bf16.msra.mxu0 %v4504_v42  ;;  %5043 = vmatpush1.bf16.msra.mxu1 %v4506_v47  ;;  %v4553_v42 = vld [vmem:[#allocation2 + $0xb88] sm:$0xff]  ;;  %v4555_v47 = vld [vmem:[#allocation2 + $0xb98] sm:$0xff] }
 0x481   :  { %4872 = vmatprep.subr.bf16.mxu0 %v4513_v48  ;;  %5044 = vmatprep.subr.bf16.mxu1 %v4515_v55  ;;  %v4552_v48 = vld [vmem:[#allocation2 + $0xb80] sm:$0xff]  ;;  %v4554_v55 = vld [vmem:[#allocation2 + $0xb90] sm:$0xff] }
 0x484   :  { %4873 = vmatpush1.bf16.msra.mxu0 %v4512_v62  ;;  %5045 = vmatpush1.bf16.msra.mxu1 %v4514_v7  ;;  %v4561_v62 = vld [vmem:[#allocation2 + $0xbc8] sm:$0xff]  ;;  %v4563_v7 = vld [vmem:[#allocation2 + $0xbd8] sm:$0xff] }
 0x485   :  { %4874 = vmatprep.subr.bf16.mxu0 %v4521_v16  ;;  %5046 = vmatprep.subr.bf16.mxu1 %v4523_v17  ;;  %v4560_v16 = vld [vmem:[#allocation2 + $0xbc0] sm:$0xff]  ;;  %v4562_v17 = vld [vmem:[#allocation2 + $0xbd0] sm:$0xff] }
 0x488   :  { %4875 = vmatpush1.bf16.msra.mxu0 %v4520_v18  ;;  %5047 = vmatpush1.bf16.msra.mxu1 %v4522_v19  ;;  %v4569_v18 = vld [vmem:[#allocation2 + $0xc08] sm:$0xff]  ;;  %v4571_v19 = vld [vmem:[#allocation2 + $0xc18] sm:$0xff] }
 0x489   :  { %4876 = vmatprep.subr.bf16.mxu0 %v4529_v20  ;;  %5048 = vmatprep.subr.bf16.mxu1 %v4531_v21  ;;  %v9763_v20 = vpack.c.bf16 %v10206_v9, %v10210_v53  ;;  %v4568_v21 = vld [vmem:[#allocation2 + $0xc00] sm:$0xff]  ;;  %v4647_v9 = vld [vmem:[#allocation2 + $0xe78] sm:$0xff] }
 0x48c   :  { %4877 = vmatpush1.bf16.msra.mxu0 %v4528_v23  ;;  %5049 = vmatpush1.bf16.msra.mxu1 %v4530_v24  ;;  %v4570_v23 = vld [vmem:[#allocation2 + $0xc10] sm:$0xff]  ;;  %v4577_v24 = vld [vmem:[#allocation2 + $0xc48] sm:$0xff] }
 0x48d   :  { %4878 = vmatprep.subr.bf16.mxu0 %v4537_v26  ;;  %5050 = vmatprep.subr.bf16.mxu1 %v4539_v30  ;;  %v4579_v26 = vld [vmem:[#allocation2 + $0xc58] sm:$0xff]  ;;  %v9769_v30 = vpack.c.bf16 %v10203_v13, %v10207_v8  ;;  %v4629_v13 = vld [vmem:[#allocation2 + $0xde8] sm:$0xff] }
 0x490   :  { %4879 = vmatpush1.bf16.msra.mxu0 %v4536_v58  ;;  %5051 = vmatpush1.bf16.msra.mxu1 %v4538_v32  ;;  %v4576_v58 = vld [vmem:[#allocation2 + $0xc40] sm:$0xff]  ;;  %v4578_v32 = vld [vmem:[#allocation2 + $0xc50] sm:$0xff] }
 0x491   :  { %4880 = vmatprep.subr.bf16.mxu0 %v4545_v63  ;;  %5052 = vmatprep.subr.bf16.mxu1 %v4547_v15  ;;  %v4585_v63 = vld [vmem:[#allocation2 + $0xc88] sm:$0xff]  ;;  %v4587_v15 = vld [vmem:[#allocation2 + $0xc98] sm:$0xff] }
 0x494   :  { %4881 = vmatpush1.bf16.msra.mxu0 %v4544_v35  ;;  %5053 = vmatpush1.bf16.msra.mxu1 %v4546_v36  ;;  %v4584_v35 = vld [vmem:[#allocation2 + $0xc80] sm:$0xff]  ;;  %v4586_v36 = vld [vmem:[#allocation2 + $0xc90] sm:$0xff] }
 0x495   :  { %4882 = vmatprep.subr.bf16.mxu0 %v4553_v42  ;;  %5054 = vmatprep.subr.bf16.mxu1 %v4555_v47  ;;  %v4593_v42 = vld [vmem:[#allocation2 + $0xcc8] sm:$0xff]  ;;  %v4595_v47 = vld [vmem:[#allocation2 + $0xcd8] sm:$0xff] }
 0x498   :  { %4883 = vmatpush1.bf16.msra.mxu0 %v4552_v48  ;;  %5055 = vmatpush1.bf16.msra.mxu1 %v4554_v55  ;;  %v4592_v48 = vld [vmem:[#allocation2 + $0xcc0] sm:$0xff]  ;;  %v4594_v55 = vld [vmem:[#allocation2 + $0xcd0] sm:$0xff] }
 0x499   :  { %4884 = vmatprep.subr.bf16.mxu0 %v4561_v62  ;;  %5056 = vmatprep.subr.bf16.mxu1 %v4563_v7  ;;  %v4601_v62 = vld [vmem:[#allocation2 + $0xd08] sm:$0xff]  ;;  %v4603_v7 = vld [vmem:[#allocation2 + $0xd18] sm:$0xff] }
 0x49c   :  { %4885 = vmatpush1.bf16.msra.mxu0 %v4560_v16  ;;  %5057 = vmatpush1.bf16.msra.mxu1 %v4562_v17  ;;  %v4600_v16 = vld [vmem:[#allocation2 + $0xd00] sm:$0xff]  ;;  %v4602_v17 = vld [vmem:[#allocation2 + $0xd10] sm:$0xff] }
 0x49d   :  { %4897 = vmatprep.subr.bf16.mxu0 %v4569_v18  ;;  %5069 = vmatprep.subr.bf16.mxu1 %v4571_v19  ;;  %v4609_v18 = vld [vmem:[#allocation2 + $0xd48] sm:$0xff]  ;;  %v4611_v19 = vld [vmem:[#allocation2 + $0xd58] sm:$0xff] }
 0x49f   :  { %4887 = vmatmul.mubr.bf16.vlgmr.msra.gmra.mrb[8].mxu0 %v9763_v20  ;;  %5059 = vmatmul.mubr.bf16.vlgmr.msra.gmra.mrb[8].mxu1 %v9763_v20 }
 0x4a0   :  { %4898 = vmatpush1.bf16.msra.mxu0 %v4568_v21  ;;  %5070 = vmatpush1.bf16.msra.mxu1 %v4570_v23  ;;  %v4608_v21 = vld [vmem:[#allocation2 + $0xd40] sm:$0xff]  ;;  %v4610_v23 = vld [vmem:[#allocation2 + $0xd50] sm:$0xff] }
 0x4a1   :  { %4899 = vmatprep.subr.bf16.mxu0 %v4577_v24  ;;  %5071 = vmatprep.subr.bf16.mxu1 %v4579_v26  ;;  %v4617_v24 = vld [vmem:[#allocation2 + $0xd88] sm:$0xff]  ;;  %v4619_v26 = vld [vmem:[#allocation2 + $0xd98] sm:$0xff] }
 0x4a2   :  { %4929 = vmatprep.mubr.bf16.mxu0 %v9769_v30  ;;  %5101 = vmatprep.mubr.bf16.mxu1 %v9769_v30 }
 0x4a4   :  { %4900 = vmatpush1.bf16.msra.mxu0 %v4576_v58  ;;  %5072 = vmatpush1.bf16.msra.mxu1 %v4578_v32  ;;  %v4616_v58 = vld [vmem:[#allocation2 + $0xd80] sm:$0xff]  ;;  %v4618_v32 = vld [vmem:[#allocation2 + $0xd90] sm:$0xff] }
 0x4a5   :  { %4901 = vmatprep.subr.bf16.mxu0 %v4585_v63  ;;  %5073 = vmatprep.subr.bf16.mxu1 %v4587_v15  ;;  %v4625_v63 = vld [vmem:[#allocation2 + $0xdc8] sm:$0xff]  ;;  %v4627_v15 = vld [vmem:[#allocation2 + $0xdd8] sm:$0xff] }
 0x4a8   :  { %4902 = vmatpush1.bf16.msra.mxu0 %v4584_v35  ;;  %5074 = vmatpush1.bf16.msra.mxu1 %v4586_v36  ;;  %v4624_v35 = vld [vmem:[#allocation2 + $0xdc0] sm:$0xff]  ;;  %v4626_v36 = vld [vmem:[#allocation2 + $0xdd0] sm:$0xff] }
 0x4a9   :  { %4903 = vmatprep.subr.bf16.mxu0 %v4593_v42  ;;  %5075 = vmatprep.subr.bf16.mxu1 %v4595_v47  ;;  %v4633_v42 = vld [vmem:[#allocation2 + $0xe08] sm:$0xff]  ;;  %v4635_v47 = vld [vmem:[#allocation2 + $0xe18] sm:$0xff] }
 0x4ac   :  { %4904 = vmatpush1.bf16.msra.mxu0 %v4592_v48  ;;  %5076 = vmatpush1.bf16.msra.mxu1 %v4594_v55  ;;  %v4632_v48 = vld [vmem:[#allocation2 + $0xe00] sm:$0xff]  ;;  %v4634_v55 = vld [vmem:[#allocation2 + $0xe10] sm:$0xff] }
 0x4ad   :  { %4905 = vmatprep.subr.bf16.mxu0 %v4601_v62  ;;  %5077 = vmatprep.subr.bf16.mxu1 %v4603_v7  ;;  %v4641_v62 = vld [vmem:[#allocation2 + $0xe48] sm:$0xff]  ;;  %v4643_v7 = vld [vmem:[#allocation2 + $0xe58] sm:$0xff] }
 0x4b0   :  { %4906 = vmatpush1.bf16.msra.mxu0 %v4600_v16  ;;  %5078 = vmatpush1.bf16.msra.mxu1 %v4602_v17  ;;  %v4640_v16 = vld [vmem:[#allocation2 + $0xe40] sm:$0xff]  ;;  %v4642_v17 = vld [vmem:[#allocation2 + $0xe50] sm:$0xff] }
 0x4b1   :  { %4907 = vmatprep.subr.bf16.mxu0 %v4609_v18  ;;  %5079 = vmatprep.subr.bf16.mxu1 %v4611_v19  ;;  %v4649_v18 = vld [vmem:[#allocation2 + $0xe88] sm:$0xff]  ;;  %v4651_v19 = vld [vmem:[#allocation2 + $0xe98] sm:$0xff] }
 0x4b4   :  { %4908 = vmatpush1.bf16.msra.mxu0 %v4608_v21  ;;  %5080 = vmatpush1.bf16.msra.mxu1 %v4610_v23  ;;  %v4648_v21 = vld [vmem:[#allocation2 + $0xe80] sm:$0xff]  ;;  %v4650_v23 = vld [vmem:[#allocation2 + $0xe90] sm:$0xff] }
 0x4b5   :  { %4909 = vmatprep.subr.bf16.mxu0 %v4617_v24  ;;  %5081 = vmatprep.subr.bf16.mxu1 %v4619_v26  ;;  %v4657_v24 = vld [vmem:[#allocation2 + $0xec8] sm:$0xff]  ;;  %v4659_v26 = vld [vmem:[#allocation2 + $0xed8] sm:$0xff] }
 0x4b8   :  { %4910 = vmatpush1.bf16.msra.mxu0 %v4616_v58  ;;  %5082 = vmatpush1.bf16.msra.mxu1 %v4618_v32  ;;  %v4656_v58 = vld [vmem:[#allocation2 + $0xec0] sm:$0xff]  ;;  %v4658_v32 = vld [vmem:[#allocation2 + $0xed0] sm:$0xff] }
 0x4b9   :  { %4911 = vmatprep.subr.bf16.mxu0 %v4625_v63  ;;  %5083 = vmatprep.subr.bf16.mxu1 %v4627_v15  ;;  %v4665_v63 = vld [vmem:[#allocation2 + $0xf08] sm:$0xff]  ;;  %v4667_v15 = vld [vmem:[#allocation2 + $0xf18] sm:$0xff] }
 0x4bc   :  { %4912 = vmatpush1.bf16.msra.mxu0 %v4624_v35  ;;  %5084 = vmatpush1.bf16.msra.mxu1 %v4626_v36  ;;  %v4664_v35 = vld [vmem:[#allocation2 + $0xf00] sm:$0xff]  ;;  %v4666_v36 = vld [vmem:[#allocation2 + $0xf10] sm:$0xff] }
 0x4bd   :  { %4913 = vmatprep.subr.bf16.mxu0 %v4633_v42  ;;  %5085 = vmatprep.subr.bf16.mxu1 %v4635_v47  ;;  %v4673_v42 = vld [vmem:[#allocation2 + $0xf48] sm:$0xff]  ;;  %v4675_v47 = vld [vmem:[#allocation2 + $0xf58] sm:$0xff] }
 0x4c0   :  { %4914 = vmatpush1.bf16.msra.mxu0 %v4632_v48  ;;  %5086 = vmatpush1.bf16.msra.mxu1 %v4634_v55  ;;  %v4672_v48 = vld [vmem:[#allocation2 + $0xf40] sm:$0xff]  ;;  %v4674_v55 = vld [vmem:[#allocation2 + $0xf50] sm:$0xff] }
 0x4c1   :  { %4915 = vmatprep.subr.bf16.mxu0 %v4641_v62  ;;  %5087 = vmatprep.subr.bf16.mxu1 %v4643_v7  ;;  %v4681_v62 = vld [vmem:[#allocation2 + $0xf88] sm:$0xff]  ;;  %v4683_v7 = vld [vmem:[#allocation2 + $0xf98] sm:$0xff] }
 0x4c4   :  { %4916 = vmatpush1.bf16.msra.mxu0 %v4640_v16  ;;  %5088 = vmatpush1.bf16.msra.mxu1 %v4642_v17  ;;  %v4680_v16 = vld [vmem:[#allocation2 + $0xf80] sm:$0xff]  ;;  %v4682_v17 = vld [vmem:[#allocation2 + $0xf90] sm:$0xff] }
 0x4c5   :  { %4917 = vmatprep.subr.bf16.mxu0 %v4649_v18  ;;  %5089 = vmatprep.subr.bf16.mxu1 %v4651_v19  ;;  %v4689_v18 = vld [vmem:[#allocation2 + $0xfc8] sm:$0xff]  ;;  %v4691_v19 = vld [vmem:[#allocation2 + $0xfd8] sm:$0xff] }
 0x4c8   :  { %4918 = vmatpush1.bf16.msra.mxu0 %v4648_v21  ;;  %5090 = vmatpush1.bf16.msra.mxu1 %v4650_v23  ;;  %v4688_v21 = vld [vmem:[#allocation2 + $0xfc0] sm:$0xff]  ;;  %v4690_v23 = vld [vmem:[#allocation2 + $0xfd0] sm:$0xff] }
 0x4c9   :  { %4919 = vmatprep.subr.bf16.mxu0 %v4657_v24  ;;  %5091 = vmatprep.subr.bf16.mxu1 %v4659_v26  ;;  %v4189_v24 = vld [vmem:[#allocation2 + $0x28] sm:$0xff]  ;;  %v4191_v26 = vld [vmem:[#allocation2 + $0x38] sm:$0xff] }
 0x4cc   :  { %4920 = vmatpush1.bf16.msra.mxu0 %v4656_v58  ;;  %5092 = vmatpush1.bf16.msra.mxu1 %v4658_v32  ;;  %v9779_v58 = vpack.c.bf16 %v10205_v11, %v10209_v59  ;;  %v4188_v32 = vld [vmem:[#allocation2 + $0x20] sm:$0xff]  ;;  %v4645_v11 = vld [vmem:[#allocation2 + $0xe68] sm:$0xff] }
 0x4cd   :  { %4921 = vmatprep.subr.bf16.mxu0 %v4665_v63  ;;  %5093 = vmatprep.subr.bf16.mxu1 %v4667_v15  ;;  %v4190_v63 = vld [vmem:[#allocation2 + $0x30] sm:$0xff]  ;;  %v4197_v15 = vld [vmem:[#allocation2 + $0x68] sm:$0xff] }
 0x4d0   :  { %4922 = vmatpush1.bf16.msra.mxu0 %v4664_v35  ;;  %5094 = vmatpush1.bf16.msra.mxu1 %v4666_v36  ;;  %v4199_v35 = vld [vmem:[#allocation2 + $0x78] sm:$0xff]  ;;  %v4196_v36 = vld [vmem:[#allocation2 + $0x60] sm:$0xff] }
 0x4d1   :  { %4923 = vmatprep.subr.bf16.mxu0 %v4673_v42  ;;  %5095 = vmatprep.subr.bf16.mxu1 %v4675_v47  ;;  %v4198_v42 = vld [vmem:[#allocation2 + $0x70] sm:$0xff]  ;;  %v4205_v47 = vld [vmem:[#allocation2 + $0xa8] sm:$0xff] }
 0x4d4   :  { %4924 = vmatpush1.bf16.msra.mxu0 %v4672_v48  ;;  %5096 = vmatpush1.bf16.msra.mxu1 %v4674_v55  ;;  %v4207_v48 = vld [vmem:[#allocation2 + $0xb8] sm:$0xff]  ;;  %v4204_v55 = vld [vmem:[#allocation2 + $0xa0] sm:$0xff] }
 0x4d5   :  { %4925 = vmatprep.subr.bf16.mxu0 %v4681_v62  ;;  %5097 = vmatprep.subr.bf16.mxu1 %v4683_v7  ;;  %v4206_v62 = vld [vmem:[#allocation2 + $0xb0] sm:$0xff]  ;;  %v4213_v7 = vld [vmem:[#allocation2 + $0xe8] sm:$0xff] }
 0x4d8   :  { %4926 = vmatpush1.bf16.msra.mxu0 %v4680_v16  ;;  %5098 = vmatpush1.bf16.msra.mxu1 %v4682_v17  ;;  %v4215_v16 = vld [vmem:[#allocation2 + $0xf8] sm:$0xff]  ;;  %v4212_v17 = vld [vmem:[#allocation2 + $0xe0] sm:$0xff] }
 0x4d9   :  { %4927 = vmatprep.subr.bf16.mxu0 %v4689_v18  ;;  %5099 = vmatprep.subr.bf16.mxu1 %v4691_v19  ;;  %v4214_v18 = vld [vmem:[#allocation2 + $0xf0] sm:$0xff]  ;;  %v4221_v19 = vld [vmem:[#allocation2 + $0x128] sm:$0xff] }
 0x4dc   :  { %4928 = vmatpush1.bf16.msra.mxu0 %v4688_v21  ;;  %5100 = vmatpush1.bf16.msra.mxu1 %v4690_v23  ;;  %v4223_v21 = vld [vmem:[#allocation2 + $0x138] sm:$0xff]  ;;  %v4222_v23 = vld [vmem:[#allocation2 + $0x130] sm:$0xff] }
 0x4dd   :  { %5112 = vmatprep.subr.bf16.mxu0 %v4189_v24  ;;  %5284 = vmatprep.subr.bf16.mxu1 %v4191_v26  ;;  %v4229_v24 = vld [vmem:[#allocation2 + $0x168] sm:$0xff]  ;;  %v4231_v26 = vld [vmem:[#allocation2 + $0x178] sm:$0xff] }
 0x4df   :  { %4930 = vmatmul.mubr.bf16.vlgmr.msra.gmra.mrb[8].mxu0 %v9779_v58  ;;  %5102 = vmatmul.mubr.bf16.vlgmr.msra.gmra.mrb[8].mxu1 %v9779_v58 }
 0x4e0   :  { %5113 = vmatpush1.bf16.msra.mxu0 %v4188_v32  ;;  %5285 = vmatpush1.bf16.msra.mxu1 %v4190_v63  ;;  %v4228_v32 = vld [vmem:[#allocation2 + $0x160] sm:$0xff]  ;;  %v4230_v63 = vld [vmem:[#allocation2 + $0x170] sm:$0xff] }
 0x4e1   :  { %5114 = vmatprep.subr.bf16.mxu0 %v4197_v15  ;;  %5286 = vmatprep.subr.bf16.mxu1 %v4199_v35  ;;  %v4237_v15 = vld [vmem:[#allocation2 + $0x1a8] sm:$0xff]  ;;  %v4239_v35 = vld [vmem:[#allocation2 + $0x1b8] sm:$0xff] }
 0x4e2   :  { %5144 = vmatprep.mubr.bf16.mxu0 %v9723_v14  ;;  %5316 = vmatprep.mubr.bf16.mxu1 %v9723_v14  ;;  %v4220_v14 = vld [vmem:[#allocation2 + $0x120] sm:$0xff] }
 0x4e4   :  { %5115 = vmatpush1.bf16.msra.mxu0 %v4196_v36  ;;  %5287 = vmatpush1.bf16.msra.mxu1 %v4198_v42  ;;  %v4236_v36 = vld [vmem:[#allocation2 + $0x1a0] sm:$0xff]  ;;  %v4238_v42 = vld [vmem:[#allocation2 + $0x1b0] sm:$0xff] }
 0x4e5   :  { %5116 = vmatprep.subr.bf16.mxu0 %v4205_v47  ;;  %5288 = vmatprep.subr.bf16.mxu1 %v4207_v48  ;;  %v4245_v47 = vld [vmem:[#allocation2 + $0x1e8] sm:$0xff]  ;;  %v4247_v48 = vld [vmem:[#allocation2 + $0x1f8] sm:$0xff] }
 0x4e8   :  { %5117 = vmatpush1.bf16.msra.mxu0 %v4204_v55  ;;  %5289 = vmatpush1.bf16.msra.mxu1 %v4206_v62  ;;  %v4244_v55 = vld [vmem:[#allocation2 + $0x1e0] sm:$0xff]  ;;  %v4246_v62 = vld [vmem:[#allocation2 + $0x1f0] sm:$0xff] }
 0x4e9   :  { %5118 = vmatprep.subr.bf16.mxu0 %v4213_v7  ;;  %5290 = vmatprep.subr.bf16.mxu1 %v4215_v16  ;;  %v4253_v7 = vld [vmem:[#allocation2 + $0x228] sm:$0xff]  ;;  %v4255_v16 = vld [vmem:[#allocation2 + $0x238] sm:$0xff] }
 0x4ec   :  { %5119 = vmatpush1.bf16.msra.mxu0 %v4212_v17  ;;  %5291 = vmatpush1.bf16.msra.mxu1 %v4214_v18  ;;  %v4252_v17 = vld [vmem:[#allocation2 + $0x220] sm:$0xff]  ;;  %v4254_v18 = vld [vmem:[#allocation2 + $0x230] sm:$0xff] }
 0x4ed   :  { %5120 = vmatprep.subr.bf16.mxu0 %v4221_v19  ;;  %5292 = vmatprep.subr.bf16.mxu1 %v4223_v21  ;;  %v4261_v19 = vld [vmem:[#allocation2 + $0x268] sm:$0xff]  ;;  %v4263_v21 = vld [vmem:[#allocation2 + $0x278] sm:$0xff] }
 0x4f0   :  { %5121 = vmatpush1.bf16.msra.mxu0 %v4220_v14  ;;  %5293 = vmatpush1.bf16.msra.mxu1 %v4222_v23  ;;  %v4260_v14 = vld [vmem:[#allocation2 + $0x260] sm:$0xff]  ;;  %v4262_v23 = vld [vmem:[#allocation2 + $0x270] sm:$0xff] }
 0x4f1   :  { %5122 = vmatprep.subr.bf16.mxu0 %v4229_v24  ;;  %5294 = vmatprep.subr.bf16.mxu1 %v4231_v26  ;;  %v4269_v24 = vld [vmem:[#allocation2 + $0x2a8] sm:$0xff]  ;;  %v4271_v26 = vld [vmem:[#allocation2 + $0x2b8] sm:$0xff] }
 0x4f4   :  { %5123 = vmatpush1.bf16.msra.mxu0 %v4228_v32  ;;  %5295 = vmatpush1.bf16.msra.mxu1 %v4230_v63  ;;  %v4268_v32 = vld [vmem:[#allocation2 + $0x2a0] sm:$0xff]  ;;  %v4270_v63 = vld [vmem:[#allocation2 + $0x2b0] sm:$0xff] }
 0x4f5   :  { %5124 = vmatprep.subr.bf16.mxu0 %v4237_v15  ;;  %5296 = vmatprep.subr.bf16.mxu1 %v4239_v35  ;;  %v4277_v15 = vld [vmem:[#allocation2 + $0x2e8] sm:$0xff]  ;;  %v4279_v35 = vld [vmem:[#allocation2 + $0x2f8] sm:$0xff] }
 0x4f8   :  { %5125 = vmatpush1.bf16.msra.mxu0 %v4236_v36  ;;  %5297 = vmatpush1.bf16.msra.mxu1 %v4238_v42  ;;  %v4276_v36 = vld [vmem:[#allocation2 + $0x2e0] sm:$0xff]  ;;  %v4278_v42 = vld [vmem:[#allocation2 + $0x2f0] sm:$0xff] }
 0x4f9   :  { %5126 = vmatprep.subr.bf16.mxu0 %v4245_v47  ;;  %5298 = vmatprep.subr.bf16.mxu1 %v4247_v48  ;;  %v4285_v47 = vld [vmem:[#allocation2 + $0x328] sm:$0xff]  ;;  %v4287_v48 = vld [vmem:[#allocation2 + $0x338] sm:$0xff] }
 0x4fc   :  { %5127 = vmatpush1.bf16.msra.mxu0 %v4244_v55  ;;  %5299 = vmatpush1.bf16.msra.mxu1 %v4246_v62  ;;  %v4284_v55 = vld [vmem:[#allocation2 + $0x320] sm:$0xff]  ;;  %v4286_v62 = vld [vmem:[#allocation2 + $0x330] sm:$0xff] }
 0x4fd   :  { %5128 = vmatprep.subr.bf16.mxu0 %v4253_v7  ;;  %5300 = vmatprep.subr.bf16.mxu1 %v4255_v16  ;;  %v4293_v7 = vld [vmem:[#allocation2 + $0x368] sm:$0xff]  ;;  %v4295_v16 = vld [vmem:[#allocation2 + $0x378] sm:$0xff] }
 0x500   :  { %5129 = vmatpush1.bf16.msra.mxu0 %v4252_v17  ;;  %5301 = vmatpush1.bf16.msra.mxu1 %v4254_v18  ;;  %v4292_v17 = vld [vmem:[#allocation2 + $0x360] sm:$0xff]  ;;  %v4294_v18 = vld [vmem:[#allocation2 + $0x370] sm:$0xff] }
 0x501   :  { %5130 = vmatprep.subr.bf16.mxu0 %v4261_v19  ;;  %5302 = vmatprep.subr.bf16.mxu1 %v4263_v21  ;;  %v4301_v19 = vld [vmem:[#allocation2 + $0x3a8] sm:$0xff]  ;;  %v4303_v21 = vld [vmem:[#allocation2 + $0x3b8] sm:$0xff] }
 0x504   :  { %5131 = vmatpush1.bf16.msra.mxu0 %v4260_v14  ;;  %5303 = vmatpush1.bf16.msra.mxu1 %v4262_v23  ;;  %v4300_v14 = vld [vmem:[#allocation2 + $0x3a0] sm:$0xff]  ;;  %v4302_v23 = vld [vmem:[#allocation2 + $0x3b0] sm:$0xff] }
 0x505   :  { %5132 = vmatprep.subr.bf16.mxu0 %v4269_v24  ;;  %5304 = vmatprep.subr.bf16.mxu1 %v4271_v26  ;;  %v4309_v24 = vld [vmem:[#allocation2 + $0x3e8] sm:$0xff]  ;;  %v4311_v26 = vld [vmem:[#allocation2 + $0x3f8] sm:$0xff] }
 0x508   :  { %5133 = vmatpush1.bf16.msra.mxu0 %v4268_v32  ;;  %5305 = vmatpush1.bf16.msra.mxu1 %v4270_v63  ;;  %v4308_v32 = vld [vmem:[#allocation2 + $0x3e0] sm:$0xff]  ;;  %v4310_v63 = vld [vmem:[#allocation2 + $0x3f0] sm:$0xff] }
 0x509   :  { %5134 = vmatprep.subr.bf16.mxu0 %v4277_v15  ;;  %5306 = vmatprep.subr.bf16.mxu1 %v4279_v35  ;;  %v4317_v15 = vld [vmem:[#allocation2 + $0x428] sm:$0xff]  ;;  %v4319_v35 = vld [vmem:[#allocation2 + $0x438] sm:$0xff] }
 0x50c   :  { %5135 = vmatpush1.bf16.msra.mxu0 %v4276_v36  ;;  %5307 = vmatpush1.bf16.msra.mxu1 %v4278_v42  ;;  %v4316_v36 = vld [vmem:[#allocation2 + $0x420] sm:$0xff]  ;;  %v4318_v42 = vld [vmem:[#allocation2 + $0x430] sm:$0xff] }
 0x50d   :  { %5136 = vmatprep.subr.bf16.mxu0 %v4285_v47  ;;  %5308 = vmatprep.subr.bf16.mxu1 %v4287_v48  ;;  %v4325_v47 = vld [vmem:[#allocation2 + $0x468] sm:$0xff]  ;;  %v4327_v48 = vld [vmem:[#allocation2 + $0x478] sm:$0xff] }
 0x510   :  { %5137 = vmatpush1.bf16.msra.mxu0 %v4284_v55  ;;  %5309 = vmatpush1.bf16.msra.mxu1 %v4286_v62  ;;  %v4324_v55 = vld [vmem:[#allocation2 + $0x460] sm:$0xff]  ;;  %v4326_v62 = vld [vmem:[#allocation2 + $0x470] sm:$0xff] }
 0x511   :  { %5138 = vmatprep.subr.bf16.mxu0 %v4293_v7  ;;  %5310 = vmatprep.subr.bf16.mxu1 %v4295_v16  ;;  %v4333_v7 = vld [vmem:[#allocation2 + $0x4a8] sm:$0xff]  ;;  %v4335_v16 = vld [vmem:[#allocation2 + $0x4b8] sm:$0xff] }
 0x514   :  { %5139 = vmatpush1.bf16.msra.mxu0 %v4292_v17  ;;  %5311 = vmatpush1.bf16.msra.mxu1 %v4294_v18  ;;  %v4332_v17 = vld [vmem:[#allocation2 + $0x4a0] sm:$0xff]  ;;  %v4334_v18 = vld [vmem:[#allocation2 + $0x4b0] sm:$0xff] }
 0x515   :  { %5140 = vmatprep.subr.bf16.mxu0 %v4301_v19  ;;  %5312 = vmatprep.subr.bf16.mxu1 %v4303_v21  ;;  %v4341_v19 = vld [vmem:[#allocation2 + $0x4e8] sm:$0xff]  ;;  %v4340_v21 = vld [vmem:[#allocation2 + $0x4e0] sm:$0xff] }
 0x518   :  { %5141 = vmatpush1.bf16.msra.mxu0 %v4300_v14  ;;  %5313 = vmatpush1.bf16.msra.mxu1 %v4302_v23  ;;  %v4342_v14 = vld [vmem:[#allocation2 + $0x4f0] sm:$0xff]  ;;  %v4349_v23 = vld [vmem:[#allocation2 + $0x528] sm:$0xff] }
 0x519   :  { %5142 = vmatprep.subr.bf16.mxu0 %v4309_v24  ;;  %5314 = vmatprep.subr.bf16.mxu1 %v4311_v26  ;;  %v4351_v24 = vld [vmem:[#allocation2 + $0x538] sm:$0xff]  ;;  %v4350_v26 = vld [vmem:[#allocation2 + $0x530] sm:$0xff] }
 0x51c   :  { %5143 = vmatpush1.bf16.msra.mxu0 %v4308_v32  ;;  %5315 = vmatpush1.bf16.msra.mxu1 %v4310_v63  ;;  %v4357_v32 = vld [vmem:[#allocation2 + $0x568] sm:$0xff]  ;;  %v4359_v63 = vld [vmem:[#allocation2 + $0x578] sm:$0xff] }
 0x51d   :  { %5155 = vmatprep.subr.bf16.mxu0 %v4317_v15  ;;  %5327 = vmatprep.subr.bf16.mxu1 %v4319_v35  ;;  %v4356_v15 = vld [vmem:[#allocation2 + $0x560] sm:$0xff]  ;;  %v4358_v35 = vld [vmem:[#allocation2 + $0x570] sm:$0xff] }
 0x51f   :  { %5145 = vmatmul.mubr.bf16.vlgmr.msra.gmra.mrb[12].mxu0 %v9731_v33  ;;  %5317 = vmatmul.mubr.bf16.vlgmr.msra.gmra.mrb[12].mxu1 %v9731_v33  ;;  %v4343_v33 = vld [vmem:[#allocation2 + $0x4f8] sm:$0xff] }
 0x520   :  { %5156 = vmatpush1.bf16.msra.mxu0 %v4316_v36  ;;  %5328 = vmatpush1.bf16.msra.mxu1 %v4318_v42  ;;  %v4365_v36 = vld [vmem:[#allocation2 + $0x5a8] sm:$0xff]  ;;  %v4367_v42 = vld [vmem:[#allocation2 + $0x5b8] sm:$0xff] }
 0x521   :  { %5157 = vmatprep.subr.bf16.mxu0 %v4325_v47  ;;  %5329 = vmatprep.subr.bf16.mxu1 %v4327_v48  ;;  %v4364_v47 = vld [vmem:[#allocation2 + $0x5a0] sm:$0xff]  ;;  %v4366_v48 = vld [vmem:[#allocation2 + $0x5b0] sm:$0xff] }
 0x522   :  { %5187 = vmatprep.mubr.bf16.mxu0 %v9737_v41  ;;  %5359 = vmatprep.mubr.bf16.mxu1 %v9737_v41  ;;  %v4348_v41 = vld [vmem:[#allocation2 + $0x520] sm:$0xff] }
 0x524   :  { %5158 = vmatpush1.bf16.msra.mxu0 %v4324_v55  ;;  %5330 = vmatpush1.bf16.msra.mxu1 %v4326_v62  ;;  %v4373_v55 = vld [vmem:[#allocation2 + $0x5e8] sm:$0xff]  ;;  %v4375_v62 = vld [vmem:[#allocation2 + $0x5f8] sm:$0xff] }
 0x525   :  { %5159 = vmatprep.subr.bf16.mxu0 %v4333_v7  ;;  %5331 = vmatprep.subr.bf16.mxu1 %v4335_v16  ;;  %v4372_v7 = vld [vmem:[#allocation2 + $0x5e0] sm:$0xff]  ;;  %v4374_v16 = vld [vmem:[#allocation2 + $0x5f0] sm:$0xff] }
 0x528   :  { %5160 = vmatpush1.bf16.msra.mxu0 %v4332_v17  ;;  %5332 = vmatpush1.bf16.msra.mxu1 %v4334_v18  ;;  %v4381_v17 = vld [vmem:[#allocation2 + $0x628] sm:$0xff]  ;;  %v4383_v18 = vld [vmem:[#allocation2 + $0x638] sm:$0xff] }
 0x529   :  { %5161 = vmatprep.subr.bf16.mxu0 %v4341_v19  ;;  %5333 = vmatprep.subr.bf16.mxu1 %v4343_v33  ;;  %v4380_v19 = vld [vmem:[#allocation2 + $0x620] sm:$0xff]  ;;  %v4382_v33 = vld [vmem:[#allocation2 + $0x630] sm:$0xff] }
 0x52c   :  { %5162 = vmatpush1.bf16.msra.mxu0 %v4340_v21  ;;  %5334 = vmatpush1.bf16.msra.mxu1 %v4342_v14  ;;  %v4389_v21 = vld [vmem:[#allocation2 + $0x668] sm:$0xff]  ;;  %v4391_v14 = vld [vmem:[#allocation2 + $0x678] sm:$0xff] }
 0x52d   :  { %5163 = vmatprep.subr.bf16.mxu0 %v4349_v23  ;;  %5335 = vmatprep.subr.bf16.mxu1 %v4351_v24  ;;  %v4388_v23 = vld [vmem:[#allocation2 + $0x660] sm:$0xff]  ;;  %v4390_v24 = vld [vmem:[#allocation2 + $0x670] sm:$0xff] }
 0x530   :  { %5164 = vmatpush1.bf16.msra.mxu0 %v4348_v41  ;;  %5336 = vmatpush1.bf16.msra.mxu1 %v4350_v26  ;;  %v4397_v41 = vld [vmem:[#allocation2 + $0x6a8] sm:$0xff]  ;;  %v4399_v26 = vld [vmem:[#allocation2 + $0x6b8] sm:$0xff] }
 0x531   :  { %5165 = vmatprep.subr.bf16.mxu0 %v4357_v32  ;;  %5337 = vmatprep.subr.bf16.mxu1 %v4359_v63  ;;  %v4396_v32 = vld [vmem:[#allocation2 + $0x6a0] sm:$0xff]  ;;  %v4398_v63 = vld [vmem:[#allocation2 + $0x6b0] sm:$0xff] }
 0x534   :  { %5166 = vmatpush1.bf16.msra.mxu0 %v4356_v15  ;;  %5338 = vmatpush1.bf16.msra.mxu1 %v4358_v35  ;;  %v4405_v15 = vld [vmem:[#allocation2 + $0x6e8] sm:$0xff]  ;;  %v4407_v35 = vld [vmem:[#allocation2 + $0x6f8] sm:$0xff] }
 0x535   :  { %5167 = vmatprep.subr.bf16.mxu0 %v4365_v36  ;;  %5339 = vmatprep.subr.bf16.mxu1 %v4367_v42  ;;  %v4404_v36 = vld [vmem:[#allocation2 + $0x6e0] sm:$0xff]  ;;  %v4406_v42 = vld [vmem:[#allocation2 + $0x6f0] sm:$0xff] }
 0x538   :  { %5168 = vmatpush1.bf16.msra.mxu0 %v4364_v47  ;;  %5340 = vmatpush1.bf16.msra.mxu1 %v4366_v48  ;;  %v4413_v47 = vld [vmem:[#allocation2 + $0x728] sm:$0xff]  ;;  %v4415_v48 = vld [vmem:[#allocation2 + $0x738] sm:$0xff] }
 0x539   :  { %5169 = vmatprep.subr.bf16.mxu0 %v4373_v55  ;;  %5341 = vmatprep.subr.bf16.mxu1 %v4375_v62  ;;  %v4412_v55 = vld [vmem:[#allocation2 + $0x720] sm:$0xff]  ;;  %v4414_v62 = vld [vmem:[#allocation2 + $0x730] sm:$0xff] }
 0x53c   :  { %5170 = vmatpush1.bf16.msra.mxu0 %v4372_v7  ;;  %5342 = vmatpush1.bf16.msra.mxu1 %v4374_v16  ;;  %v4421_v7 = vld [vmem:[#allocation2 + $0x768] sm:$0xff]  ;;  %v4423_v16 = vld [vmem:[#allocation2 + $0x778] sm:$0xff] }
 0x53d   :  { %5171 = vmatprep.subr.bf16.mxu0 %v4381_v17  ;;  %5343 = vmatprep.subr.bf16.mxu1 %v4383_v18  ;;  %v4420_v17 = vld [vmem:[#allocation2 + $0x760] sm:$0xff]  ;;  %v4422_v18 = vld [vmem:[#allocation2 + $0x770] sm:$0xff] }
 0x540   :  { %5172 = vmatpush1.bf16.msra.mxu0 %v4380_v19  ;;  %5344 = vmatpush1.bf16.msra.mxu1 %v4382_v33  ;;  %v4429_v19 = vld [vmem:[#allocation2 + $0x7a8] sm:$0xff]  ;;  %v4431_v33 = vld [vmem:[#allocation2 + $0x7b8] sm:$0xff] }
 0x541   :  { %5173 = vmatprep.subr.bf16.mxu0 %v4389_v21  ;;  %5345 = vmatprep.subr.bf16.mxu1 %v4391_v14  ;;  %v4428_v21 = vld [vmem:[#allocation2 + $0x7a0] sm:$0xff]  ;;  %v4430_v14 = vld [vmem:[#allocation2 + $0x7b0] sm:$0xff] }
 0x544   :  { %5174 = vmatpush1.bf16.msra.mxu0 %v4388_v23  ;;  %5346 = vmatpush1.bf16.msra.mxu1 %v4390_v24  ;;  %v4437_v23 = vld [vmem:[#allocation2 + $0x7e8] sm:$0xff]  ;;  %v4439_v24 = vld [vmem:[#allocation2 + $0x7f8] sm:$0xff] }
 0x545   :  { %5175 = vmatprep.subr.bf16.mxu0 %v4397_v41  ;;  %5347 = vmatprep.subr.bf16.mxu1 %v4399_v26  ;;  %v4436_v41 = vld [vmem:[#allocation2 + $0x7e0] sm:$0xff]  ;;  %v4438_v26 = vld [vmem:[#allocation2 + $0x7f0] sm:$0xff] }
 0x548   :  { %5176 = vmatpush1.bf16.msra.mxu0 %v4396_v32  ;;  %5348 = vmatpush1.bf16.msra.mxu1 %v4398_v63  ;;  %v4445_v32 = vld [vmem:[#allocation2 + $0x828] sm:$0xff]  ;;  %v4447_v63 = vld [vmem:[#allocation2 + $0x838] sm:$0xff] }
 0x549   :  { %5177 = vmatprep.subr.bf16.mxu0 %v4405_v15  ;;  %5349 = vmatprep.subr.bf16.mxu1 %v4407_v35  ;;  %v4444_v15 = vld [vmem:[#allocation2 + $0x820] sm:$0xff]  ;;  %v4446_v35 = vld [vmem:[#allocation2 + $0x830] sm:$0xff] }
 0x54c   :  { %5178 = vmatpush1.bf16.msra.mxu0 %v4404_v36  ;;  %5350 = vmatpush1.bf16.msra.mxu1 %v4406_v42  ;;  %v4453_v36 = vld [vmem:[#allocation2 + $0x868] sm:$0xff]  ;;  %v4455_v42 = vld [vmem:[#allocation2 + $0x878] sm:$0xff] }
 0x54d   :  { %5179 = vmatprep.subr.bf16.mxu0 %v4413_v47  ;;  %5351 = vmatprep.subr.bf16.mxu1 %v4415_v48  ;;  %v4452_v47 = vld [vmem:[#allocation2 + $0x860] sm:$0xff]  ;;  %v4454_v48 = vld [vmem:[#allocation2 + $0x870] sm:$0xff] }
 0x550   :  { %5180 = vmatpush1.bf16.msra.mxu0 %v4412_v55  ;;  %5352 = vmatpush1.bf16.msra.mxu1 %v4414_v62  ;;  %v4461_v55 = vld [vmem:[#allocation2 + $0x8a8] sm:$0xff]  ;;  %v4463_v62 = vld [vmem:[#allocation2 + $0x8b8] sm:$0xff] }
 0x551   :  { %5181 = vmatprep.subr.bf16.mxu0 %v4421_v7  ;;  %5353 = vmatprep.subr.bf16.mxu1 %v4423_v16  ;;  %v4460_v7 = vld [vmem:[#allocation2 + $0x8a0] sm:$0xff]  ;;  %v4462_v16 = vld [vmem:[#allocation2 + $0x8b0] sm:$0xff] }
 0x554   :  { %5182 = vmatpush1.bf16.msra.mxu0 %v4420_v17  ;;  %5354 = vmatpush1.bf16.msra.mxu1 %v4422_v18  ;;  %v4469_v17 = vld [vmem:[#allocation2 + $0x8e8] sm:$0xff]  ;;  %v4468_v18 = vld [vmem:[#allocation2 + $0x8e0] sm:$0xff] }
 0x555   :  { %5183 = vmatprep.subr.bf16.mxu0 %v4429_v19  ;;  %5355 = vmatprep.subr.bf16.mxu1 %v4431_v33  ;;  %v4470_v19 = vld [vmem:[#allocation2 + $0x8f0] sm:$0xff]  ;;  %v4477_v33 = vld [vmem:[#allocation2 + $0x928] sm:$0xff] }
 0x558   :  { %5184 = vmatpush1.bf16.msra.mxu0 %v4428_v21  ;;  %5356 = vmatpush1.bf16.msra.mxu1 %v4430_v14  ;;  %v4479_v21 = vld [vmem:[#allocation2 + $0x938] sm:$0xff]  ;;  %v4478_v14 = vld [vmem:[#allocation2 + $0x930] sm:$0xff] }
 0x559   :  { %5185 = vmatprep.subr.bf16.mxu0 %v4437_v23  ;;  %5357 = vmatprep.subr.bf16.mxu1 %v4439_v24  ;;  %v4485_v23 = vld [vmem:[#allocation2 + $0x968] sm:$0xff]  ;;  %v4487_v24 = vld [vmem:[#allocation2 + $0x978] sm:$0xff] }
 0x55c   :  { %5186 = vmatpush1.bf16.msra.mxu0 %v4436_v41  ;;  %5358 = vmatpush1.bf16.msra.mxu1 %v4438_v26  ;;  %v4484_v41 = vld [vmem:[#allocation2 + $0x960] sm:$0xff]  ;;  %v4486_v26 = vld [vmem:[#allocation2 + $0x970] sm:$0xff] }
 0x55d   :  { %5198 = vmatprep.subr.bf16.mxu0 %v4445_v32  ;;  %5370 = vmatprep.subr.bf16.mxu1 %v4447_v63  ;;  %v4493_v32 = vld [vmem:[#allocation2 + $0x9a8] sm:$0xff]  ;;  %v4495_v63 = vld [vmem:[#allocation2 + $0x9b8] sm:$0xff] }
 0x55f   :  { %5188 = vmatmul.mubr.bf16.vlgmr.msra.gmra.mrb[12].mxu0 %v9747_v22  ;;  %5360 = vmatmul.mubr.bf16.vlgmr.msra.gmra.mrb[12].mxu1 %v9747_v22  ;;  %v4471_v22 = vld [vmem:[#allocation2 + $0x8f8] sm:$0xff] }
 0x560   :  { %5199 = vmatpush1.bf16.msra.mxu0 %v4444_v15  ;;  %5371 = vmatpush1.bf16.msra.mxu1 %v4446_v35  ;;  %v4492_v15 = vld [vmem:[#allocation2 + $0x9a0] sm:$0xff]  ;;  %v4494_v35 = vld [vmem:[#allocation2 + $0x9b0] sm:$0xff] }
 0x561   :  { %5200 = vmatprep.subr.bf16.mxu0 %v4453_v36  ;;  %5372 = vmatprep.subr.bf16.mxu1 %v4455_v42  ;;  %v4501_v36 = vld [vmem:[#allocation2 + $0x9e8] sm:$0xff]  ;;  %v4503_v42 = vld [vmem:[#allocation2 + $0x9f8] sm:$0xff] }
 0x562   :  { %5230 = vmatprep.mubr.bf16.mxu0 %v9753_v31  ;;  %5402 = vmatprep.mubr.bf16.mxu1 %v9753_v31  ;;  %v4476_v31 = vld [vmem:[#allocation2 + $0x920] sm:$0xff] }
 0x564   :  { %5201 = vmatpush1.bf16.msra.mxu0 %v4452_v47  ;;  %5373 = vmatpush1.bf16.msra.mxu1 %v4454_v48  ;;  %v4500_v47 = vld [vmem:[#allocation2 + $0x9e0] sm:$0xff]  ;;  %v4502_v48 = vld [vmem:[#allocation2 + $0x9f0] sm:$0xff] }
 0x565   :  { %5202 = vmatprep.subr.bf16.mxu0 %v4461_v55  ;;  %5374 = vmatprep.subr.bf16.mxu1 %v4463_v62  ;;  %v4509_v55 = vld [vmem:[#allocation2 + $0xa28] sm:$0xff]  ;;  %v4511_v62 = vld [vmem:[#allocation2 + $0xa38] sm:$0xff] }
 0x568   :  { %5203 = vmatpush1.bf16.msra.mxu0 %v4460_v7  ;;  %5375 = vmatpush1.bf16.msra.mxu1 %v4462_v16  ;;  %v4508_v7 = vld [vmem:[#allocation2 + $0xa20] sm:$0xff]  ;;  %v4510_v16 = vld [vmem:[#allocation2 + $0xa30] sm:$0xff] }
 0x569   :  { %5204 = vmatprep.subr.bf16.mxu0 %v4469_v17  ;;  %5376 = vmatprep.subr.bf16.mxu1 %v4471_v22  ;;  %v4517_v17 = vld [vmem:[#allocation2 + $0xa68] sm:$0xff]  ;;  %v4519_v22 = vld [vmem:[#allocation2 + $0xa78] sm:$0xff] }
 0x56c   :  { %5205 = vmatpush1.bf16.msra.mxu0 %v4468_v18  ;;  %5377 = vmatpush1.bf16.msra.mxu1 %v4470_v19  ;;  %v4516_v18 = vld [vmem:[#allocation2 + $0xa60] sm:$0xff]  ;;  %v4518_v19 = vld [vmem:[#allocation2 + $0xa70] sm:$0xff] }
 0x56d   :  { %5206 = vmatprep.subr.bf16.mxu0 %v4477_v33  ;;  %5378 = vmatprep.subr.bf16.mxu1 %v4479_v21  ;;  %v4525_v33 = vld [vmem:[#allocation2 + $0xaa8] sm:$0xff]  ;;  %v4527_v21 = vld [vmem:[#allocation2 + $0xab8] sm:$0xff] }
 0x570   :  { %5207 = vmatpush1.bf16.msra.mxu0 %v4476_v31  ;;  %5379 = vmatpush1.bf16.msra.mxu1 %v4478_v14  ;;  %v4524_v31 = vld [vmem:[#allocation2 + $0xaa0] sm:$0xff]  ;;  %v4526_v14 = vld [vmem:[#allocation2 + $0xab0] sm:$0xff] }
 0x571   :  { %5208 = vmatprep.subr.bf16.mxu0 %v4485_v23  ;;  %5380 = vmatprep.subr.bf16.mxu1 %v4487_v24  ;;  %v4533_v23 = vld [vmem:[#allocation2 + $0xae8] sm:$0xff]  ;;  %v4535_v24 = vld [vmem:[#allocation2 + $0xaf8] sm:$0xff] }
 0x574   :  { %5209 = vmatpush1.bf16.msra.mxu0 %v4484_v41  ;;  %5381 = vmatpush1.bf16.msra.mxu1 %v4486_v26  ;;  %v4532_v41 = vld [vmem:[#allocation2 + $0xae0] sm:$0xff]  ;;  %v4534_v26 = vld [vmem:[#allocation2 + $0xaf0] sm:$0xff] }
 0x575   :  { %5210 = vmatprep.subr.bf16.mxu0 %v4493_v32  ;;  %5382 = vmatprep.subr.bf16.mxu1 %v4495_v63  ;;  %v4541_v32 = vld [vmem:[#allocation2 + $0xb28] sm:$0xff]  ;;  %v4543_v63 = vld [vmem:[#allocation2 + $0xb38] sm:$0xff] }
 0x578   :  { %5211 = vmatpush1.bf16.msra.mxu0 %v4492_v15  ;;  %5383 = vmatpush1.bf16.msra.mxu1 %v4494_v35  ;;  %v4540_v15 = vld [vmem:[#allocation2 + $0xb20] sm:$0xff]  ;;  %v4542_v35 = vld [vmem:[#allocation2 + $0xb30] sm:$0xff] }
 0x579   :  { %5212 = vmatprep.subr.bf16.mxu0 %v4501_v36  ;;  %5384 = vmatprep.subr.bf16.mxu1 %v4503_v42  ;;  %v4549_v36 = vld [vmem:[#allocation2 + $0xb68] sm:$0xff]  ;;  %v4551_v42 = vld [vmem:[#allocation2 + $0xb78] sm:$0xff] }
 0x57c   :  { %5213 = vmatpush1.bf16.msra.mxu0 %v4500_v47  ;;  %5385 = vmatpush1.bf16.msra.mxu1 %v4502_v48  ;;  %v4548_v47 = vld [vmem:[#allocation2 + $0xb60] sm:$0xff]  ;;  %v4550_v48 = vld [vmem:[#allocation2 + $0xb70] sm:$0xff] }
 0x57d   :  { %5214 = vmatprep.subr.bf16.mxu0 %v4509_v55  ;;  %5386 = vmatprep.subr.bf16.mxu1 %v4511_v62  ;;  %v4557_v55 = vld [vmem:[#allocation2 + $0xba8] sm:$0xff]  ;;  %v4559_v62 = vld [vmem:[#allocation2 + $0xbb8] sm:$0xff] }
 0x580   :  { %5215 = vmatpush1.bf16.msra.mxu0 %v4508_v7  ;;  %5387 = vmatpush1.bf16.msra.mxu1 %v4510_v16  ;;  %v4556_v7 = vld [vmem:[#allocation2 + $0xba0] sm:$0xff]  ;;  %v4558_v16 = vld [vmem:[#allocation2 + $0xbb0] sm:$0xff] }
 0x581   :  { %5216 = vmatprep.subr.bf16.mxu0 %v4517_v17  ;;  %5388 = vmatprep.subr.bf16.mxu1 %v4519_v22  ;;  %v4565_v17 = vld [vmem:[#allocation2 + $0xbe8] sm:$0xff]  ;;  %v4567_v22 = vld [vmem:[#allocation2 + $0xbf8] sm:$0xff] }
 0x584   :  { %5217 = vmatpush1.bf16.msra.mxu0 %v4516_v18  ;;  %5389 = vmatpush1.bf16.msra.mxu1 %v4518_v19  ;;  %v4564_v18 = vld [vmem:[#allocation2 + $0xbe0] sm:$0xff]  ;;  %v4566_v19 = vld [vmem:[#allocation2 + $0xbf0] sm:$0xff] }
 0x585   :  { %5218 = vmatprep.subr.bf16.mxu0 %v4525_v33  ;;  %5390 = vmatprep.subr.bf16.mxu1 %v4527_v21  ;;  %v4573_v33 = vld [vmem:[#allocation2 + $0xc28] sm:$0xff]  ;;  %v4575_v21 = vld [vmem:[#allocation2 + $0xc38] sm:$0xff] }
 0x588   :  { %5219 = vmatpush1.bf16.msra.mxu0 %v4524_v31  ;;  %5391 = vmatpush1.bf16.msra.mxu1 %v4526_v14  ;;  %v4572_v31 = vld [vmem:[#allocation2 + $0xc20] sm:$0xff]  ;;  %v4574_v14 = vld [vmem:[#allocation2 + $0xc30] sm:$0xff] }
 0x589   :  { %5220 = vmatprep.subr.bf16.mxu0 %v4533_v23  ;;  %5392 = vmatprep.subr.bf16.mxu1 %v4535_v24  ;;  %v4581_v23 = vld [vmem:[#allocation2 + $0xc68] sm:$0xff]  ;;  %v4583_v24 = vld [vmem:[#allocation2 + $0xc78] sm:$0xff] }
 0x58c   :  { %5221 = vmatpush1.bf16.msra.mxu0 %v4532_v41  ;;  %5393 = vmatpush1.bf16.msra.mxu1 %v4534_v26  ;;  %v4580_v41 = vld [vmem:[#allocation2 + $0xc60] sm:$0xff]  ;;  %v4582_v26 = vld [vmem:[#allocation2 + $0xc70] sm:$0xff] }
 0x58d   :  { %5222 = vmatprep.subr.bf16.mxu0 %v4541_v32  ;;  %5394 = vmatprep.subr.bf16.mxu1 %v4543_v63  ;;  %v4589_v32 = vld [vmem:[#allocation2 + $0xca8] sm:$0xff]  ;;  %v4591_v63 = vld [vmem:[#allocation2 + $0xcb8] sm:$0xff] }
 0x590   :  { %5223 = vmatpush1.bf16.msra.mxu0 %v4540_v15  ;;  %5395 = vmatpush1.bf16.msra.mxu1 %v4542_v35  ;;  %v4588_v15 = vld [vmem:[#allocation2 + $0xca0] sm:$0xff]  ;;  %v4590_v35 = vld [vmem:[#allocation2 + $0xcb0] sm:$0xff] }
 0x591   :  { %5224 = vmatprep.subr.bf16.mxu0 %v4549_v36  ;;  %5396 = vmatprep.subr.bf16.mxu1 %v4551_v42  ;;  %v4597_v36 = vld [vmem:[#allocation2 + $0xce8] sm:$0xff]  ;;  %v9798_v42 = vsub.s32 1, %v9628_v50 }
 0x594   :  { %5225 = vmatpush1.bf16.msra.mxu0 %v4548_v47  ;;  %5397 = vmatpush1.bf16.msra.mxu1 %v4550_v48  ;;  %v9801_v47 = vsub.s32 5, %v9628_v50  ;;  %v4596_v48 = vld [vmem:[#allocation2 + $0xce0] sm:$0xff] }
 0x595   :  { %5226 = vmatprep.subr.bf16.mxu0 %v4557_v55  ;;  %5398 = vmatprep.subr.bf16.mxu1 %v4559_v62  ;;  %v4605_v55 = vld [vmem:[#allocation2 + $0xd28] sm:$0xff]  ;;  %v4607_v62 = vld [vmem:[#allocation2 + $0xd38] sm:$0xff] }
 0x598   :  { %5227 = vmatpush1.bf16.msra.mxu0 %v4556_v7  ;;  %5399 = vmatpush1.bf16.msra.mxu1 %v4558_v16  ;;  %v4699_v7 = vrot.slane %v9634_v61, %v9798_v42  ;;  %v4707_v16 = vrot.slane %v9639_v1, %v9798_v42 }
 0x599   :  { %5228 = vmatprep.subr.bf16.mxu0 %v4565_v17  ;;  %5400 = vmatprep.subr.bf16.mxu1 %v4567_v22  ;;  %v4703_v17 = vrot.slane %v9634_v61, %v9801_v47  ;;  %v4711_v22 = vrot.slane %v9639_v1, %v9801_v47 }
 0x59c   :  { %5229 = vmatpush1.bf16.msra.mxu0 %v4564_v18  ;;  %5401 = vmatpush1.bf16.msra.mxu1 %v4566_v19  ;;  %v4604_v18 = vld [vmem:[#allocation2 + $0xd20] sm:$0xff]  ;;  %v4606_v19 = vld [vmem:[#allocation2 + $0xd30] sm:$0xff] }
 0x59d   :  { %5241 = vmatprep.subr.bf16.mxu0 %v4573_v33  ;;  %5413 = vmatprep.subr.bf16.mxu1 %v4575_v21  ;;  %v4613_v33 = vld [vmem:[#allocation2 + $0xd68] sm:$0xff]  ;;  %v4615_v21 = vld [vmem:[#allocation2 + $0xd78] sm:$0xff] }
 0x59f   :  { %5231 = vmatmul.mubr.bf16.vlgmr.msra.gmra.mrb[12].mxu0 %v9763_v20  ;;  %5403 = vmatmul.mubr.bf16.vlgmr.msra.gmra.mrb[12].mxu1 %v9763_v20  ;;  %v4599_v20 = vld [vmem:[#allocation2 + $0xcf8] sm:$0xff] }
 0x5a0   :  { %5242 = vmatpush1.bf16.msra.mxu0 %v4572_v31  ;;  %5414 = vmatpush1.bf16.msra.mxu1 %v4574_v14  ;;  %v4739_v31 = vrot.slane %v4699_v7, %v9798_v42  ;;  %v4747_v14 = vrot.slane %v4707_v16, %v9798_v42 }
 0x5a1   :  { %5243 = vmatprep.subr.bf16.mxu0 %v4581_v23  ;;  %5415 = vmatprep.subr.bf16.mxu1 %v4583_v24  ;;  %v4743_v23 = vrot.slane %v4703_v17, %v9798_v42  ;;  %v4751_v24 = vrot.slane %v4711_v22, %v9798_v42 }
 0x5a2   :  { %5273 = vmatprep.mubr.bf16.mxu0 %v9769_v30  ;;  %5445 = vmatprep.mubr.bf16.mxu1 %v9769_v30  ;;  %v4598_v30 = vld [vmem:[#allocation2 + $0xcf0] sm:$0xff] }
 0x5a4   :  { %5244 = vmatpush1.bf16.msra.mxu0 %v4580_v41  ;;  %5416 = vmatpush1.bf16.msra.mxu1 %v4582_v26  ;;  %v4612_v41 = vld [vmem:[#allocation2 + $0xd60] sm:$0xff]  ;;  %v4614_v26 = vld [vmem:[#allocation2 + $0xd70] sm:$0xff] }
 0x5a5   :  { %5245 = vmatprep.subr.bf16.mxu0 %v4589_v32  ;;  %5417 = vmatprep.subr.bf16.mxu1 %v4591_v63 }
 0x5a8   :  { %5246 = vmatpush1.bf16.msra.mxu0 %v4588_v15  ;;  %5418 = vmatpush1.bf16.msra.mxu1 %v4590_v35  ;;  %v4621_v15 = vld [vmem:[#allocation2 + $0xda8] sm:$0xff]  ;;  %v4623_v35 = vld [vmem:[#allocation2 + $0xdb8] sm:$0xff] }
 0x5a9   :  { %5247 = vmatprep.subr.bf16.mxu0 %v4597_v36  ;;  %5419 = vmatprep.subr.bf16.mxu1 %v4599_v20 }
 0x5ac   :  { %5248 = vmatpush1.bf16.msra.mxu0 %v4596_v48  ;;  %5420 = vmatpush1.bf16.msra.mxu1 %v4598_v30 }
 0x5ad   :  { %5249 = vmatprep.subr.bf16.mxu0 %v4605_v55  ;;  %5421 = vmatprep.subr.bf16.mxu1 %v4607_v62 }
 0x5b0   :  { %5250 = vmatpush1.bf16.msra.mxu0 %v4604_v18  ;;  %5422 = vmatpush1.bf16.msra.mxu1 %v4606_v19 }
 0x5b1   :  { %5251 = vmatprep.subr.bf16.mxu0 %v4613_v33  ;;  %5423 = vmatprep.subr.bf16.mxu1 %v4615_v21 }
 0x5b2   :  { %v4931_v32 = vpop.f32.mrb[8].mxu0  ;;  %v5103_v63 = vpop.f32.mrb[8].mxu1 }
 0x5b3   :  { %v9815_v36 = vadd.f32 %v4931_v32, %v4739_v31  ;;  %v9817_v20 = vadd.f32 %v5103_v63, %v4747_v14  ;;  %v4933_v48 = vpop.f32.mrb[9].mxu0  ;;  %v5105_v30 = vpop.f32.mrb[9].mxu1  ;;  %v4620_v32 = vld [vmem:[#allocation2 + $0xda0] sm:$0xff]  ;;  %v4622_v63 = vld [vmem:[#allocation2 + $0xdb0] sm:$0xff] }
 0x5b4   :  { %v9819_v55 = vadd.f32 %v4933_v48, %v4743_v23  ;;  %v9821_v62 = vadd.f32 %v5105_v30, %v4751_v24  ;;  %v4935_v7 = vpop.f32.mrb[10].mxu0  ;;  %v5107_v16 = vpop.f32.mrb[10].mxu1  ;;  %5252 = vmatpush1.bf16.msra.mxu0 %v4612_v41  ;;  %5424 = vmatpush1.bf16.msra.mxu1 %v4614_v26 }
 0x5b5   :  { %v5456_v17 = vmax.f32 %v9815_v36, 0.0  ;;  %v5458_v22 = vmax.f32 %v9817_v20, 0.0  ;;  %v9825_v18 = vadd.f32 %v4935_v7, %v4739_v31  ;;  %v9827_v19 = vadd.f32 %v5107_v16, %v4747_v14  ;;  %v4937_v33 = vpop.f32.mrb[11].mxu0  ;;  %v5109_v21 = vpop.f32.mrb[11].mxu1  ;;  %5253 = vmatprep.subr.bf16.mxu0 %v4621_v15  ;;  %5425 = vmatprep.subr.bf16.mxu1 %v4623_v35  ;;  %v4628_v35 = vld [vmem:[#allocation2 + $0xde0] sm:$0xff]  ;;  %v4630_v16 = vld [vmem:[#allocation2 + $0xdf0] sm:$0xff] }
 0x5b6   :  { %v5457_v48 = vmax.f32 %v9819_v55, 0.0  ;;  %v5459_v30 = vmax.f32 %v9821_v62, 0.0  ;;  %v9831_v41 = vadd.f32 %v4937_v33, %v4743_v23  ;;  %v9833_v26 = vadd.f32 %v5109_v21, %v4751_v24  ;;  %v4637_v23 = vld [vmem:[#allocation2 + $0xe28] sm:$0xff]  ;;  %v4639_v33 = vld [vmem:[#allocation2 + $0xe38] sm:$0xff]  ;;  %v4636_v24 = vld [vmem:[#allocation2 + $0xe20] sm:$0xff] }
 0x5b7   :  { %v5464_v31 = vmax.f32 %v9825_v18, 0.0  ;;  %v5466_v14 = vmax.f32 %v9827_v19, 0.0  ;;  %v4638_v21 = vld [vmem:[#allocation2 + $0xe30] sm:$0xff] }
 0x5b8   :  { %v5465_v7 = vmax.f32 %v9831_v41, 0.0  ;;  %v5467_v15 = vmax.f32 %v9833_v26, 0.0  ;;  %5254 = vmatpush1.bf16.msra.mxu0 %v4620_v32  ;;  %5426 = vmatpush1.bf16.msra.mxu1 %v4622_v63  ;;  %v4644_v32 = vld [vmem:[#allocation2 + $0xe60] sm:$0xff]  ;;  %v4646_v63 = vld [vmem:[#allocation2 + $0xe70] sm:$0xff] }
 0x5b9   :  { %5255 = vmatprep.subr.bf16.mxu0 %v4629_v13  ;;  %5427 = vmatprep.subr.bf16.mxu1 %v4631_v12  ;;  %v4653_v13 = vld [vmem:[#allocation2 + $0xea8] sm:$0xff]  ;;  %v4655_v12 = vld [vmem:[#allocation2 + $0xeb8] sm:$0xff] }
 0x5bc   :  { %5256 = vmatpush1.bf16.msra.mxu0 %v4628_v35  ;;  %5428 = vmatpush1.bf16.msra.mxu1 %v4630_v16  ;;  %v4652_v35 = vld [vmem:[#allocation2 + $0xea0] sm:$0xff]  ;;  %v4654_v16 = vld [vmem:[#allocation2 + $0xeb0] sm:$0xff] }
 0x5bd   :  { %5257 = vmatprep.subr.bf16.mxu0 %v4637_v23  ;;  %5429 = vmatprep.subr.bf16.mxu1 %v4639_v33  ;;  %v4661_v23 = vld [vmem:[#allocation2 + $0xee8] sm:$0xff]  ;;  %v4663_v33 = vld [vmem:[#allocation2 + $0xef8] sm:$0xff] }
 0x5c0   :  { %5258 = vmatpush1.bf16.msra.mxu0 %v4636_v24  ;;  %5430 = vmatpush1.bf16.msra.mxu1 %v4638_v21  ;;  %v4660_v24 = vld [vmem:[#allocation2 + $0xee0] sm:$0xff]  ;;  %v4662_v21 = vld [vmem:[#allocation2 + $0xef0] sm:$0xff] }
 0x5c1   :  { %5259 = vmatprep.subr.bf16.mxu0 %v4645_v11  ;;  %5431 = vmatprep.subr.bf16.mxu1 %v4647_v9  ;;  %v4669_v11 = vld [vmem:[#allocation2 + $0xf28] sm:$0xff]  ;;  %v4671_v9 = vld [vmem:[#allocation2 + $0xf38] sm:$0xff] }
 0x5c4   :  { %5260 = vmatpush1.bf16.msra.mxu0 %v4644_v32  ;;  %5432 = vmatpush1.bf16.msra.mxu1 %v4646_v63  ;;  %v4668_v32 = vld [vmem:[#allocation2 + $0xf20] sm:$0xff]  ;;  %v4670_v63 = vld [vmem:[#allocation2 + $0xf30] sm:$0xff] }
 0x5c5   :  { %5261 = vmatprep.subr.bf16.mxu0 %v4653_v13  ;;  %5433 = vmatprep.subr.bf16.mxu1 %v4655_v12  ;;  %v4677_v13 = vld [vmem:[#allocation2 + $0xf68] sm:$0xff]  ;;  %v4679_v12 = vld [vmem:[#allocation2 + $0xf78] sm:$0xff] }
 0x5c8   :  { %5262 = vmatpush1.bf16.msra.mxu0 %v4652_v35  ;;  %5434 = vmatpush1.bf16.msra.mxu1 %v4654_v16  ;;  %v4676_v35 = vld [vmem:[#allocation2 + $0xf60] sm:$0xff]  ;;  %v4678_v16 = vld [vmem:[#allocation2 + $0xf70] sm:$0xff] }
 0x5c9   :  { %5263 = vmatprep.subr.bf16.mxu0 %v4661_v23  ;;  %5435 = vmatprep.subr.bf16.mxu1 %v4663_v33  ;;  %v4685_v23 = vld [vmem:[#allocation2 + $0xfa8] sm:$0xff]  ;;  %v4687_v33 = vld [vmem:[#allocation2 + $0xfb8] sm:$0xff] }
 0x5cc   :  { %5264 = vmatpush1.bf16.msra.mxu0 %v4660_v24  ;;  %5436 = vmatpush1.bf16.msra.mxu1 %v4662_v21  ;;  %v4684_v24 = vld [vmem:[#allocation2 + $0xfa0] sm:$0xff]  ;;  %v4686_v21 = vld [vmem:[#allocation2 + $0xfb0] sm:$0xff] }
 0x5cd   :  { %5265 = vmatprep.subr.bf16.mxu0 %v4669_v11  ;;  %5437 = vmatprep.subr.bf16.mxu1 %v4671_v9  ;;  %v4693_v11 = vld [vmem:[#allocation2 + $0xfe8] sm:$0xff]  ;;  %v4695_v9 = vld [vmem:[#allocation2 + $0xff8] sm:$0xff] }
 0x5d0   :  { %5266 = vmatpush1.bf16.msra.mxu0 %v4668_v32  ;;  %5438 = vmatpush1.bf16.msra.mxu1 %v4670_v63  ;;  %v4692_v32 = vld [vmem:[#allocation2 + $0xfe0] sm:$0xff]  ;;  %v4694_v63 = vld [vmem:[#allocation2 + $0xff0] sm:$0xff] }
 0x5d1   :  { %5267 = vmatprep.subr.bf16.mxu0 %v4677_v13  ;;  %5439 = vmatprep.subr.bf16.mxu1 %v4679_v12  ;;  %v4715_v13 = vrot.slane %v9679_v28, %v9798_v42  ;;  %v4723_v12 = vrot.slane %v9681_v29, %v9798_v42 }
 0x5d4   :  { %5268 = vmatpush1.bf16.msra.mxu0 %v4676_v35  ;;  %5440 = vmatpush1.bf16.msra.mxu1 %v4678_v16  ;;  %v4719_v35 = vrot.slane %v9679_v28, %v9801_v47  ;;  %v4727_v16 = vrot.slane %v9681_v29, %v9801_v47 }
 0x5d5   :  { %5269 = vmatprep.subr.bf16.mxu0 %v4685_v23  ;;  %5441 = vmatprep.subr.bf16.mxu1 %v4687_v33  ;;  %v4755_v23 = vrot.slane %v4715_v13, %v9798_v42  ;;  %v4763_v33 = vrot.slane %v4723_v12, %v9798_v42 }
 0x5d8   :  { %5270 = vmatpush1.bf16.msra.mxu0 %v4684_v24  ;;  %5442 = vmatpush1.bf16.msra.mxu1 %v4686_v21  ;;  %v4759_v24 = vrot.slane %v4719_v35, %v9798_v42 }
 0x5d9   :  { %5271 = vmatprep.subr.bf16.mxu0 %v4693_v11  ;;  %5443 = vmatprep.subr.bf16.mxu1 %v4695_v9 }
 0x5dc   :  { %5272 = vmatpush1.bf16.msra.mxu0 %v4692_v32  ;;  %5444 = vmatpush1.bf16.msra.mxu1 %v4694_v63 }
 0x5df   :  { %5274 = vmatmul.mubr.bf16.vlgmr.msra.gmra.mrb[12].mxu0 %v9779_v58  ;;  %5446 = vmatmul.mubr.bf16.vlgmr.msra.gmra.mrb[12].mxu1 %v9779_v58  ;;  %v4767_v58 = vrot.slane %v4727_v16, %v9798_v42 }
 0x6b2   :  { %v5275_v21 = vpop.f32.mrb[12].mxu0  ;;  %v5447_v11 = vpop.f32.mrb[12].mxu1 }
 0x6b3   :  { %v9853_v9 = vadd.f32 %v5275_v21, %v4755_v23  ;;  %v9855_v32 = vadd.f32 %v5447_v11, %v4763_v33  ;;  %v5277_v63 = vpop.f32.mrb[13].mxu0  ;;  %v5449_v8 = vpop.f32.mrb[13].mxu1 }
 0x6b4   :  { %v9857_v0 = vadd.f32 %v5277_v63, %v4759_v24  ;;  %v9859_v59 = vadd.f32 %v5449_v8, %v4767_v58  ;;  %v5279_v47 = vpop.f32.mrb[14].mxu0  ;;  %v5451_v13 = vpop.f32.mrb[14].mxu1 }
 0x6b5   :  { %v5460_v12 = vmax.f32 %v9853_v9, 0.0  ;;  %v5462_v35 = vmax.f32 %v9855_v32, 0.0  ;;  %v9863_v53 = vadd.f32 %v5279_v47, %v4755_v23  ;;  %v9865_v42 = vadd.f32 %v5451_v13, %v4763_v33  ;;  %v5281_v16 = vpop.f32.mrb[15].mxu0  ;;  %v5453_v21 = vpop.f32.mrb[15].mxu1 }
 0x6b6   :  { %v5461_v11 = vmax.f32 %v9857_v0, 0.0  ;;  %v5463_v5 = vmax.f32 %v9859_v59, 0.0  ;;  %v9869_v63 = vadd.f32 %v5281_v16, %v4759_v24  ;;  %v9871_v8 = vadd.f32 %v5453_v21, %v4767_v58 }
 0x6b7   :  { %v5468_v3 = vmax.f32 %v9863_v53, 0.0  ;;  %v5470_v2 = vmax.f32 %v9865_v42, 0.0 }
 0x6b8   :  { %v5469_v57 = vmax.f32 %v9869_v63, 0.0  ;;  %v5471_v23 = vmax.f32 %v9871_v8, 0.0 }
 0x6b9   :  { %9242 = dma.done.wait [#allocation5 + $0x1], 65536 }
 0x6ba   :  { %9243 = vsyncadd [#allocation5 + $0x1], 4294901760  ;;  %v9881_v33 = vpack.c.bf16 %v5465_v7, %v5457_v48  ;;  %v5489_v24 = vld [vmem:[#allocation3 + $0x8] sm:$0xff]  ;;  %v5491_v58 = vld [vmem:[#allocation3 + $0x18] sm:$0xff] }
 0x6bb   :  { %v5488_v47 = vld [vmem:[#allocation3] sm:$0xff]  ;;  %6072 = vmatprep.subr.bf16.mxu0 %v5489_v24  ;;  %6244 = vmatprep.subr.bf16.mxu1 %v5491_v58  ;;  %v5490_v13 = vld [vmem:[#allocation3 + $0x10] sm:$0xff]  ;;  %v5497_v16 = vld [vmem:[#allocation3 + $0x48] sm:$0xff] }
 0x6bc   :  { %6104 = vmatprep.mubr.bf16.mxu0 %v9881_v33  ;;  %6276 = vmatprep.mubr.bf16.mxu1 %v9881_v33  ;;  %v5499_v21 = vld [vmem:[#allocation3 + $0x58] sm:$0xff]  ;;  %v5496_v55 = vld [vmem:[#allocation3 + $0x40] sm:$0xff]  ;;  %v5498_v41 = vld [vmem:[#allocation3 + $0x50] sm:$0xff] }
 0x6bd   :  { %6073 = vmatpush1.bf16.msra.mxu0 %v5488_v47  ;;  %6245 = vmatpush1.bf16.msra.mxu1 %v5490_v13  ;;  %v5505_v48 = vld [vmem:[#allocation3 + $0x88] sm:$0xff]  ;;  %v5507_v7 = vld [vmem:[#allocation3 + $0x98] sm:$0xff]  ;;  %v5504_v56 = vld [vmem:[#allocation3 + $0x80] sm:$0xff] }
 0x6be   :  { %6074 = vmatprep.subr.bf16.mxu0 %v5497_v16  ;;  %6246 = vmatprep.subr.bf16.mxu1 %v5499_v21  ;;  %v5506_v51 = vld [vmem:[#allocation3 + $0x90] sm:$0xff]  ;;  %v5513_v49 = vld [vmem:[#allocation3 + $0xc8] sm:$0xff]  ;;  %v5515_v24 = vld [vmem:[#allocation3 + $0xd8] sm:$0xff] }
 0x6bf   :  { %v5512_v58 = vld [vmem:[#allocation3 + $0xc0] sm:$0xff]  ;;  %v5514_v47 = vld [vmem:[#allocation3 + $0xd0] sm:$0xff]  ;;  %v5521_v13 = vld [vmem:[#allocation3 + $0x108] sm:$0xff] }
 0x6c0   :  { %v5523_v16 = vld [vmem:[#allocation3 + $0x118] sm:$0xff]  ;;  %v5520_v21 = vld [vmem:[#allocation3 + $0x100] sm:$0xff]  ;;  %v5633_v18 = vld [vmem:[#allocation3 + $0x488] sm:$0xff] }
 0x6c1   :  { %6075 = vmatpush1.bf16.msra.mxu0 %v5496_v55  ;;  %6247 = vmatpush1.bf16.msra.mxu1 %v5498_v41  ;;  %v5522_v55 = vld [vmem:[#allocation3 + $0x110] sm:$0xff]  ;;  %v5529_v41 = vld [vmem:[#allocation3 + $0x148] sm:$0xff]  ;;  %v5624_v36 = vld [vmem:[#allocation3 + $0x440] sm:$0xff] }
 0x6c2   :  { %6076 = vmatprep.subr.bf16.mxu0 %v5505_v48  ;;  %6248 = vmatprep.subr.bf16.mxu1 %v5507_v7  ;;  %v5531_v48 = vld [vmem:[#allocation3 + $0x158] sm:$0xff]  ;;  %v5632_v62 = vld [vmem:[#allocation3 + $0x480] sm:$0xff]  ;;  %v5641_v26 = vld [vmem:[#allocation3 + $0x4c8] sm:$0xff] }
 0x6c3   :  { %v5539_v7 = vld [vmem:[#allocation3 + $0x198] sm:$0xff]  ;;  %v5752_v20 = vld [vmem:[#allocation3 + $0x840] sm:$0xff]  ;;  %v5761_v19 = vld [vmem:[#allocation3 + $0x888] sm:$0xff] }
 0x6c4   :  { %v5762_v0 = vld [vmem:[#allocation3 + $0x890] sm:$0xff]  ;;  %v5771_v63 = vld [vmem:[#allocation3 + $0x8d8] sm:$0xff]  ;;  %v5889_v9 = vld [vmem:[#allocation3 + $0xc88] sm:$0xff] }
 0x6c5   :  { %6077 = vmatpush1.bf16.msra.mxu0 %v5504_v56  ;;  %6249 = vmatpush1.bf16.msra.mxu1 %v5506_v51  ;;  %v5528_v56 = vld [vmem:[#allocation3 + $0x140] sm:$0xff]  ;;  %v5530_v51 = vld [vmem:[#allocation3 + $0x150] sm:$0xff]  ;;  %v5897_v8 = vld [vmem:[#allocation3 + $0xcc8] sm:$0xff] }
 0x6c6   :  { %6078 = vmatprep.subr.bf16.mxu0 %v5513_v49  ;;  %6250 = vmatprep.subr.bf16.mxu1 %v5515_v24  ;;  %v5537_v49 = vld [vmem:[#allocation3 + $0x188] sm:$0xff]  ;;  %v5536_v24 = vld [vmem:[#allocation3 + $0x180] sm:$0xff]  ;;  %v5882_v53 = vld [vmem:[#allocation3 + $0xc50] sm:$0xff] }
 0x6c7   :  { %v5890_v59 = vld [vmem:[#allocation3 + $0xc90] sm:$0xff]  ;;  %v5500_v32 = vld [vmem:[#allocation3 + $0x60] sm:$0xff] }
 0x6c8   :  { %v5502_v42 = vld [vmem:[#allocation3 + $0x70] sm:$0xff] }
 0x6c9   :  { %6079 = vmatpush1.bf16.msra.mxu0 %v5512_v58  ;;  %6251 = vmatpush1.bf16.msra.mxu1 %v5514_v47  ;;  %v5538_v58 = vld [vmem:[#allocation3 + $0x190] sm:$0xff]  ;;  %v5545_v47 = vld [vmem:[#allocation3 + $0x1c8] sm:$0xff] }
 0x6ca   :  { %6080 = vmatprep.subr.bf16.mxu0 %v5521_v13  ;;  %6252 = vmatprep.subr.bf16.mxu1 %v5523_v16  ;;  %v5547_v13 = vld [vmem:[#allocation3 + $0x1d8] sm:$0xff]  ;;  %v5544_v16 = vld [vmem:[#allocation3 + $0x1c0] sm:$0xff] }
 0x6cd   :  { %6081 = vmatpush1.bf16.msra.mxu0 %v5520_v21  ;;  %6253 = vmatpush1.bf16.msra.mxu1 %v5522_v55  ;;  %v5546_v21 = vld [vmem:[#allocation3 + $0x1d0] sm:$0xff]  ;;  %v5553_v55 = vld [vmem:[#allocation3 + $0x208] sm:$0xff] }
 0x6ce   :  { %6082 = vmatprep.subr.bf16.mxu0 %v5529_v41  ;;  %6254 = vmatprep.subr.bf16.mxu1 %v5531_v48  ;;  %v5555_v41 = vld [vmem:[#allocation3 + $0x218] sm:$0xff]  ;;  %v5552_v48 = vld [vmem:[#allocation3 + $0x200] sm:$0xff] }
 0x6d1   :  { %6083 = vmatpush1.bf16.msra.mxu0 %v5528_v56  ;;  %6255 = vmatpush1.bf16.msra.mxu1 %v5530_v51  ;;  %v5554_v56 = vld [vmem:[#allocation3 + $0x210] sm:$0xff]  ;;  %v5561_v51 = vld [vmem:[#allocation3 + $0x248] sm:$0xff] }
 0x6d2   :  { %6084 = vmatprep.subr.bf16.mxu0 %v5537_v49  ;;  %6256 = vmatprep.subr.bf16.mxu1 %v5539_v7  ;;  %v5563_v49 = vld [vmem:[#allocation3 + $0x258] sm:$0xff]  ;;  %v5560_v7 = vld [vmem:[#allocation3 + $0x240] sm:$0xff] }
 0x6d5   :  { %6085 = vmatpush1.bf16.msra.mxu0 %v5536_v24  ;;  %6257 = vmatpush1.bf16.msra.mxu1 %v5538_v58  ;;  %v5562_v24 = vld [vmem:[#allocation3 + $0x250] sm:$0xff]  ;;  %v5569_v58 = vld [vmem:[#allocation3 + $0x288] sm:$0xff] }
 0x6d6   :  { %6086 = vmatprep.subr.bf16.mxu0 %v5545_v47  ;;  %6258 = vmatprep.subr.bf16.mxu1 %v5547_v13  ;;  %v5571_v47 = vld [vmem:[#allocation3 + $0x298] sm:$0xff]  ;;  %v5568_v13 = vld [vmem:[#allocation3 + $0x280] sm:$0xff] }
 0x6d9   :  { %6087 = vmatpush1.bf16.msra.mxu0 %v5544_v16  ;;  %6259 = vmatpush1.bf16.msra.mxu1 %v5546_v21  ;;  %v5570_v16 = vld [vmem:[#allocation3 + $0x290] sm:$0xff]  ;;  %v5577_v21 = vld [vmem:[#allocation3 + $0x2c8] sm:$0xff] }
 0x6da   :  { %6088 = vmatprep.subr.bf16.mxu0 %v5553_v55  ;;  %6260 = vmatprep.subr.bf16.mxu1 %v5555_v41  ;;  %v5579_v55 = vld [vmem:[#allocation3 + $0x2d8] sm:$0xff]  ;;  %v5576_v41 = vld [vmem:[#allocation3 + $0x2c0] sm:$0xff] }
 0x6dd   :  { %6089 = vmatpush1.bf16.msra.mxu0 %v5552_v48  ;;  %6261 = vmatpush1.bf16.msra.mxu1 %v5554_v56  ;;  %v5578_v48 = vld [vmem:[#allocation3 + $0x2d0] sm:$0xff]  ;;  %v5585_v56 = vld [vmem:[#allocation3 + $0x308] sm:$0xff] }
 0x6de   :  { %6090 = vmatprep.subr.bf16.mxu0 %v5561_v51  ;;  %6262 = vmatprep.subr.bf16.mxu1 %v5563_v49  ;;  %v5587_v51 = vld [vmem:[#allocation3 + $0x318] sm:$0xff]  ;;  %v5584_v49 = vld [vmem:[#allocation3 + $0x300] sm:$0xff] }
 0x6e1   :  { %6091 = vmatpush1.bf16.msra.mxu0 %v5560_v7  ;;  %6263 = vmatpush1.bf16.msra.mxu1 %v5562_v24  ;;  %v5586_v7 = vld [vmem:[#allocation3 + $0x310] sm:$0xff]  ;;  %v5593_v24 = vld [vmem:[#allocation3 + $0x348] sm:$0xff] }
 0x6e2   :  { %6092 = vmatprep.subr.bf16.mxu0 %v5569_v58  ;;  %6264 = vmatprep.subr.bf16.mxu1 %v5571_v47  ;;  %v5595_v58 = vld [vmem:[#allocation3 + $0x358] sm:$0xff]  ;;  %v5592_v47 = vld [vmem:[#allocation3 + $0x340] sm:$0xff] }
 0x6e5   :  { %6093 = vmatpush1.bf16.msra.mxu0 %v5568_v13  ;;  %6265 = vmatpush1.bf16.msra.mxu1 %v5570_v16  ;;  %v5594_v13 = vld [vmem:[#allocation3 + $0x350] sm:$0xff]  ;;  %v5601_v16 = vld [vmem:[#allocation3 + $0x388] sm:$0xff] }
 0x6e6   :  { %6094 = vmatprep.subr.bf16.mxu0 %v5577_v21  ;;  %6266 = vmatprep.subr.bf16.mxu1 %v5579_v55  ;;  %v5603_v21 = vld [vmem:[#allocation3 + $0x398] sm:$0xff]  ;;  %v5600_v55 = vld [vmem:[#allocation3 + $0x380] sm:$0xff] }
 0x6e9   :  { %6095 = vmatpush1.bf16.msra.mxu0 %v5576_v41  ;;  %6267 = vmatpush1.bf16.msra.mxu1 %v5578_v48  ;;  %v5602_v41 = vld [vmem:[#allocation3 + $0x390] sm:$0xff]  ;;  %v5609_v48 = vld [vmem:[#allocation3 + $0x3c8] sm:$0xff] }
 0x6ea   :  { %6096 = vmatprep.subr.bf16.mxu0 %v5585_v56  ;;  %6268 = vmatprep.subr.bf16.mxu1 %v5587_v51  ;;  %v5611_v56 = vld [vmem:[#allocation3 + $0x3d8] sm:$0xff]  ;;  %v5608_v51 = vld [vmem:[#allocation3 + $0x3c0] sm:$0xff] }
 0x6ed   :  { %6097 = vmatpush1.bf16.msra.mxu0 %v5584_v49  ;;  %6269 = vmatpush1.bf16.msra.mxu1 %v5586_v7  ;;  %v5610_v49 = vld [vmem:[#allocation3 + $0x3d0] sm:$0xff]  ;;  %v5617_v7 = vld [vmem:[#allocation3 + $0x408] sm:$0xff] }
 0x6ee   :  { %6098 = vmatprep.subr.bf16.mxu0 %v5593_v24  ;;  %6270 = vmatprep.subr.bf16.mxu1 %v5595_v58  ;;  %v5619_v24 = vld [vmem:[#allocation3 + $0x418] sm:$0xff]  ;;  %v9889_v58 = vpack.c.bf16 %v5464_v31, %v5456_v17  ;;  %v5626_v17 = vld [vmem:[#allocation3 + $0x450] sm:$0xff] }
 0x6ef   :  { %v5635_v31 = vld [vmem:[#allocation3 + $0x498] sm:$0xff] }
 0x6f1   :  { %6099 = vmatpush1.bf16.msra.mxu0 %v5592_v47  ;;  %6271 = vmatpush1.bf16.msra.mxu1 %v5594_v13  ;;  %v5616_v47 = vld [vmem:[#allocation3 + $0x400] sm:$0xff]  ;;  %v5618_v13 = vld [vmem:[#allocation3 + $0x410] sm:$0xff] }
 0x6f2   :  { %6100 = vmatprep.subr.bf16.mxu0 %v5601_v16  ;;  %6272 = vmatprep.subr.bf16.mxu1 %v5603_v21  ;;  %v5625_v16 = vld [vmem:[#allocation3 + $0x448] sm:$0xff]  ;;  %v5627_v21 = vld [vmem:[#allocation3 + $0x458] sm:$0xff] }
 0x6f5   :  { %6101 = vmatpush1.bf16.msra.mxu0 %v5600_v55  ;;  %6273 = vmatpush1.bf16.msra.mxu1 %v5602_v41  ;;  %v9895_v55 = vpack.c.bf16 %v5467_v15, %v5459_v30  ;;  %v5634_v30 = vld [vmem:[#allocation3 + $0x490] sm:$0xff]  ;;  %v5643_v15 = vld [vmem:[#allocation3 + $0x4d8] sm:$0xff]  ;;  %v5640_v41 = vld [vmem:[#allocation3 + $0x4c0] sm:$0xff] }
 0x6f6   :  { %6102 = vmatprep.subr.bf16.mxu0 %v5609_v48  ;;  %6274 = vmatprep.subr.bf16.mxu1 %v5611_v56  ;;  %v5642_v48 = vld [vmem:[#allocation3 + $0x4d0] sm:$0xff]  ;;  %v5649_v56 = vld [vmem:[#allocation3 + $0x508] sm:$0xff] }
 0x6f9   :  { %6103 = vmatpush1.bf16.msra.mxu0 %v5608_v51  ;;  %6275 = vmatpush1.bf16.msra.mxu1 %v5610_v49  ;;  %v5651_v51 = vld [vmem:[#allocation3 + $0x518] sm:$0xff]  ;;  %v5648_v49 = vld [vmem:[#allocation3 + $0x500] sm:$0xff] }
 0x6fa   :  { %6115 = vmatprep.subr.bf16.mxu0 %v5617_v7  ;;  %6287 = vmatprep.subr.bf16.mxu1 %v5619_v24  ;;  %v5650_v7 = vld [vmem:[#allocation3 + $0x510] sm:$0xff]  ;;  %v5657_v24 = vld [vmem:[#allocation3 + $0x548] sm:$0xff] }
 0x6fc   :  { %6105 = vmatmul.mubr.bf16.vlgmr.msra.gmra.mrb[16].mxu0 %v9889_v58  ;;  %6277 = vmatmul.mubr.bf16.vlgmr.msra.gmra.mrb[16].mxu1 %v9889_v58 }
 0x6fd   :  { %6116 = vmatpush1.bf16.msra.mxu0 %v5616_v47  ;;  %6288 = vmatpush1.bf16.msra.mxu1 %v5618_v13  ;;  %v5659_v47 = vld [vmem:[#allocation3 + $0x558] sm:$0xff]  ;;  %v5656_v13 = vld [vmem:[#allocation3 + $0x540] sm:$0xff] }
 0x6fe   :  { %6117 = vmatprep.subr.bf16.mxu0 %v5625_v16  ;;  %6289 = vmatprep.subr.bf16.mxu1 %v5627_v21  ;;  %v5658_v16 = vld [vmem:[#allocation3 + $0x550] sm:$0xff]  ;;  %v5665_v21 = vld [vmem:[#allocation3 + $0x588] sm:$0xff] }
 0x6ff   :  { %6147 = vmatprep.mubr.bf16.mxu0 %v9895_v55  ;;  %6319 = vmatprep.mubr.bf16.mxu1 %v9895_v55 }
 0x701   :  { %6118 = vmatpush1.bf16.msra.mxu0 %v5624_v36  ;;  %6290 = vmatpush1.bf16.msra.mxu1 %v5626_v17  ;;  %v5667_v36 = vld [vmem:[#allocation3 + $0x598] sm:$0xff]  ;;  %v5664_v17 = vld [vmem:[#allocation3 + $0x580] sm:$0xff] }
 0x702   :  { %6119 = vmatprep.subr.bf16.mxu0 %v5633_v18  ;;  %6291 = vmatprep.subr.bf16.mxu1 %v5635_v31  ;;  %v5666_v18 = vld [vmem:[#allocation3 + $0x590] sm:$0xff]  ;;  %v5673_v31 = vld [vmem:[#allocation3 + $0x5c8] sm:$0xff] }
 0x705   :  { %6120 = vmatpush1.bf16.msra.mxu0 %v5632_v62  ;;  %6292 = vmatpush1.bf16.msra.mxu1 %v5634_v30  ;;  %v5675_v62 = vld [vmem:[#allocation3 + $0x5d8] sm:$0xff]  ;;  %v5672_v30 = vld [vmem:[#allocation3 + $0x5c0] sm:$0xff] }
 0x706   :  { %6121 = vmatprep.subr.bf16.mxu0 %v5641_v26  ;;  %6293 = vmatprep.subr.bf16.mxu1 %v5643_v15  ;;  %v5674_v26 = vld [vmem:[#allocation3 + $0x5d0] sm:$0xff]  ;;  %v5681_v15 = vld [vmem:[#allocation3 + $0x608] sm:$0xff] }
 0x709   :  { %6122 = vmatpush1.bf16.msra.mxu0 %v5640_v41  ;;  %6294 = vmatpush1.bf16.msra.mxu1 %v5642_v48  ;;  %v5683_v41 = vld [vmem:[#allocation3 + $0x618] sm:$0xff]  ;;  %v5680_v48 = vld [vmem:[#allocation3 + $0x600] sm:$0xff] }
 0x70a   :  { %6123 = vmatprep.subr.bf16.mxu0 %v5649_v56  ;;  %6295 = vmatprep.subr.bf16.mxu1 %v5651_v51  ;;  %v5682_v56 = vld [vmem:[#allocation3 + $0x610] sm:$0xff]  ;;  %v5689_v51 = vld [vmem:[#allocation3 + $0x648] sm:$0xff] }
 0x70d   :  { %6124 = vmatpush1.bf16.msra.mxu0 %v5648_v49  ;;  %6296 = vmatpush1.bf16.msra.mxu1 %v5650_v7  ;;  %v5691_v49 = vld [vmem:[#allocation3 + $0x658] sm:$0xff]  ;;  %v5688_v7 = vld [vmem:[#allocation3 + $0x640] sm:$0xff] }
 0x70e   :  { %6125 = vmatprep.subr.bf16.mxu0 %v5657_v24  ;;  %6297 = vmatprep.subr.bf16.mxu1 %v5659_v47  ;;  %v5690_v24 = vld [vmem:[#allocation3 + $0x650] sm:$0xff]  ;;  %v5697_v47 = vld [vmem:[#allocation3 + $0x688] sm:$0xff] }
 0x711   :  { %6126 = vmatpush1.bf16.msra.mxu0 %v5656_v13  ;;  %6298 = vmatpush1.bf16.msra.mxu1 %v5658_v16  ;;  %v5699_v13 = vld [vmem:[#allocation3 + $0x698] sm:$0xff]  ;;  %v5696_v16 = vld [vmem:[#allocation3 + $0x680] sm:$0xff] }
 0x712   :  { %6127 = vmatprep.subr.bf16.mxu0 %v5665_v21  ;;  %6299 = vmatprep.subr.bf16.mxu1 %v5667_v36  ;;  %v5698_v21 = vld [vmem:[#allocation3 + $0x690] sm:$0xff]  ;;  %v5705_v36 = vld [vmem:[#allocation3 + $0x6c8] sm:$0xff] }
 0x715   :  { %6128 = vmatpush1.bf16.msra.mxu0 %v5664_v17  ;;  %6300 = vmatpush1.bf16.msra.mxu1 %v5666_v18  ;;  %v5707_v17 = vld [vmem:[#allocation3 + $0x6d8] sm:$0xff]  ;;  %v5704_v18 = vld [vmem:[#allocation3 + $0x6c0] sm:$0xff] }
 0x716   :  { %6129 = vmatprep.subr.bf16.mxu0 %v5673_v31  ;;  %6301 = vmatprep.subr.bf16.mxu1 %v5675_v62  ;;  %v5706_v31 = vld [vmem:[#allocation3 + $0x6d0] sm:$0xff]  ;;  %v5713_v62 = vld [vmem:[#allocation3 + $0x708] sm:$0xff] }
 0x719   :  { %6130 = vmatpush1.bf16.msra.mxu0 %v5672_v30  ;;  %6302 = vmatpush1.bf16.msra.mxu1 %v5674_v26  ;;  %v5715_v30 = vld [vmem:[#allocation3 + $0x718] sm:$0xff]  ;;  %v5712_v26 = vld [vmem:[#allocation3 + $0x700] sm:$0xff] }
 0x71a   :  { %6131 = vmatprep.subr.bf16.mxu0 %v5681_v15  ;;  %6303 = vmatprep.subr.bf16.mxu1 %v5683_v41  ;;  %v5714_v15 = vld [vmem:[#allocation3 + $0x710] sm:$0xff]  ;;  %v5721_v41 = vld [vmem:[#allocation3 + $0x748] sm:$0xff] }
 0x71d   :  { %6132 = vmatpush1.bf16.msra.mxu0 %v5680_v48  ;;  %6304 = vmatpush1.bf16.msra.mxu1 %v5682_v56  ;;  %v5723_v48 = vld [vmem:[#allocation3 + $0x758] sm:$0xff]  ;;  %v5720_v56 = vld [vmem:[#allocation3 + $0x740] sm:$0xff] }
 0x71e   :  { %6133 = vmatprep.subr.bf16.mxu0 %v5689_v51  ;;  %6305 = vmatprep.subr.bf16.mxu1 %v5691_v49  ;;  %v5722_v51 = vld [vmem:[#allocation3 + $0x750] sm:$0xff]  ;;  %v5729_v49 = vld [vmem:[#allocation3 + $0x788] sm:$0xff] }
 0x721   :  { %6134 = vmatpush1.bf16.msra.mxu0 %v5688_v7  ;;  %6306 = vmatpush1.bf16.msra.mxu1 %v5690_v24  ;;  %v5731_v7 = vld [vmem:[#allocation3 + $0x798] sm:$0xff]  ;;  %v5728_v24 = vld [vmem:[#allocation3 + $0x780] sm:$0xff] }
 0x722   :  { %6135 = vmatprep.subr.bf16.mxu0 %v5697_v47  ;;  %6307 = vmatprep.subr.bf16.mxu1 %v5699_v13  ;;  %v5730_v47 = vld [vmem:[#allocation3 + $0x790] sm:$0xff]  ;;  %v5737_v13 = vld [vmem:[#allocation3 + $0x7c8] sm:$0xff] }
 0x725   :  { %6136 = vmatpush1.bf16.msra.mxu0 %v5696_v16  ;;  %6308 = vmatpush1.bf16.msra.mxu1 %v5698_v21  ;;  %v5739_v16 = vld [vmem:[#allocation3 + $0x7d8] sm:$0xff]  ;;  %v5736_v21 = vld [vmem:[#allocation3 + $0x7c0] sm:$0xff] }
 0x726   :  { %6137 = vmatprep.subr.bf16.mxu0 %v5705_v36  ;;  %6309 = vmatprep.subr.bf16.mxu1 %v5707_v17  ;;  %v5738_v36 = vld [vmem:[#allocation3 + $0x7d0] sm:$0xff]  ;;  %v5745_v17 = vld [vmem:[#allocation3 + $0x808] sm:$0xff] }
 0x729   :  { %6138 = vmatpush1.bf16.msra.mxu0 %v5704_v18  ;;  %6310 = vmatpush1.bf16.msra.mxu1 %v5706_v31  ;;  %v5747_v18 = vld [vmem:[#allocation3 + $0x818] sm:$0xff]  ;;  %v9905_v31 = vpack.c.bf16 %v5466_v14, %v5458_v22  ;;  %v5754_v22 = vld [vmem:[#allocation3 + $0x850] sm:$0xff] }
 0x72a   :  { %6139 = vmatprep.subr.bf16.mxu0 %v5713_v62  ;;  %6311 = vmatprep.subr.bf16.mxu1 %v5715_v30  ;;  %v5744_v62 = vld [vmem:[#allocation3 + $0x800] sm:$0xff]  ;;  %v5746_v30 = vld [vmem:[#allocation3 + $0x810] sm:$0xff]  ;;  %v5763_v14 = vld [vmem:[#allocation3 + $0x898] sm:$0xff] }
 0x72d   :  { %6140 = vmatpush1.bf16.msra.mxu0 %v5712_v26  ;;  %6312 = vmatpush1.bf16.msra.mxu1 %v5714_v15  ;;  %v5753_v26 = vld [vmem:[#allocation3 + $0x848] sm:$0xff]  ;;  %v5755_v15 = vld [vmem:[#allocation3 + $0x858] sm:$0xff] }
 0x72e   :  { %6141 = vmatprep.subr.bf16.mxu0 %v5721_v41  ;;  %6313 = vmatprep.subr.bf16.mxu1 %v5723_v48  ;;  %v9911_v41 = vpack.c.bf16 %v5469_v57, %v5461_v11  ;;  %v5760_v57 = vld [vmem:[#allocation3 + $0x880] sm:$0xff]  ;;  %v5769_v11 = vld [vmem:[#allocation3 + $0x8c8] sm:$0xff] }
 0x72f   :  { %v5768_v48 = vld [vmem:[#allocation3 + $0x8c0] sm:$0xff] }
 0x731   :  { %6142 = vmatpush1.bf16.msra.mxu0 %v5720_v56  ;;  %6314 = vmatpush1.bf16.msra.mxu1 %v5722_v51  ;;  %v5770_v56 = vld [vmem:[#allocation3 + $0x8d0] sm:$0xff]  ;;  %v5777_v51 = vld [vmem:[#allocation3 + $0x908] sm:$0xff] }
 0x732   :  { %6143 = vmatprep.subr.bf16.mxu0 %v5729_v49  ;;  %6315 = vmatprep.subr.bf16.mxu1 %v5731_v7  ;;  %v5779_v49 = vld [vmem:[#allocation3 + $0x918] sm:$0xff]  ;;  %v5776_v7 = vld [vmem:[#allocation3 + $0x900] sm:$0xff] }
 0x735   :  { %6144 = vmatpush1.bf16.msra.mxu0 %v5728_v24  ;;  %6316 = vmatpush1.bf16.msra.mxu1 %v5730_v47  ;;  %v5778_v24 = vld [vmem:[#allocation3 + $0x910] sm:$0xff]  ;;  %v5785_v47 = vld [vmem:[#allocation3 + $0x948] sm:$0xff] }
 0x736   :  { %6145 = vmatprep.subr.bf16.mxu0 %v5737_v13  ;;  %6317 = vmatprep.subr.bf16.mxu1 %v5739_v16  ;;  %v5787_v13 = vld [vmem:[#allocation3 + $0x958] sm:$0xff]  ;;  %v5784_v16 = vld [vmem:[#allocation3 + $0x940] sm:$0xff] }
 0x739   :  { %6146 = vmatpush1.bf16.msra.mxu0 %v5736_v21  ;;  %6318 = vmatpush1.bf16.msra.mxu1 %v5738_v36  ;;  %v5786_v21 = vld [vmem:[#allocation3 + $0x950] sm:$0xff]  ;;  %v5793_v36 = vld [vmem:[#allocation3 + $0x988] sm:$0xff] }
 0x73a   :  { %6158 = vmatprep.subr.bf16.mxu0 %v5745_v17  ;;  %6330 = vmatprep.subr.bf16.mxu1 %v5747_v18  ;;  %v5795_v17 = vld [vmem:[#allocation3 + $0x998] sm:$0xff]  ;;  %v5792_v18 = vld [vmem:[#allocation3 + $0x980] sm:$0xff] }
 0x73c   :  { %6148 = vmatmul.mubr.bf16.vlgmr.msra.gmra.mrb[16].mxu0 %v9905_v31  ;;  %6320 = vmatmul.mubr.bf16.vlgmr.msra.gmra.mrb[16].mxu1 %v9905_v31 }
 0x73d   :  { %6159 = vmatpush1.bf16.msra.mxu0 %v5744_v62  ;;  %6331 = vmatpush1.bf16.msra.mxu1 %v5746_v30  ;;  %v5794_v62 = vld [vmem:[#allocation3 + $0x990] sm:$0xff]  ;;  %v5801_v30 = vld [vmem:[#allocation3 + $0x9c8] sm:$0xff] }
 0x73e   :  { %6160 = vmatprep.subr.bf16.mxu0 %v5753_v26  ;;  %6332 = vmatprep.subr.bf16.mxu1 %v5755_v15  ;;  %v5803_v26 = vld [vmem:[#allocation3 + $0x9d8] sm:$0xff]  ;;  %v5800_v15 = vld [vmem:[#allocation3 + $0x9c0] sm:$0xff] }
 0x73f   :  { %6190 = vmatprep.mubr.bf16.mxu0 %v9911_v41  ;;  %6362 = vmatprep.mubr.bf16.mxu1 %v9911_v41 }
 0x741   :  { %6161 = vmatpush1.bf16.msra.mxu0 %v5752_v20  ;;  %6333 = vmatpush1.bf16.msra.mxu1 %v5754_v22  ;;  %v5802_v20 = vld [vmem:[#allocation3 + $0x9d0] sm:$0xff]  ;;  %v5809_v22 = vld [vmem:[#allocation3 + $0xa08] sm:$0xff] }
 0x742   :  { %6162 = vmatprep.subr.bf16.mxu0 %v5761_v19  ;;  %6334 = vmatprep.subr.bf16.mxu1 %v5763_v14  ;;  %v5811_v19 = vld [vmem:[#allocation3 + $0xa18] sm:$0xff]  ;;  %v5808_v14 = vld [vmem:[#allocation3 + $0xa00] sm:$0xff] }
 0x745   :  { %6163 = vmatpush1.bf16.msra.mxu0 %v5760_v57  ;;  %6335 = vmatpush1.bf16.msra.mxu1 %v5762_v0  ;;  %v5810_v57 = vld [vmem:[#allocation3 + $0xa10] sm:$0xff]  ;;  %v5817_v0 = vld [vmem:[#allocation3 + $0xa48] sm:$0xff] }
 0x746   :  { %6164 = vmatprep.subr.bf16.mxu0 %v5769_v11  ;;  %6336 = vmatprep.subr.bf16.mxu1 %v5771_v63  ;;  %v5819_v11 = vld [vmem:[#allocation3 + $0xa58] sm:$0xff]  ;;  %v5816_v63 = vld [vmem:[#allocation3 + $0xa40] sm:$0xff] }
 0x749   :  { %6165 = vmatpush1.bf16.msra.mxu0 %v5768_v48  ;;  %6337 = vmatpush1.bf16.msra.mxu1 %v5770_v56  ;;  %v5818_v48 = vld [vmem:[#allocation3 + $0xa50] sm:$0xff]  ;;  %v5825_v56 = vld [vmem:[#allocation3 + $0xa88] sm:$0xff] }
 0x74a   :  { %6166 = vmatprep.subr.bf16.mxu0 %v5777_v51  ;;  %6338 = vmatprep.subr.bf16.mxu1 %v5779_v49  ;;  %v5827_v51 = vld [vmem:[#allocation3 + $0xa98] sm:$0xff]  ;;  %v5824_v49 = vld [vmem:[#allocation3 + $0xa80] sm:$0xff] }
 0x74d   :  { %6167 = vmatpush1.bf16.msra.mxu0 %v5776_v7  ;;  %6339 = vmatpush1.bf16.msra.mxu1 %v5778_v24  ;;  %v5826_v7 = vld [vmem:[#allocation3 + $0xa90] sm:$0xff]  ;;  %v5833_v24 = vld [vmem:[#allocation3 + $0xac8] sm:$0xff] }
 0x74e   :  { %6168 = vmatprep.subr.bf16.mxu0 %v5785_v47  ;;  %6340 = vmatprep.subr.bf16.mxu1 %v5787_v13  ;;  %v5835_v47 = vld [vmem:[#allocation3 + $0xad8] sm:$0xff]  ;;  %v5832_v13 = vld [vmem:[#allocation3 + $0xac0] sm:$0xff] }
 0x751   :  { %6169 = vmatpush1.bf16.msra.mxu0 %v5784_v16  ;;  %6341 = vmatpush1.bf16.msra.mxu1 %v5786_v21  ;;  %v5834_v16 = vld [vmem:[#allocation3 + $0xad0] sm:$0xff]  ;;  %v5841_v21 = vld [vmem:[#allocation3 + $0xb08] sm:$0xff] }
 0x752   :  { %6170 = vmatprep.subr.bf16.mxu0 %v5793_v36  ;;  %6342 = vmatprep.subr.bf16.mxu1 %v5795_v17  ;;  %v5843_v36 = vld [vmem:[#allocation3 + $0xb18] sm:$0xff]  ;;  %v5840_v17 = vld [vmem:[#allocation3 + $0xb00] sm:$0xff] }
 0x755   :  { %6171 = vmatpush1.bf16.msra.mxu0 %v5792_v18  ;;  %6343 = vmatpush1.bf16.msra.mxu1 %v5794_v62  ;;  %v5842_v18 = vld [vmem:[#allocation3 + $0xb10] sm:$0xff]  ;;  %v5849_v62 = vld [vmem:[#allocation3 + $0xb48] sm:$0xff] }
 0x756   :  { %6172 = vmatprep.subr.bf16.mxu0 %v5801_v30  ;;  %6344 = vmatprep.subr.bf16.mxu1 %v5803_v26  ;;  %v5851_v30 = vld [vmem:[#allocation3 + $0xb58] sm:$0xff]  ;;  %v5848_v26 = vld [vmem:[#allocation3 + $0xb40] sm:$0xff] }
 0x759   :  { %6173 = vmatpush1.bf16.msra.mxu0 %v5800_v15  ;;  %6345 = vmatpush1.bf16.msra.mxu1 %v5802_v20  ;;  %v5850_v15 = vld [vmem:[#allocation3 + $0xb50] sm:$0xff]  ;;  %v5857_v20 = vld [vmem:[#allocation3 + $0xb88] sm:$0xff] }
 0x75a   :  { %6174 = vmatprep.subr.bf16.mxu0 %v5809_v22  ;;  %6346 = vmatprep.subr.bf16.mxu1 %v5811_v19  ;;  %v5859_v22 = vld [vmem:[#allocation3 + $0xb98] sm:$0xff]  ;;  %v5856_v19 = vld [vmem:[#allocation3 + $0xb80] sm:$0xff] }
 0x75d   :  { %6175 = vmatpush1.bf16.msra.mxu0 %v5808_v14  ;;  %6347 = vmatpush1.bf16.msra.mxu1 %v5810_v57  ;;  %v5858_v14 = vld [vmem:[#allocation3 + $0xb90] sm:$0xff]  ;;  %v5865_v57 = vld [vmem:[#allocation3 + $0xbc8] sm:$0xff] }
 0x75e   :  { %6176 = vmatprep.subr.bf16.mxu0 %v5817_v0  ;;  %6348 = vmatprep.subr.bf16.mxu1 %v5819_v11  ;;  %v5867_v0 = vld [vmem:[#allocation3 + $0xbd8] sm:$0xff]  ;;  %v5864_v11 = vld [vmem:[#allocation3 + $0xbc0] sm:$0xff] }
 0x761   :  { %6177 = vmatpush1.bf16.msra.mxu0 %v5816_v63  ;;  %6349 = vmatpush1.bf16.msra.mxu1 %v5818_v48  ;;  %v5866_v63 = vld [vmem:[#allocation3 + $0xbd0] sm:$0xff]  ;;  %v5873_v48 = vld [vmem:[#allocation3 + $0xc08] sm:$0xff] }
 0x762   :  { %6178 = vmatprep.subr.bf16.mxu0 %v5825_v56  ;;  %6350 = vmatprep.subr.bf16.mxu1 %v5827_v51  ;;  %v5875_v56 = vld [vmem:[#allocation3 + $0xc18] sm:$0xff]  ;;  %v9921_v51 = vpack.c.bf16 %v5468_v3, %v5460_v12  ;;  %v5880_v3 = vld [vmem:[#allocation3 + $0xc40] sm:$0xff] }
 0x763   :  { %v5891_v12 = vld [vmem:[#allocation3 + $0xc98] sm:$0xff] }
 0x765   :  { %6179 = vmatpush1.bf16.msra.mxu0 %v5824_v49  ;;  %6351 = vmatpush1.bf16.msra.mxu1 %v5826_v7  ;;  %v5872_v49 = vld [vmem:[#allocation3 + $0xc00] sm:$0xff]  ;;  %v5874_v7 = vld [vmem:[#allocation3 + $0xc10] sm:$0xff] }
 0x766   :  { %6180 = vmatprep.subr.bf16.mxu0 %v5833_v24  ;;  %6352 = vmatprep.subr.bf16.mxu1 %v5835_v47  ;;  %v5881_v24 = vld [vmem:[#allocation3 + $0xc48] sm:$0xff]  ;;  %v5883_v47 = vld [vmem:[#allocation3 + $0xc58] sm:$0xff] }
 0x769   :  { %6181 = vmatpush1.bf16.msra.mxu0 %v5832_v13  ;;  %6353 = vmatpush1.bf16.msra.mxu1 %v5834_v16  ;;  %v9927_v13 = vpack.c.bf16 %v5471_v23, %v5463_v5  ;;  %v5888_v5 = vld [vmem:[#allocation3 + $0xc80] sm:$0xff]  ;;  %v5899_v23 = vld [vmem:[#allocation3 + $0xcd8] sm:$0xff] }
 0x76a   :  { %6182 = vmatprep.subr.bf16.mxu0 %v5841_v21  ;;  %6354 = vmatprep.subr.bf16.mxu1 %v5843_v36  ;;  %v5896_v16 = vld [vmem:[#allocation3 + $0xcc0] sm:$0xff]  ;;  %v5898_v21 = vld [vmem:[#allocation3 + $0xcd0] sm:$0xff]  ;;  %v5905_v36 = vld [vmem:[#allocation3 + $0xd08] sm:$0xff] }
 0x76d   :  { %6183 = vmatpush1.bf16.msra.mxu0 %v5840_v17  ;;  %6355 = vmatpush1.bf16.msra.mxu1 %v5842_v18  ;;  %v5907_v17 = vld [vmem:[#allocation3 + $0xd18] sm:$0xff]  ;;  %v5904_v18 = vld [vmem:[#allocation3 + $0xd00] sm:$0xff] }
 0x76e   :  { %6184 = vmatprep.subr.bf16.mxu0 %v5849_v62  ;;  %6356 = vmatprep.subr.bf16.mxu1 %v5851_v30  ;;  %v5906_v62 = vld [vmem:[#allocation3 + $0xd10] sm:$0xff]  ;;  %v5913_v30 = vld [vmem:[#allocation3 + $0xd48] sm:$0xff] }
 0x771   :  { %6185 = vmatpush1.bf16.msra.mxu0 %v5848_v26  ;;  %6357 = vmatpush1.bf16.msra.mxu1 %v5850_v15  ;;  %v5915_v26 = vld [vmem:[#allocation3 + $0xd58] sm:$0xff]  ;;  %v5912_v15 = vld [vmem:[#allocation3 + $0xd40] sm:$0xff] }
 0x772   :  { %6186 = vmatprep.subr.bf16.mxu0 %v5857_v20  ;;  %6358 = vmatprep.subr.bf16.mxu1 %v5859_v22  ;;  %v5914_v20 = vld [vmem:[#allocation3 + $0xd50] sm:$0xff]  ;;  %v5921_v22 = vld [vmem:[#allocation3 + $0xd88] sm:$0xff] }
 0x775   :  { %6187 = vmatpush1.bf16.msra.mxu0 %v5856_v19  ;;  %6359 = vmatpush1.bf16.msra.mxu1 %v5858_v14  ;;  %v5923_v19 = vld [vmem:[#allocation3 + $0xd98] sm:$0xff]  ;;  %v5920_v14 = vld [vmem:[#allocation3 + $0xd80] sm:$0xff] }
 0x776   :  { %6188 = vmatprep.subr.bf16.mxu0 %v5865_v57  ;;  %6360 = vmatprep.subr.bf16.mxu1 %v5867_v0  ;;  %v5922_v57 = vld [vmem:[#allocation3 + $0xd90] sm:$0xff]  ;;  %v5929_v0 = vld [vmem:[#allocation3 + $0xdc8] sm:$0xff] }
 0x779   :  { %6189 = vmatpush1.bf16.msra.mxu0 %v5864_v11  ;;  %6361 = vmatpush1.bf16.msra.mxu1 %v5866_v63  ;;  %v5931_v11 = vld [vmem:[#allocation3 + $0xdd8] sm:$0xff]  ;;  %v5928_v63 = vld [vmem:[#allocation3 + $0xdc0] sm:$0xff] }
 0x77a   :  { %6201 = vmatprep.subr.bf16.mxu0 %v5873_v48  ;;  %6373 = vmatprep.subr.bf16.mxu1 %v5875_v56  ;;  %v5930_v48 = vld [vmem:[#allocation3 + $0xdd0] sm:$0xff]  ;;  %v5937_v56 = vld [vmem:[#allocation3 + $0xe08] sm:$0xff] }
 0x77c   :  { %6191 = vmatmul.mubr.bf16.vlgmr.msra.gmra.mrb[16].mxu0 %v9921_v51  ;;  %6363 = vmatmul.mubr.bf16.vlgmr.msra.gmra.mrb[16].mxu1 %v9921_v51 }
 0x77d   :  { %6202 = vmatpush1.bf16.msra.mxu0 %v5872_v49  ;;  %6374 = vmatpush1.bf16.msra.mxu1 %v5874_v7  ;;  %v5939_v49 = vld [vmem:[#allocation3 + $0xe18] sm:$0xff]  ;;  %v5936_v7 = vld [vmem:[#allocation3 + $0xe00] sm:$0xff] }
 0x77e   :  { %6203 = vmatprep.subr.bf16.mxu0 %v5881_v24  ;;  %6375 = vmatprep.subr.bf16.mxu1 %v5883_v47  ;;  %v5938_v24 = vld [vmem:[#allocation3 + $0xe10] sm:$0xff]  ;;  %v5945_v47 = vld [vmem:[#allocation3 + $0xe48] sm:$0xff] }
 0x77f   :  { %6233 = vmatprep.mubr.bf16.mxu0 %v9927_v13  ;;  %6405 = vmatprep.mubr.bf16.mxu1 %v9927_v13 }
 0x781   :  { %6204 = vmatpush1.bf16.msra.mxu0 %v5880_v3  ;;  %6376 = vmatpush1.bf16.msra.mxu1 %v5882_v53  ;;  %v5947_v3 = vld [vmem:[#allocation3 + $0xe58] sm:$0xff]  ;;  %v5944_v53 = vld [vmem:[#allocation3 + $0xe40] sm:$0xff] }
 0x782   :  { %6205 = vmatprep.subr.bf16.mxu0 %v5889_v9  ;;  %6377 = vmatprep.subr.bf16.mxu1 %v5891_v12  ;;  %v5946_v9 = vld [vmem:[#allocation3 + $0xe50] sm:$0xff]  ;;  %v5953_v12 = vld [vmem:[#allocation3 + $0xe88] sm:$0xff] }
 0x785   :  { %6206 = vmatpush1.bf16.msra.mxu0 %v5888_v5  ;;  %6378 = vmatpush1.bf16.msra.mxu1 %v5890_v59  ;;  %v5955_v5 = vld [vmem:[#allocation3 + $0xe98] sm:$0xff]  ;;  %v5952_v59 = vld [vmem:[#allocation3 + $0xe80] sm:$0xff] }
 0x786   :  { %6207 = vmatprep.subr.bf16.mxu0 %v5897_v8  ;;  %6379 = vmatprep.subr.bf16.mxu1 %v5899_v23  ;;  %v5954_v8 = vld [vmem:[#allocation3 + $0xe90] sm:$0xff]  ;;  %v5961_v23 = vld [vmem:[#allocation3 + $0xec8] sm:$0xff] }
 0x789   :  { %6208 = vmatpush1.bf16.msra.mxu0 %v5896_v16  ;;  %6380 = vmatpush1.bf16.msra.mxu1 %v5898_v21  ;;  %v5963_v16 = vld [vmem:[#allocation3 + $0xed8] sm:$0xff]  ;;  %v5960_v21 = vld [vmem:[#allocation3 + $0xec0] sm:$0xff] }
 0x78a   :  { %6209 = vmatprep.subr.bf16.mxu0 %v5905_v36  ;;  %6381 = vmatprep.subr.bf16.mxu1 %v5907_v17  ;;  %v5962_v36 = vld [vmem:[#allocation3 + $0xed0] sm:$0xff]  ;;  %v5969_v17 = vld [vmem:[#allocation3 + $0xf08] sm:$0xff] }
 0x78d   :  { %6210 = vmatpush1.bf16.msra.mxu0 %v5904_v18  ;;  %6382 = vmatpush1.bf16.msra.mxu1 %v5906_v62  ;;  %v5971_v18 = vld [vmem:[#allocation3 + $0xf18] sm:$0xff]  ;;  %v5968_v62 = vld [vmem:[#allocation3 + $0xf00] sm:$0xff] }
 0x78e   :  { %6211 = vmatprep.subr.bf16.mxu0 %v5913_v30  ;;  %6383 = vmatprep.subr.bf16.mxu1 %v5915_v26  ;;  %v5970_v30 = vld [vmem:[#allocation3 + $0xf10] sm:$0xff]  ;;  %v5977_v26 = vld [vmem:[#allocation3 + $0xf48] sm:$0xff] }
 0x791   :  { %6212 = vmatpush1.bf16.msra.mxu0 %v5912_v15  ;;  %6384 = vmatpush1.bf16.msra.mxu1 %v5914_v20  ;;  %v5979_v15 = vld [vmem:[#allocation3 + $0xf58] sm:$0xff]  ;;  %v5976_v20 = vld [vmem:[#allocation3 + $0xf40] sm:$0xff] }
 0x792   :  { %6213 = vmatprep.subr.bf16.mxu0 %v5921_v22  ;;  %6385 = vmatprep.subr.bf16.mxu1 %v5923_v19  ;;  %v5978_v22 = vld [vmem:[#allocation3 + $0xf50] sm:$0xff]  ;;  %v5985_v19 = vld [vmem:[#allocation3 + $0xf88] sm:$0xff] }
 0x795   :  { %6214 = vmatpush1.bf16.msra.mxu0 %v5920_v14  ;;  %6386 = vmatpush1.bf16.msra.mxu1 %v5922_v57  ;;  %v5987_v14 = vld [vmem:[#allocation3 + $0xf98] sm:$0xff]  ;;  %v5984_v57 = vld [vmem:[#allocation3 + $0xf80] sm:$0xff] }
 0x796   :  { %6215 = vmatprep.subr.bf16.mxu0 %v5929_v0  ;;  %6387 = vmatprep.subr.bf16.mxu1 %v5931_v11  ;;  %v5986_v0 = vld [vmem:[#allocation3 + $0xf90] sm:$0xff]  ;;  %v5993_v11 = vld [vmem:[#allocation3 + $0xfc8] sm:$0xff] }
 0x799   :  { %6216 = vmatpush1.bf16.msra.mxu0 %v5928_v63  ;;  %6388 = vmatpush1.bf16.msra.mxu1 %v5930_v48  ;;  %v5995_v63 = vld [vmem:[#allocation3 + $0xfd8] sm:$0xff]  ;;  %v5992_v48 = vld [vmem:[#allocation3 + $0xfc0] sm:$0xff] }
 0x79a   :  { %6217 = vmatprep.subr.bf16.mxu0 %v5937_v56  ;;  %6389 = vmatprep.subr.bf16.mxu1 %v5939_v49  ;;  %v5994_v56 = vld [vmem:[#allocation3 + $0xfd0] sm:$0xff]  ;;  %v5493_v49 = vld [vmem:[#allocation3 + $0x28] sm:$0xff] }
 0x79d   :  { %6218 = vmatpush1.bf16.msra.mxu0 %v5936_v7  ;;  %6390 = vmatpush1.bf16.msra.mxu1 %v5938_v24  ;;  %v5495_v7 = vld [vmem:[#allocation3 + $0x38] sm:$0xff]  ;;  %v9937_v24 = vpack.c.bf16 %v5470_v2, %v5462_v35  ;;  %v5509_v2 = vld [vmem:[#allocation3 + $0xa8] sm:$0xff] }
 0x79e   :  { %6219 = vmatprep.subr.bf16.mxu0 %v5945_v47  ;;  %6391 = vmatprep.subr.bf16.mxu1 %v5947_v3  ;;  %v5492_v47 = vld [vmem:[#allocation3 + $0x20] sm:$0xff]  ;;  %v5494_v3 = vld [vmem:[#allocation3 + $0x30] sm:$0xff]  ;;  %v5511_v35 = vld [vmem:[#allocation3 + $0xb8] sm:$0xff] }
 0x7a1   :  { %6220 = vmatpush1.bf16.msra.mxu0 %v5944_v53  ;;  %6392 = vmatpush1.bf16.msra.mxu1 %v5946_v9  ;;  %v5501_v53 = vld [vmem:[#allocation3 + $0x68] sm:$0xff]  ;;  %v5503_v9 = vld [vmem:[#allocation3 + $0x78] sm:$0xff] }
 0x7a2   :  { %6221 = vmatprep.subr.bf16.mxu0 %v5953_v12  ;;  %6393 = vmatprep.subr.bf16.mxu1 %v5955_v5  ;;  %v5508_v12 = vld [vmem:[#allocation3 + $0xa0] sm:$0xff]  ;;  %v5510_v5 = vld [vmem:[#allocation3 + $0xb0] sm:$0xff] }
 0x7a5   :  { %6222 = vmatpush1.bf16.msra.mxu0 %v5952_v59  ;;  %6394 = vmatpush1.bf16.msra.mxu1 %v5954_v8  ;;  %v5517_v59 = vld [vmem:[#allocation3 + $0xe8] sm:$0xff]  ;;  %v5519_v8 = vld [vmem:[#allocation3 + $0xf8] sm:$0xff] }
 0x7a6   :  { %6223 = vmatprep.subr.bf16.mxu0 %v5961_v23  ;;  %6395 = vmatprep.subr.bf16.mxu1 %v5963_v16  ;;  %v5516_v23 = vld [vmem:[#allocation3 + $0xe0] sm:$0xff]  ;;  %v5518_v16 = vld [vmem:[#allocation3 + $0xf0] sm:$0xff] }
 0x7a9   :  { %6224 = vmatpush1.bf16.msra.mxu0 %v5960_v21  ;;  %6396 = vmatpush1.bf16.msra.mxu1 %v5962_v36  ;;  %v5525_v21 = vld [vmem:[#allocation3 + $0x128] sm:$0xff]  ;;  %v5527_v36 = vld [vmem:[#allocation3 + $0x138] sm:$0xff] }
 0x7aa   :  { %6225 = vmatprep.subr.bf16.mxu0 %v5969_v17  ;;  %6397 = vmatprep.subr.bf16.mxu1 %v5971_v18  ;;  %v5526_v17 = vld [vmem:[#allocation3 + $0x130] sm:$0xff]  ;;  %v5533_v18 = vld [vmem:[#allocation3 + $0x168] sm:$0xff] }
 0x7ad   :  { %6226 = vmatpush1.bf16.msra.mxu0 %v5968_v62  ;;  %6398 = vmatpush1.bf16.msra.mxu1 %v5970_v30  ;;  %v5535_v62 = vld [vmem:[#allocation3 + $0x178] sm:$0xff]  ;;  %v5532_v30 = vld [vmem:[#allocation3 + $0x160] sm:$0xff] }
 0x7ae   :  { %6227 = vmatprep.subr.bf16.mxu0 %v5977_v26  ;;  %6399 = vmatprep.subr.bf16.mxu1 %v5979_v15  ;;  %v5534_v26 = vld [vmem:[#allocation3 + $0x170] sm:$0xff]  ;;  %v5541_v15 = vld [vmem:[#allocation3 + $0x1a8] sm:$0xff] }
 0x7b1   :  { %6228 = vmatpush1.bf16.msra.mxu0 %v5976_v20  ;;  %6400 = vmatpush1.bf16.msra.mxu1 %v5978_v22  ;;  %v5543_v20 = vld [vmem:[#allocation3 + $0x1b8] sm:$0xff]  ;;  %v5540_v22 = vld [vmem:[#allocation3 + $0x1a0] sm:$0xff] }
 0x7b2   :  { %6229 = vmatprep.subr.bf16.mxu0 %v5985_v19  ;;  %6401 = vmatprep.subr.bf16.mxu1 %v5987_v14  ;;  %v5542_v19 = vld [vmem:[#allocation3 + $0x1b0] sm:$0xff]  ;;  %v5549_v14 = vld [vmem:[#allocation3 + $0x1e8] sm:$0xff] }
 0x7b5   :  { %6230 = vmatpush1.bf16.msra.mxu0 %v5984_v57  ;;  %6402 = vmatpush1.bf16.msra.mxu1 %v5986_v0  ;;  %v5551_v57 = vld [vmem:[#allocation3 + $0x1f8] sm:$0xff]  ;;  %v5548_v0 = vld [vmem:[#allocation3 + $0x1e0] sm:$0xff] }
 0x7b6   :  { %6231 = vmatprep.subr.bf16.mxu0 %v5993_v11  ;;  %6403 = vmatprep.subr.bf16.mxu1 %v5995_v63  ;;  %v5550_v11 = vld [vmem:[#allocation3 + $0x1f0] sm:$0xff]  ;;  %v5557_v63 = vld [vmem:[#allocation3 + $0x228] sm:$0xff] }
 0x7b9   :  { %6232 = vmatpush1.bf16.msra.mxu0 %v5992_v48  ;;  %6404 = vmatpush1.bf16.msra.mxu1 %v5994_v56  ;;  %v5559_v48 = vld [vmem:[#allocation3 + $0x238] sm:$0xff]  ;;  %v5556_v56 = vld [vmem:[#allocation3 + $0x220] sm:$0xff] }
 0x7ba   :  { %6416 = vmatprep.subr.bf16.mxu0 %v5493_v49  ;;  %6588 = vmatprep.subr.bf16.mxu1 %v5495_v7  ;;  %v5558_v49 = vld [vmem:[#allocation3 + $0x230] sm:$0xff]  ;;  %v5565_v7 = vld [vmem:[#allocation3 + $0x268] sm:$0xff] }
 0x7bc   :  { %6234 = vmatmul.mubr.bf16.vlgmr.msra.gmra.mrb[16].mxu0 %v9937_v24  ;;  %6406 = vmatmul.mubr.bf16.vlgmr.msra.gmra.mrb[16].mxu1 %v9937_v24 }
 0x7bd   :  { %6417 = vmatpush1.bf16.msra.mxu0 %v5492_v47  ;;  %6589 = vmatpush1.bf16.msra.mxu1 %v5494_v3  ;;  %v5567_v47 = vld [vmem:[#allocation3 + $0x278] sm:$0xff]  ;;  %v5564_v3 = vld [vmem:[#allocation3 + $0x260] sm:$0xff] }
 0x7be   :  { %6418 = vmatprep.subr.bf16.mxu0 %v5501_v53  ;;  %6590 = vmatprep.subr.bf16.mxu1 %v5503_v9  ;;  %v5566_v53 = vld [vmem:[#allocation3 + $0x270] sm:$0xff]  ;;  %v5573_v9 = vld [vmem:[#allocation3 + $0x2a8] sm:$0xff] }
 0x7bf   :  { %6448 = vmatprep.mubr.bf16.mxu0 %v9881_v33  ;;  %6620 = vmatprep.mubr.bf16.mxu1 %v9881_v33  ;;  %v5524_v33 = vld [vmem:[#allocation3 + $0x120] sm:$0xff] }
 0x7c1   :  { %6419 = vmatpush1.bf16.msra.mxu0 %v5500_v32  ;;  %6591 = vmatpush1.bf16.msra.mxu1 %v5502_v42  ;;  %v5575_v32 = vld [vmem:[#allocation3 + $0x2b8] sm:$0xff]  ;;  %v5572_v42 = vld [vmem:[#allocation3 + $0x2a0] sm:$0xff] }
 0x7c2   :  { %6420 = vmatprep.subr.bf16.mxu0 %v5509_v2  ;;  %6592 = vmatprep.subr.bf16.mxu1 %v5511_v35  ;;  %v5574_v2 = vld [vmem:[#allocation3 + $0x2b0] sm:$0xff]  ;;  %v5581_v35 = vld [vmem:[#allocation3 + $0x2e8] sm:$0xff] }
 0x7c5   :  { %6421 = vmatpush1.bf16.msra.mxu0 %v5508_v12  ;;  %6593 = vmatpush1.bf16.msra.mxu1 %v5510_v5  ;;  %v5583_v12 = vld [vmem:[#allocation3 + $0x2f8] sm:$0xff]  ;;  %v5580_v5 = vld [vmem:[#allocation3 + $0x2e0] sm:$0xff] }
 0x7c6   :  { %6422 = vmatprep.subr.bf16.mxu0 %v5517_v59  ;;  %6594 = vmatprep.subr.bf16.mxu1 %v5519_v8  ;;  %v5582_v59 = vld [vmem:[#allocation3 + $0x2f0] sm:$0xff]  ;;  %v5589_v8 = vld [vmem:[#allocation3 + $0x328] sm:$0xff] }
 0x7c9   :  { %6423 = vmatpush1.bf16.msra.mxu0 %v5516_v23  ;;  %6595 = vmatpush1.bf16.msra.mxu1 %v5518_v16  ;;  %v5591_v23 = vld [vmem:[#allocation3 + $0x338] sm:$0xff]  ;;  %v5588_v16 = vld [vmem:[#allocation3 + $0x320] sm:$0xff] }
 0x7ca   :  { %6424 = vmatprep.subr.bf16.mxu0 %v5525_v21  ;;  %6596 = vmatprep.subr.bf16.mxu1 %v5527_v36  ;;  %v5590_v21 = vld [vmem:[#allocation3 + $0x330] sm:$0xff]  ;;  %v5597_v36 = vld [vmem:[#allocation3 + $0x368] sm:$0xff] }
 0x7cd   :  { %6425 = vmatpush1.bf16.msra.mxu0 %v5524_v33  ;;  %6597 = vmatpush1.bf16.msra.mxu1 %v5526_v17  ;;  %v5599_v33 = vld [vmem:[#allocation3 + $0x378] sm:$0xff]  ;;  %v5596_v17 = vld [vmem:[#allocation3 + $0x360] sm:$0xff] }
 0x7ce   :  { %6426 = vmatprep.subr.bf16.mxu0 %v5533_v18  ;;  %6598 = vmatprep.subr.bf16.mxu1 %v5535_v62  ;;  %v5598_v18 = vld [vmem:[#allocation3 + $0x370] sm:$0xff]  ;;  %v5605_v62 = vld [vmem:[#allocation3 + $0x3a8] sm:$0xff] }
 0x7d1   :  { %6427 = vmatpush1.bf16.msra.mxu0 %v5532_v30  ;;  %6599 = vmatpush1.bf16.msra.mxu1 %v5534_v26  ;;  %v5607_v30 = vld [vmem:[#allocation3 + $0x3b8] sm:$0xff]  ;;  %v5604_v26 = vld [vmem:[#allocation3 + $0x3a0] sm:$0xff] }
 0x7d2   :  { %6428 = vmatprep.subr.bf16.mxu0 %v5541_v15  ;;  %6600 = vmatprep.subr.bf16.mxu1 %v5543_v20  ;;  %v5606_v15 = vld [vmem:[#allocation3 + $0x3b0] sm:$0xff]  ;;  %v5613_v20 = vld [vmem:[#allocation3 + $0x3e8] sm:$0xff] }
 0x7d5   :  { %6429 = vmatpush1.bf16.msra.mxu0 %v5540_v22  ;;  %6601 = vmatpush1.bf16.msra.mxu1 %v5542_v19  ;;  %v5615_v22 = vld [vmem:[#allocation3 + $0x3f8] sm:$0xff]  ;;  %v5612_v19 = vld [vmem:[#allocation3 + $0x3e0] sm:$0xff] }
 0x7d6   :  { %6430 = vmatprep.subr.bf16.mxu0 %v5549_v14  ;;  %6602 = vmatprep.subr.bf16.mxu1 %v5551_v57  ;;  %v5614_v14 = vld [vmem:[#allocation3 + $0x3f0] sm:$0xff]  ;;  %v5621_v57 = vld [vmem:[#allocation3 + $0x428] sm:$0xff] }
 0x7d9   :  { %6431 = vmatpush1.bf16.msra.mxu0 %v5548_v0  ;;  %6603 = vmatpush1.bf16.msra.mxu1 %v5550_v11  ;;  %v5623_v0 = vld [vmem:[#allocation3 + $0x438] sm:$0xff]  ;;  %v5620_v11 = vld [vmem:[#allocation3 + $0x420] sm:$0xff] }
 0x7da   :  { %6432 = vmatprep.subr.bf16.mxu0 %v5557_v63  ;;  %6604 = vmatprep.subr.bf16.mxu1 %v5559_v48  ;;  %v5622_v63 = vld [vmem:[#allocation3 + $0x430] sm:$0xff]  ;;  %v5629_v48 = vld [vmem:[#allocation3 + $0x468] sm:$0xff] }
 0x7dd   :  { %6433 = vmatpush1.bf16.msra.mxu0 %v5556_v56  ;;  %6605 = vmatpush1.bf16.msra.mxu1 %v5558_v49  ;;  %v5631_v56 = vld [vmem:[#allocation3 + $0x478] sm:$0xff]  ;;  %v5628_v49 = vld [vmem:[#allocation3 + $0x460] sm:$0xff] }
 0x7de   :  { %6434 = vmatprep.subr.bf16.mxu0 %v5565_v7  ;;  %6606 = vmatprep.subr.bf16.mxu1 %v5567_v47  ;;  %v5630_v7 = vld [vmem:[#allocation3 + $0x470] sm:$0xff]  ;;  %v5637_v47 = vld [vmem:[#allocation3 + $0x4a8] sm:$0xff] }
 0x7e1   :  { %6435 = vmatpush1.bf16.msra.mxu0 %v5564_v3  ;;  %6607 = vmatpush1.bf16.msra.mxu1 %v5566_v53  ;;  %v5639_v3 = vld [vmem:[#allocation3 + $0x4b8] sm:$0xff]  ;;  %v5636_v53 = vld [vmem:[#allocation3 + $0x4a0] sm:$0xff] }
 0x7e2   :  { %6436 = vmatprep.subr.bf16.mxu0 %v5573_v9  ;;  %6608 = vmatprep.subr.bf16.mxu1 %v5575_v32  ;;  %v5638_v9 = vld [vmem:[#allocation3 + $0x4b0] sm:$0xff]  ;;  %v5645_v32 = vld [vmem:[#allocation3 + $0x4e8] sm:$0xff] }
 0x7e5   :  { %6437 = vmatpush1.bf16.msra.mxu0 %v5572_v42  ;;  %6609 = vmatpush1.bf16.msra.mxu1 %v5574_v2  ;;  %v5644_v42 = vld [vmem:[#allocation3 + $0x4e0] sm:$0xff]  ;;  %v5646_v2 = vld [vmem:[#allocation3 + $0x4f0] sm:$0xff] }
 0x7e6   :  { %6438 = vmatprep.subr.bf16.mxu0 %v5581_v35  ;;  %6610 = vmatprep.subr.bf16.mxu1 %v5583_v12  ;;  %v5653_v35 = vld [vmem:[#allocation3 + $0x528] sm:$0xff]  ;;  %v5655_v12 = vld [vmem:[#allocation3 + $0x538] sm:$0xff] }
 0x7e9   :  { %6439 = vmatpush1.bf16.msra.mxu0 %v5580_v5  ;;  %6611 = vmatpush1.bf16.msra.mxu1 %v5582_v59  ;;  %v5654_v5 = vld [vmem:[#allocation3 + $0x530] sm:$0xff]  ;;  %v5661_v59 = vld [vmem:[#allocation3 + $0x568] sm:$0xff] }
 0x7ea   :  { %6440 = vmatprep.subr.bf16.mxu0 %v5589_v8  ;;  %6612 = vmatprep.subr.bf16.mxu1 %v5591_v23  ;;  %v5663_v8 = vld [vmem:[#allocation3 + $0x578] sm:$0xff]  ;;  %v5660_v23 = vld [vmem:[#allocation3 + $0x560] sm:$0xff] }
 0x7ed   :  { %6441 = vmatpush1.bf16.msra.mxu0 %v5588_v16  ;;  %6613 = vmatpush1.bf16.msra.mxu1 %v5590_v21  ;;  %v5662_v16 = vld [vmem:[#allocation3 + $0x570] sm:$0xff]  ;;  %v5669_v21 = vld [vmem:[#allocation3 + $0x5a8] sm:$0xff] }
 0x7ee   :  { %6442 = vmatprep.subr.bf16.mxu0 %v5597_v36  ;;  %6614 = vmatprep.subr.bf16.mxu1 %v5599_v33  ;;  %v5671_v36 = vld [vmem:[#allocation3 + $0x5b8] sm:$0xff]  ;;  %v5668_v33 = vld [vmem:[#allocation3 + $0x5a0] sm:$0xff] }
 0x7f1   :  { %6443 = vmatpush1.bf16.msra.mxu0 %v5596_v17  ;;  %6615 = vmatpush1.bf16.msra.mxu1 %v5598_v18  ;;  %v5670_v17 = vld [vmem:[#allocation3 + $0x5b0] sm:$0xff]  ;;  %v5677_v18 = vld [vmem:[#allocation3 + $0x5e8] sm:$0xff] }
 0x7f2   :  { %6444 = vmatprep.subr.bf16.mxu0 %v5605_v62  ;;  %6616 = vmatprep.subr.bf16.mxu1 %v5607_v30  ;;  %v5679_v62 = vld [vmem:[#allocation3 + $0x5f8] sm:$0xff]  ;;  %v5676_v30 = vld [vmem:[#allocation3 + $0x5e0] sm:$0xff] }
 0x7f5   :  { %6445 = vmatpush1.bf16.msra.mxu0 %v5604_v26  ;;  %6617 = vmatpush1.bf16.msra.mxu1 %v5606_v15  ;;  %v5678_v26 = vld [vmem:[#allocation3 + $0x5f0] sm:$0xff]  ;;  %v5685_v15 = vld [vmem:[#allocation3 + $0x628] sm:$0xff] }
 0x7f6   :  { %6446 = vmatprep.subr.bf16.mxu0 %v5613_v20  ;;  %6618 = vmatprep.subr.bf16.mxu1 %v5615_v22  ;;  %v5687_v20 = vld [vmem:[#allocation3 + $0x638] sm:$0xff]  ;;  %v5684_v22 = vld [vmem:[#allocation3 + $0x620] sm:$0xff] }
 0x7f9   :  { %6447 = vmatpush1.bf16.msra.mxu0 %v5612_v19  ;;  %6619 = vmatpush1.bf16.msra.mxu1 %v5614_v14  ;;  %v5686_v19 = vld [vmem:[#allocation3 + $0x630] sm:$0xff]  ;;  %v5693_v14 = vld [vmem:[#allocation3 + $0x668] sm:$0xff] }
 0x7fa   :  { %6459 = vmatprep.subr.bf16.mxu0 %v5621_v57  ;;  %6631 = vmatprep.subr.bf16.mxu1 %v5623_v0  ;;  %v5695_v57 = vld [vmem:[#allocation3 + $0x678] sm:$0xff]  ;;  %v5692_v0 = vld [vmem:[#allocation3 + $0x660] sm:$0xff] }
 0x7fc   :  { %6449 = vmatmul.mubr.bf16.vlgmr.msra.gmra.mrb[20].mxu0 %v9889_v58  ;;  %6621 = vmatmul.mubr.bf16.vlgmr.msra.gmra.mrb[20].mxu1 %v9889_v58  ;;  %v5647_v58 = vld [vmem:[#allocation3 + $0x4f8] sm:$0xff] }
 0x7fd   :  { %6460 = vmatpush1.bf16.msra.mxu0 %v5620_v11  ;;  %6632 = vmatpush1.bf16.msra.mxu1 %v5622_v63  ;;  %v5694_v11 = vld [vmem:[#allocation3 + $0x670] sm:$0xff]  ;;  %v5701_v63 = vld [vmem:[#allocation3 + $0x6a8] sm:$0xff] }
 0x7fe   :  { %6461 = vmatprep.subr.bf16.mxu0 %v5629_v48  ;;  %6633 = vmatprep.subr.bf16.mxu1 %v5631_v56  ;;  %v5703_v48 = vld [vmem:[#allocation3 + $0x6b8] sm:$0xff]  ;;  %v5700_v56 = vld [vmem:[#allocation3 + $0x6a0] sm:$0xff] }
 0x7ff   :  { %6491 = vmatprep.mubr.bf16.mxu0 %v9895_v55  ;;  %6663 = vmatprep.mubr.bf16.mxu1 %v9895_v55  ;;  %v5652_v55 = vld [vmem:[#allocation3 + $0x520] sm:$0xff] }
 0x801   :  { %6462 = vmatpush1.bf16.msra.mxu0 %v5628_v49  ;;  %6634 = vmatpush1.bf16.msra.mxu1 %v5630_v7  ;;  %v5702_v49 = vld [vmem:[#allocation3 + $0x6b0] sm:$0xff]  ;;  %v5709_v7 = vld [vmem:[#allocation3 + $0x6e8] sm:$0xff] }
 0x802   :  { %6463 = vmatprep.subr.bf16.mxu0 %v5637_v47  ;;  %6635 = vmatprep.subr.bf16.mxu1 %v5639_v3  ;;  %v5711_v47 = vld [vmem:[#allocation3 + $0x6f8] sm:$0xff]  ;;  %v5708_v3 = vld [vmem:[#allocation3 + $0x6e0] sm:$0xff] }
 0x805   :  { %6464 = vmatpush1.bf16.msra.mxu0 %v5636_v53  ;;  %6636 = vmatpush1.bf16.msra.mxu1 %v5638_v9  ;;  %v5710_v53 = vld [vmem:[#allocation3 + $0x6f0] sm:$0xff]  ;;  %v5717_v9 = vld [vmem:[#allocation3 + $0x728] sm:$0xff] }
 0x806   :  { %6465 = vmatprep.subr.bf16.mxu0 %v5645_v32  ;;  %6637 = vmatprep.subr.bf16.mxu1 %v5647_v58  ;;  %v5719_v32 = vld [vmem:[#allocation3 + $0x738] sm:$0xff]  ;;  %v5716_v58 = vld [vmem:[#allocation3 + $0x720] sm:$0xff] }
 0x809   :  { %6466 = vmatpush1.bf16.msra.mxu0 %v5644_v42  ;;  %6638 = vmatpush1.bf16.msra.mxu1 %v5646_v2  ;;  %v5718_v42 = vld [vmem:[#allocation3 + $0x730] sm:$0xff]  ;;  %v5725_v2 = vld [vmem:[#allocation3 + $0x768] sm:$0xff] }
 0x80a   :  { %6467 = vmatprep.subr.bf16.mxu0 %v5653_v35  ;;  %6639 = vmatprep.subr.bf16.mxu1 %v5655_v12  ;;  %v5727_v35 = vld [vmem:[#allocation3 + $0x778] sm:$0xff]  ;;  %v5724_v12 = vld [vmem:[#allocation3 + $0x760] sm:$0xff] }
 0x80d   :  { %6468 = vmatpush1.bf16.msra.mxu0 %v5652_v55  ;;  %6640 = vmatpush1.bf16.msra.mxu1 %v5654_v5  ;;  %v5726_v55 = vld [vmem:[#allocation3 + $0x770] sm:$0xff]  ;;  %v5733_v5 = vld [vmem:[#allocation3 + $0x7a8] sm:$0xff] }
 0x80e   :  { %6469 = vmatprep.subr.bf16.mxu0 %v5661_v59  ;;  %6641 = vmatprep.subr.bf16.mxu1 %v5663_v8  ;;  %v5735_v59 = vld [vmem:[#allocation3 + $0x7b8] sm:$0xff]  ;;  %v5732_v8 = vld [vmem:[#allocation3 + $0x7a0] sm:$0xff] }
 0x811   :  { %6470 = vmatpush1.bf16.msra.mxu0 %v5660_v23  ;;  %6642 = vmatpush1.bf16.msra.mxu1 %v5662_v16  ;;  %v5734_v23 = vld [vmem:[#allocation3 + $0x7b0] sm:$0xff]  ;;  %v5741_v16 = vld [vmem:[#allocation3 + $0x7e8] sm:$0xff] }
 0x812   :  { %6471 = vmatprep.subr.bf16.mxu0 %v5669_v21  ;;  %6643 = vmatprep.subr.bf16.mxu1 %v5671_v36  ;;  %v5743_v21 = vld [vmem:[#allocation3 + $0x7f8] sm:$0xff]  ;;  %v5740_v36 = vld [vmem:[#allocation3 + $0x7e0] sm:$0xff] }
 0x815   :  { %6472 = vmatpush1.bf16.msra.mxu0 %v5668_v33  ;;  %6644 = vmatpush1.bf16.msra.mxu1 %v5670_v17  ;;  %v5742_v33 = vld [vmem:[#allocation3 + $0x7f0] sm:$0xff]  ;;  %v5749_v17 = vld [vmem:[#allocation3 + $0x828] sm:$0xff] }
 0x816   :  { %6473 = vmatprep.subr.bf16.mxu0 %v5677_v18  ;;  %6645 = vmatprep.subr.bf16.mxu1 %v5679_v62  ;;  %v5751_v18 = vld [vmem:[#allocation3 + $0x838] sm:$0xff]  ;;  %v5748_v62 = vld [vmem:[#allocation3 + $0x820] sm:$0xff] }
 0x819   :  { %6474 = vmatpush1.bf16.msra.mxu0 %v5676_v30  ;;  %6646 = vmatpush1.bf16.msra.mxu1 %v5678_v26  ;;  %v5750_v30 = vld [vmem:[#allocation3 + $0x830] sm:$0xff]  ;;  %v5757_v26 = vld [vmem:[#allocation3 + $0x868] sm:$0xff] }
 0x81a   :  { %6475 = vmatprep.subr.bf16.mxu0 %v5685_v15  ;;  %6647 = vmatprep.subr.bf16.mxu1 %v5687_v20  ;;  %v5759_v15 = vld [vmem:[#allocation3 + $0x878] sm:$0xff]  ;;  %v5756_v20 = vld [vmem:[#allocation3 + $0x860] sm:$0xff] }
 0x81d   :  { %6476 = vmatpush1.bf16.msra.mxu0 %v5684_v22  ;;  %6648 = vmatpush1.bf16.msra.mxu1 %v5686_v19  ;;  %v5758_v22 = vld [vmem:[#allocation3 + $0x870] sm:$0xff]  ;;  %v5765_v19 = vld [vmem:[#allocation3 + $0x8a8] sm:$0xff] }
 0x81e   :  { %6477 = vmatprep.subr.bf16.mxu0 %v5693_v14  ;;  %6649 = vmatprep.subr.bf16.mxu1 %v5695_v57  ;;  %v5767_v14 = vld [vmem:[#allocation3 + $0x8b8] sm:$0xff]  ;;  %v5764_v57 = vld [vmem:[#allocation3 + $0x8a0] sm:$0xff] }
 0x821   :  { %6478 = vmatpush1.bf16.msra.mxu0 %v5692_v0  ;;  %6650 = vmatpush1.bf16.msra.mxu1 %v5694_v11  ;;  %v5766_v0 = vld [vmem:[#allocation3 + $0x8b0] sm:$0xff]  ;;  %v5773_v11 = vld [vmem:[#allocation3 + $0x8e8] sm:$0xff] }
 0x822   :  { %6479 = vmatprep.subr.bf16.mxu0 %v5701_v63  ;;  %6651 = vmatprep.subr.bf16.mxu1 %v5703_v48  ;;  %v5772_v63 = vld [vmem:[#allocation3 + $0x8e0] sm:$0xff]  ;;  %v5774_v48 = vld [vmem:[#allocation3 + $0x8f0] sm:$0xff] }
 0x825   :  { %6480 = vmatpush1.bf16.msra.mxu0 %v5700_v56  ;;  %6652 = vmatpush1.bf16.msra.mxu1 %v5702_v49  ;;  %v5781_v56 = vld [vmem:[#allocation3 + $0x928] sm:$0xff]  ;;  %v5783_v49 = vld [vmem:[#allocation3 + $0x938] sm:$0xff] }
 0x826   :  { %6481 = vmatprep.subr.bf16.mxu0 %v5709_v7  ;;  %6653 = vmatprep.subr.bf16.mxu1 %v5711_v47  ;;  %v5782_v7 = vld [vmem:[#allocation3 + $0x930] sm:$0xff]  ;;  %v5789_v47 = vld [vmem:[#allocation3 + $0x968] sm:$0xff] }
 0x829   :  { %6482 = vmatpush1.bf16.msra.mxu0 %v5708_v3  ;;  %6654 = vmatpush1.bf16.msra.mxu1 %v5710_v53  ;;  %v5791_v3 = vld [vmem:[#allocation3 + $0x978] sm:$0xff]  ;;  %v5788_v53 = vld [vmem:[#allocation3 + $0x960] sm:$0xff] }
 0x82a   :  { %6483 = vmatprep.subr.bf16.mxu0 %v5717_v9  ;;  %6655 = vmatprep.subr.bf16.mxu1 %v5719_v32  ;;  %v5790_v9 = vld [vmem:[#allocation3 + $0x970] sm:$0xff]  ;;  %v5797_v32 = vld [vmem:[#allocation3 + $0x9a8] sm:$0xff] }
 0x82d   :  { %6484 = vmatpush1.bf16.msra.mxu0 %v5716_v58  ;;  %6656 = vmatpush1.bf16.msra.mxu1 %v5718_v42  ;;  %v5799_v58 = vld [vmem:[#allocation3 + $0x9b8] sm:$0xff]  ;;  %v5796_v42 = vld [vmem:[#allocation3 + $0x9a0] sm:$0xff] }
 0x82e   :  { %6485 = vmatprep.subr.bf16.mxu0 %v5725_v2  ;;  %6657 = vmatprep.subr.bf16.mxu1 %v5727_v35  ;;  %v5798_v2 = vld [vmem:[#allocation3 + $0x9b0] sm:$0xff]  ;;  %v5805_v35 = vld [vmem:[#allocation3 + $0x9e8] sm:$0xff] }
 0x831   :  { %6486 = vmatpush1.bf16.msra.mxu0 %v5724_v12  ;;  %6658 = vmatpush1.bf16.msra.mxu1 %v5726_v55  ;;  %v5807_v12 = vld [vmem:[#allocation3 + $0x9f8] sm:$0xff]  ;;  %v5804_v55 = vld [vmem:[#allocation3 + $0x9e0] sm:$0xff] }
 0x832   :  { %6487 = vmatprep.subr.bf16.mxu0 %v5733_v5  ;;  %6659 = vmatprep.subr.bf16.mxu1 %v5735_v59  ;;  %v5806_v5 = vld [vmem:[#allocation3 + $0x9f0] sm:$0xff]  ;;  %v5813_v59 = vld [vmem:[#allocation3 + $0xa28] sm:$0xff] }
 0x835   :  { %6488 = vmatpush1.bf16.msra.mxu0 %v5732_v8  ;;  %6660 = vmatpush1.bf16.msra.mxu1 %v5734_v23  ;;  %v5815_v8 = vld [vmem:[#allocation3 + $0xa38] sm:$0xff]  ;;  %v5812_v23 = vld [vmem:[#allocation3 + $0xa20] sm:$0xff] }
 0x836   :  { %6489 = vmatprep.subr.bf16.mxu0 %v5741_v16  ;;  %6661 = vmatprep.subr.bf16.mxu1 %v5743_v21  ;;  %v5814_v16 = vld [vmem:[#allocation3 + $0xa30] sm:$0xff]  ;;  %v5821_v21 = vld [vmem:[#allocation3 + $0xa68] sm:$0xff] }
 0x839   :  { %6490 = vmatpush1.bf16.msra.mxu0 %v5740_v36  ;;  %6662 = vmatpush1.bf16.msra.mxu1 %v5742_v33  ;;  %v5823_v36 = vld [vmem:[#allocation3 + $0xa78] sm:$0xff]  ;;  %v5820_v33 = vld [vmem:[#allocation3 + $0xa60] sm:$0xff] }
 0x83a   :  { %6502 = vmatprep.subr.bf16.mxu0 %v5749_v17  ;;  %6674 = vmatprep.subr.bf16.mxu1 %v5751_v18  ;;  %v5822_v17 = vld [vmem:[#allocation3 + $0xa70] sm:$0xff]  ;;  %v5829_v18 = vld [vmem:[#allocation3 + $0xaa8] sm:$0xff] }
 0x83c   :  { %6492 = vmatmul.mubr.bf16.vlgmr.msra.gmra.mrb[20].mxu0 %v9905_v31  ;;  %6664 = vmatmul.mubr.bf16.vlgmr.msra.gmra.mrb[20].mxu1 %v9905_v31  ;;  %v5775_v31 = vld [vmem:[#allocation3 + $0x8f8] sm:$0xff] }
 0x83d   :  { %6503 = vmatpush1.bf16.msra.mxu0 %v5748_v62  ;;  %6675 = vmatpush1.bf16.msra.mxu1 %v5750_v30  ;;  %v5831_v62 = vld [vmem:[#allocation3 + $0xab8] sm:$0xff]  ;;  %v5828_v30 = vld [vmem:[#allocation3 + $0xaa0] sm:$0xff] }
 0x83e   :  { %6504 = vmatprep.subr.bf16.mxu0 %v5757_v26  ;;  %6676 = vmatprep.subr.bf16.mxu1 %v5759_v15  ;;  %v5830_v26 = vld [vmem:[#allocation3 + $0xab0] sm:$0xff]  ;;  %v5837_v15 = vld [vmem:[#allocation3 + $0xae8] sm:$0xff] }
 0x83f   :  { %6534 = vmatprep.mubr.bf16.mxu0 %v9911_v41  ;;  %6706 = vmatprep.mubr.bf16.mxu1 %v9911_v41  ;;  %v5780_v41 = vld [vmem:[#allocation3 + $0x920] sm:$0xff] }
 0x841   :  { %6505 = vmatpush1.bf16.msra.mxu0 %v5756_v20  ;;  %6677 = vmatpush1.bf16.msra.mxu1 %v5758_v22  ;;  %v5839_v20 = vld [vmem:[#allocation3 + $0xaf8] sm:$0xff]  ;;  %v5836_v22 = vld [vmem:[#allocation3 + $0xae0] sm:$0xff] }
 0x842   :  { %6506 = vmatprep.subr.bf16.mxu0 %v5765_v19  ;;  %6678 = vmatprep.subr.bf16.mxu1 %v5767_v14  ;;  %v5838_v19 = vld [vmem:[#allocation3 + $0xaf0] sm:$0xff]  ;;  %v5845_v14 = vld [vmem:[#allocation3 + $0xb28] sm:$0xff] }
 0x845   :  { %6507 = vmatpush1.bf16.msra.mxu0 %v5764_v57  ;;  %6679 = vmatpush1.bf16.msra.mxu1 %v5766_v0  ;;  %v5847_v57 = vld [vmem:[#allocation3 + $0xb38] sm:$0xff]  ;;  %v5844_v0 = vld [vmem:[#allocation3 + $0xb20] sm:$0xff] }
 0x846   :  { %6508 = vmatprep.subr.bf16.mxu0 %v5773_v11  ;;  %6680 = vmatprep.subr.bf16.mxu1 %v5775_v31  ;;  %v5846_v11 = vld [vmem:[#allocation3 + $0xb30] sm:$0xff]  ;;  %v5853_v31 = vld [vmem:[#allocation3 + $0xb68] sm:$0xff] }
 0x849   :  { %6509 = vmatpush1.bf16.msra.mxu0 %v5772_v63  ;;  %6681 = vmatpush1.bf16.msra.mxu1 %v5774_v48  ;;  %v5855_v63 = vld [vmem:[#allocation3 + $0xb78] sm:$0xff]  ;;  %v5852_v48 = vld [vmem:[#allocation3 + $0xb60] sm:$0xff] }
 0x84a   :  { %6510 = vmatprep.subr.bf16.mxu0 %v5781_v56  ;;  %6682 = vmatprep.subr.bf16.mxu1 %v5783_v49  ;;  %v5854_v56 = vld [vmem:[#allocation3 + $0xb70] sm:$0xff]  ;;  %v5861_v49 = vld [vmem:[#allocation3 + $0xba8] sm:$0xff] }
 0x84d   :  { %6511 = vmatpush1.bf16.msra.mxu0 %v5780_v41  ;;  %6683 = vmatpush1.bf16.msra.mxu1 %v5782_v7  ;;  %v5863_v41 = vld [vmem:[#allocation3 + $0xbb8] sm:$0xff]  ;;  %v5860_v7 = vld [vmem:[#allocation3 + $0xba0] sm:$0xff] }
 0x84e   :  { %6512 = vmatprep.subr.bf16.mxu0 %v5789_v47  ;;  %6684 = vmatprep.subr.bf16.mxu1 %v5791_v3  ;;  %v5862_v47 = vld [vmem:[#allocation3 + $0xbb0] sm:$0xff]  ;;  %v5869_v3 = vld [vmem:[#allocation3 + $0xbe8] sm:$0xff] }
 0x851   :  { %6513 = vmatpush1.bf16.msra.mxu0 %v5788_v53  ;;  %6685 = vmatpush1.bf16.msra.mxu1 %v5790_v9  ;;  %v5871_v53 = vld [vmem:[#allocation3 + $0xbf8] sm:$0xff]  ;;  %v5868_v9 = vld [vmem:[#allocation3 + $0xbe0] sm:$0xff] }
 0x852   :  { %6514 = vmatprep.subr.bf16.mxu0 %v5797_v32  ;;  %6686 = vmatprep.subr.bf16.mxu1 %v5799_v58  ;;  %v5870_v32 = vld [vmem:[#allocation3 + $0xbf0] sm:$0xff]  ;;  %v5877_v58 = vld [vmem:[#allocation3 + $0xc28] sm:$0xff] }
 0x855   :  { %6515 = vmatpush1.bf16.msra.mxu0 %v5796_v42  ;;  %6687 = vmatpush1.bf16.msra.mxu1 %v5798_v2  ;;  %v5879_v42 = vld [vmem:[#allocation3 + $0xc38] sm:$0xff]  ;;  %v5876_v2 = vld [vmem:[#allocation3 + $0xc20] sm:$0xff] }
 0x856   :  { %6516 = vmatprep.subr.bf16.mxu0 %v5805_v35  ;;  %6688 = vmatprep.subr.bf16.mxu1 %v5807_v12  ;;  %v5878_v35 = vld [vmem:[#allocation3 + $0xc30] sm:$0xff]  ;;  %v5885_v12 = vld [vmem:[#allocation3 + $0xc68] sm:$0xff] }
 0x859   :  { %6517 = vmatpush1.bf16.msra.mxu0 %v5804_v55  ;;  %6689 = vmatpush1.bf16.msra.mxu1 %v5806_v5  ;;  %v5887_v55 = vld [vmem:[#allocation3 + $0xc78] sm:$0xff]  ;;  %v5884_v5 = vld [vmem:[#allocation3 + $0xc60] sm:$0xff] }
 0x85a   :  { %6518 = vmatprep.subr.bf16.mxu0 %v5813_v59  ;;  %6690 = vmatprep.subr.bf16.mxu1 %v5815_v8  ;;  %v5886_v59 = vld [vmem:[#allocation3 + $0xc70] sm:$0xff]  ;;  %v5893_v8 = vld [vmem:[#allocation3 + $0xca8] sm:$0xff] }
 0x85d   :  { %6519 = vmatpush1.bf16.msra.mxu0 %v5812_v23  ;;  %6691 = vmatpush1.bf16.msra.mxu1 %v5814_v16  ;;  %v5895_v23 = vld [vmem:[#allocation3 + $0xcb8] sm:$0xff]  ;;  %v5892_v16 = vld [vmem:[#allocation3 + $0xca0] sm:$0xff] }
 0x85e   :  { %6520 = vmatprep.subr.bf16.mxu0 %v5821_v21  ;;  %6692 = vmatprep.subr.bf16.mxu1 %v5823_v36  ;;  %v5894_v21 = vld [vmem:[#allocation3 + $0xcb0] sm:$0xff]  ;;  %v5901_v36 = vld [vmem:[#allocation3 + $0xce8] sm:$0xff] }
 0x861   :  { %6521 = vmatpush1.bf16.msra.mxu0 %v5820_v33  ;;  %6693 = vmatpush1.bf16.msra.mxu1 %v5822_v17  ;;  %v9956_v33 = vsub.s32 2, %v9628_v50  ;;  %v9959_v17 = vsub.s32 6, %v9628_v50 }
 0x862   :  { %6522 = vmatprep.subr.bf16.mxu0 %v5829_v18  ;;  %6694 = vmatprep.subr.bf16.mxu1 %v5831_v62  ;;  %v5900_v18 = vld [vmem:[#allocation3 + $0xce0] sm:$0xff]  ;;  %v5909_v62 = vld [vmem:[#allocation3 + $0xd28] sm:$0xff] }
 0x865   :  { %6523 = vmatpush1.bf16.msra.mxu0 %v5828_v30  ;;  %6695 = vmatpush1.bf16.msra.mxu1 %v5830_v26  ;;  %v5911_v30 = vld [vmem:[#allocation3 + $0xd38] sm:$0xff]  ;;  %v6003_v26 = vrot.slane %v9634_v61, %v9956_v33 }
 0x866   :  { %6524 = vmatprep.subr.bf16.mxu0 %v5837_v15  ;;  %6696 = vmatprep.subr.bf16.mxu1 %v5839_v20  ;;  %v6011_v15 = vrot.slane %v9639_v1, %v9956_v33  ;;  %v6007_v20 = vrot.slane %v9634_v61, %v9959_v17 }
 0x869   :  { %6525 = vmatpush1.bf16.msra.mxu0 %v5836_v22  ;;  %6697 = vmatpush1.bf16.msra.mxu1 %v5838_v19  ;;  %v6015_v22 = vrot.slane %v9639_v1, %v9959_v17  ;;  %v5908_v19 = vld [vmem:[#allocation3 + $0xd20] sm:$0xff] }
 0x86a   :  { %6526 = vmatprep.subr.bf16.mxu0 %v5845_v14  ;;  %6698 = vmatprep.subr.bf16.mxu1 %v5847_v57  ;;  %v5910_v14 = vld [vmem:[#allocation3 + $0xd30] sm:$0xff]  ;;  %v5917_v57 = vld [vmem:[#allocation3 + $0xd68] sm:$0xff] }
 0x86d   :  { %6527 = vmatpush1.bf16.msra.mxu0 %v5844_v0  ;;  %6699 = vmatpush1.bf16.msra.mxu1 %v5846_v11  ;;  %v5919_v0 = vld [vmem:[#allocation3 + $0xd78] sm:$0xff]  ;;  %v6043_v11 = vrot.slane %v6003_v26, %v9956_v33 }
 0x86e   :  { %6528 = vmatprep.subr.bf16.mxu0 %v5853_v31  ;;  %6700 = vmatprep.subr.bf16.mxu1 %v5855_v63  ;;  %v6051_v31 = vrot.slane %v6011_v15, %v9956_v33  ;;  %v6047_v63 = vrot.slane %v6007_v20, %v9956_v33  ;;  %v5935_v26 = vld [vmem:[#allocation3 + $0xdf8] sm:$0xff] }
 0x871   :  { %6529 = vmatpush1.bf16.msra.mxu0 %v5852_v48  ;;  %6701 = vmatpush1.bf16.msra.mxu1 %v5854_v56  ;;  %v6055_v48 = vrot.slane %v6015_v22, %v9956_v33  ;;  %v5916_v56 = vld [vmem:[#allocation3 + $0xd60] sm:$0xff]  ;;  %v10221_v22 = vmax.f32 %v9662_v25, 0.0 }
 0x872   :  { %6530 = vmatprep.subr.bf16.mxu0 %v5861_v49  ;;  %6702 = vmatprep.subr.bf16.mxu1 %v5863_v41  ;;  %v5918_v49 = vld [vmem:[#allocation3 + $0xd70] sm:$0xff] }
 0x875   :  { %6531 = vmatpush1.bf16.msra.mxu0 %v5860_v7  ;;  %6703 = vmatpush1.bf16.msra.mxu1 %v5862_v47  ;;  %v5925_v47 = vld [vmem:[#allocation3 + $0xda8] sm:$0xff] }
 0x876   :  { %6532 = vmatprep.subr.bf16.mxu0 %v5869_v3  ;;  %6704 = vmatprep.subr.bf16.mxu1 %v5871_v53 }
 0x879   :  { %6533 = vmatpush1.bf16.msra.mxu0 %v5868_v9  ;;  %6705 = vmatpush1.bf16.msra.mxu1 %v5870_v32 }
 0x87a   :  { %6545 = vmatprep.subr.bf16.mxu0 %v5877_v58  ;;  %6717 = vmatprep.subr.bf16.mxu1 %v5879_v42  ;;  %v5927_v58 = vld [vmem:[#allocation3 + $0xdb8] sm:$0xff] }
 0x87c   :  { %6535 = vmatmul.mubr.bf16.vlgmr.msra.gmra.mrb[20].mxu0 %v9921_v51  ;;  %6707 = vmatmul.mubr.bf16.vlgmr.msra.gmra.mrb[20].mxu1 %v9921_v51  ;;  %v5903_v51 = vld [vmem:[#allocation3 + $0xcf8] sm:$0xff] }
 0x87d   :  { %6546 = vmatpush1.bf16.msra.mxu0 %v5876_v2  ;;  %6718 = vmatpush1.bf16.msra.mxu1 %v5878_v35 }
 0x87e   :  { %6547 = vmatprep.subr.bf16.mxu0 %v5885_v12  ;;  %6719 = vmatprep.subr.bf16.mxu1 %v5887_v55 }
 0x87f   :  { %6577 = vmatprep.mubr.bf16.mxu0 %v9927_v13  ;;  %6749 = vmatprep.mubr.bf16.mxu1 %v9927_v13  ;;  %v5902_v13 = vld [vmem:[#allocation3 + $0xcf0] sm:$0xff] }
 0x881   :  { %6548 = vmatpush1.bf16.msra.mxu0 %v5884_v5  ;;  %6720 = vmatpush1.bf16.msra.mxu1 %v5886_v59  ;;  %v10218_v5 = vmax.f32 %v9655_v38, 0.0  ;;  %v5933_v38 = vld [vmem:[#allocation3 + $0xde8] sm:$0xff] }
 0x882   :  { %6549 = vmatprep.subr.bf16.mxu0 %v5893_v8  ;;  %6721 = vmatprep.subr.bf16.mxu1 %v5895_v23 }
 0x885   :  { %6550 = vmatpush1.bf16.msra.mxu0 %v5892_v16  ;;  %6722 = vmatpush1.bf16.msra.mxu1 %v5894_v21 }
 0x886   :  { %6551 = vmatprep.subr.bf16.mxu0 %v5901_v36  ;;  %6723 = vmatprep.subr.bf16.mxu1 %v5903_v51  ;;  %v5924_v36 = vld [vmem:[#allocation3 + $0xda0] sm:$0xff]  ;;  %v5926_v51 = vld [vmem:[#allocation3 + $0xdb0] sm:$0xff] }
 0x889   :  { %6552 = vmatpush1.bf16.msra.mxu0 %v5900_v18  ;;  %6724 = vmatpush1.bf16.msra.mxu1 %v5902_v13  ;;  %v10219_v18 = vmax.f32 %v9657_v39, 0.0  ;;  %v10222_v39 = vmax.f32 %v9666_v43, 0.0 }
 0x88a   :  { %6553 = vmatprep.subr.bf16.mxu0 %v5909_v62  ;;  %6725 = vmatprep.subr.bf16.mxu1 %v5911_v30  ;;  %v10220_v62 = vmax.f32 %v9660_v27, 0.0 }
 0x88d   :  { %6554 = vmatpush1.bf16.msra.mxu0 %v5908_v19  ;;  %6726 = vmatpush1.bf16.msra.mxu1 %v5910_v14 }
 0x88e   :  { %6555 = vmatprep.subr.bf16.mxu0 %v5917_v57  ;;  %6727 = vmatprep.subr.bf16.mxu1 %v5919_v0  ;;  %v10223_v0 = vmax.f32 %v9668_v52, 0.0 }
 0x88f   :  { %v6235_v41 = vpop.f32.mrb[16].mxu0  ;;  %v6407_v7 = vpop.f32.mrb[16].mxu1 }
 0x890   :  { %v8707_v3 = vadd.f32 %v6235_v41, %v6043_v11  ;;  %v8711_v53 = vadd.f32 %v6407_v7, %v6051_v31  ;;  %v6237_v9 = vpop.f32.mrb[17].mxu0  ;;  %v6409_v32 = vpop.f32.mrb[17].mxu1  ;;  %v5941_v41 = vld [vmem:[#allocation3 + $0xe28] sm:$0xff]  ;;  %v5943_v7 = vld [vmem:[#allocation3 + $0xe38] sm:$0xff] }
 0x891   :  { %v8708_v42 = vadd.f32 %v6237_v9, %v6047_v63  ;;  %v8712_v2 = vadd.f32 %v6409_v32, %v6055_v48  ;;  %v6239_v35 = vpop.f32.mrb[18].mxu0  ;;  %v6411_v12 = vpop.f32.mrb[18].mxu1  ;;  %6556 = vmatpush1.bf16.msra.mxu0 %v5916_v56  ;;  %6728 = vmatpush1.bf16.msra.mxu1 %v5918_v49  ;;  %v5934_v56 = vld [vmem:[#allocation3 + $0xdf0] sm:$0xff]  ;;  %v5948_v9 = vld [vmem:[#allocation3 + $0xe60] sm:$0xff] }
 0x892   :  { %v9975_v55 = vadd.f32 %v8707_v3, %v4153_v45  ;;  %v9979_v59 = vadd.f32 %v8711_v53, %v10218_v5  ;;  %v8709_v8 = vadd.f32 %v6239_v35, %v6043_v11  ;;  %v8713_v23 = vadd.f32 %v6411_v12, %v6051_v31  ;;  %v6241_v16 = vpop.f32.mrb[19].mxu0  ;;  %v6413_v21 = vpop.f32.mrb[19].mxu1  ;;  %6557 = vmatprep.subr.bf16.mxu0 %v5925_v47  ;;  %v5942_v47 = vld [vmem:[#allocation3 + $0xe30] sm:$0xff]  ;;  %v5949_v3 = vld [vmem:[#allocation3 + $0xe68] sm:$0xff]  ;;  %v5951_v53 = vld [vmem:[#allocation3 + $0xe78] sm:$0xff] }
 0x893   :  { %v9983_v13 = vadd.f32 %v8708_v42, %v10219_v18  ;;  %v9987_v34 = vadd.f32 %v8712_v2, %v10220_v62  ;;  %v8710_v45 = vadd.f32 %v6241_v16, %v6047_v63  ;;  %v8714_v30 = vadd.f32 %v6413_v21, %v6055_v48  ;;  %6729 = vmatprep.subr.bf16.mxu1 %v5927_v58  ;;  %v5932_v48 = vld [vmem:[#allocation3 + $0xde0] sm:$0xff]  ;;  %v5950_v32 = vld [vmem:[#allocation3 + $0xe70] sm:$0xff]  ;;  %v5957_v58 = vld [vmem:[#allocation3 + $0xea8] sm:$0xff] }
 0x894   :  { %v6776_v15 = vmax.f32 %v9975_v55, 0.0  ;;  %v6778_v20 = vmax.f32 %v9979_v59, 0.0  ;;  %v9993_v19 = vadd.f32 %v8709_v8, %v10221_v22  ;;  %v9997_v14 = vadd.f32 %v8713_v23, %v10222_v39  ;;  %v5959_v42 = vld [vmem:[#allocation3 + $0xeb8] sm:$0xff]  ;;  %v5956_v2 = vld [vmem:[#allocation3 + $0xea0] sm:$0xff]  ;;  %v5958_v35 = vld [vmem:[#allocation3 + $0xeb0] sm:$0xff] }
 0x895   :  { %v6777_v27 = vmax.f32 %v9983_v13, 0.0  ;;  %v6779_v57 = vmax.f32 %v9987_v34, 0.0  ;;  %v10003_v11 = vadd.f32 %v8710_v45, %v10223_v0  ;;  %v10224_v31 = vmax.f32 %v9672_v60, 0.0  ;;  %6558 = vmatpush1.bf16.msra.mxu0 %v5924_v36  ;;  %6730 = vmatpush1.bf16.msra.mxu1 %v5926_v51  ;;  %v5940_v60 = vld [vmem:[#allocation3 + $0xe20] sm:$0xff]  ;;  %v5965_v12 = vld [vmem:[#allocation3 + $0xee8] sm:$0xff]  ;;  %v5967_v5 = vld [vmem:[#allocation3 + $0xef8] sm:$0xff] }
 0x896   :  { %v6784_v25 = vmax.f32 %v9993_v19, 0.0  ;;  %v6786_v43 = vmax.f32 %v9997_v14, 0.0  ;;  %6559 = vmatprep.subr.bf16.mxu0 %v5933_v38  ;;  %6731 = vmatprep.subr.bf16.mxu1 %v5935_v26  ;;  %v5964_v8 = vld [vmem:[#allocation3 + $0xee0] sm:$0xff]  ;;  %v5966_v23 = vld [vmem:[#allocation3 + $0xef0] sm:$0xff]  ;;  %v5973_v16 = vld [vmem:[#allocation3 + $0xf28] sm:$0xff] }
 0x897   :  { %v10007_v63 = vadd.f32 %v8714_v30, %v10224_v31  ;;  %v6785_v49 = vmax.f32 %v10003_v11, 0.0  ;;  %v5975_v21 = vld [vmem:[#allocation3 + $0xf38] sm:$0xff]  ;;  %v5972_v36 = vld [vmem:[#allocation3 + $0xf20] sm:$0xff]  ;;  %v5974_v51 = vld [vmem:[#allocation3 + $0xf30] sm:$0xff] }
 0x898   :  { %v5981_v18 = vld [vmem:[#allocation3 + $0xf68] sm:$0xff]  ;;  %v5983_v62 = vld [vmem:[#allocation3 + $0xf78] sm:$0xff]  ;;  %v5980_v45 = vld [vmem:[#allocation3 + $0xf60] sm:$0xff] }
 0x899   :  { %v6787_v52 = vmax.f32 %v10007_v63, 0.0  ;;  %6560 = vmatpush1.bf16.msra.mxu0 %v5932_v48  ;;  %6732 = vmatpush1.bf16.msra.mxu1 %v5934_v56  ;;  %v5982_v30 = vld [vmem:[#allocation3 + $0xf70] sm:$0xff]  ;;  %v5989_v38 = vld [vmem:[#allocation3 + $0xfa8] sm:$0xff]  ;;  %v5991_v26 = vld [vmem:[#allocation3 + $0xfb8] sm:$0xff] }
 0x89a   :  { %6561 = vmatprep.subr.bf16.mxu0 %v5941_v41  ;;  %6733 = vmatprep.subr.bf16.mxu1 %v5943_v7  ;;  %v5988_v22 = vld [vmem:[#allocation3 + $0xfa0] sm:$0xff]  ;;  %v5990_v39 = vld [vmem:[#allocation3 + $0xfb0] sm:$0xff]  ;;  %v5997_v0 = vld [vmem:[#allocation3 + $0xfe8] sm:$0xff]  ;;  %v6019_v41 = vrot.slane %v9679_v28, %v9956_v33  ;;  %v6027_v7 = vrot.slane %v9681_v29, %v9956_v33 }
 0x89b   :  { %v5999_v31 = vld [vmem:[#allocation3 + $0xff8] sm:$0xff]  ;;  %v5996_v48 = vld [vmem:[#allocation3 + $0xfe0] sm:$0xff]  ;;  %v5998_v56 = vld [vmem:[#allocation3 + $0xff0] sm:$0xff] }
 0x89d   :  { %6562 = vmatpush1.bf16.msra.mxu0 %v5940_v60  ;;  %6734 = vmatpush1.bf16.msra.mxu1 %v5942_v47  ;;  %v6023_v60 = vrot.slane %v9679_v28, %v9959_v17  ;;  %v6031_v47 = vrot.slane %v9681_v29, %v9959_v17  ;;  %v10225_v17 = vmax.f32 %v9695_v40, 0.0 }
 0x89e   :  { %6563 = vmatprep.subr.bf16.mxu0 %v5949_v3  ;;  %6735 = vmatprep.subr.bf16.mxu1 %v5951_v53  ;;  %v6059_v3 = vrot.slane %v6019_v41, %v9956_v33  ;;  %v6067_v53 = vrot.slane %v6027_v7, %v9956_v33  ;;  %v10231_v7 = vmax.f32 %v9710_v6, 0.0 }
 0x8a1   :  { %6564 = vmatpush1.bf16.msra.mxu0 %v5948_v9  ;;  %6736 = vmatpush1.bf16.msra.mxu1 %v5950_v32  ;;  %v6063_v9 = vrot.slane %v6023_v60, %v9956_v33 }
 0x8a2   :  { %6565 = vmatprep.subr.bf16.mxu0 %v5957_v58  ;;  %6737 = vmatprep.subr.bf16.mxu1 %v5959_v42 }
 0x8a5   :  { %6566 = vmatpush1.bf16.msra.mxu0 %v5956_v2  ;;  %6738 = vmatpush1.bf16.msra.mxu1 %v5958_v35 }
 0x8a6   :  { %6567 = vmatprep.subr.bf16.mxu0 %v5965_v12  ;;  %6739 = vmatprep.subr.bf16.mxu1 %v5967_v5 }
 0x8a9   :  { %6568 = vmatpush1.bf16.msra.mxu0 %v5964_v8  ;;  %6740 = vmatpush1.bf16.msra.mxu1 %v5966_v23 }
 0x8aa   :  { %6569 = vmatprep.subr.bf16.mxu0 %v5973_v16  ;;  %6741 = vmatprep.subr.bf16.mxu1 %v5975_v21 }
 0x8ad   :  { %6570 = vmatpush1.bf16.msra.mxu0 %v5972_v36  ;;  %6742 = vmatpush1.bf16.msra.mxu1 %v5974_v51  ;;  %v10226_v36 = vmax.f32 %v9697_v44, 0.0 }
 0x8ae   :  { %6571 = vmatprep.subr.bf16.mxu0 %v5981_v18  ;;  %6743 = vmatprep.subr.bf16.mxu1 %v5983_v62 }
 0x8b1   :  { %6572 = vmatpush1.bf16.msra.mxu0 %v5980_v45  ;;  %6744 = vmatpush1.bf16.msra.mxu1 %v5982_v30  ;;  %v10227_v30 = vmax.f32 %v9699_v46, 0.0 }
 0x8b2   :  { %6573 = vmatprep.subr.bf16.mxu0 %v5989_v38  ;;  %6745 = vmatprep.subr.bf16.mxu1 %v5991_v26  ;;  %v10228_v26 = vmax.f32 %v9702_v54, 0.0 }
 0x8b5   :  { %6574 = vmatpush1.bf16.msra.mxu0 %v5988_v22  ;;  %6746 = vmatpush1.bf16.msra.mxu1 %v5990_v39 }
 0x8b6   :  { %6575 = vmatprep.subr.bf16.mxu0 %v5997_v0  ;;  %6747 = vmatprep.subr.bf16.mxu1 %v5999_v31  ;;  %v10229_v31 = vmax.f32 %v9704_v37, 0.0 }
 0x8b9   :  { %6576 = vmatpush1.bf16.msra.mxu0 %v5996_v48  ;;  %6748 = vmatpush1.bf16.msra.mxu1 %v5998_v56  ;;  %v10230_v56 = vmax.f32 %v9708_v4, 0.0 }
 0x8bc   :  { %6578 = vmatmul.mubr.bf16.vlgmr.msra.gmra.mrb[20].mxu0 %v9937_v24  ;;  %6750 = vmatmul.mubr.bf16.vlgmr.msra.gmra.mrb[20].mxu1 %v9937_v24  ;;  %v6071_v24 = vrot.slane %v6031_v47, %v9956_v33  ;;  %v10232_v47 = vmax.f32 %v9714_v10, 0.0 }
 0x98f   :  { %v6579_v32 = vpop.f32.mrb[20].mxu0  ;;  %v6751_v58 = vpop.f32.mrb[20].mxu1 }
 0x990   :  { %v8715_v42 = vadd.f32 %v6579_v32, %v6059_v3  ;;  %v8719_v2 = vadd.f32 %v6751_v58, %v6067_v53  ;;  %v6581_v35 = vpop.f32.mrb[21].mxu0  ;;  %v6753_v12 = vpop.f32.mrb[21].mxu1 }
 0x991   :  { %v8716_v5 = vadd.f32 %v6581_v35, %v6063_v9  ;;  %v8720_v8 = vadd.f32 %v6753_v12, %v6071_v24  ;;  %v6583_v23 = vpop.f32.mrb[22].mxu0  ;;  %v6755_v16 = vpop.f32.mrb[22].mxu1 }
 0x992   :  { %v10029_v21 = vadd.f32 %v8715_v42, %v10225_v17  ;;  %v10033_v51 = vadd.f32 %v8719_v2, %v10226_v36  ;;  %v8717_v18 = vadd.f32 %v6583_v23, %v6059_v3  ;;  %v8721_v33 = vadd.f32 %v6755_v16, %v6067_v53  ;;  %v6585_v62 = vpop.f32.mrb[23].mxu0  ;;  %v6757_v45 = vpop.f32.mrb[23].mxu1 }
 0x993   :  { %v10037_v38 = vadd.f32 %v8716_v5, %v10227_v30  ;;  %v10041_v22 = vadd.f32 %v8720_v8, %v10228_v26  ;;  %v8718_v39 = vadd.f32 %v6585_v62, %v6063_v9  ;;  %v8722_v40 = vadd.f32 %v6757_v45, %v6071_v24 }
 0x994   :  { %v6780_v0 = vmax.f32 %v10029_v21, 0.0  ;;  %v6782_v44 = vmax.f32 %v10033_v51, 0.0  ;;  %v10047_v48 = vadd.f32 %v8717_v18, %v10229_v31  ;;  %v10051_v41 = vadd.f32 %v8721_v33, %v10230_v56 }
 0x995   :  { %v6781_v46 = vmax.f32 %v10037_v38, 0.0  ;;  %v6783_v54 = vmax.f32 %v10041_v22, 0.0  ;;  %v10057_v60 = vadd.f32 %v8718_v39, %v10231_v7  ;;  %v10061_v3 = vadd.f32 %v8722_v40, %v10232_v47 }
 0x996   :  { %v6788_v37 = vmax.f32 %v10047_v48, 0.0  ;;  %v6790_v53 = vmax.f32 %v10051_v41, 0.0 }
 0x997   :  { %v6789_v4 = vmax.f32 %v10057_v60, 0.0  ;;  %v6791_v9 = vmax.f32 %v10061_v3, 0.0 }
 0x998   :  { %9244 = dma.done.wait [#allocation5 + $0x2], 65536 }
 0x999   :  { %9245 = vsyncadd [#allocation5 + $0x2], 4294901760  ;;  %v10071_v6 = vpack.c.bf16 %v6785_v49, %v6777_v27  ;;  %v6809_v10 = vld [vmem:[#allocation4 + $0x8] sm:$0xff]  ;;  %v6811_v24 = vld [vmem:[#allocation4 + $0x18] sm:$0xff]  ;;  %s9279_s11 = smov [#allocation23]  }
 0x99a   :  { %v6808_v32 = vld [vmem:[#allocation4] sm:$0xff]  ;;  %7392 = vmatprep.subr.bf16.mxu0 %v6809_v10  ;;  %7564 = vmatprep.subr.bf16.mxu1 %v6811_v24  ;;  %v6810_v58 = vld [vmem:[#allocation4 + $0x10] sm:$0xff]  ;;  %v6817_v42 = vld [vmem:[#allocation4 + $0x48] sm:$0xff]  ;;  %s8117_s23 = sshll.u32 %s9279_s11, 4  ;;  %s8118_s23 = int_to_ptr.vmem [resolvable:$true] %s8117_s23 }
 0x99b   :  { %7424 = vmatprep.mubr.bf16.mxu0 %v10071_v6  ;;  %7596 = vmatprep.mubr.bf16.mxu1 %v10071_v6  ;;  %v6819_v2 = vld [vmem:[#allocation4 + $0x58] sm:$0xff]  ;;  %v6816_v13 = vld [vmem:[#allocation4 + $0x40] sm:$0xff]  ;;  %v6818_v11 = vld [vmem:[#allocation4 + $0x50] sm:$0xff]  ;;  %s9206_s26 = scalar_lea.vmem %s8118_s23, 2048  ;;  %p9211_p13 = scmp.lt.s32.totalorder %s8118_s23, %s8118_s23 }
 0x99c   :  { %7393 = vmatpush1.bf16.msra.mxu0 %v6808_v32  ;;  %7565 = vmatpush1.bf16.msra.mxu1 %v6810_v58  ;;  %v6825_v27 = vld [vmem:[#allocation4 + $0x88] sm:$0xff]  ;;  %v6827_v49 = vld [vmem:[#allocation4 + $0x98] sm:$0xff]  ;;  %v6824_v35 = vld [vmem:[#allocation4 + $0x80] sm:$0xff]  ;;  %p9207_p12 = scmp.ne.s32.totalorder %s8118_s23, %s9206_s26  ;;  %p9212_p0 = scmp.lt.s32.totalorder %s9206_s26, %s9206_s26 }
 0x99d   :  { %7394 = vmatprep.subr.bf16.mxu0 %v6817_v42  ;;  %7566 = vmatprep.subr.bf16.mxu1 %v6819_v2  ;;  %v6826_v12 = vld [vmem:[#allocation4 + $0x90] sm:$0xff]  ;;  %v6833_v5 = vld [vmem:[#allocation4 + $0xc8] sm:$0xff]  ;;  %v6835_v8 = vld [vmem:[#allocation4 + $0xd8] sm:$0xff] }
 0x99e   :  { %v6832_v23 = vld [vmem:[#allocation4 + $0xc0] sm:$0xff]  ;;  %v6834_v16 = vld [vmem:[#allocation4 + $0xd0] sm:$0xff]  ;;  %v6841_v17 = vld [vmem:[#allocation4 + $0x108] sm:$0xff]  ;;  %p9213_p1 = por %p9212_p0, %p9211_p13 }
 0x99f   :  { %v6843_v36 = vld [vmem:[#allocation4 + $0x118] sm:$0xff]  ;;  %v6840_v18 = vld [vmem:[#allocation4 + $0x100] sm:$0xff]  ;;  %v6842_v33 = vld [vmem:[#allocation4 + $0x110] sm:$0xff] }
 0x9a0   :  { %7395 = vmatpush1.bf16.msra.mxu0 %v6816_v13  ;;  %7567 = vmatpush1.bf16.msra.mxu1 %v6818_v11  ;;  %v6849_v62 = vld [vmem:[#allocation4 + $0x148] sm:$0xff]  ;;  %v6851_v45 = vld [vmem:[#allocation4 + $0x158] sm:$0xff]  ;;  %v6848_v30 = vld [vmem:[#allocation4 + $0x140] sm:$0xff]  ;;  %p9214_p2 = pnand %p9213_p1, %p9207_p12 }
 0x9a1   :  { %7396 = vmatprep.subr.bf16.mxu0 %v6825_v27  ;;  %7568 = vmatprep.subr.bf16.mxu1 %v6827_v49  ;;  %v6850_v26 = vld [vmem:[#allocation4 + $0x150] sm:$0xff]  ;;  %v6857_v39 = vld [vmem:[#allocation4 + $0x188] sm:$0xff]  ;;  %v6859_v40 = vld [vmem:[#allocation4 + $0x198] sm:$0xff] }
 0x9a2   :  { %v6856_v31 = vld [vmem:[#allocation4 + $0x180] sm:$0xff]  ;;  %v6858_v56 = vld [vmem:[#allocation4 + $0x190] sm:$0xff]  ;;  %v6865_v7 = vld [vmem:[#allocation4 + $0x1c8] sm:$0xff] }
 0x9a3   :  { %v6867_v47 = vld [vmem:[#allocation4 + $0x1d8] sm:$0xff]  ;;  %v6864_v10 = vld [vmem:[#allocation4 + $0x1c0] sm:$0xff]  ;;  %v6866_v24 = vld [vmem:[#allocation4 + $0x1d0] sm:$0xff] }
 0x9a4   :  { %7397 = vmatpush1.bf16.msra.mxu0 %v6824_v35  ;;  %7569 = vmatpush1.bf16.msra.mxu1 %v6826_v12  ;;  %v6873_v32 = vld [vmem:[#allocation4 + $0x208] sm:$0xff]  ;;  %v6875_v58 = vld [vmem:[#allocation4 + $0x218] sm:$0xff]  ;;  %v6872_v42 = vld [vmem:[#allocation4 + $0x200] sm:$0xff] }
 0x9a5   :  { %7398 = vmatprep.subr.bf16.mxu0 %v6833_v5  ;;  %7570 = vmatprep.subr.bf16.mxu1 %v6835_v8  ;;  %v6874_v2 = vld [vmem:[#allocation4 + $0x210] sm:$0xff]  ;;  %v6881_v13 = vld [vmem:[#allocation4 + $0x248] sm:$0xff]  ;;  %v6883_v11 = vld [vmem:[#allocation4 + $0x258] sm:$0xff] }
 0x9a6   :  { %v6880_v27 = vld [vmem:[#allocation4 + $0x240] sm:$0xff]  ;;  %v6882_v49 = vld [vmem:[#allocation4 + $0x250] sm:$0xff]  ;;  %v6889_v35 = vld [vmem:[#allocation4 + $0x288] sm:$0xff] }
 0x9a7   :  { %v6891_v12 = vld [vmem:[#allocation4 + $0x298] sm:$0xff]  ;;  %v6888_v5 = vld [vmem:[#allocation4 + $0x280] sm:$0xff]  ;;  %v6890_v8 = vld [vmem:[#allocation4 + $0x290] sm:$0xff] }
 0x9a8   :  { %7399 = vmatpush1.bf16.msra.mxu0 %v6832_v23  ;;  %7571 = vmatpush1.bf16.msra.mxu1 %v6834_v16  ;;  %v6897_v23 = vld [vmem:[#allocation4 + $0x2c8] sm:$0xff]  ;;  %v6899_v16 = vld [vmem:[#allocation4 + $0x2d8] sm:$0xff]  ;;  %v6944_v55 = vld [vmem:[#allocation4 + $0x440] sm:$0xff] }
 0x9a9   :  { %7400 = vmatprep.subr.bf16.mxu0 %v6841_v17  ;;  %7572 = vmatprep.subr.bf16.mxu1 %v6843_v36  ;;  %v6896_v17 = vld [vmem:[#allocation4 + $0x2c0] sm:$0xff]  ;;  %v6898_v36 = vld [vmem:[#allocation4 + $0x2d0] sm:$0xff]  ;;  %v6953_v19 = vld [vmem:[#allocation4 + $0x488] sm:$0xff] }
 0x9aa   :  { %v6952_v34 = vld [vmem:[#allocation4 + $0x480] sm:$0xff]  ;;  %v6961_v63 = vld [vmem:[#allocation4 + $0x4c8] sm:$0xff]  ;;  %v6822_v41 = vld [vmem:[#allocation4 + $0x70] sm:$0xff] }
 0x9ab   :  { %v7072_v59 = vld [vmem:[#allocation4 + $0x840] sm:$0xff]  ;;  %v7081_v14 = vld [vmem:[#allocation4 + $0x888] sm:$0xff] }
 0x9ac   :  { %7401 = vmatpush1.bf16.msra.mxu0 %v6840_v18  ;;  %7573 = vmatpush1.bf16.msra.mxu1 %v6842_v33  ;;  %v6905_v18 = vld [vmem:[#allocation4 + $0x308] sm:$0xff]  ;;  %v6907_v33 = vld [vmem:[#allocation4 + $0x318] sm:$0xff]  ;;  %v7080_v38 = vld [vmem:[#allocation4 + $0x880] sm:$0xff] }
 0x9ad   :  { %7402 = vmatprep.subr.bf16.mxu0 %v6849_v62  ;;  %7574 = vmatprep.subr.bf16.mxu1 %v6851_v45  ;;  %v6904_v62 = vld [vmem:[#allocation4 + $0x300] sm:$0xff]  ;;  %v6906_v45 = vld [vmem:[#allocation4 + $0x310] sm:$0xff]  ;;  %v7089_v60 = vld [vmem:[#allocation4 + $0x8c8] sm:$0xff] }
 0x9ae   :  { %v7200_v21 = vld [vmem:[#allocation4 + $0xc40] sm:$0xff]  ;;  %v7209_v48 = vld [vmem:[#allocation4 + $0xc88] sm:$0xff] }
 0x9af   :  { %v7208_v22 = vld [vmem:[#allocation4 + $0xc80] sm:$0xff]  ;;  %v7217_v3 = vld [vmem:[#allocation4 + $0xcc8] sm:$0xff] }
 0x9b0   :  { %7403 = vmatpush1.bf16.msra.mxu0 %v6848_v30  ;;  %7575 = vmatpush1.bf16.msra.mxu1 %v6850_v26  ;;  %v6913_v30 = vld [vmem:[#allocation4 + $0x348] sm:$0xff]  ;;  %v6915_v26 = vld [vmem:[#allocation4 + $0x358] sm:$0xff]  ;;  %v6820_v51 = vld [vmem:[#allocation4 + $0x60] sm:$0xff] }
 0x9b1   :  { %7404 = vmatprep.subr.bf16.mxu0 %v6857_v39  ;;  %7576 = vmatprep.subr.bf16.mxu1 %v6859_v40  ;;  %v6912_v39 = vld [vmem:[#allocation4 + $0x340] sm:$0xff]  ;;  %v6914_v40 = vld [vmem:[#allocation4 + $0x350] sm:$0xff] }
 0x9b4   :  { %7405 = vmatpush1.bf16.msra.mxu0 %v6856_v31  ;;  %7577 = vmatpush1.bf16.msra.mxu1 %v6858_v56  ;;  %v6921_v31 = vld [vmem:[#allocation4 + $0x388] sm:$0xff]  ;;  %v6923_v56 = vld [vmem:[#allocation4 + $0x398] sm:$0xff] }
 0x9b5   :  { %7406 = vmatprep.subr.bf16.mxu0 %v6865_v7  ;;  %7578 = vmatprep.subr.bf16.mxu1 %v6867_v47  ;;  %v6920_v7 = vld [vmem:[#allocation4 + $0x380] sm:$0xff]  ;;  %v6922_v47 = vld [vmem:[#allocation4 + $0x390] sm:$0xff] }
 0x9b8   :  { %7407 = vmatpush1.bf16.msra.mxu0 %v6864_v10  ;;  %7579 = vmatpush1.bf16.msra.mxu1 %v6866_v24  ;;  %v6929_v10 = vld [vmem:[#allocation4 + $0x3c8] sm:$0xff]  ;;  %v6931_v24 = vld [vmem:[#allocation4 + $0x3d8] sm:$0xff] }
 0x9b9   :  { %7408 = vmatprep.subr.bf16.mxu0 %v6873_v32  ;;  %7580 = vmatprep.subr.bf16.mxu1 %v6875_v58  ;;  %v6928_v32 = vld [vmem:[#allocation4 + $0x3c0] sm:$0xff]  ;;  %v6930_v58 = vld [vmem:[#allocation4 + $0x3d0] sm:$0xff] }
 0x9bc   :  { %7409 = vmatpush1.bf16.msra.mxu0 %v6872_v42  ;;  %7581 = vmatpush1.bf16.msra.mxu1 %v6874_v2  ;;  %v6937_v42 = vld [vmem:[#allocation4 + $0x408] sm:$0xff]  ;;  %v6939_v2 = vld [vmem:[#allocation4 + $0x418] sm:$0xff] }
 0x9bd   :  { %7410 = vmatprep.subr.bf16.mxu0 %v6881_v13  ;;  %7582 = vmatprep.subr.bf16.mxu1 %v6883_v11  ;;  %v10079_v13 = vpack.c.bf16 %v6784_v25, %v6776_v15  ;;  %v6936_v11 = vld [vmem:[#allocation4 + $0x400] sm:$0xff]  ;;  %v6946_v15 = vld [vmem:[#allocation4 + $0x450] sm:$0xff]  ;;  %v6955_v25 = vld [vmem:[#allocation4 + $0x498] sm:$0xff] }
 0x9c0   :  { %7411 = vmatpush1.bf16.msra.mxu0 %v6880_v27  ;;  %7583 = vmatpush1.bf16.msra.mxu1 %v6882_v49  ;;  %v6938_v27 = vld [vmem:[#allocation4 + $0x410] sm:$0xff]  ;;  %v6945_v49 = vld [vmem:[#allocation4 + $0x448] sm:$0xff] }
 0x9c1   :  { %7412 = vmatprep.subr.bf16.mxu0 %v6889_v35  ;;  %7584 = vmatprep.subr.bf16.mxu1 %v6891_v12  ;;  %v6947_v35 = vld [vmem:[#allocation4 + $0x458] sm:$0xff]  ;;  %v10085_v12 = vpack.c.bf16 %v6787_v52, %v6779_v57  ;;  %v6954_v57 = vld [vmem:[#allocation4 + $0x490] sm:$0xff] }
 0x9c2   :  { %v6963_v52 = vld [vmem:[#allocation4 + $0x4d8] sm:$0xff] }
 0x9c4   :  { %7413 = vmatpush1.bf16.msra.mxu0 %v6888_v5  ;;  %7585 = vmatpush1.bf16.msra.mxu1 %v6890_v8  ;;  %v6960_v5 = vld [vmem:[#allocation4 + $0x4c0] sm:$0xff]  ;;  %v6962_v8 = vld [vmem:[#allocation4 + $0x4d0] sm:$0xff] }
 0x9c5   :  { %7414 = vmatprep.subr.bf16.mxu0 %v6897_v23  ;;  %7586 = vmatprep.subr.bf16.mxu1 %v6899_v16  ;;  %v6969_v23 = vld [vmem:[#allocation4 + $0x508] sm:$0xff]  ;;  %v6971_v16 = vld [vmem:[#allocation4 + $0x518] sm:$0xff] }
 0x9c8   :  { %7415 = vmatpush1.bf16.msra.mxu0 %v6896_v17  ;;  %7587 = vmatpush1.bf16.msra.mxu1 %v6898_v36  ;;  %v6968_v17 = vld [vmem:[#allocation4 + $0x500] sm:$0xff]  ;;  %v6970_v36 = vld [vmem:[#allocation4 + $0x510] sm:$0xff] }
 0x9c9   :  { %7416 = vmatprep.subr.bf16.mxu0 %v6905_v18  ;;  %7588 = vmatprep.subr.bf16.mxu1 %v6907_v33  ;;  %v6977_v18 = vld [vmem:[#allocation4 + $0x548] sm:$0xff]  ;;  %v6979_v33 = vld [vmem:[#allocation4 + $0x558] sm:$0xff] }
 0x9cc   :  { %7417 = vmatpush1.bf16.msra.mxu0 %v6904_v62  ;;  %7589 = vmatpush1.bf16.msra.mxu1 %v6906_v45  ;;  %v6976_v62 = vld [vmem:[#allocation4 + $0x540] sm:$0xff]  ;;  %v6978_v45 = vld [vmem:[#allocation4 + $0x550] sm:$0xff] }
 0x9cd   :  { %7418 = vmatprep.subr.bf16.mxu0 %v6913_v30  ;;  %7590 = vmatprep.subr.bf16.mxu1 %v6915_v26  ;;  %v6985_v30 = vld [vmem:[#allocation4 + $0x588] sm:$0xff]  ;;  %v6987_v26 = vld [vmem:[#allocation4 + $0x598] sm:$0xff] }
 0x9d0   :  { %7419 = vmatpush1.bf16.msra.mxu0 %v6912_v39  ;;  %7591 = vmatpush1.bf16.msra.mxu1 %v6914_v40  ;;  %v6984_v39 = vld [vmem:[#allocation4 + $0x580] sm:$0xff]  ;;  %v6986_v40 = vld [vmem:[#allocation4 + $0x590] sm:$0xff] }
 0x9d1   :  { %7420 = vmatprep.subr.bf16.mxu0 %v6921_v31  ;;  %7592 = vmatprep.subr.bf16.mxu1 %v6923_v56  ;;  %v6993_v31 = vld [vmem:[#allocation4 + $0x5c8] sm:$0xff]  ;;  %v6995_v56 = vld [vmem:[#allocation4 + $0x5d8] sm:$0xff] }
 0x9d4   :  { %7421 = vmatpush1.bf16.msra.mxu0 %v6920_v7  ;;  %7593 = vmatpush1.bf16.msra.mxu1 %v6922_v47  ;;  %v6992_v7 = vld [vmem:[#allocation4 + $0x5c0] sm:$0xff]  ;;  %v6994_v47 = vld [vmem:[#allocation4 + $0x5d0] sm:$0xff] }
 0x9d5   :  { %7422 = vmatprep.subr.bf16.mxu0 %v6929_v10  ;;  %7594 = vmatprep.subr.bf16.mxu1 %v6931_v24  ;;  %v7001_v10 = vld [vmem:[#allocation4 + $0x608] sm:$0xff]  ;;  %v7003_v24 = vld [vmem:[#allocation4 + $0x618] sm:$0xff] }
 0x9d8   :  { %7423 = vmatpush1.bf16.msra.mxu0 %v6928_v32  ;;  %7595 = vmatpush1.bf16.msra.mxu1 %v6930_v58  ;;  %v7000_v32 = vld [vmem:[#allocation4 + $0x600] sm:$0xff]  ;;  %v7002_v58 = vld [vmem:[#allocation4 + $0x610] sm:$0xff] }
 0x9d9   :  { %7435 = vmatprep.subr.bf16.mxu0 %v6937_v42  ;;  %7607 = vmatprep.subr.bf16.mxu1 %v6939_v2  ;;  %v7009_v42 = vld [vmem:[#allocation4 + $0x648] sm:$0xff]  ;;  %v7011_v2 = vld [vmem:[#allocation4 + $0x658] sm:$0xff] }
 0x9db   :  { %7425 = vmatmul.mubr.bf16.vlgmr.msra.gmra.mrb[24].mxu0 %v10079_v13  ;;  %7597 = vmatmul.mubr.bf16.vlgmr.msra.gmra.mrb[24].mxu1 %v10079_v13 }
 0x9dc   :  { %7436 = vmatpush1.bf16.msra.mxu0 %v6936_v11  ;;  %7608 = vmatpush1.bf16.msra.mxu1 %v6938_v27  ;;  %v7008_v11 = vld [vmem:[#allocation4 + $0x640] sm:$0xff]  ;;  %v7010_v27 = vld [vmem:[#allocation4 + $0x650] sm:$0xff] }
 0x9dd   :  { %7437 = vmatprep.subr.bf16.mxu0 %v6945_v49  ;;  %7609 = vmatprep.subr.bf16.mxu1 %v6947_v35  ;;  %v7017_v49 = vld [vmem:[#allocation4 + $0x688] sm:$0xff]  ;;  %v7019_v35 = vld [vmem:[#allocation4 + $0x698] sm:$0xff] }
 0x9de   :  { %7467 = vmatprep.mubr.bf16.mxu0 %v10085_v12  ;;  %7639 = vmatprep.mubr.bf16.mxu1 %v10085_v12 }
 0x9e0   :  { %7438 = vmatpush1.bf16.msra.mxu0 %v6944_v55  ;;  %7610 = vmatpush1.bf16.msra.mxu1 %v6946_v15  ;;  %v7016_v55 = vld [vmem:[#allocation4 + $0x680] sm:$0xff]  ;;  %v7018_v15 = vld [vmem:[#allocation4 + $0x690] sm:$0xff] }
 0x9e1   :  { %7439 = vmatprep.subr.bf16.mxu0 %v6953_v19  ;;  %7611 = vmatprep.subr.bf16.mxu1 %v6955_v25  ;;  %v7025_v19 = vld [vmem:[#allocation4 + $0x6c8] sm:$0xff]  ;;  %v7027_v25 = vld [vmem:[#allocation4 + $0x6d8] sm:$0xff] }
 0x9e4   :  { %7440 = vmatpush1.bf16.msra.mxu0 %v6952_v34  ;;  %7612 = vmatpush1.bf16.msra.mxu1 %v6954_v57  ;;  %v7024_v34 = vld [vmem:[#allocation4 + $0x6c0] sm:$0xff]  ;;  %v7026_v57 = vld [vmem:[#allocation4 + $0x6d0] sm:$0xff] }
 0x9e5   :  { %7441 = vmatprep.subr.bf16.mxu0 %v6961_v63  ;;  %7613 = vmatprep.subr.bf16.mxu1 %v6963_v52  ;;  %v7033_v63 = vld [vmem:[#allocation4 + $0x708] sm:$0xff]  ;;  %v7035_v52 = vld [vmem:[#allocation4 + $0x718] sm:$0xff] }
 0x9e8   :  { %7442 = vmatpush1.bf16.msra.mxu0 %v6960_v5  ;;  %7614 = vmatpush1.bf16.msra.mxu1 %v6962_v8  ;;  %v7032_v5 = vld [vmem:[#allocation4 + $0x700] sm:$0xff]  ;;  %v7034_v8 = vld [vmem:[#allocation4 + $0x710] sm:$0xff] }
 0x9e9   :  { %7443 = vmatprep.subr.bf16.mxu0 %v6969_v23  ;;  %7615 = vmatprep.subr.bf16.mxu1 %v6971_v16  ;;  %v7041_v23 = vld [vmem:[#allocation4 + $0x748] sm:$0xff]  ;;  %v7043_v16 = vld [vmem:[#allocation4 + $0x758] sm:$0xff] }
 0x9ec   :  { %7444 = vmatpush1.bf16.msra.mxu0 %v6968_v17  ;;  %7616 = vmatpush1.bf16.msra.mxu1 %v6970_v36  ;;  %v7040_v17 = vld [vmem:[#allocation4 + $0x740] sm:$0xff]  ;;  %v7042_v36 = vld [vmem:[#allocation4 + $0x750] sm:$0xff] }
 0x9ed   :  { %7445 = vmatprep.subr.bf16.mxu0 %v6977_v18  ;;  %7617 = vmatprep.subr.bf16.mxu1 %v6979_v33  ;;  %v7049_v18 = vld [vmem:[#allocation4 + $0x788] sm:$0xff]  ;;  %v7051_v33 = vld [vmem:[#allocation4 + $0x798] sm:$0xff] }
 0x9f0   :  { %7446 = vmatpush1.bf16.msra.mxu0 %v6976_v62  ;;  %7618 = vmatpush1.bf16.msra.mxu1 %v6978_v45  ;;  %v7048_v62 = vld [vmem:[#allocation4 + $0x780] sm:$0xff]  ;;  %v7050_v45 = vld [vmem:[#allocation4 + $0x790] sm:$0xff] }
 0x9f1   :  { %7447 = vmatprep.subr.bf16.mxu0 %v6985_v30  ;;  %7619 = vmatprep.subr.bf16.mxu1 %v6987_v26  ;;  %v7057_v30 = vld [vmem:[#allocation4 + $0x7c8] sm:$0xff]  ;;  %v7059_v26 = vld [vmem:[#allocation4 + $0x7d8] sm:$0xff] }
 0x9f4   :  { %7448 = vmatpush1.bf16.msra.mxu0 %v6984_v39  ;;  %7620 = vmatpush1.bf16.msra.mxu1 %v6986_v40  ;;  %v7056_v39 = vld [vmem:[#allocation4 + $0x7c0] sm:$0xff]  ;;  %v7058_v40 = vld [vmem:[#allocation4 + $0x7d0] sm:$0xff] }
 0x9f5   :  { %7449 = vmatprep.subr.bf16.mxu0 %v6993_v31  ;;  %7621 = vmatprep.subr.bf16.mxu1 %v6995_v56  ;;  %v7065_v31 = vld [vmem:[#allocation4 + $0x808] sm:$0xff]  ;;  %v7067_v56 = vld [vmem:[#allocation4 + $0x818] sm:$0xff] }
 0x9f8   :  { %7450 = vmatpush1.bf16.msra.mxu0 %v6992_v7  ;;  %7622 = vmatpush1.bf16.msra.mxu1 %v6994_v47  ;;  %v10095_v7 = vpack.c.bf16 %v6786_v43, %v6778_v20  ;;  %v7064_v47 = vld [vmem:[#allocation4 + $0x800] sm:$0xff]  ;;  %v7074_v20 = vld [vmem:[#allocation4 + $0x850] sm:$0xff]  ;;  %v7083_v43 = vld [vmem:[#allocation4 + $0x898] sm:$0xff] }
 0x9f9   :  { %7451 = vmatprep.subr.bf16.mxu0 %v7001_v10  ;;  %7623 = vmatprep.subr.bf16.mxu1 %v7003_v24  ;;  %v7066_v10 = vld [vmem:[#allocation4 + $0x810] sm:$0xff]  ;;  %v7073_v24 = vld [vmem:[#allocation4 + $0x848] sm:$0xff] }
 0x9fc   :  { %7452 = vmatpush1.bf16.msra.mxu0 %v7000_v32  ;;  %7624 = vmatpush1.bf16.msra.mxu1 %v7002_v58  ;;  %v7075_v32 = vld [vmem:[#allocation4 + $0x858] sm:$0xff]  ;;  %v10101_v58 = vpack.c.bf16 %v6789_v4, %v6781_v46  ;;  %v7082_v46 = vld [vmem:[#allocation4 + $0x890] sm:$0xff] }
 0x9fd   :  { %7453 = vmatprep.subr.bf16.mxu0 %v7009_v42  ;;  %7625 = vmatprep.subr.bf16.mxu1 %v7011_v2  ;;  %v7091_v4 = vld [vmem:[#allocation4 + $0x8d8] sm:$0xff]  ;;  %v7088_v42 = vld [vmem:[#allocation4 + $0x8c0] sm:$0xff]  ;;  %v7090_v2 = vld [vmem:[#allocation4 + $0x8d0] sm:$0xff] }
 0xa00   :  { %7454 = vmatpush1.bf16.msra.mxu0 %v7008_v11  ;;  %7626 = vmatpush1.bf16.msra.mxu1 %v7010_v27  ;;  %v7097_v11 = vld [vmem:[#allocation4 + $0x908] sm:$0xff]  ;;  %v7099_v27 = vld [vmem:[#allocation4 + $0x918] sm:$0xff] }
 0xa01   :  { %7455 = vmatprep.subr.bf16.mxu0 %v7017_v49  ;;  %7627 = vmatprep.subr.bf16.mxu1 %v7019_v35  ;;  %v7096_v49 = vld [vmem:[#allocation4 + $0x900] sm:$0xff]  ;;  %v7098_v35 = vld [vmem:[#allocation4 + $0x910] sm:$0xff] }
 0xa04   :  { %7456 = vmatpush1.bf16.msra.mxu0 %v7016_v55  ;;  %7628 = vmatpush1.bf16.msra.mxu1 %v7018_v15  ;;  %v7105_v55 = vld [vmem:[#allocation4 + $0x948] sm:$0xff]  ;;  %v7107_v15 = vld [vmem:[#allocation4 + $0x958] sm:$0xff] }
 0xa05   :  { %7457 = vmatprep.subr.bf16.mxu0 %v7025_v19  ;;  %7629 = vmatprep.subr.bf16.mxu1 %v7027_v25  ;;  %v7104_v19 = vld [vmem:[#allocation4 + $0x940] sm:$0xff]  ;;  %v7106_v25 = vld [vmem:[#allocation4 + $0x950] sm:$0xff] }
 0xa08   :  { %7458 = vmatpush1.bf16.msra.mxu0 %v7024_v34  ;;  %7630 = vmatpush1.bf16.msra.mxu1 %v7026_v57  ;;  %v7113_v34 = vld [vmem:[#allocation4 + $0x988] sm:$0xff]  ;;  %v7115_v57 = vld [vmem:[#allocation4 + $0x998] sm:$0xff] }
 0xa09   :  { %7459 = vmatprep.subr.bf16.mxu0 %v7033_v63  ;;  %7631 = vmatprep.subr.bf16.mxu1 %v7035_v52  ;;  %v7112_v63 = vld [vmem:[#allocation4 + $0x980] sm:$0xff]  ;;  %v7114_v52 = vld [vmem:[#allocation4 + $0x990] sm:$0xff] }
 0xa0c   :  { %7460 = vmatpush1.bf16.msra.mxu0 %v7032_v5  ;;  %7632 = vmatpush1.bf16.msra.mxu1 %v7034_v8  ;;  %v7121_v5 = vld [vmem:[#allocation4 + $0x9c8] sm:$0xff]  ;;  %v7123_v8 = vld [vmem:[#allocation4 + $0x9d8] sm:$0xff] }
 0xa0d   :  { %7461 = vmatprep.subr.bf16.mxu0 %v7041_v23  ;;  %7633 = vmatprep.subr.bf16.mxu1 %v7043_v16  ;;  %v7120_v23 = vld [vmem:[#allocation4 + $0x9c0] sm:$0xff]  ;;  %v7122_v16 = vld [vmem:[#allocation4 + $0x9d0] sm:$0xff] }
 0xa10   :  { %7462 = vmatpush1.bf16.msra.mxu0 %v7040_v17  ;;  %7634 = vmatpush1.bf16.msra.mxu1 %v7042_v36  ;;  %v7129_v17 = vld [vmem:[#allocation4 + $0xa08] sm:$0xff]  ;;  %v7131_v36 = vld [vmem:[#allocation4 + $0xa18] sm:$0xff] }
 0xa11   :  { %7463 = vmatprep.subr.bf16.mxu0 %v7049_v18  ;;  %7635 = vmatprep.subr.bf16.mxu1 %v7051_v33  ;;  %v7128_v18 = vld [vmem:[#allocation4 + $0xa00] sm:$0xff]  ;;  %v7130_v33 = vld [vmem:[#allocation4 + $0xa10] sm:$0xff] }
 0xa14   :  { %7464 = vmatpush1.bf16.msra.mxu0 %v7048_v62  ;;  %7636 = vmatpush1.bf16.msra.mxu1 %v7050_v45  ;;  %v7137_v62 = vld [vmem:[#allocation4 + $0xa48] sm:$0xff]  ;;  %v7139_v45 = vld [vmem:[#allocation4 + $0xa58] sm:$0xff] }
 0xa15   :  { %7465 = vmatprep.subr.bf16.mxu0 %v7057_v30  ;;  %7637 = vmatprep.subr.bf16.mxu1 %v7059_v26  ;;  %v7136_v30 = vld [vmem:[#allocation4 + $0xa40] sm:$0xff]  ;;  %v7138_v26 = vld [vmem:[#allocation4 + $0xa50] sm:$0xff] }
 0xa18   :  { %7466 = vmatpush1.bf16.msra.mxu0 %v7056_v39  ;;  %7638 = vmatpush1.bf16.msra.mxu1 %v7058_v40  ;;  %v7145_v39 = vld [vmem:[#allocation4 + $0xa88] sm:$0xff]  ;;  %v7147_v40 = vld [vmem:[#allocation4 + $0xa98] sm:$0xff] }
 0xa19   :  { %7478 = vmatprep.subr.bf16.mxu0 %v7065_v31  ;;  %7650 = vmatprep.subr.bf16.mxu1 %v7067_v56  ;;  %v7144_v31 = vld [vmem:[#allocation4 + $0xa80] sm:$0xff]  ;;  %v7146_v56 = vld [vmem:[#allocation4 + $0xa90] sm:$0xff] }
 0xa1b   :  { %7468 = vmatmul.mubr.bf16.vlgmr.msra.gmra.mrb[24].mxu0 %v10095_v7  ;;  %7640 = vmatmul.mubr.bf16.vlgmr.msra.gmra.mrb[24].mxu1 %v10095_v7 }
 0xa1c   :  { %7479 = vmatpush1.bf16.msra.mxu0 %v7064_v47  ;;  %7651 = vmatpush1.bf16.msra.mxu1 %v7066_v10  ;;  %v7153_v47 = vld [vmem:[#allocation4 + $0xac8] sm:$0xff]  ;;  %v7155_v10 = vld [vmem:[#allocation4 + $0xad8] sm:$0xff] }
 0xa1d   :  { %7480 = vmatprep.subr.bf16.mxu0 %v7073_v24  ;;  %7652 = vmatprep.subr.bf16.mxu1 %v7075_v32  ;;  %v7152_v24 = vld [vmem:[#allocation4 + $0xac0] sm:$0xff]  ;;  %v7154_v32 = vld [vmem:[#allocation4 + $0xad0] sm:$0xff] }
 0xa1e   :  { %7510 = vmatprep.mubr.bf16.mxu0 %v10101_v58  ;;  %7682 = vmatprep.mubr.bf16.mxu1 %v10101_v58 }
 0xa20   :  { %7481 = vmatpush1.bf16.msra.mxu0 %v7072_v59  ;;  %7653 = vmatpush1.bf16.msra.mxu1 %v7074_v20  ;;  %v7161_v59 = vld [vmem:[#allocation4 + $0xb08] sm:$0xff]  ;;  %v7163_v20 = vld [vmem:[#allocation4 + $0xb18] sm:$0xff] }
 0xa21   :  { %7482 = vmatprep.subr.bf16.mxu0 %v7081_v14  ;;  %7654 = vmatprep.subr.bf16.mxu1 %v7083_v43  ;;  %v7160_v14 = vld [vmem:[#allocation4 + $0xb00] sm:$0xff]  ;;  %v7162_v43 = vld [vmem:[#allocation4 + $0xb10] sm:$0xff] }
 0xa24   :  { %7483 = vmatpush1.bf16.msra.mxu0 %v7080_v38  ;;  %7655 = vmatpush1.bf16.msra.mxu1 %v7082_v46  ;;  %v7169_v38 = vld [vmem:[#allocation4 + $0xb48] sm:$0xff]  ;;  %v7171_v46 = vld [vmem:[#allocation4 + $0xb58] sm:$0xff] }
 0xa25   :  { %7484 = vmatprep.subr.bf16.mxu0 %v7089_v60  ;;  %7656 = vmatprep.subr.bf16.mxu1 %v7091_v4  ;;  %v7168_v60 = vld [vmem:[#allocation4 + $0xb40] sm:$0xff]  ;;  %v7170_v4 = vld [vmem:[#allocation4 + $0xb50] sm:$0xff] }
 0xa28   :  { %7485 = vmatpush1.bf16.msra.mxu0 %v7088_v42  ;;  %7657 = vmatpush1.bf16.msra.mxu1 %v7090_v2  ;;  %v7177_v42 = vld [vmem:[#allocation4 + $0xb88] sm:$0xff]  ;;  %v7179_v2 = vld [vmem:[#allocation4 + $0xb98] sm:$0xff] }
 0xa29   :  { %7486 = vmatprep.subr.bf16.mxu0 %v7097_v11  ;;  %7658 = vmatprep.subr.bf16.mxu1 %v7099_v27  ;;  %v7176_v11 = vld [vmem:[#allocation4 + $0xb80] sm:$0xff]  ;;  %v7178_v27 = vld [vmem:[#allocation4 + $0xb90] sm:$0xff] }
 0xa2c   :  { %7487 = vmatpush1.bf16.msra.mxu0 %v7096_v49  ;;  %7659 = vmatpush1.bf16.msra.mxu1 %v7098_v35  ;;  %v7185_v49 = vld [vmem:[#allocation4 + $0xbc8] sm:$0xff]  ;;  %v7187_v35 = vld [vmem:[#allocation4 + $0xbd8] sm:$0xff] }
 0xa2d   :  { %7488 = vmatprep.subr.bf16.mxu0 %v7105_v55  ;;  %7660 = vmatprep.subr.bf16.mxu1 %v7107_v15  ;;  %v7184_v55 = vld [vmem:[#allocation4 + $0xbc0] sm:$0xff]  ;;  %v7186_v15 = vld [vmem:[#allocation4 + $0xbd0] sm:$0xff] }
 0xa30   :  { %7489 = vmatpush1.bf16.msra.mxu0 %v7104_v19  ;;  %7661 = vmatpush1.bf16.msra.mxu1 %v7106_v25  ;;  %v7193_v19 = vld [vmem:[#allocation4 + $0xc08] sm:$0xff]  ;;  %v7195_v25 = vld [vmem:[#allocation4 + $0xc18] sm:$0xff] }
 0xa31   :  { %7490 = vmatprep.subr.bf16.mxu0 %v7113_v34  ;;  %7662 = vmatprep.subr.bf16.mxu1 %v7115_v57  ;;  %v10111_v34 = vpack.c.bf16 %v6788_v37, %v6780_v0  ;;  %v7192_v57 = vld [vmem:[#allocation4 + $0xc00] sm:$0xff]  ;;  %v7202_v0 = vld [vmem:[#allocation4 + $0xc50] sm:$0xff]  ;;  %v7211_v37 = vld [vmem:[#allocation4 + $0xc98] sm:$0xff] }
 0xa34   :  { %7491 = vmatpush1.bf16.msra.mxu0 %v7112_v63  ;;  %7663 = vmatpush1.bf16.msra.mxu1 %v7114_v52  ;;  %v7194_v63 = vld [vmem:[#allocation4 + $0xc10] sm:$0xff]  ;;  %v7201_v52 = vld [vmem:[#allocation4 + $0xc48] sm:$0xff] }
 0xa35   :  { %7492 = vmatprep.subr.bf16.mxu0 %v7121_v5  ;;  %7664 = vmatprep.subr.bf16.mxu1 %v7123_v8  ;;  %v7203_v5 = vld [vmem:[#allocation4 + $0xc58] sm:$0xff]  ;;  %v10117_v8 = vpack.c.bf16 %v6791_v9, %v6783_v54  ;;  %v7210_v54 = vld [vmem:[#allocation4 + $0xc90] sm:$0xff] }
 0xa36   :  { %v7219_v9 = vld [vmem:[#allocation4 + $0xcd8] sm:$0xff] }
 0xa38   :  { %7493 = vmatpush1.bf16.msra.mxu0 %v7120_v23  ;;  %7665 = vmatpush1.bf16.msra.mxu1 %v7122_v16  ;;  %v7216_v23 = vld [vmem:[#allocation4 + $0xcc0] sm:$0xff]  ;;  %v7218_v16 = vld [vmem:[#allocation4 + $0xcd0] sm:$0xff] }
 0xa39   :  { %7494 = vmatprep.subr.bf16.mxu0 %v7129_v17  ;;  %7666 = vmatprep.subr.bf16.mxu1 %v7131_v36  ;;  %v7225_v17 = vld [vmem:[#allocation4 + $0xd08] sm:$0xff]  ;;  %v7227_v36 = vld [vmem:[#allocation4 + $0xd18] sm:$0xff] }
 0xa3c   :  { %7495 = vmatpush1.bf16.msra.mxu0 %v7128_v18  ;;  %7667 = vmatpush1.bf16.msra.mxu1 %v7130_v33  ;;  %v7224_v18 = vld [vmem:[#allocation4 + $0xd00] sm:$0xff]  ;;  %v7226_v33 = vld [vmem:[#allocation4 + $0xd10] sm:$0xff] }
 0xa3d   :  { %7496 = vmatprep.subr.bf16.mxu0 %v7137_v62  ;;  %7668 = vmatprep.subr.bf16.mxu1 %v7139_v45  ;;  %v7233_v62 = vld [vmem:[#allocation4 + $0xd48] sm:$0xff]  ;;  %v7235_v45 = vld [vmem:[#allocation4 + $0xd58] sm:$0xff] }
 0xa40   :  { %7497 = vmatpush1.bf16.msra.mxu0 %v7136_v30  ;;  %7669 = vmatpush1.bf16.msra.mxu1 %v7138_v26  ;;  %v7232_v30 = vld [vmem:[#allocation4 + $0xd40] sm:$0xff]  ;;  %v7234_v26 = vld [vmem:[#allocation4 + $0xd50] sm:$0xff] }
 0xa41   :  { %7498 = vmatprep.subr.bf16.mxu0 %v7145_v39  ;;  %7670 = vmatprep.subr.bf16.mxu1 %v7147_v40  ;;  %v7241_v39 = vld [vmem:[#allocation4 + $0xd88] sm:$0xff]  ;;  %v7243_v40 = vld [vmem:[#allocation4 + $0xd98] sm:$0xff] }
 0xa44   :  { %7499 = vmatpush1.bf16.msra.mxu0 %v7144_v31  ;;  %7671 = vmatpush1.bf16.msra.mxu1 %v7146_v56  ;;  %v7240_v31 = vld [vmem:[#allocation4 + $0xd80] sm:$0xff]  ;;  %v7242_v56 = vld [vmem:[#allocation4 + $0xd90] sm:$0xff] }
 0xa45   :  { %7500 = vmatprep.subr.bf16.mxu0 %v7153_v47  ;;  %7672 = vmatprep.subr.bf16.mxu1 %v7155_v10  ;;  %v7249_v47 = vld [vmem:[#allocation4 + $0xdc8] sm:$0xff]  ;;  %v7251_v10 = vld [vmem:[#allocation4 + $0xdd8] sm:$0xff] }
 0xa48   :  { %7501 = vmatpush1.bf16.msra.mxu0 %v7152_v24  ;;  %7673 = vmatpush1.bf16.msra.mxu1 %v7154_v32  ;;  %v7248_v24 = vld [vmem:[#allocation4 + $0xdc0] sm:$0xff]  ;;  %v7250_v32 = vld [vmem:[#allocation4 + $0xdd0] sm:$0xff] }
 0xa49   :  { %7502 = vmatprep.subr.bf16.mxu0 %v7161_v59  ;;  %7674 = vmatprep.subr.bf16.mxu1 %v7163_v20  ;;  %v7257_v59 = vld [vmem:[#allocation4 + $0xe08] sm:$0xff]  ;;  %v7259_v20 = vld [vmem:[#allocation4 + $0xe18] sm:$0xff] }
 0xa4c   :  { %7503 = vmatpush1.bf16.msra.mxu0 %v7160_v14  ;;  %7675 = vmatpush1.bf16.msra.mxu1 %v7162_v43  ;;  %v7256_v14 = vld [vmem:[#allocation4 + $0xe00] sm:$0xff]  ;;  %v7258_v43 = vld [vmem:[#allocation4 + $0xe10] sm:$0xff] }
 0xa4d   :  { %7504 = vmatprep.subr.bf16.mxu0 %v7169_v38  ;;  %7676 = vmatprep.subr.bf16.mxu1 %v7171_v46  ;;  %v7265_v38 = vld [vmem:[#allocation4 + $0xe48] sm:$0xff]  ;;  %v7267_v46 = vld [vmem:[#allocation4 + $0xe58] sm:$0xff] }
 0xa50   :  { %7505 = vmatpush1.bf16.msra.mxu0 %v7168_v60  ;;  %7677 = vmatpush1.bf16.msra.mxu1 %v7170_v4  ;;  %v7264_v60 = vld [vmem:[#allocation4 + $0xe40] sm:$0xff]  ;;  %v7266_v4 = vld [vmem:[#allocation4 + $0xe50] sm:$0xff] }
 0xa51   :  { %7506 = vmatprep.subr.bf16.mxu0 %v7177_v42  ;;  %7678 = vmatprep.subr.bf16.mxu1 %v7179_v2  ;;  %v7273_v42 = vld [vmem:[#allocation4 + $0xe88] sm:$0xff]  ;;  %v7275_v2 = vld [vmem:[#allocation4 + $0xe98] sm:$0xff] }
 0xa54   :  { %7507 = vmatpush1.bf16.msra.mxu0 %v7176_v11  ;;  %7679 = vmatpush1.bf16.msra.mxu1 %v7178_v27  ;;  %v7272_v11 = vld [vmem:[#allocation4 + $0xe80] sm:$0xff]  ;;  %v7274_v27 = vld [vmem:[#allocation4 + $0xe90] sm:$0xff] }
 0xa55   :  { %7508 = vmatprep.subr.bf16.mxu0 %v7185_v49  ;;  %7680 = vmatprep.subr.bf16.mxu1 %v7187_v35  ;;  %v7281_v49 = vld [vmem:[#allocation4 + $0xec8] sm:$0xff]  ;;  %v7283_v35 = vld [vmem:[#allocation4 + $0xed8] sm:$0xff] }
 0xa58   :  { %7509 = vmatpush1.bf16.msra.mxu0 %v7184_v55  ;;  %7681 = vmatpush1.bf16.msra.mxu1 %v7186_v15  ;;  %v7280_v55 = vld [vmem:[#allocation4 + $0xec0] sm:$0xff]  ;;  %v7282_v15 = vld [vmem:[#allocation4 + $0xed0] sm:$0xff] }
 0xa59   :  { %7521 = vmatprep.subr.bf16.mxu0 %v7193_v19  ;;  %7693 = vmatprep.subr.bf16.mxu1 %v7195_v25  ;;  %v7289_v19 = vld [vmem:[#allocation4 + $0xf08] sm:$0xff]  ;;  %v7291_v25 = vld [vmem:[#allocation4 + $0xf18] sm:$0xff] }
 0xa5b   :  { %7511 = vmatmul.mubr.bf16.vlgmr.msra.gmra.mrb[24].mxu0 %v10111_v34  ;;  %7683 = vmatmul.mubr.bf16.vlgmr.msra.gmra.mrb[24].mxu1 %v10111_v34 }
 0xa5c   :  { %7522 = vmatpush1.bf16.msra.mxu0 %v7192_v57  ;;  %7694 = vmatpush1.bf16.msra.mxu1 %v7194_v63  ;;  %v7288_v57 = vld [vmem:[#allocation4 + $0xf00] sm:$0xff]  ;;  %v7290_v63 = vld [vmem:[#allocation4 + $0xf10] sm:$0xff] }
 0xa5d   :  { %7523 = vmatprep.subr.bf16.mxu0 %v7201_v52  ;;  %7695 = vmatprep.subr.bf16.mxu1 %v7203_v5  ;;  %v7297_v52 = vld [vmem:[#allocation4 + $0xf48] sm:$0xff]  ;;  %v7299_v5 = vld [vmem:[#allocation4 + $0xf58] sm:$0xff] }
 0xa5e   :  { %7553 = vmatprep.mubr.bf16.mxu0 %v10117_v8  ;;  %7725 = vmatprep.mubr.bf16.mxu1 %v10117_v8 }
 0xa60   :  { %7524 = vmatpush1.bf16.msra.mxu0 %v7200_v21  ;;  %7696 = vmatpush1.bf16.msra.mxu1 %v7202_v0  ;;  %v7296_v21 = vld [vmem:[#allocation4 + $0xf40] sm:$0xff]  ;;  %v7298_v0 = vld [vmem:[#allocation4 + $0xf50] sm:$0xff] }
 0xa61   :  { %7525 = vmatprep.subr.bf16.mxu0 %v7209_v48  ;;  %7697 = vmatprep.subr.bf16.mxu1 %v7211_v37  ;;  %v7305_v48 = vld [vmem:[#allocation4 + $0xf88] sm:$0xff]  ;;  %v7307_v37 = vld [vmem:[#allocation4 + $0xf98] sm:$0xff] }
 0xa64   :  { %7526 = vmatpush1.bf16.msra.mxu0 %v7208_v22  ;;  %7698 = vmatpush1.bf16.msra.mxu1 %v7210_v54  ;;  %v7304_v22 = vld [vmem:[#allocation4 + $0xf80] sm:$0xff]  ;;  %v7306_v54 = vld [vmem:[#allocation4 + $0xf90] sm:$0xff] }
 0xa65   :  { %7527 = vmatprep.subr.bf16.mxu0 %v7217_v3  ;;  %7699 = vmatprep.subr.bf16.mxu1 %v7219_v9  ;;  %v7313_v3 = vld [vmem:[#allocation4 + $0xfc8] sm:$0xff]  ;;  %v7315_v9 = vld [vmem:[#allocation4 + $0xfd8] sm:$0xff] }
 0xa68   :  { %7528 = vmatpush1.bf16.msra.mxu0 %v7216_v23  ;;  %7700 = vmatpush1.bf16.msra.mxu1 %v7218_v16  ;;  %v7312_v23 = vld [vmem:[#allocation4 + $0xfc0] sm:$0xff]  ;;  %v7314_v16 = vld [vmem:[#allocation4 + $0xfd0] sm:$0xff] }
 0xa69   :  { %7529 = vmatprep.subr.bf16.mxu0 %v7225_v17  ;;  %7701 = vmatprep.subr.bf16.mxu1 %v7227_v36  ;;  %v6813_v17 = vld [vmem:[#allocation4 + $0x28] sm:$0xff]  ;;  %v6815_v36 = vld [vmem:[#allocation4 + $0x38] sm:$0xff] }
 0xa6c   :  { %7530 = vmatpush1.bf16.msra.mxu0 %v7224_v18  ;;  %7702 = vmatpush1.bf16.msra.mxu1 %v7226_v33  ;;  %v10127_v18 = vpack.c.bf16 %v6790_v53, %v6782_v44  ;;  %v6812_v33 = vld [vmem:[#allocation4 + $0x20] sm:$0xff]  ;;  %v6829_v44 = vld [vmem:[#allocation4 + $0xa8] sm:$0xff]  ;;  %v6831_v53 = vld [vmem:[#allocation4 + $0xb8] sm:$0xff] }
 0xa6d   :  { %7531 = vmatprep.subr.bf16.mxu0 %v7233_v62  ;;  %7703 = vmatprep.subr.bf16.mxu1 %v7235_v45  ;;  %v6814_v62 = vld [vmem:[#allocation4 + $0x30] sm:$0xff]  ;;  %v6821_v45 = vld [vmem:[#allocation4 + $0x68] sm:$0xff] }
 0xa70   :  { %7532 = vmatpush1.bf16.msra.mxu0 %v7232_v30  ;;  %7704 = vmatpush1.bf16.msra.mxu1 %v7234_v26  ;;  %v6823_v30 = vld [vmem:[#allocation4 + $0x78] sm:$0xff]  ;;  %v6828_v26 = vld [vmem:[#allocation4 + $0xa0] sm:$0xff] }
 0xa71   :  { %7533 = vmatprep.subr.bf16.mxu0 %v7241_v39  ;;  %7705 = vmatprep.subr.bf16.mxu1 %v7243_v40  ;;  %v6830_v39 = vld [vmem:[#allocation4 + $0xb0] sm:$0xff]  ;;  %v6837_v40 = vld [vmem:[#allocation4 + $0xe8] sm:$0xff] }
 0xa74   :  { %7534 = vmatpush1.bf16.msra.mxu0 %v7240_v31  ;;  %7706 = vmatpush1.bf16.msra.mxu1 %v7242_v56  ;;  %v6839_v31 = vld [vmem:[#allocation4 + $0xf8] sm:$0xff]  ;;  %v6836_v56 = vld [vmem:[#allocation4 + $0xe0] sm:$0xff] }
 0xa75   :  { %7535 = vmatprep.subr.bf16.mxu0 %v7249_v47  ;;  %7707 = vmatprep.subr.bf16.mxu1 %v7251_v10  ;;  %v6838_v47 = vld [vmem:[#allocation4 + $0xf0] sm:$0xff]  ;;  %v6845_v10 = vld [vmem:[#allocation4 + $0x128] sm:$0xff] }
 0xa78   :  { %7536 = vmatpush1.bf16.msra.mxu0 %v7248_v24  ;;  %7708 = vmatpush1.bf16.msra.mxu1 %v7250_v32  ;;  %v6847_v24 = vld [vmem:[#allocation4 + $0x138] sm:$0xff]  ;;  %v6846_v32 = vld [vmem:[#allocation4 + $0x130] sm:$0xff] }
 0xa79   :  { %7537 = vmatprep.subr.bf16.mxu0 %v7257_v59  ;;  %7709 = vmatprep.subr.bf16.mxu1 %v7259_v20  ;;  %v6853_v59 = vld [vmem:[#allocation4 + $0x168] sm:$0xff]  ;;  %v6855_v20 = vld [vmem:[#allocation4 + $0x178] sm:$0xff] }
 0xa7c   :  { %7538 = vmatpush1.bf16.msra.mxu0 %v7256_v14  ;;  %7710 = vmatpush1.bf16.msra.mxu1 %v7258_v43  ;;  %v6852_v14 = vld [vmem:[#allocation4 + $0x160] sm:$0xff]  ;;  %v6854_v43 = vld [vmem:[#allocation4 + $0x170] sm:$0xff] }
 0xa7d   :  { %7539 = vmatprep.subr.bf16.mxu0 %v7265_v38  ;;  %7711 = vmatprep.subr.bf16.mxu1 %v7267_v46  ;;  %v6861_v38 = vld [vmem:[#allocation4 + $0x1a8] sm:$0xff]  ;;  %v6863_v46 = vld [vmem:[#allocation4 + $0x1b8] sm:$0xff] }
 0xa80   :  { %7540 = vmatpush1.bf16.msra.mxu0 %v7264_v60  ;;  %7712 = vmatpush1.bf16.msra.mxu1 %v7266_v4  ;;  %v6860_v60 = vld [vmem:[#allocation4 + $0x1a0] sm:$0xff]  ;;  %v6862_v4 = vld [vmem:[#allocation4 + $0x1b0] sm:$0xff] }
 0xa81   :  { %7541 = vmatprep.subr.bf16.mxu0 %v7273_v42  ;;  %7713 = vmatprep.subr.bf16.mxu1 %v7275_v2  ;;  %v6869_v42 = vld [vmem:[#allocation4 + $0x1e8] sm:$0xff]  ;;  %v6871_v2 = vld [vmem:[#allocation4 + $0x1f8] sm:$0xff] }
 0xa84   :  { %7542 = vmatpush1.bf16.msra.mxu0 %v7272_v11  ;;  %7714 = vmatpush1.bf16.msra.mxu1 %v7274_v27  ;;  %v6868_v11 = vld [vmem:[#allocation4 + $0x1e0] sm:$0xff]  ;;  %v6870_v27 = vld [vmem:[#allocation4 + $0x1f0] sm:$0xff] }
 0xa85   :  { %7543 = vmatprep.subr.bf16.mxu0 %v7281_v49  ;;  %7715 = vmatprep.subr.bf16.mxu1 %v7283_v35  ;;  %v6877_v49 = vld [vmem:[#allocation4 + $0x228] sm:$0xff]  ;;  %v6879_v35 = vld [vmem:[#allocation4 + $0x238] sm:$0xff] }
 0xa88   :  { %7544 = vmatpush1.bf16.msra.mxu0 %v7280_v55  ;;  %7716 = vmatpush1.bf16.msra.mxu1 %v7282_v15  ;;  %v6876_v55 = vld [vmem:[#allocation4 + $0x220] sm:$0xff]  ;;  %v6878_v15 = vld [vmem:[#allocation4 + $0x230] sm:$0xff] }
 0xa89   :  { %7545 = vmatprep.subr.bf16.mxu0 %v7289_v19  ;;  %7717 = vmatprep.subr.bf16.mxu1 %v7291_v25  ;;  %v6885_v19 = vld [vmem:[#allocation4 + $0x268] sm:$0xff]  ;;  %v6887_v25 = vld [vmem:[#allocation4 + $0x278] sm:$0xff] }
 0xa8c   :  { %7546 = vmatpush1.bf16.msra.mxu0 %v7288_v57  ;;  %7718 = vmatpush1.bf16.msra.mxu1 %v7290_v63  ;;  %v6884_v57 = vld [vmem:[#allocation4 + $0x260] sm:$0xff]  ;;  %v6886_v63 = vld [vmem:[#allocation4 + $0x270] sm:$0xff] }
 0xa8d   :  { %7547 = vmatprep.subr.bf16.mxu0 %v7297_v52  ;;  %7719 = vmatprep.subr.bf16.mxu1 %v7299_v5  ;;  %v6893_v52 = vld [vmem:[#allocation4 + $0x2a8] sm:$0xff]  ;;  %v6895_v5 = vld [vmem:[#allocation4 + $0x2b8] sm:$0xff] }
 0xa90   :  { %7548 = vmatpush1.bf16.msra.mxu0 %v7296_v21  ;;  %7720 = vmatpush1.bf16.msra.mxu1 %v7298_v0  ;;  %v6892_v21 = vld [vmem:[#allocation4 + $0x2a0] sm:$0xff]  ;;  %v6894_v0 = vld [vmem:[#allocation4 + $0x2b0] sm:$0xff] }
 0xa91   :  { %7549 = vmatprep.subr.bf16.mxu0 %v7305_v48  ;;  %7721 = vmatprep.subr.bf16.mxu1 %v7307_v37  ;;  %v6901_v48 = vld [vmem:[#allocation4 + $0x2e8] sm:$0xff]  ;;  %v6903_v37 = vld [vmem:[#allocation4 + $0x2f8] sm:$0xff] }
 0xa94   :  { %7550 = vmatpush1.bf16.msra.mxu0 %v7304_v22  ;;  %7722 = vmatpush1.bf16.msra.mxu1 %v7306_v54  ;;  %v6900_v22 = vld [vmem:[#allocation4 + $0x2e0] sm:$0xff]  ;;  %v6902_v54 = vld [vmem:[#allocation4 + $0x2f0] sm:$0xff] }
 0xa95   :  { %7551 = vmatprep.subr.bf16.mxu0 %v7313_v3  ;;  %7723 = vmatprep.subr.bf16.mxu1 %v7315_v9  ;;  %v6909_v3 = vld [vmem:[#allocation4 + $0x328] sm:$0xff]  ;;  %v6911_v9 = vld [vmem:[#allocation4 + $0x338] sm:$0xff] }
 0xa98   :  { %7552 = vmatpush1.bf16.msra.mxu0 %v7312_v23  ;;  %7724 = vmatpush1.bf16.msra.mxu1 %v7314_v16  ;;  %v6908_v23 = vld [vmem:[#allocation4 + $0x320] sm:$0xff]  ;;  %v6910_v16 = vld [vmem:[#allocation4 + $0x330] sm:$0xff] }
 0xa99   :  { %7736 = vmatprep.subr.bf16.mxu0 %v6813_v17  ;;  %7908 = vmatprep.subr.bf16.mxu1 %v6815_v36  ;;  %v6917_v17 = vld [vmem:[#allocation4 + $0x368] sm:$0xff]  ;;  %v6919_v36 = vld [vmem:[#allocation4 + $0x378] sm:$0xff] }
 0xa9b   :  { %7554 = vmatmul.mubr.bf16.vlgmr.msra.gmra.mrb[24].mxu0 %v10127_v18  ;;  %7726 = vmatmul.mubr.bf16.vlgmr.msra.gmra.mrb[24].mxu1 %v10127_v18 }
 0xa9c   :  { %7737 = vmatpush1.bf16.msra.mxu0 %v6812_v33  ;;  %7909 = vmatpush1.bf16.msra.mxu1 %v6814_v62  ;;  %v6916_v33 = vld [vmem:[#allocation4 + $0x360] sm:$0xff]  ;;  %v6918_v62 = vld [vmem:[#allocation4 + $0x370] sm:$0xff] }
 0xa9d   :  { %7738 = vmatprep.subr.bf16.mxu0 %v6821_v45  ;;  %7910 = vmatprep.subr.bf16.mxu1 %v6823_v30  ;;  %v6925_v45 = vld [vmem:[#allocation4 + $0x3a8] sm:$0xff]  ;;  %v6927_v30 = vld [vmem:[#allocation4 + $0x3b8] sm:$0xff] }
 0xa9e   :  { %7768 = vmatprep.mubr.bf16.mxu0 %v10071_v6  ;;  %7940 = vmatprep.mubr.bf16.mxu1 %v10071_v6  ;;  %v6844_v6 = vld [vmem:[#allocation4 + $0x120] sm:$0xff] }
 0xaa0   :  { %7739 = vmatpush1.bf16.msra.mxu0 %v6820_v51  ;;  %7911 = vmatpush1.bf16.msra.mxu1 %v6822_v41  ;;  %v6924_v51 = vld [vmem:[#allocation4 + $0x3a0] sm:$0xff]  ;;  %v6926_v41 = vld [vmem:[#allocation4 + $0x3b0] sm:$0xff] }
 0xaa1   :  { %7740 = vmatprep.subr.bf16.mxu0 %v6829_v44  ;;  %7912 = vmatprep.subr.bf16.mxu1 %v6831_v53  ;;  %v6933_v44 = vld [vmem:[#allocation4 + $0x3e8] sm:$0xff]  ;;  %v6935_v53 = vld [vmem:[#allocation4 + $0x3f8] sm:$0xff] }
 0xaa4   :  { %7741 = vmatpush1.bf16.msra.mxu0 %v6828_v26  ;;  %7913 = vmatpush1.bf16.msra.mxu1 %v6830_v39  ;;  %v6932_v26 = vld [vmem:[#allocation4 + $0x3e0] sm:$0xff]  ;;  %v6934_v39 = vld [vmem:[#allocation4 + $0x3f0] sm:$0xff] }
 0xaa5   :  { %7742 = vmatprep.subr.bf16.mxu0 %v6837_v40  ;;  %7914 = vmatprep.subr.bf16.mxu1 %v6839_v31  ;;  %v6941_v40 = vld [vmem:[#allocation4 + $0x428] sm:$0xff]  ;;  %v6943_v31 = vld [vmem:[#allocation4 + $0x438] sm:$0xff] }
 0xaa8   :  { %7743 = vmatpush1.bf16.msra.mxu0 %v6836_v56  ;;  %7915 = vmatpush1.bf16.msra.mxu1 %v6838_v47  ;;  %v6940_v56 = vld [vmem:[#allocation4 + $0x420] sm:$0xff]  ;;  %v6942_v47 = vld [vmem:[#allocation4 + $0x430] sm:$0xff] }
 0xaa9   :  { %7744 = vmatprep.subr.bf16.mxu0 %v6845_v10  ;;  %7916 = vmatprep.subr.bf16.mxu1 %v6847_v24  ;;  %v6949_v10 = vld [vmem:[#allocation4 + $0x468] sm:$0xff]  ;;  %v6951_v24 = vld [vmem:[#allocation4 + $0x478] sm:$0xff] }
 0xaac   :  { %7745 = vmatpush1.bf16.msra.mxu0 %v6844_v6  ;;  %7917 = vmatpush1.bf16.msra.mxu1 %v6846_v32  ;;  %v6948_v6 = vld [vmem:[#allocation4 + $0x460] sm:$0xff]  ;;  %v6950_v32 = vld [vmem:[#allocation4 + $0x470] sm:$0xff] }
 0xaad   :  { %7746 = vmatprep.subr.bf16.mxu0 %v6853_v59  ;;  %7918 = vmatprep.subr.bf16.mxu1 %v6855_v20  ;;  %v6957_v59 = vld [vmem:[#allocation4 + $0x4a8] sm:$0xff]  ;;  %v6959_v20 = vld [vmem:[#allocation4 + $0x4b8] sm:$0xff] }
 0xab0   :  { %7747 = vmatpush1.bf16.msra.mxu0 %v6852_v14  ;;  %7919 = vmatpush1.bf16.msra.mxu1 %v6854_v43  ;;  %v6956_v14 = vld [vmem:[#allocation4 + $0x4a0] sm:$0xff]  ;;  %v6958_v43 = vld [vmem:[#allocation4 + $0x4b0] sm:$0xff] }
 0xab1   :  { %7748 = vmatprep.subr.bf16.mxu0 %v6861_v38  ;;  %7920 = vmatprep.subr.bf16.mxu1 %v6863_v46  ;;  %v6965_v38 = vld [vmem:[#allocation4 + $0x4e8] sm:$0xff]  ;;  %v6964_v46 = vld [vmem:[#allocation4 + $0x4e0] sm:$0xff] }
 0xab4   :  { %7749 = vmatpush1.bf16.msra.mxu0 %v6860_v60  ;;  %7921 = vmatpush1.bf16.msra.mxu1 %v6862_v4  ;;  %v6966_v60 = vld [vmem:[#allocation4 + $0x4f0] sm:$0xff]  ;;  %v6973_v4 = vld [vmem:[#allocation4 + $0x528] sm:$0xff] }
 0xab5   :  { %7750 = vmatprep.subr.bf16.mxu0 %v6869_v42  ;;  %7922 = vmatprep.subr.bf16.mxu1 %v6871_v2  ;;  %v6975_v42 = vld [vmem:[#allocation4 + $0x538] sm:$0xff]  ;;  %v6974_v2 = vld [vmem:[#allocation4 + $0x530] sm:$0xff] }
 0xab8   :  { %7751 = vmatpush1.bf16.msra.mxu0 %v6868_v11  ;;  %7923 = vmatpush1.bf16.msra.mxu1 %v6870_v27  ;;  %v6981_v11 = vld [vmem:[#allocation4 + $0x568] sm:$0xff]  ;;  %v6983_v27 = vld [vmem:[#allocation4 + $0x578] sm:$0xff] }
 0xab9   :  { %7752 = vmatprep.subr.bf16.mxu0 %v6877_v49  ;;  %7924 = vmatprep.subr.bf16.mxu1 %v6879_v35  ;;  %v6980_v49 = vld [vmem:[#allocation4 + $0x560] sm:$0xff]  ;;  %v6982_v35 = vld [vmem:[#allocation4 + $0x570] sm:$0xff] }
 0xabc   :  { %7753 = vmatpush1.bf16.msra.mxu0 %v6876_v55  ;;  %7925 = vmatpush1.bf16.msra.mxu1 %v6878_v15  ;;  %v6989_v55 = vld [vmem:[#allocation4 + $0x5a8] sm:$0xff]  ;;  %v6991_v15 = vld [vmem:[#allocation4 + $0x5b8] sm:$0xff] }
 0xabd   :  { %7754 = vmatprep.subr.bf16.mxu0 %v6885_v19  ;;  %7926 = vmatprep.subr.bf16.mxu1 %v6887_v25  ;;  %v6988_v19 = vld [vmem:[#allocation4 + $0x5a0] sm:$0xff]  ;;  %v6990_v25 = vld [vmem:[#allocation4 + $0x5b0] sm:$0xff] }
 0xac0   :  { %7755 = vmatpush1.bf16.msra.mxu0 %v6884_v57  ;;  %7927 = vmatpush1.bf16.msra.mxu1 %v6886_v63  ;;  %v6997_v57 = vld [vmem:[#allocation4 + $0x5e8] sm:$0xff]  ;;  %v6999_v63 = vld [vmem:[#allocation4 + $0x5f8] sm:$0xff] }
 0xac1   :  { %7756 = vmatprep.subr.bf16.mxu0 %v6893_v52  ;;  %7928 = vmatprep.subr.bf16.mxu1 %v6895_v5  ;;  %v6996_v52 = vld [vmem:[#allocation4 + $0x5e0] sm:$0xff]  ;;  %v6998_v5 = vld [vmem:[#allocation4 + $0x5f0] sm:$0xff] }
 0xac4   :  { %7757 = vmatpush1.bf16.msra.mxu0 %v6892_v21  ;;  %7929 = vmatpush1.bf16.msra.mxu1 %v6894_v0  ;;  %v7005_v21 = vld [vmem:[#allocation4 + $0x628] sm:$0xff]  ;;  %v7007_v0 = vld [vmem:[#allocation4 + $0x638] sm:$0xff] }
 0xac5   :  { %7758 = vmatprep.subr.bf16.mxu0 %v6901_v48  ;;  %7930 = vmatprep.subr.bf16.mxu1 %v6903_v37  ;;  %v7004_v48 = vld [vmem:[#allocation4 + $0x620] sm:$0xff]  ;;  %v7006_v37 = vld [vmem:[#allocation4 + $0x630] sm:$0xff] }
 0xac8   :  { %7759 = vmatpush1.bf16.msra.mxu0 %v6900_v22  ;;  %7931 = vmatpush1.bf16.msra.mxu1 %v6902_v54  ;;  %v7013_v22 = vld [vmem:[#allocation4 + $0x668] sm:$0xff]  ;;  %v7015_v54 = vld [vmem:[#allocation4 + $0x678] sm:$0xff] }
 0xac9   :  { %7760 = vmatprep.subr.bf16.mxu0 %v6909_v3  ;;  %7932 = vmatprep.subr.bf16.mxu1 %v6911_v9  ;;  %v7012_v3 = vld [vmem:[#allocation4 + $0x660] sm:$0xff]  ;;  %v7014_v9 = vld [vmem:[#allocation4 + $0x670] sm:$0xff] }
 0xacc   :  { %7761 = vmatpush1.bf16.msra.mxu0 %v6908_v23  ;;  %7933 = vmatpush1.bf16.msra.mxu1 %v6910_v16  ;;  %v7021_v23 = vld [vmem:[#allocation4 + $0x6a8] sm:$0xff]  ;;  %v7023_v16 = vld [vmem:[#allocation4 + $0x6b8] sm:$0xff] }
 0xacd   :  { %7762 = vmatprep.subr.bf16.mxu0 %v6917_v17  ;;  %7934 = vmatprep.subr.bf16.mxu1 %v6919_v36  ;;  %v7020_v17 = vld [vmem:[#allocation4 + $0x6a0] sm:$0xff]  ;;  %v7022_v36 = vld [vmem:[#allocation4 + $0x6b0] sm:$0xff] }
 0xad0   :  { %7763 = vmatpush1.bf16.msra.mxu0 %v6916_v33  ;;  %7935 = vmatpush1.bf16.msra.mxu1 %v6918_v62  ;;  %v7029_v33 = vld [vmem:[#allocation4 + $0x6e8] sm:$0xff]  ;;  %v7031_v62 = vld [vmem:[#allocation4 + $0x6f8] sm:$0xff] }
 0xad1   :  { %7764 = vmatprep.subr.bf16.mxu0 %v6925_v45  ;;  %7936 = vmatprep.subr.bf16.mxu1 %v6927_v30  ;;  %v7028_v45 = vld [vmem:[#allocation4 + $0x6e0] sm:$0xff]  ;;  %v7030_v30 = vld [vmem:[#allocation4 + $0x6f0] sm:$0xff] }
 0xad4   :  { %7765 = vmatpush1.bf16.msra.mxu0 %v6924_v51  ;;  %7937 = vmatpush1.bf16.msra.mxu1 %v6926_v41  ;;  %v7037_v51 = vld [vmem:[#allocation4 + $0x728] sm:$0xff]  ;;  %v7039_v41 = vld [vmem:[#allocation4 + $0x738] sm:$0xff] }
 0xad5   :  { %7766 = vmatprep.subr.bf16.mxu0 %v6933_v44  ;;  %7938 = vmatprep.subr.bf16.mxu1 %v6935_v53  ;;  %v7036_v44 = vld [vmem:[#allocation4 + $0x720] sm:$0xff]  ;;  %v7038_v53 = vld [vmem:[#allocation4 + $0x730] sm:$0xff] }
 0xad8   :  { %7767 = vmatpush1.bf16.msra.mxu0 %v6932_v26  ;;  %7939 = vmatpush1.bf16.msra.mxu1 %v6934_v39  ;;  %v7045_v26 = vld [vmem:[#allocation4 + $0x768] sm:$0xff]  ;;  %v7047_v39 = vld [vmem:[#allocation4 + $0x778] sm:$0xff] }
 0xad9   :  { %7779 = vmatprep.subr.bf16.mxu0 %v6941_v40  ;;  %7951 = vmatprep.subr.bf16.mxu1 %v6943_v31  ;;  %v7044_v40 = vld [vmem:[#allocation4 + $0x760] sm:$0xff]  ;;  %v7046_v31 = vld [vmem:[#allocation4 + $0x770] sm:$0xff] }
 0xadb   :  { %7769 = vmatmul.mubr.bf16.vlgmr.msra.gmra.mrb[28].mxu0 %v10079_v13  ;;  %7941 = vmatmul.mubr.bf16.vlgmr.msra.gmra.mrb[28].mxu1 %v10079_v13  ;;  %v6967_v13 = vld [vmem:[#allocation4 + $0x4f8] sm:$0xff] }
 0xadc   :  { %7780 = vmatpush1.bf16.msra.mxu0 %v6940_v56  ;;  %7952 = vmatpush1.bf16.msra.mxu1 %v6942_v47  ;;  %v7053_v56 = vld [vmem:[#allocation4 + $0x7a8] sm:$0xff]  ;;  %v7055_v47 = vld [vmem:[#allocation4 + $0x7b8] sm:$0xff] }
 0xadd   :  { %7781 = vmatprep.subr.bf16.mxu0 %v6949_v10  ;;  %7953 = vmatprep.subr.bf16.mxu1 %v6951_v24  ;;  %v7052_v10 = vld [vmem:[#allocation4 + $0x7a0] sm:$0xff]  ;;  %v7054_v24 = vld [vmem:[#allocation4 + $0x7b0] sm:$0xff] }
 0xade   :  { %7811 = vmatprep.mubr.bf16.mxu0 %v10085_v12  ;;  %7983 = vmatprep.mubr.bf16.mxu1 %v10085_v12  ;;  %v6972_v12 = vld [vmem:[#allocation4 + $0x520] sm:$0xff] }
 0xae0   :  { %7782 = vmatpush1.bf16.msra.mxu0 %v6948_v6  ;;  %7954 = vmatpush1.bf16.msra.mxu1 %v6950_v32  ;;  %v7061_v6 = vld [vmem:[#allocation4 + $0x7e8] sm:$0xff]  ;;  %v7063_v32 = vld [vmem:[#allocation4 + $0x7f8] sm:$0xff] }
 0xae1   :  { %7783 = vmatprep.subr.bf16.mxu0 %v6957_v59  ;;  %7955 = vmatprep.subr.bf16.mxu1 %v6959_v20  ;;  %v7060_v59 = vld [vmem:[#allocation4 + $0x7e0] sm:$0xff]  ;;  %v7062_v20 = vld [vmem:[#allocation4 + $0x7f0] sm:$0xff] }
 0xae4   :  { %7784 = vmatpush1.bf16.msra.mxu0 %v6956_v14  ;;  %7956 = vmatpush1.bf16.msra.mxu1 %v6958_v43  ;;  %v7069_v14 = vld [vmem:[#allocation4 + $0x828] sm:$0xff]  ;;  %v7071_v43 = vld [vmem:[#allocation4 + $0x838] sm:$0xff] }
 0xae5   :  { %7785 = vmatprep.subr.bf16.mxu0 %v6965_v38  ;;  %7957 = vmatprep.subr.bf16.mxu1 %v6967_v13  ;;  %v7068_v38 = vld [vmem:[#allocation4 + $0x820] sm:$0xff]  ;;  %v7070_v13 = vld [vmem:[#allocation4 + $0x830] sm:$0xff] }
 0xae8   :  { %7786 = vmatpush1.bf16.msra.mxu0 %v6964_v46  ;;  %7958 = vmatpush1.bf16.msra.mxu1 %v6966_v60  ;;  %v7077_v46 = vld [vmem:[#allocation4 + $0x868] sm:$0xff]  ;;  %v7079_v60 = vld [vmem:[#allocation4 + $0x878] sm:$0xff] }
 0xae9   :  { %7787 = vmatprep.subr.bf16.mxu0 %v6973_v4  ;;  %7959 = vmatprep.subr.bf16.mxu1 %v6975_v42  ;;  %v7076_v4 = vld [vmem:[#allocation4 + $0x860] sm:$0xff]  ;;  %v7078_v42 = vld [vmem:[#allocation4 + $0x870] sm:$0xff] }
 0xaec   :  { %7788 = vmatpush1.bf16.msra.mxu0 %v6972_v12  ;;  %7960 = vmatpush1.bf16.msra.mxu1 %v6974_v2  ;;  %v7085_v12 = vld [vmem:[#allocation4 + $0x8a8] sm:$0xff]  ;;  %v7087_v2 = vld [vmem:[#allocation4 + $0x8b8] sm:$0xff] }
 0xaed   :  { %7789 = vmatprep.subr.bf16.mxu0 %v6981_v11  ;;  %7961 = vmatprep.subr.bf16.mxu1 %v6983_v27  ;;  %v7084_v11 = vld [vmem:[#allocation4 + $0x8a0] sm:$0xff]  ;;  %v7086_v27 = vld [vmem:[#allocation4 + $0x8b0] sm:$0xff] }
 0xaf0   :  { %7790 = vmatpush1.bf16.msra.mxu0 %v6980_v49  ;;  %7962 = vmatpush1.bf16.msra.mxu1 %v6982_v35  ;;  %v7093_v49 = vld [vmem:[#allocation4 + $0x8e8] sm:$0xff]  ;;  %v7092_v35 = vld [vmem:[#allocation4 + $0x8e0] sm:$0xff] }
 0xaf1   :  { %7791 = vmatprep.subr.bf16.mxu0 %v6989_v55  ;;  %7963 = vmatprep.subr.bf16.mxu1 %v6991_v15  ;;  %v7094_v55 = vld [vmem:[#allocation4 + $0x8f0] sm:$0xff]  ;;  %v7101_v15 = vld [vmem:[#allocation4 + $0x928] sm:$0xff] }
 0xaf4   :  { %7792 = vmatpush1.bf16.msra.mxu0 %v6988_v19  ;;  %7964 = vmatpush1.bf16.msra.mxu1 %v6990_v25  ;;  %v7103_v19 = vld [vmem:[#allocation4 + $0x938] sm:$0xff]  ;;  %v7102_v25 = vld [vmem:[#allocation4 + $0x930] sm:$0xff] }
 0xaf5   :  { %7793 = vmatprep.subr.bf16.mxu0 %v6997_v57  ;;  %7965 = vmatprep.subr.bf16.mxu1 %v6999_v63  ;;  %v7109_v57 = vld [vmem:[#allocation4 + $0x968] sm:$0xff]  ;;  %v7111_v63 = vld [vmem:[#allocation4 + $0x978] sm:$0xff] }
 0xaf8   :  { %7794 = vmatpush1.bf16.msra.mxu0 %v6996_v52  ;;  %7966 = vmatpush1.bf16.msra.mxu1 %v6998_v5  ;;  %v7108_v52 = vld [vmem:[#allocation4 + $0x960] sm:$0xff]  ;;  %v7110_v5 = vld [vmem:[#allocation4 + $0x970] sm:$0xff] }
 0xaf9   :  { %7795 = vmatprep.subr.bf16.mxu0 %v7005_v21  ;;  %7967 = vmatprep.subr.bf16.mxu1 %v7007_v0  ;;  %v7117_v21 = vld [vmem:[#allocation4 + $0x9a8] sm:$0xff]  ;;  %v7119_v0 = vld [vmem:[#allocation4 + $0x9b8] sm:$0xff] }
 0xafc   :  { %7796 = vmatpush1.bf16.msra.mxu0 %v7004_v48  ;;  %7968 = vmatpush1.bf16.msra.mxu1 %v7006_v37  ;;  %v7116_v48 = vld [vmem:[#allocation4 + $0x9a0] sm:$0xff]  ;;  %v7118_v37 = vld [vmem:[#allocation4 + $0x9b0] sm:$0xff] }
 0xafd   :  { %7797 = vmatprep.subr.bf16.mxu0 %v7013_v22  ;;  %7969 = vmatprep.subr.bf16.mxu1 %v7015_v54  ;;  %v7125_v22 = vld [vmem:[#allocation4 + $0x9e8] sm:$0xff]  ;;  %v7127_v54 = vld [vmem:[#allocation4 + $0x9f8] sm:$0xff] }
 0xb00   :  { %7798 = vmatpush1.bf16.msra.mxu0 %v7012_v3  ;;  %7970 = vmatpush1.bf16.msra.mxu1 %v7014_v9  ;;  %v7124_v3 = vld [vmem:[#allocation4 + $0x9e0] sm:$0xff]  ;;  %v7126_v9 = vld [vmem:[#allocation4 + $0x9f0] sm:$0xff] }
 0xb01   :  { %7799 = vmatprep.subr.bf16.mxu0 %v7021_v23  ;;  %7971 = vmatprep.subr.bf16.mxu1 %v7023_v16  ;;  %v7133_v23 = vld [vmem:[#allocation4 + $0xa28] sm:$0xff]  ;;  %v7135_v16 = vld [vmem:[#allocation4 + $0xa38] sm:$0xff] }
 0xb04   :  { %7800 = vmatpush1.bf16.msra.mxu0 %v7020_v17  ;;  %7972 = vmatpush1.bf16.msra.mxu1 %v7022_v36  ;;  %v7132_v17 = vld [vmem:[#allocation4 + $0xa20] sm:$0xff]  ;;  %v7134_v36 = vld [vmem:[#allocation4 + $0xa30] sm:$0xff] }
 0xb05   :  { %7801 = vmatprep.subr.bf16.mxu0 %v7029_v33  ;;  %7973 = vmatprep.subr.bf16.mxu1 %v7031_v62  ;;  %v7141_v33 = vld [vmem:[#allocation4 + $0xa68] sm:$0xff]  ;;  %v7143_v62 = vld [vmem:[#allocation4 + $0xa78] sm:$0xff] }
 0xb08   :  { %7802 = vmatpush1.bf16.msra.mxu0 %v7028_v45  ;;  %7974 = vmatpush1.bf16.msra.mxu1 %v7030_v30  ;;  %v7140_v45 = vld [vmem:[#allocation4 + $0xa60] sm:$0xff]  ;;  %v7142_v30 = vld [vmem:[#allocation4 + $0xa70] sm:$0xff] }
 0xb09   :  { %7803 = vmatprep.subr.bf16.mxu0 %v7037_v51  ;;  %7975 = vmatprep.subr.bf16.mxu1 %v7039_v41  ;;  %v7149_v51 = vld [vmem:[#allocation4 + $0xaa8] sm:$0xff]  ;;  %v7151_v41 = vld [vmem:[#allocation4 + $0xab8] sm:$0xff] }
 0xb0c   :  { %7804 = vmatpush1.bf16.msra.mxu0 %v7036_v44  ;;  %7976 = vmatpush1.bf16.msra.mxu1 %v7038_v53  ;;  %v7148_v44 = vld [vmem:[#allocation4 + $0xaa0] sm:$0xff]  ;;  %v7150_v53 = vld [vmem:[#allocation4 + $0xab0] sm:$0xff] }
 0xb0d   :  { %7805 = vmatprep.subr.bf16.mxu0 %v7045_v26  ;;  %7977 = vmatprep.subr.bf16.mxu1 %v7047_v39  ;;  %v7157_v26 = vld [vmem:[#allocation4 + $0xae8] sm:$0xff]  ;;  %v7159_v39 = vld [vmem:[#allocation4 + $0xaf8] sm:$0xff] }
 0xb10   :  { %7806 = vmatpush1.bf16.msra.mxu0 %v7044_v40  ;;  %7978 = vmatpush1.bf16.msra.mxu1 %v7046_v31  ;;  %v7156_v40 = vld [vmem:[#allocation4 + $0xae0] sm:$0xff]  ;;  %v7158_v31 = vld [vmem:[#allocation4 + $0xaf0] sm:$0xff] }
 0xb11   :  { %7807 = vmatprep.subr.bf16.mxu0 %v7053_v56  ;;  %7979 = vmatprep.subr.bf16.mxu1 %v7055_v47  ;;  %v7165_v56 = vld [vmem:[#allocation4 + $0xb28] sm:$0xff]  ;;  %v7167_v47 = vld [vmem:[#allocation4 + $0xb38] sm:$0xff] }
 0xb14   :  { %7808 = vmatpush1.bf16.msra.mxu0 %v7052_v10  ;;  %7980 = vmatpush1.bf16.msra.mxu1 %v7054_v24  ;;  %v7164_v10 = vld [vmem:[#allocation4 + $0xb20] sm:$0xff]  ;;  %v7166_v24 = vld [vmem:[#allocation4 + $0xb30] sm:$0xff] }
 0xb15   :  { %7809 = vmatprep.subr.bf16.mxu0 %v7061_v6  ;;  %7981 = vmatprep.subr.bf16.mxu1 %v7063_v32  ;;  %v7173_v6 = vld [vmem:[#allocation4 + $0xb68] sm:$0xff]  ;;  %v7175_v32 = vld [vmem:[#allocation4 + $0xb78] sm:$0xff] }
 0xb18   :  { %7810 = vmatpush1.bf16.msra.mxu0 %v7060_v59  ;;  %7982 = vmatpush1.bf16.msra.mxu1 %v7062_v20  ;;  %v7172_v59 = vld [vmem:[#allocation4 + $0xb60] sm:$0xff]  ;;  %v7174_v20 = vld [vmem:[#allocation4 + $0xb70] sm:$0xff] }
 0xb19   :  { %7822 = vmatprep.subr.bf16.mxu0 %v7069_v14  ;;  %7994 = vmatprep.subr.bf16.mxu1 %v7071_v43  ;;  %v7181_v14 = vld [vmem:[#allocation4 + $0xba8] sm:$0xff]  ;;  %v7183_v43 = vld [vmem:[#allocation4 + $0xbb8] sm:$0xff] }
 0xb1b   :  { %7812 = vmatmul.mubr.bf16.vlgmr.msra.gmra.mrb[28].mxu0 %v10095_v7  ;;  %7984 = vmatmul.mubr.bf16.vlgmr.msra.gmra.mrb[28].mxu1 %v10095_v7  ;;  %v7095_v7 = vld [vmem:[#allocation4 + $0x8f8] sm:$0xff] }
 0xb1c   :  { %7823 = vmatpush1.bf16.msra.mxu0 %v7068_v38  ;;  %7995 = vmatpush1.bf16.msra.mxu1 %v7070_v13  ;;  %v7180_v38 = vld [vmem:[#allocation4 + $0xba0] sm:$0xff]  ;;  %v7182_v13 = vld [vmem:[#allocation4 + $0xbb0] sm:$0xff] }
 0xb1d   :  { %7824 = vmatprep.subr.bf16.mxu0 %v7077_v46  ;;  %7996 = vmatprep.subr.bf16.mxu1 %v7079_v60  ;;  %v7189_v46 = vld [vmem:[#allocation4 + $0xbe8] sm:$0xff]  ;;  %v7191_v60 = vld [vmem:[#allocation4 + $0xbf8] sm:$0xff] }
 0xb1e   :  { %7854 = vmatprep.mubr.bf16.mxu0 %v10101_v58  ;;  %8026 = vmatprep.mubr.bf16.mxu1 %v10101_v58  ;;  %v7100_v58 = vld [vmem:[#allocation4 + $0x920] sm:$0xff] }
 0xb20   :  { %7825 = vmatpush1.bf16.msra.mxu0 %v7076_v4  ;;  %7997 = vmatpush1.bf16.msra.mxu1 %v7078_v42  ;;  %v7188_v4 = vld [vmem:[#allocation4 + $0xbe0] sm:$0xff]  ;;  %v7190_v42 = vld [vmem:[#allocation4 + $0xbf0] sm:$0xff] }
 0xb21   :  { %7826 = vmatprep.subr.bf16.mxu0 %v7085_v12  ;;  %7998 = vmatprep.subr.bf16.mxu1 %v7087_v2  ;;  %v7197_v12 = vld [vmem:[#allocation4 + $0xc28] sm:$0xff]  ;;  %v7199_v2 = vld [vmem:[#allocation4 + $0xc38] sm:$0xff] }
 0xb24   :  { %7827 = vmatpush1.bf16.msra.mxu0 %v7084_v11  ;;  %7999 = vmatpush1.bf16.msra.mxu1 %v7086_v27  ;;  %v7196_v11 = vld [vmem:[#allocation4 + $0xc20] sm:$0xff]  ;;  %v7198_v27 = vld [vmem:[#allocation4 + $0xc30] sm:$0xff] }
 0xb25   :  { %7828 = vmatprep.subr.bf16.mxu0 %v7093_v49  ;;  %8000 = vmatprep.subr.bf16.mxu1 %v7095_v7  ;;  %v7205_v49 = vld [vmem:[#allocation4 + $0xc68] sm:$0xff]  ;;  %v7207_v7 = vld [vmem:[#allocation4 + $0xc78] sm:$0xff] }
 0xb28   :  { %7829 = vmatpush1.bf16.msra.mxu0 %v7092_v35  ;;  %8001 = vmatpush1.bf16.msra.mxu1 %v7094_v55  ;;  %v7204_v35 = vld [vmem:[#allocation4 + $0xc60] sm:$0xff]  ;;  %v7206_v55 = vld [vmem:[#allocation4 + $0xc70] sm:$0xff] }
 0xb29   :  { %7830 = vmatprep.subr.bf16.mxu0 %v7101_v15  ;;  %8002 = vmatprep.subr.bf16.mxu1 %v7103_v19  ;;  %v7213_v15 = vld [vmem:[#allocation4 + $0xca8] sm:$0xff]  ;;  %v7215_v19 = vld [vmem:[#allocation4 + $0xcb8] sm:$0xff] }
 0xb2c   :  { %7831 = vmatpush1.bf16.msra.mxu0 %v7100_v58  ;;  %8003 = vmatpush1.bf16.msra.mxu1 %v7102_v25  ;;  %v7212_v58 = vld [vmem:[#allocation4 + $0xca0] sm:$0xff]  ;;  %v7214_v25 = vld [vmem:[#allocation4 + $0xcb0] sm:$0xff] }
 0xb2d   :  { %7832 = vmatprep.subr.bf16.mxu0 %v7109_v57  ;;  %8004 = vmatprep.subr.bf16.mxu1 %v7111_v63  ;;  %v7221_v57 = vld [vmem:[#allocation4 + $0xce8] sm:$0xff]  ;;  %v10146_v63 = vsub.s32 3, %v9628_v50 }
 0xb30   :  { %7833 = vmatpush1.bf16.msra.mxu0 %v7108_v52  ;;  %8005 = vmatpush1.bf16.msra.mxu1 %v7110_v5  ;;  %v10149_v52 = vsub.s32 7, %v9628_v50  ;;  %v7220_v5 = vld [vmem:[#allocation4 + $0xce0] sm:$0xff] }
 0xb31   :  { %7834 = vmatprep.subr.bf16.mxu0 %v7117_v21  ;;  %8006 = vmatprep.subr.bf16.mxu1 %v7119_v0  ;;  %v7229_v21 = vld [vmem:[#allocation4 + $0xd28] sm:$0xff]  ;;  %v7231_v0 = vld [vmem:[#allocation4 + $0xd38] sm:$0xff] }
 0xb32   :  { %v7335_v50 = vrot.slane %v9639_v1, %v10149_v52 }
 0xb34   :  { %7835 = vmatpush1.bf16.msra.mxu0 %v7116_v48  ;;  %8007 = vmatpush1.bf16.msra.mxu1 %v7118_v37  ;;  %v7323_v48 = vrot.slane %v9634_v61, %v10146_v63  ;;  %v7331_v37 = vrot.slane %v9639_v1, %v10146_v63  ;;  %v7238_v1 = vld [vmem:[#allocation4 + $0xd70] sm:$0xff] }
 0xb35   :  { %7836 = vmatprep.subr.bf16.mxu0 %v7125_v22  ;;  %8008 = vmatprep.subr.bf16.mxu1 %v7127_v54  ;;  %v7327_v22 = vrot.slane %v9634_v61, %v10149_v52  ;;  %v7228_v54 = vld [vmem:[#allocation4 + $0xd20] sm:$0xff] }
 0xb36   :  { %v7236_v61 = vld [vmem:[#allocation4 + $0xd60] sm:$0xff] }
 0xb38   :  { %7837 = vmatpush1.bf16.msra.mxu0 %v7124_v3  ;;  %8009 = vmatpush1.bf16.msra.mxu1 %v7126_v9  ;;  %v7230_v3 = vld [vmem:[#allocation4 + $0xd30] sm:$0xff]  ;;  %v7237_v9 = vld [vmem:[#allocation4 + $0xd68] sm:$0xff] }
 0xb39   :  { %7838 = vmatprep.subr.bf16.mxu0 %v7133_v23  ;;  %8010 = vmatprep.subr.bf16.mxu1 %v7135_v16  ;;  %v7239_v23 = vld [vmem:[#allocation4 + $0xd78] sm:$0xff]  ;;  %v7363_v16 = vrot.slane %v7323_v48, %v10146_v63 }
 0xb3a   :  { %v7287_v48 = vld [vmem:[#allocation4 + $0xef8] sm:$0xff] }
 0xb3c   :  { %7839 = vmatpush1.bf16.msra.mxu0 %v7132_v17  ;;  %8011 = vmatpush1.bf16.msra.mxu1 %v7134_v36  ;;  %v7371_v17 = vrot.slane %v7331_v37, %v10146_v63  ;;  %v7367_v36 = vrot.slane %v7327_v22, %v10146_v63  ;;  %v7284_v37 = vld [vmem:[#allocation4 + $0xee0] sm:$0xff]  ;;  %v7286_v22 = vld [vmem:[#allocation4 + $0xef0] sm:$0xff] }
 0xb3d   :  { %7840 = vmatprep.subr.bf16.mxu0 %v7141_v33  ;;  %8012 = vmatprep.subr.bf16.mxu1 %v7143_v62  ;;  %v7375_v33 = vrot.slane %v7335_v50, %v10146_v63  ;;  %v7293_v50 = vld [vmem:[#allocation4 + $0xf28] sm:$0xff] }
 0xb40   :  { %7841 = vmatpush1.bf16.msra.mxu0 %v7140_v45  ;;  %8013 = vmatpush1.bf16.msra.mxu1 %v7142_v30  ;;  %v7245_v30 = vld [vmem:[#allocation4 + $0xda8] sm:$0xff] }
 0xb41   :  { %7842 = vmatprep.subr.bf16.mxu0 %v7149_v51  ;;  %8014 = vmatprep.subr.bf16.mxu1 %v7151_v41  ;;  %v7247_v51 = vld [vmem:[#allocation4 + $0xdb8] sm:$0xff] }
 0xb44   :  { %7843 = vmatpush1.bf16.msra.mxu0 %v7148_v44  ;;  %8015 = vmatpush1.bf16.msra.mxu1 %v7150_v53 }
 0xb45   :  { %7844 = vmatprep.subr.bf16.mxu0 %v7157_v26  ;;  %8016 = vmatprep.subr.bf16.mxu1 %v7159_v39 }
 0xb48   :  { %7845 = vmatpush1.bf16.msra.mxu0 %v7156_v40  ;;  %8017 = vmatpush1.bf16.msra.mxu1 %v7158_v31 }
 0xb49   :  { %7846 = vmatprep.subr.bf16.mxu0 %v7165_v56  ;;  %8018 = vmatprep.subr.bf16.mxu1 %v7167_v47 }
 0xb4c   :  { %7847 = vmatpush1.bf16.msra.mxu0 %v7164_v10  ;;  %8019 = vmatpush1.bf16.msra.mxu1 %v7166_v24 }
 0xb4d   :  { %7848 = vmatprep.subr.bf16.mxu0 %v7173_v6  ;;  %8020 = vmatprep.subr.bf16.mxu1 %v7175_v32 }
 0xb50   :  { %7849 = vmatpush1.bf16.msra.mxu0 %v7172_v59  ;;  %8021 = vmatpush1.bf16.msra.mxu1 %v7174_v20  ;;  %v7244_v20 = vld [vmem:[#allocation4 + $0xda0] sm:$0xff] }
 0xb51   :  { %7850 = vmatprep.subr.bf16.mxu0 %v7181_v14  ;;  %8022 = vmatprep.subr.bf16.mxu1 %v7183_v43  ;;  %v7246_v14 = vld [vmem:[#allocation4 + $0xdb0] sm:$0xff] }
 0xb54   :  { %7851 = vmatpush1.bf16.msra.mxu0 %v7180_v38  ;;  %8023 = vmatpush1.bf16.msra.mxu1 %v7182_v13 }
 0xb55   :  { %7852 = vmatprep.subr.bf16.mxu0 %v7189_v46  ;;  %8024 = vmatprep.subr.bf16.mxu1 %v7191_v60  ;;  %v7253_v60 = vld [vmem:[#allocation4 + $0xde8] sm:$0xff] }
 0xb58   :  { %7853 = vmatpush1.bf16.msra.mxu0 %v7188_v4  ;;  %8025 = vmatpush1.bf16.msra.mxu1 %v7190_v42  ;;  %v7255_v4 = vld [vmem:[#allocation4 + $0xdf8] sm:$0xff] }
 0xb59   :  { %7865 = vmatprep.subr.bf16.mxu0 %v7197_v12  ;;  %8037 = vmatprep.subr.bf16.mxu1 %v7199_v2 }
 0xb5b   :  { %7855 = vmatmul.mubr.bf16.vlgmr.msra.gmra.mrb[28].mxu0 %v10111_v34  ;;  %8027 = vmatmul.mubr.bf16.vlgmr.msra.gmra.mrb[28].mxu1 %v10111_v34  ;;  %v7223_v34 = vld [vmem:[#allocation4 + $0xcf8] sm:$0xff] }
 0xb5c   :  { %7866 = vmatpush1.bf16.msra.mxu0 %v7196_v11  ;;  %8038 = vmatpush1.bf16.msra.mxu1 %v7198_v27  ;;  %v7252_v27 = vld [vmem:[#allocation4 + $0xde0] sm:$0xff] }
 0xb5d   :  { %7867 = vmatprep.subr.bf16.mxu0 %v7205_v49  ;;  %8039 = vmatprep.subr.bf16.mxu1 %v7207_v7  ;;  %v7254_v49 = vld [vmem:[#allocation4 + $0xdf0] sm:$0xff]  ;;  %v7261_v7 = vld [vmem:[#allocation4 + $0xe28] sm:$0xff] }
 0xb5e   :  { %7897 = vmatprep.mubr.bf16.mxu0 %v10117_v8  ;;  %8069 = vmatprep.mubr.bf16.mxu1 %v10117_v8  ;;  %v7222_v8 = vld [vmem:[#allocation4 + $0xcf0] sm:$0xff] }
 0xb60   :  { %7868 = vmatpush1.bf16.msra.mxu0 %v7204_v35  ;;  %8040 = vmatpush1.bf16.msra.mxu1 %v7206_v55  ;;  %v7263_v35 = vld [vmem:[#allocation4 + $0xe38] sm:$0xff]  ;;  %v7260_v55 = vld [vmem:[#allocation4 + $0xe20] sm:$0xff] }
 0xb61   :  { %7869 = vmatprep.subr.bf16.mxu0 %v7213_v15  ;;  %8041 = vmatprep.subr.bf16.mxu1 %v7215_v19  ;;  %v7262_v15 = vld [vmem:[#allocation4 + $0xe30] sm:$0xff]  ;;  %v7269_v19 = vld [vmem:[#allocation4 + $0xe68] sm:$0xff] }
 0xb64   :  { %7870 = vmatpush1.bf16.msra.mxu0 %v7212_v58  ;;  %8042 = vmatpush1.bf16.msra.mxu1 %v7214_v25  ;;  %v7271_v58 = vld [vmem:[#allocation4 + $0xe78] sm:$0xff]  ;;  %v7268_v25 = vld [vmem:[#allocation4 + $0xe60] sm:$0xff] }
 0xb65   :  { %7871 = vmatprep.subr.bf16.mxu0 %v7221_v57  ;;  %8043 = vmatprep.subr.bf16.mxu1 %v7223_v34  ;;  %v7270_v57 = vld [vmem:[#allocation4 + $0xe70] sm:$0xff]  ;;  %v7277_v34 = vld [vmem:[#allocation4 + $0xea8] sm:$0xff] }
 0xb68   :  { %7872 = vmatpush1.bf16.msra.mxu0 %v7220_v5  ;;  %8044 = vmatpush1.bf16.msra.mxu1 %v7222_v8  ;;  %v7279_v5 = vld [vmem:[#allocation4 + $0xeb8] sm:$0xff]  ;;  %v7276_v8 = vld [vmem:[#allocation4 + $0xea0] sm:$0xff] }
 0xb69   :  { %7873 = vmatprep.subr.bf16.mxu0 %v7229_v21  ;;  %8045 = vmatprep.subr.bf16.mxu1 %v7231_v0  ;;  %v7278_v21 = vld [vmem:[#allocation4 + $0xeb0] sm:$0xff]  ;;  %v7285_v0 = vld [vmem:[#allocation4 + $0xee8] sm:$0xff] }
 0xb6c   :  { %7874 = vmatpush1.bf16.msra.mxu0 %v7228_v54  ;;  %8046 = vmatpush1.bf16.msra.mxu1 %v7230_v3  ;;  %v7295_v54 = vld [vmem:[#allocation4 + $0xf38] sm:$0xff]  ;;  %v7292_v3 = vld [vmem:[#allocation4 + $0xf20] sm:$0xff] }
 0xb6d   :  { %7875 = vmatprep.subr.bf16.mxu0 %v7237_v9  ;;  %8047 = vmatprep.subr.bf16.mxu1 %v7239_v23  ;;  %v7294_v9 = vld [vmem:[#allocation4 + $0xf30] sm:$0xff]  ;;  %v7301_v23 = vld [vmem:[#allocation4 + $0xf68] sm:$0xff] }
 0xb6e   :  { %v7555_v62 = vpop.f32.mrb[24].mxu0  ;;  %v7727_v45 = vpop.f32.mrb[24].mxu1 }
 0xb6f   :  { %v8723_v41 = vadd.f32 %v7555_v62, %v7363_v16  ;;  %v8727_v44 = vadd.f32 %v7727_v45, %v7371_v17  ;;  %v7557_v53 = vpop.f32.mrb[25].mxu0  ;;  %v7729_v26 = vpop.f32.mrb[25].mxu1  ;;  %v7310_v62 = vld [vmem:[#allocation4 + $0xfb0] sm:$0xff]  ;;  %v7317_v45 = vld [vmem:[#allocation4 + $0xfe8] sm:$0xff] }
 0xb70   :  { %v8724_v39 = vadd.f32 %v7557_v53, %v7367_v36  ;;  %v8728_v40 = vadd.f32 %v7729_v26, %v7375_v33  ;;  %v7559_v31 = vpop.f32.mrb[26].mxu0  ;;  %v7731_v56 = vpop.f32.mrb[26].mxu1  ;;  %7876 = vmatpush1.bf16.msra.mxu0 %v7236_v61  ;;  %8048 = vmatpush1.bf16.msra.mxu1 %v7238_v1  ;;  %v7311_v61 = vld [vmem:[#allocation4 + $0xfb8] sm:$0xff]  ;;  %v7308_v1 = vld [vmem:[#allocation4 + $0xfa0] sm:$0xff]  ;;  %v7347_v53 = vrot.slane %v9681_v29, %v10146_v63 }
 0xb71   :  { %v8080_v47 = vmax.f32 %v8723_v41, 0.0  ;;  %v8082_v10 = vmax.f32 %v8727_v44, 0.0  ;;  %v8725_v24 = vadd.f32 %v7559_v31, %v7363_v16  ;;  %v8729_v6 = vadd.f32 %v7731_v56, %v7371_v17  ;;  %v7561_v32 = vpop.f32.mrb[27].mxu0  ;;  %v7733_v59 = vpop.f32.mrb[27].mxu1  ;;  %7877 = vmatprep.subr.bf16.mxu0 %v7245_v30  ;;  %8049 = vmatprep.subr.bf16.mxu1 %v7247_v51  ;;  %v7303_v16 = vld [vmem:[#allocation4 + $0xf78] sm:$0xff]  ;;  %v7300_v17 = vld [vmem:[#allocation4 + $0xf60] sm:$0xff] }
 0xb72   :  { %v8081_v43 = vmax.f32 %v8724_v39, 0.0  ;;  %v8083_v38 = vmax.f32 %v8728_v40, 0.0  ;;  %v8726_v13 = vadd.f32 %v7561_v32, %v7367_v36  ;;  %v8730_v46 = vadd.f32 %v7733_v59, %v7375_v33  ;;  %v7302_v36 = vld [vmem:[#allocation4 + $0xf70] sm:$0xff]  ;;  %v7309_v33 = vld [vmem:[#allocation4 + $0xfa8] sm:$0xff]  ;;  %v7319_v30 = vld [vmem:[#allocation4 + $0xff8] sm:$0xff] }
 0xb73   :  { %8096 = vst [vmem:[#allocation23] sm:$0xff] %v8080_v47  ;;  %8098 = vst [vmem:[#allocation23 + $0x10] sm:$0xff] %v8082_v10  ;;  %v8088_v42 = vmax.f32 %v8725_v24, 0.0  ;;  %v8090_v12 = vmax.f32 %v8729_v6, 0.0  ;;  %v7316_v51 = vld [vmem:[#allocation4 + $0xfe0] sm:$0xff]  ;;  %v7318_v41 = vld [vmem:[#allocation4 + $0xff0] sm:$0xff]  ;;  %v7339_v44 = vrot.slane %v9679_v28, %v10146_v63  ;;  %v7343_v26 = vrot.slane %v9679_v28, %v10149_v52 }
 0xb74   :  { %8097 = vst [vmem:[#allocation23 + $0x8] sm:$0xff] %v8081_v43  ;;  %8099 = vst [vmem:[#allocation23 + $0x18] sm:$0xff] %v8083_v38  ;;  %v8089_v2 = vmax.f32 %v8726_v13, 0.0  ;;  %v8091_v11 = vmax.f32 %v8730_v46, 0.0  ;;  %7878 = vmatpush1.bf16.msra.mxu0 %v7244_v20  ;;  %8050 = vmatpush1.bf16.msra.mxu1 %v7246_v14  ;;  %v7351_v39 = vrot.slane %v9681_v29, %v10149_v52 }
 0xb75   :  { %8104 = vst [vmem:[#allocation23 + $0x40] sm:$0xff] %v8088_v42  ;;  %8106 = vst [vmem:[#allocation23 + $0x50] sm:$0xff] %v8090_v12  ;;  %7879 = vmatprep.subr.bf16.mxu0 %v7253_v60  ;;  %8051 = vmatprep.subr.bf16.mxu1 %v7255_v4  ;;  %v7379_v40 = vrot.slane %v7339_v44, %v10146_v63  ;;  %v7387_v31 = vrot.slane %v7347_v53, %v10146_v63 }
 0xb76   :  { %8105 = vst [vmem:[#allocation23 + $0x48] sm:$0xff] %v8089_v2  ;;  %8107 = vst [vmem:[#allocation23 + $0x58] sm:$0xff] %v8091_v11  ;;  %v7383_v56 = vrot.slane %v7343_v26, %v10146_v63 }
 0xb78   :  { %7880 = vmatpush1.bf16.msra.mxu0 %v7252_v27  ;;  %8052 = vmatpush1.bf16.msra.mxu1 %v7254_v49 }
 0xb79   :  { %7881 = vmatprep.subr.bf16.mxu0 %v7261_v7  ;;  %8053 = vmatprep.subr.bf16.mxu1 %v7263_v35 }
 0xb7c   :  { %7882 = vmatpush1.bf16.msra.mxu0 %v7260_v55  ;;  %8054 = vmatpush1.bf16.msra.mxu1 %v7262_v15 }
 0xb7d   :  { %7883 = vmatprep.subr.bf16.mxu0 %v7269_v19  ;;  %8055 = vmatprep.subr.bf16.mxu1 %v7271_v58 }
 0xb80   :  { %7884 = vmatpush1.bf16.msra.mxu0 %v7268_v25  ;;  %8056 = vmatpush1.bf16.msra.mxu1 %v7270_v57 }
 0xb81   :  { %7885 = vmatprep.subr.bf16.mxu0 %v7277_v34  ;;  %8057 = vmatprep.subr.bf16.mxu1 %v7279_v5 }
 0xb84   :  { %7886 = vmatpush1.bf16.msra.mxu0 %v7276_v8  ;;  %8058 = vmatpush1.bf16.msra.mxu1 %v7278_v21 }
 0xb85   :  { %7887 = vmatprep.subr.bf16.mxu0 %v7285_v0  ;;  %8059 = vmatprep.subr.bf16.mxu1 %v7287_v48 }
 0xb88   :  { %7888 = vmatpush1.bf16.msra.mxu0 %v7284_v37  ;;  %8060 = vmatpush1.bf16.msra.mxu1 %v7286_v22 }
 0xb89   :  { %7889 = vmatprep.subr.bf16.mxu0 %v7293_v50  ;;  %8061 = vmatprep.subr.bf16.mxu1 %v7295_v54 }
 0xb8c   :  { %7890 = vmatpush1.bf16.msra.mxu0 %v7292_v3  ;;  %8062 = vmatpush1.bf16.msra.mxu1 %v7294_v9 }
 0xb8d   :  { %7891 = vmatprep.subr.bf16.mxu0 %v7301_v23  ;;  %8063 = vmatprep.subr.bf16.mxu1 %v7303_v16 }
 0xb90   :  { %7892 = vmatpush1.bf16.msra.mxu0 %v7300_v17  ;;  %8064 = vmatpush1.bf16.msra.mxu1 %v7302_v36 }
 0xb91   :  { %7893 = vmatprep.subr.bf16.mxu0 %v7309_v33  ;;  %8065 = vmatprep.subr.bf16.mxu1 %v7311_v61 }
 0xb94   :  { %7894 = vmatpush1.bf16.msra.mxu0 %v7308_v1  ;;  %8066 = vmatpush1.bf16.msra.mxu1 %v7310_v62 }
 0xb95   :  { %7895 = vmatprep.subr.bf16.mxu0 %v7317_v45  ;;  %8067 = vmatprep.subr.bf16.mxu1 %v7319_v30 }
 0xb98   :  { %7896 = vmatpush1.bf16.msra.mxu0 %v7316_v51  ;;  %8068 = vmatpush1.bf16.msra.mxu1 %v7318_v41 }
 0xb9b   :  { %7898 = vmatmul.mubr.bf16.vlgmr.msra.gmra.mrb[28].mxu0 %v10127_v18  ;;  %8070 = vmatmul.mubr.bf16.vlgmr.msra.gmra.mrb[28].mxu1 %v10127_v18  ;;  %v7391_v18 = vrot.slane %v7351_v39, %v10146_v63 }
 0xc6e   :  { %v7899_v47 = vpop.f32.mrb[28].mxu0  ;;  %v8071_v10 = vpop.f32.mrb[28].mxu1 }
 0xc6f   :  { %v8731_v24 = vadd.f32 %v7899_v47, %v7379_v40  ;;  %v8735_v6 = vadd.f32 %v8071_v10, %v7387_v31  ;;  %v7901_v32 = vpop.f32.mrb[29].mxu0  ;;  %v8073_v59 = vpop.f32.mrb[29].mxu1 }
 0xc70   :  { %v8732_v20 = vadd.f32 %v7901_v32, %v7383_v56  ;;  %v8736_v14 = vadd.f32 %v8073_v59, %v7391_v18  ;;  %v7903_v28 = vpop.f32.mrb[30].mxu0  ;;  %v8075_v43 = vpop.f32.mrb[30].mxu1 }
 0xc71   :  { %v8084_v29 = vmax.f32 %v8731_v24, 0.0  ;;  %v8086_v52 = vmax.f32 %v8735_v6, 0.0  ;;  %v8733_v38 = vadd.f32 %v7903_v28, %v7379_v40  ;;  %v8737_v13 = vadd.f32 %v8075_v43, %v7387_v31  ;;  %v7905_v46 = vpop.f32.mrb[31].mxu0  ;;  %v8077_v60 = vpop.f32.mrb[31].mxu1 }
 0xc72   :  { %v8085_v4 = vmax.f32 %v8732_v20, 0.0  ;;  %v8087_v63 = vmax.f32 %v8736_v14, 0.0  ;;  %v8734_v42 = vadd.f32 %v7905_v46, %v7383_v56  ;;  %v8738_v12 = vadd.f32 %v8077_v60, %v7391_v18 }
 0xc73   :  { %8100 = vst [vmem:[#allocation23 + $0x20] sm:$0xff] %v8084_v29  ;;  %8102 = vst [vmem:[#allocation23 + $0x30] sm:$0xff] %v8086_v52  ;;  %v8092_v2 = vmax.f32 %v8733_v38, 0.0  ;;  %v8094_v11 = vmax.f32 %v8737_v13, 0.0 }
 0xc74   :  { %8101 = vst [vmem:[#allocation23 + $0x28] sm:$0xff] %v8085_v4  ;;  %8103 = vst [vmem:[#allocation23 + $0x38] sm:$0xff] %v8087_v63  ;;  %v8093_v27 = vmax.f32 %v8734_v42, 0.0  ;;  %v8095_v49 = vmax.f32 %v8738_v12, 0.0 }
 0xc75   :  { %8108 = vst [vmem:[#allocation23 + $0x60] sm:$0xff] %v8092_v2  ;;  %8110 = vst [vmem:[#allocation23 + $0x70] sm:$0xff] %v8094_v11 }
 0xc76   :  { %8109 = vst [vmem:[#allocation23 + $0x68] sm:$0xff] %v8093_v27  ;;  %8111 = vst [vmem:[#allocation23 + $0x78] sm:$0xff] %v8095_v49 }
 0xc77   :  { %9217 = shalt.err (!%p9214_p2)
}
 0xc78   :  { %s9218_s5 = scalar_lea.hbm %s10202_s13, 2048 }
 0xc79   :  { %p9219_p3 = scmp.ne.s32.totalorder %s10202_s13, %s9218_s5  ;;  %p9222_p4 = scmp.lt.u32.totalorder %s9218_s5, %s10202_s13 }
 0xc7b   :  { %p9224_p5 = pnand %p9222_p4, %p9219_p3 }
 0xc7d   :  { %9227 = shalt.err (!%p9224_p5)
}
 0xc7e   :  { %s9280_s20 = smov 1024   ;;  %s9281_s21 = smov 64  }
 0xc7f   :  { %8123 = dma.vmem_to_hbm [thread:$0]  %s8118_s23, 2048, %s10202_s13, [#allocation8], %s9280_s20, %s9280_s20, %s9281_s21  }
 0xc80   :  { %9246 = dma.done.wait [#allocation8], 2048  }
 0xc81   :  { %9247 = vsyncadd [#allocation8], 4294965248 }
 0xc82   :  { %8127 = vsyncpa [#allocation7], 1 }
 0xc83   :  { %8128 = vsyncpa [#allocation10], 1 }
 0xc84   :  { %8129 = vsyncpa [#allocation13], 1 }
 0xc85   :  { %8130 = vsyncpa [#allocation16], 1 }
 0xc86   :  { %8131 = vsyncpa [#allocation19], 1 }
 0xc87   :  { %8132 = vsyncpa [#allocation22], 1 }
 0xc88   :  { %8133 = vsyncpa [#allocation8], 1 }
 0xc89   :  { %8134 = vsyncmov [#allocation5] }
 0xc8c   :  { %s8135_s29 = vpop.sfrf %8134 }
 0xc8d   :  { %p8672_p6 = scmp.ne.s32.totalorder %s8135_s29, 0 }
 0xc8f   :  { %8139 = shalt.err (%p8672_p6)  }
 0xc90   :  { %8141 = vsyncmov [#allocation5 + $0x1] }
 0xc93   :  { %s8142_s1 = vpop.sfrf %8141 }
 0xc94   :  { %p8673_p7 = scmp.ne.s32.totalorder %s8142_s1, 0 }
 0xc96   :  { %8146 = shalt.err (%p8673_p7)  }
 0xc97   :  { %8148 = vsyncmov [#allocation5 + $0x2] }
 0xc9a   :  { %s8149_s15 = vpop.sfrf %8148 }
 0xc9b   :  { %p8674_p8 = scmp.ne.s32.totalorder %s8149_s15, 0 }
 0xc9d   :  { %8153 = shalt.err (%p8674_p8)  }

</bundles_post_ra>
